<compile_context>
chip_gen: v5e
topology: v5e:2x2
jax: 0.10.0
libtpu: 0.0.40
codegen_flags: <defaults>
</compile_context>

<pallas_src>
import numpy as np

import jax
import jax.numpy as jnp
from jax.experimental import pallas as pl
from jax.experimental.pallas import tpu as pltpu


_VMEM_LIMIT_BYTES = 40 * 1024 * 1024   # resident weights (~7.7 MiB, x2 buffers) + headroom

# Order in which packed parameters are passed to the kernel (must match kernel signature).
_PARAM_ORDER = (
    "enc1_w", "enc1_b", "enc2_w", "enc2_b", "enc3_w", "enc3_b", "enc4_w", "enc4_b",
    "mean_w", "mean_b", "logvar_w", "logvar_b",
    "dec1_w", "dec1_b", "dec2_w", "dec2_b", "dec3_w", "dec3_b", "dec4_w", "dec4_b",
)


# --------------------------------------------------------------------------- #
# The fused Pallas kernel: the whole VAE forward for one batch element.
# --------------------------------------------------------------------------- #
def _vae_kernel(x_ref, eps_ref,
                w1, b1, w2, b2, w3, b3, w4, b4,
                wm, bm, wv, bv,
                wd1, bd1, wd2, bd2, wd3, bd3, wd4, bd4,
                recon_ref, mean_ref, logvar_ref):
    """Entire SpatialVAE forward on one flattened NHWC image row.

    Every conv / transposed-conv layer has been pre-lowered (prepare_params) to a dense
    GEMM over the NHWC-flattened activation, so the body is a chain of MXU dots with
    fused bias + nonlinearity; all activations live in VMEM/vregs.
    """
    def gemm(a, w_ref, b_ref):
        return jnp.dot(a, w_ref[...], preferred_element_type=jnp.float32) + b_ref[...]

    def relu(v):
        return jnp.maximum(v, 0.0)

    x = x_ref[...]                                    # (1, H*W*Cin)
    # ---- Encoder: 4 x (Conv2d k=4 s=2 p=1 + ReLU) ----
    h = relu(gemm(x, w1, b1))
    h = relu(gemm(h, w2, b2))
    h = relu(gemm(h, w3, b3))
    h = relu(gemm(h, w4, b4))
    # ---- Heads (Conv2d k=3 s=1 p=1) + reparameterization ----
    mean = gemm(h, wm, bm)                            # (1, Hh*Wh*lat)
    logvar = gemm(h, wv, bv)
    z = mean + eps_ref[...] * jnp.exp(0.5 * logvar)
    # ---- Decoder: 4 x ConvTranspose2d k=4 s=2 p=1, ReLU / exact sigmoid ----
    d = relu(gemm(z, wd1, bd1))
    d = relu(gemm(d, wd2, bd2))
    d = relu(gemm(d, wd3, bd3))
    logits = gemm(d, wd4, bd4)
    recon_ref[...] = 1.0 / (1.0 + jnp.exp(-logits))   # exact sigmoid (review note)
    mean_ref[...] = mean
    logvar_ref[...] = logvar


def _vae_pallas_call(packed, x_flat, eps_flat):
    """grid=(batch,), 'parallel' so v7x can put one image per TensorCore."""
    n = x_flat.shape[0]
    f_in = x_flat.shape[2]
    f_eps = eps_flat.shape[2]
    f_rec = packed["dec4_w"].shape[1]
    f_lat = packed["mean_w"].shape[1]
    params = [packed[k] for k in _PARAM_ORDER]

    def row_spec(f):
        # Per-batch row block; leading batch dim is squeezed away -> kernel sees (1, f).
        return pl.BlockSpec((None, 1, f), lambda i: (i, 0, 0))

    def resident_spec(arr):
        # Full-array block with constant index map: fetched once, resident in VMEM.
        return pl.BlockSpec(arr.shape, lambda i: (0, 0))

    in_specs = [row_spec(f_in), row_spec(f_eps)] + [resident_spec(p) for p in params]
    out_specs = (row_spec(f_rec), row_spec(f_lat), row_spec(f_lat))
    out_shape = (
        jax.ShapeDtypeStruct((n, 1, f_rec), jnp.float32),
        jax.ShapeDtypeStruct((n, 1, f_lat), jnp.float32),
        jax.ShapeDtypeStruct((n, 1, f_lat), jnp.float32),
    )
    return pl.pallas_call(
        _vae_kernel,
        out_shape=out_shape,
        grid=(n,),
        in_specs=in_specs,
        out_specs=out_specs,
        compiler_params=pltpu.CompilerParams(
            dimension_semantics=("parallel",),
            vmem_limit_bytes=_VMEM_LIMIT_BYTES,
        ),
    )(x_flat, eps_flat, *params)


def spatial_vae_forward(packed, x_nchw, eps_nchw):
    """Public API: NCHW in / NCHW out; transposes only at the boundary."""
    n, cin, h, w = x_nchw.shape
    _, lat, hh, wh = eps_nchw.shape
    x_flat = jnp.transpose(x_nchw, (0, 2, 3, 1)).reshape(n, 1, h * w * cin)
    eps_flat = jnp.transpose(eps_nchw, (0, 2, 3, 1)).reshape(n, 1, hh * wh * lat)
    recon_flat, mean_flat, logvar_flat = _vae_pallas_call(packed, x_flat, eps_flat)
    out_ch = recon_flat.shape[2] // (h * w)
    recon = recon_flat.reshape(n, h, w, out_ch).transpose(0, 3, 1, 2)
    mean = mean_flat.reshape(n, hh, wh, lat).transpose(0, 3, 1, 2)
    log_var = logvar_flat.reshape(n, hh, wh, lat).transpose(0, 3, 1, 2)
    return recon, mean, log_var


# --------------------------------------------------------------------------- #
# One-time weight packing: PyTorch conv weights -> unfolded (Toeplitz) GEMM matrices.
# Column/row order is NHWC-flat: index = (y * W + x) * C + c.
# --------------------------------------------------------------------------- #
def _unfold_conv2d(w, b, h_in, w_in, stride, pad):
    """Conv2d (C_out, C_in, k, k) -> dense (h_in*w_in*C_in, h_out*w_out*C_out) matrix."""
    w = np.asarray(w, np.float32)
    b = np.asarray(b, np.float32)
    c_out, c_in, k, _ = w.shape
    h_out = (h_in + 2 * pad - k) // stride + 1
    w_out = (w_in + 2 * pad - k) // stride + 1
    wt = np.transpose(w, (2, 3, 1, 0))                     # (k, k, Cin, Cout)
    m = np.zeros((h_in * w_in * c_in, h_out * w_out * c_out), np.float32)
    for oy in range(h_out):
        for ox in range(w_out):
            col = (oy * w_out + ox) * c_out
            for ky in range(k):
                y = stride * oy + ky - pad
                if y < 0 or y >= h_in:
                    continue
                for kx in range(k):
                    x = stride * ox + kx - pad
                    if x < 0 or x >= w_in:
                        continue
                    row = (y * w_in + x) * c_in
                    m[row:row + c_in, col:col + c_out] += wt[ky, kx]
    bias = np.tile(b, h_out * w_out).reshape(1, h_out * w_out * c_out)
    return m, bias, h_out, w_out


def _unfold_conv_transpose2d(w, b, h_in, w_in, stride, pad):
    """ConvTranspose2d (C_in, C_out, k, k) -> dense unfolded matrix (oy = s*y + ky - p)."""
    w = np.asarray(w, np.float32)
    b = np.asarray(b, np.float32)
    c_in, c_out, k, _ = w.shape
    h_out = (h_in - 1) * stride - 2 * pad + k
    w_out = (w_in - 1) * stride - 2 * pad + k
    wt = np.transpose(w, (2, 3, 0, 1))                     # (k, k, Cin, Cout)
    m = np.zeros((h_in * w_in * c_in, h_out * w_out * c_out), np.float32)
    for y in range(h_in):
        for x in range(w_in):
            row = (y * w_in + x) * c_in
            for ky in range(k):
                oy = stride * y + ky - pad
                if oy < 0 or oy >= h_out:
                    continue
                for kx in range(k):
                    ox = stride * x + kx - pad
                    if ox < 0 or ox >= w_out:
                        continue
                    col = (oy * w_out + ox) * c_out
                    m[row:row + c_in, col:col + c_out] += wt[ky, kx]
    bias = np.tile(b, h_out * w_out).reshape(1, h_out * w_out * c_out)
    return m, bias, h_out, w_out


def prepare_params(raw, image_hw):
    """Pack raw PyTorch-layout parameters once; the forward never touches raw weights."""
    h, w = image_hw
    q = {}
    for i, name in enumerate(("conv1", "conv2", "conv3", "conv4"), start=1):
        m, bias, h, w = _unfold_conv2d(raw[name + "_w"], raw[name + "_b"], h, w, 2, 1)
        q[f"enc{i}_w"] = jnp.asarray(m)
        q[f"enc{i}_b"] = jnp.asarray(bias)
    m, bias, _, _ = _unfold_conv2d(raw["convm_w"], raw["convm_b"], h, w, 1, 1)
    q["mean_w"], q["mean_b"] = jnp.asarray(m), jnp.asarray(bias)
    m, bias, _, _ = _unfold_conv2d(raw["convv_w"], raw["convv_b"], h, w, 1, 1)
    q["logvar_w"], q["logvar_b"] = jnp.asarray(m), jnp.asarray(bias)
    for i, name in enumerate(("d1", "d2", "d3", "d4"), start=1):
        m, bias, h, w = _unfold_conv_transpose2d(raw[name + "_w"], raw[name + "_b"], h, w, 2, 1)
        q[f"dec{i}_w"] = jnp.asarray(m)
        q[f"dec{i}_b"] = jnp.asarray(bias)
    return q


# --------------------------------------------------------------------------- #
# Deterministic parameter init (PyTorch-style uniform bounds, raw layouts).
# `scale` inflates the bounds so activations stay O(1) through all 10 layers and the
# numerical self-check below is meaningful.
# --------------------------------------------------------------------------- #
def init_params(key, in_ch=3, hid=8, lat=4, out_ch=3, scale=3.0):
    def conv_init(k_, co, ci, ksz):
        kw, kb = jax.random.split(k_)
        bound = scale / float(ci * ksz * ksz) ** 0.5
        w = jax.random.uniform(kw, (co, ci, ksz, ksz), jnp.float32, -bound, bound)
        b = jax.random.uniform(kb, (co,), jnp.float32, -bound, bound)
        return w, b

    def deconv_init(k_, ci, co, ksz):
        kw, kb = jax.random.split(k_)
        bound = scale / float(co * ksz * ksz) ** 0.5
        w = jax.random.uniform(kw, (ci, co, ksz, ksz), jnp.float32, -bound, bound)
        b = jax.random.uniform(kb, (co,), jnp.float32, -bound, bound)
        return w, b

    ks = jax.random.split(key, 10)
    p = {}
    p["conv1_w"], p["conv1_b"] = conv_init(ks[0], hid, in_ch, 4)
    p["conv2_w"], p["conv2_b"] = conv_init(ks[1], hid * 2, hid, 4)
    p["conv3_w"], p["conv3_b"] = conv_init(ks[2], hid * 4, hid * 2, 4)
    p["conv4_w"], p["conv4_b"] = conv_init(ks[3], hid * 8, hid * 4, 4)
    p["convm_w"], p["convm_b"] = conv_init(ks[4], lat, hid * 8, 3)
    p["convv_w"], p["convv_b"] = conv_init(ks[5], lat, hid * 8, 3)
    p["d1_w"], p["d1_b"] = deconv_init(ks[6], lat, hid * 8, 4)
    p["d2_w"], p["d2_b"] = deconv_init(ks[7], hid * 8, hid * 4, 4)
    p["d3_w"], p["d3_b"] = deconv_init(ks[8], hid * 4, hid * 2, 4)
    p["d4_w"], p["d4_b"] = deconv_init(ks[9], hid * 2, out_ch, 4)
    return p


# --------------------------------------------------------------------------- #
# Pure NumPy reference (direct PyTorch semantics) for a one-off numerical self-check.
# --------------------------------------------------------------------------- #
def _np_conv2d(x, w, b, stride, pad):
    x = np.asarray(x, np.float32)
    w = np.asarray(w, np.float32)
    b = np.asarray(b, np.float32)
    n, cin, h, wd = x.shape
    cout, _, k, _ = w.shape
    ho = (h + 2 * pad - k) // stride + 1
    wo = (wd + 2 * pad - k) // stride + 1
    xp = np.zeros((n, cin, h + 2 * pad, wd + 2 * pad), np.float32)
    xp[:, :, pad:pad + h, pad:pad + wd] = x
    out = np.zeros((n, cout, ho, wo), np.float32)
    for oy in range(ho):
        for ox in range(wo):
            patch = xp[:, :, oy * stride:oy * stride + k, ox * stride:ox * stride + k]
            out[:, :, oy, ox] = np.tensordot(patch, w, axes=([1, 2, 3], [1, 2, 3]))
    return out + b.reshape(1, cout, 1, 1)


def _np_conv_transpose2d(x, w, b, stride, pad):
    x = np.asarray(x, np.float32)
    w = np.asarray(w, np.float32)
    b = np.asarray(b, np.float32)
    n, cin, h, wd = x.shape
    _, cout, k, _ = w.shape
    ho = (h - 1) * stride - 2 * pad + k
    wo = (wd - 1) * stride - 2 * pad + k
    full = np.zeros((n, cout, (h - 1) * stride + k, (wd - 1) * stride + k), np.float32)
    for y in range(h):
        for xx in range(wd):
            contrib = np.tensordot(x[:, :, y, xx], w, axes=([1], [0]))   # (n, cout, k, k)
            full[:, :, y * stride:y * stride + k, xx * stride:xx * stride + k] += contrib
    return full[:, :, pad:pad + ho, pad:pad + wo] + b.reshape(1, cout, 1, 1)


def reference_forward(raw, x, eps):
    relu = lambda v: np.maximum(v, 0.0)
    sigmoid = lambda v: 1.0 / (1.0 + np.exp(-v))
    h = relu(_np_conv2d(x, raw["conv1_w"], raw["conv1_b"], 2, 1))
    h = relu(_np_conv2d(h, raw["conv2_w"], raw["conv2_b"], 2, 1))
    h = relu(_np_conv2d(h, raw["conv3_w"], raw["conv3_b"], 2, 1))
    h = relu(_np_conv2d(h, raw["conv4_w"], raw["conv4_b"], 2, 1))
    mean = _np_conv2d(h, raw["convm_w"], raw["convm_b"], 1, 1)
    logvar = _np_conv2d(h, raw["convv_w"], raw["convv_b"], 1, 1)
    z = mean + eps * np.exp(0.5 * logvar)
    d = relu(_np_conv_transpose2d(z, raw["d1_w"], raw["d1_b"], 2, 1))
    d = relu(_np_conv_transpose2d(d, raw["d2_w"], raw["d2_b"], 2, 1))
    d = relu(_np_conv_transpose2d(d, raw["d3_w"], raw["d3_b"], 2, 1))
    recon = sigmoid(_np_conv_transpose2d(d, raw["d4_w"], raw["d4_b"], 2, 1))
    return recon, mean, logvar


if __name__ == "__main__":
    key = jax.random.PRNGKey(0)
    k_param, k_x, k_eps = jax.random.split(key, 3)

    # Small shapes consistent with the module: batch=2, in_channels=3, 16x16 image,
    # hidden_channels=8, latent_channels=4.  Encoder: 16->8->4->2->1; Decoder: 1->...->16.
    batch, in_ch, H, W = 2, 3, 16, 16
    hid, lat, out_ch = 8, 4, 3

    raw_params = init_params(k_param, in_ch=in_ch, hid=hid, lat=lat, out_ch=out_ch)
    packed_params = prepare_params(raw_params, (H, W))     # one-time unfolding to GEMMs
    x = jax.random.normal(k_x, (batch, in_ch, H, W), jnp.float32)
    eps = jax.random.normal(k_eps, (batch, lat, H // 16, W // 16), jnp.float32)

    fwd = jax.jit(spatial_vae_forward)
    recon, mean, log_var = fwd(packed_params, x, eps)
    jax.block_until_ready((recon, mean, log_var))

    assert recon.shape == (batch, out_ch, H, W)
    assert mean.shape == (batch, lat, H // 16, W // 16)
    assert log_var.shape == (batch, lat, H // 16, W // 16)

    # One-off numerical check of the fused kernel + unfolded weights against a direct
    # NumPy implementation of the PyTorch module (addresses the review's deconv concern).
    ref_recon, ref_mean, ref_logvar = reference_forward(raw_params, np.asarray(x), np.asarray(eps))
    assert np.allclose(np.asarray(recon), ref_recon, rtol=5e-2, atol=1e-2), \
        f"recon mismatch, max abs diff {np.max(np.abs(np.asarray(recon) - ref_recon))}"
    assert np.allclose(np.asarray(mean), ref_mean, rtol=5e-2, atol=1e-2), \
        f"mean mismatch, max abs diff {np.max(np.abs(np.asarray(mean) - ref_mean))}"
    assert np.allclose(np.asarray(log_var), ref_logvar, rtol=5e-2, atol=1e-2), \
        f"log_var mismatch, max abs diff {np.max(np.abs(np.asarray(log_var) - ref_logvar))}"

    print("KERNEL_OK")
</pallas_src>

<mosaic_0001>
module attributes {stable_mosaic.version = 11 : i64} {
  func.func @_vae_kernel(%arg0: i32, %arg1: memref<1x1x768xf32, #tpu.memory_space<vmem>>, %arg2: memref<1x1x4xf32, #tpu.memory_space<vmem>>, %arg3: memref<768x512xf32, #tpu.memory_space<vmem>>, %arg4: memref<1x512xf32, #tpu.memory_space<vmem>>, %arg5: memref<512x256xf32, #tpu.memory_space<vmem>>, %arg6: memref<1x256xf32, #tpu.memory_space<vmem>>, %arg7: memref<256x128xf32, #tpu.memory_space<vmem>>, %arg8: memref<1x128xf32, #tpu.memory_space<vmem>>, %arg9: memref<128x64xf32, #tpu.memory_space<vmem>>, %arg10: memref<1x64xf32, #tpu.memory_space<vmem>>, %arg11: memref<64x4xf32, #tpu.memory_space<vmem>>, %arg12: memref<1x4xf32, #tpu.memory_space<vmem>>, %arg13: memref<64x4xf32, #tpu.memory_space<vmem>>, %arg14: memref<1x4xf32, #tpu.memory_space<vmem>>, %arg15: memref<4x256xf32, #tpu.memory_space<vmem>>, %arg16: memref<1x256xf32, #tpu.memory_space<vmem>>, %arg17: memref<256x512xf32, #tpu.memory_space<vmem>>, %arg18: memref<1x512xf32, #tpu.memory_space<vmem>>, %arg19: memref<512x1024xf32, #tpu.memory_space<vmem>>, %arg20: memref<1x1024xf32, #tpu.memory_space<vmem>>, %arg21: memref<1024x768xf32, #tpu.memory_space<vmem>>, %arg22: memref<1x768xf32, #tpu.memory_space<vmem>>, %arg23: memref<1x1x768xf32, #tpu.memory_space<vmem>>, %arg24: memref<1x1x4xf32, #tpu.memory_space<vmem>>, %arg25: memref<1x1x4xf32, #tpu.memory_space<vmem>>) attributes {dimension_semantics = [#tpu.dimension_semantics<parallel>], iteration_bounds = array<i64: 2>, scalar_prefetch = 0 : i64, scratch_operands = 0 : i64, tpu.core_type = #tpu.core_type<tc>, window_params = [{transform_indices = @transform_0, window_bounds = array<i64: 1, 1, 768>}, {transform_indices = @transform_1, window_bounds = array<i64: 1, 1, 4>}, {pipeline_mode = #tpu.pipeline_mode<synchronous>, transform_indices = @transform_2, window_bounds = array<i64: 768, 512>}, {pipeline_mode = #tpu.pipeline_mode<synchronous>, transform_indices = @transform_3, window_bounds = array<i64: 1, 512>}, {pipeline_mode = #tpu.pipeline_mode<synchronous>, transform_indices = @transform_4, window_bounds = array<i64: 512, 256>}, {pipeline_mode = #tpu.pipeline_mode<synchronous>, transform_indices = @transform_5, window_bounds = array<i64: 1, 256>}, {pipeline_mode = #tpu.pipeline_mode<synchronous>, transform_indices = @transform_6, window_bounds = array<i64: 256, 128>}, {pipeline_mode = #tpu.pipeline_mode<synchronous>, transform_indices = @transform_7, window_bounds = array<i64: 1, 128>}, {pipeline_mode = #tpu.pipeline_mode<synchronous>, transform_indices = @transform_8, window_bounds = array<i64: 128, 64>}, {pipeline_mode = #tpu.pipeline_mode<synchronous>, transform_indices = @transform_9, window_bounds = array<i64: 1, 64>}, {pipeline_mode = #tpu.pipeline_mode<synchronous>, transform_indices = @transform_10, window_bounds = array<i64: 64, 4>}, {pipeline_mode = #tpu.pipeline_mode<synchronous>, transform_indices = @transform_11, window_bounds = array<i64: 1, 4>}, {pipeline_mode = #tpu.pipeline_mode<synchronous>, transform_indices = @transform_12, window_bounds = array<i64: 64, 4>}, {pipeline_mode = #tpu.pipeline_mode<synchronous>, transform_indices = @transform_13, window_bounds = array<i64: 1, 4>}, {pipeline_mode = #tpu.pipeline_mode<synchronous>, transform_indices = @transform_14, window_bounds = array<i64: 4, 256>}, {pipeline_mode = #tpu.pipeline_mode<synchronous>, transform_indices = @transform_15, window_bounds = array<i64: 1, 256>}, {pipeline_mode = #tpu.pipeline_mode<synchronous>, transform_indices = @transform_16, window_bounds = array<i64: 256, 512>}, {pipeline_mode = #tpu.pipeline_mode<synchronous>, transform_indices = @transform_17, window_bounds = array<i64: 1, 512>}, {pipeline_mode = #tpu.pipeline_mode<synchronous>, transform_indices = @transform_18, window_bounds = array<i64: 512, 1024>}, {pipeline_mode = #tpu.pipeline_mode<synchronous>, transform_indices = @transform_19, window_bounds = array<i64: 1, 1024>}, {pipeline_mode = #tpu.pipeline_mode<synchronous>, transform_indices = @transform_20, window_bounds = array<i64: 1024, 768>}, {pipeline_mode = #tpu.pipeline_mode<synchronous>, transform_indices = @transform_21, window_bounds = array<i64: 1, 768>}, {transform_indices = @transform_22, window_bounds = array<i64: 1, 1, 768>}, {transform_indices = @transform_23, window_bounds = array<i64: 1, 1, 4>}, {transform_indices = @transform_24, window_bounds = array<i64: 1, 1, 4>}]} {
    %c0 = arith.constant 0 : index
    %c0_0 = arith.constant 0 : index
    %c0_1 = arith.constant 0 : index
    %0 = vector.load %arg1[%c0, %c0_0, %c0_1] : memref<1x1x768xf32, #tpu.memory_space<vmem>>, vector<1x1x768xf32>
    %1 = vector.shape_cast %0 : vector<1x1x768xf32> to vector<1x768xf32>
    %c0_2 = arith.constant 0 : index
    %c0_3 = arith.constant 0 : index
    %2 = vector.load %arg3[%c0_2, %c0_3] : memref<768x512xf32, #tpu.memory_space<vmem>>, vector<768x512xf32>
    %cst = arith.constant dense<0.000000e+00> : vector<1x512xf32>
    %3 = tpu.matmul %1, %2, %cst {dimension_numbers = #tpu.dot_dimension_numbers<[1], [0], [0], [1], [0, 0, 1, 1], [], []>} : vector<1x768xf32>, vector<768x512xf32>, vector<1x512xf32> -> vector<1x512xf32>
    %c0_4 = arith.constant 0 : index
    %c0_5 = arith.constant 0 : index
    %4 = vector.load %arg4[%c0_4, %c0_5] : memref<1x512xf32, #tpu.memory_space<vmem>>, vector<1x512xf32>
    %5 = arith.addf %3, %4 : vector<1x512xf32>
    %cst_6 = arith.constant 0.000000e+00 : f32
    %6 = vector.broadcast %cst_6 : f32 to vector<1x512xf32>
    %7 = arith.maximumf %5, %6 : vector<1x512xf32>
    %c0_7 = arith.constant 0 : index
    %c0_8 = arith.constant 0 : index
    %8 = vector.load %arg5[%c0_7, %c0_8] : memref<512x256xf32, #tpu.memory_space<vmem>>, vector<512x256xf32>
    %cst_9 = arith.constant dense<0.000000e+00> : vector<1x256xf32>
    %9 = tpu.matmul %7, %8, %cst_9 {dimension_numbers = #tpu.dot_dimension_numbers<[1], [0], [0], [1], [0, 0, 1, 1], [], []>} : vector<1x512xf32>, vector<512x256xf32>, vector<1x256xf32> -> vector<1x256xf32>
    %c0_10 = arith.constant 0 : index
    %c0_11 = arith.constant 0 : index
    %10 = vector.load %arg6[%c0_10, %c0_11] : memref<1x256xf32, #tpu.memory_space<vmem>>, vector<1x256xf32>
    %11 = arith.addf %9, %10 : vector<1x256xf32>
    %cst_12 = arith.constant 0.000000e+00 : f32
    %12 = vector.broadcast %cst_12 : f32 to vector<1x256xf32>
    %13 = arith.maximumf %11, %12 : vector<1x256xf32>
    %c0_13 = arith.constant 0 : index
    %c0_14 = arith.constant 0 : index
    %14 = vector.load %arg7[%c0_13, %c0_14] : memref<256x128xf32, #tpu.memory_space<vmem>>, vector<256x128xf32>
    %cst_15 = arith.constant dense<0.000000e+00> : vector<1x128xf32>
    %15 = tpu.matmul %13, %14, %cst_15 {dimension_numbers = #tpu.dot_dimension_numbers<[1], [0], [0], [1], [0, 0, 1, 1], [], []>} : vector<1x256xf32>, vector<256x128xf32>, vector<1x128xf32> -> vector<1x128xf32>
    %c0_16 = arith.constant 0 : index
    %c0_17 = arith.constant 0 : index
    %16 = vector.load %arg8[%c0_16, %c0_17] : memref<1x128xf32, #tpu.memory_space<vmem>>, vector<1x128xf32>
    %17 = arith.addf %15, %16 : vector<1x128xf32>
    %cst_18 = arith.constant 0.000000e+00 : f32
    %18 = vector.broadcast %cst_18 : f32 to vector<1x128xf32>
    %19 = arith.maximumf %17, %18 : vector<1x128xf32>
    %c0_19 = arith.constant 0 : index
    %c0_20 = arith.constant 0 : index
    %20 = vector.load %arg9[%c0_19, %c0_20] : memref<128x64xf32, #tpu.memory_space<vmem>>, vector<128x64xf32>
    %cst_21 = arith.constant dense<0.000000e+00> : vector<1x64xf32>
    %21 = tpu.matmul %19, %20, %cst_21 {dimension_numbers = #tpu.dot_dimension_numbers<[1], [0], [0], [1], [0, 0, 1, 1], [], []>} : vector<1x128xf32>, vector<128x64xf32>, vector<1x64xf32> -> vector<1x64xf32>
    %c0_22 = arith.constant 0 : index
    %c0_23 = arith.constant 0 : index
    %22 = vector.load %arg10[%c0_22, %c0_23] : memref<1x64xf32, #tpu.memory_space<vmem>>, vector<1x64xf32>
    %23 = arith.addf %21, %22 : vector<1x64xf32>
    %cst_24 = arith.constant 0.000000e+00 : f32
    %24 = vector.broadcast %cst_24 : f32 to vector<1x64xf32>
    %25 = arith.maximumf %23, %24 : vector<1x64xf32>
    %c0_25 = arith.constant 0 : index
    %c0_26 = arith.constant 0 : index
    %26 = vector.load %arg11[%c0_25, %c0_26] : memref<64x4xf32, #tpu.memory_space<vmem>>, vector<64x4xf32>
    %cst_27 = arith.constant dense<0.000000e+00> : vector<1x4xf32>
    %27 = tpu.matmul %25, %26, %cst_27 {dimension_numbers = #tpu.dot_dimension_numbers<[1], [0], [0], [1], [0, 0, 1, 1], [], []>} : vector<1x64xf32>, vector<64x4xf32>, vector<1x4xf32> -> vector<1x4xf32>
    %c0_28 = arith.constant 0 : index
    %c0_29 = arith.constant 0 : index
    %28 = vector.load %arg12[%c0_28, %c0_29] : memref<1x4xf32, #tpu.memory_space<vmem>>, vector<1x4xf32>
    %29 = arith.addf %27, %28 : vector<1x4xf32>
    %c0_30 = arith.constant 0 : index
    %c0_31 = arith.constant 0 : index
    %30 = vector.load %arg13[%c0_30, %c0_31] : memref<64x4xf32, #tpu.memory_space<vmem>>, vector<64x4xf32>
    %cst_32 = arith.constant dense<0.000000e+00> : vector<1x4xf32>
    %31 = tpu.matmul %25, %30, %cst_32 {dimension_numbers = #tpu.dot_dimension_numbers<[1], [0], [0], [1], [0, 0, 1, 1], [], []>} : vector<1x64xf32>, vector<64x4xf32>, vector<1x4xf32> -> vector<1x4xf32>
    %c0_33 = arith.constant 0 : index
    %c0_34 = arith.constant 0 : index
    %32 = vector.load %arg14[%c0_33, %c0_34] : memref<1x4xf32, #tpu.memory_space<vmem>>, vector<1x4xf32>
    %33 = arith.addf %31, %32 : vector<1x4xf32>
    %c0_35 = arith.constant 0 : index
    %c0_36 = arith.constant 0 : index
    %c0_37 = arith.constant 0 : index
    %34 = vector.load %arg2[%c0_35, %c0_36, %c0_37] : memref<1x1x4xf32, #tpu.memory_space<vmem>>, vector<1x1x4xf32>
    %35 = vector.shape_cast %34 : vector<1x1x4xf32> to vector<1x4xf32>
    %cst_38 = arith.constant 5.000000e-01 : f32
    %36 = vector.broadcast %cst_38 : f32 to vector<1x4xf32>
    %37 = arith.mulf %36, %33 : vector<1x4xf32>
    %38 = math.exp %37 : vector<1x4xf32>
    %39 = arith.mulf %35, %38 : vector<1x4xf32>
    %40 = arith.addf %29, %39 : vector<1x4xf32>
    %c0_39 = arith.constant 0 : index
    %c0_40 = arith.constant 0 : index
    %41 = vector.load %arg15[%c0_39, %c0_40] : memref<4x256xf32, #tpu.memory_space<vmem>>, vector<4x256xf32>
    %cst_41 = arith.constant dense<0.000000e+00> : vector<1x256xf32>
    %42 = tpu.matmul %40, %41, %cst_41 {dimension_numbers = #tpu.dot_dimension_numbers<[1], [0], [0], [1], [0, 0, 1, 1], [], []>} : vector<1x4xf32>, vector<4x256xf32>, vector<1x256xf32> -> vector<1x256xf32>
    %c0_42 = arith.constant 0 : index
    %c0_43 = arith.constant 0 : index
    %43 = vector.load %arg16[%c0_42, %c0_43] : memref<1x256xf32, #tpu.memory_space<vmem>>, vector<1x256xf32>
    %44 = arith.addf %42, %43 : vector<1x256xf32>
    %cst_44 = arith.constant 0.000000e+00 : f32
    %45 = vector.broadcast %cst_44 : f32 to vector<1x256xf32>
    %46 = arith.maximumf %44, %45 : vector<1x256xf32>
    %c0_45 = arith.constant 0 : index
    %c0_46 = arith.constant 0 : index
    %47 = vector.load %arg17[%c0_45, %c0_46] : memref<256x512xf32, #tpu.memory_space<vmem>>, vector<256x512xf32>
    %cst_47 = arith.constant dense<0.000000e+00> : vector<1x512xf32>
    %48 = tpu.matmul %46, %47, %cst_47 {dimension_numbers = #tpu.dot_dimension_numbers<[1], [0], [0], [1], [0, 0, 1, 1], [], []>} : vector<1x256xf32>, vector<256x512xf32>, vector<1x512xf32> -> vector<1x512xf32>
    %c0_48 = arith.constant 0 : index
    %c0_49 = arith.constant 0 : index
    %49 = vector.load %arg18[%c0_48, %c0_49] : memref<1x512xf32, #tpu.memory_space<vmem>>, vector<1x512xf32>
    %50 = arith.addf %48, %49 : vector<1x512xf32>
    %cst_50 = arith.constant 0.000000e+00 : f32
    %51 = vector.broadcast %cst_50 : f32 to vector<1x512xf32>
    %52 = arith.maximumf %50, %51 : vector<1x512xf32>
    %c0_51 = arith.constant 0 : index
    %c0_52 = arith.constant 0 : index
    %53 = vector.load %arg19[%c0_51, %c0_52] : memref<512x1024xf32, #tpu.memory_space<vmem>>, vector<512x1024xf32>
    %cst_53 = arith.constant dense<0.000000e+00> : vector<1x1024xf32>
    %54 = tpu.matmul %52, %53, %cst_53 {dimension_numbers = #tpu.dot_dimension_numbers<[1], [0], [0], [1], [0, 0, 1, 1], [], []>} : vector<1x512xf32>, vector<512x1024xf32>, vector<1x1024xf32> -> vector<1x1024xf32>
    %c0_54 = arith.constant 0 : index
    %c0_55 = arith.constant 0 : index
    %55 = vector.load %arg20[%c0_54, %c0_55] : memref<1x1024xf32, #tpu.memory_space<vmem>>, vector<1x1024xf32>
    %56 = arith.addf %54, %55 : vector<1x1024xf32>
    %cst_56 = arith.constant 0.000000e+00 : f32
    %57 = vector.broadcast %cst_56 : f32 to vector<1x1024xf32>
    %58 = arith.maximumf %56, %57 : vector<1x1024xf32>
    %c0_57 = arith.constant 0 : index
    %c0_58 = arith.constant 0 : index
    %59 = vector.load %arg21[%c0_57, %c0_58] : memref<1024x768xf32, #tpu.memory_space<vmem>>, vector<1024x768xf32>
    %cst_59 = arith.constant dense<0.000000e+00> : vector<1x768xf32>
    %60 = tpu.matmul %58, %59, %cst_59 {dimension_numbers = #tpu.dot_dimension_numbers<[1], [0], [0], [1], [0, 0, 1, 1], [], []>} : vector<1x1024xf32>, vector<1024x768xf32>, vector<1x768xf32> -> vector<1x768xf32>
    %c0_60 = arith.constant 0 : index
    %c0_61 = arith.constant 0 : index
    %61 = vector.load %arg22[%c0_60, %c0_61] : memref<1x768xf32, #tpu.memory_space<vmem>>, vector<1x768xf32>
    %62 = arith.addf %60, %61 : vector<1x768xf32>
    %cst_62 = arith.constant 0.000000e+00 : f32
    %63 = vector.broadcast %cst_62 : f32 to vector<1x768xf32>
    %64 = arith.subf %63, %62 : vector<1x768xf32>
    %65 = math.exp %64 : vector<1x768xf32>
    %cst_63 = arith.constant 1.000000e+00 : f32
    %66 = vector.broadcast %cst_63 : f32 to vector<1x768xf32>
    %67 = arith.addf %66, %65 : vector<1x768xf32>
    %cst_64 = arith.constant 1.000000e+00 : f32
    %68 = vector.broadcast %cst_64 : f32 to vector<1x768xf32>
    %69 = arith.divf %68, %67 : vector<1x768xf32>
    %c0_65 = arith.constant 0 : index
    %c0_66 = arith.constant 0 : index
    %c0_67 = arith.constant 0 : index
    %70 = vector.load %arg23[%c0_65, %c0_66, %c0_67] : memref<1x1x768xf32, #tpu.memory_space<vmem>>, vector<1x1x768xf32>
    %71 = vector.shape_cast %70 : vector<1x1x768xf32> to vector<1x768xf32>
    %72 = vector.shape_cast %69 : vector<1x768xf32> to vector<1x1x768xf32>
    tpu.vector_store %arg23[%c0_65, %c0_66, %c0_67], %72 {strides = array<i32>} : memref<1x1x768xf32, #tpu.memory_space<vmem>>, vector<1x1x768xf32>,
    %c0_68 = arith.constant 0 : index
    %c0_69 = arith.constant 0 : index
    %c0_70 = arith.constant 0 : index
    %73 = vector.load %arg24[%c0_68, %c0_69, %c0_70] : memref<1x1x4xf32, #tpu.memory_space<vmem>>, vector<1x1x4xf32>
    %74 = vector.shape_cast %73 : vector<1x1x4xf32> to vector<1x4xf32>
    %75 = vector.shape_cast %29 : vector<1x4xf32> to vector<1x1x4xf32>
    tpu.vector_store %arg24[%c0_68, %c0_69, %c0_70], %75 {strides = array<i32>} : memref<1x1x4xf32, #tpu.memory_space<vmem>>, vector<1x1x4xf32>,
    %c0_71 = arith.constant 0 : index
    %c0_72 = arith.constant 0 : index
    %c0_73 = arith.constant 0 : index
    %76 = vector.load %arg25[%c0_71, %c0_72, %c0_73] : memref<1x1x4xf32, #tpu.memory_space<vmem>>, vector<1x1x4xf32>
    %77 = vector.shape_cast %76 : vector<1x1x4xf32> to vector<1x4xf32>
    %78 = vector.shape_cast %33 : vector<1x4xf32> to vector<1x1x4xf32>
    tpu.vector_store %arg25[%c0_71, %c0_72, %c0_73], %78 {strides = array<i32>} : memref<1x1x4xf32, #tpu.memory_space<vmem>>, vector<1x1x4xf32>,
    return
  }
  func.func @transform_0(%arg0: i32) -> (i32, i32, i32) {
    %c0_i32 = arith.constant 0 : i32
    %c0_i32_0 = arith.constant 0 : i32
    %c0_i32_1 = arith.constant 0 : i32
    return %arg0, %c0_i32, %c0_i32_0 : i32, i32, i32
  }
  func.func @transform_1(%arg0: i32) -> (i32, i32, i32) {
    %c0_i32 = arith.constant 0 : i32
    %c0_i32_0 = arith.constant 0 : i32
    %c0_i32_1 = arith.constant 0 : i32
    return %arg0, %c0_i32, %c0_i32_0 : i32, i32, i32
  }
  func.func @transform_2(%arg0: i32) -> (i32, i32) {
    %c0_i32 = arith.constant 0 : i32
    %c0_i32_0 = arith.constant 0 : i32
    %c0_i32_1 = arith.constant 0 : i32
    return %c0_i32, %c0_i32_0 : i32, i32
  }
  func.func @transform_3(%arg0: i32) -> (i32, i32) {
    %c0_i32 = arith.constant 0 : i32
    %c0_i32_0 = arith.constant 0 : i32
    %c0_i32_1 = arith.constant 0 : i32
    return %c0_i32, %c0_i32_0 : i32, i32
  }
  func.func @transform_4(%arg0: i32) -> (i32, i32) {
    %c0_i32 = arith.constant 0 : i32
    %c0_i32_0 = arith.constant 0 : i32
    %c0_i32_1 = arith.constant 0 : i32
    return %c0_i32, %c0_i32_0 : i32, i32
  }
  func.func @transform_5(%arg0: i32) -> (i32, i32) {
    %c0_i32 = arith.constant 0 : i32
    %c0_i32_0 = arith.constant 0 : i32
    %c0_i32_1 = arith.constant 0 : i32
    return %c0_i32, %c0_i32_0 : i32, i32
  }
  func.func @transform_6(%arg0: i32) -> (i32, i32) {
    %c0_i32 = arith.constant 0 : i32
    %c0_i32_0 = arith.constant 0 : i32
    %c0_i32_1 = arith.constant 0 : i32
    return %c0_i32, %c0_i32_0 : i32, i32
  }
  func.func @transform_7(%arg0: i32) -> (i32, i32) {
    %c0_i32 = arith.constant 0 : i32
    %c0_i32_0 = arith.constant 0 : i32
    %c0_i32_1 = arith.constant 0 : i32
    return %c0_i32, %c0_i32_0 : i32, i32
  }
  func.func @transform_8(%arg0: i32) -> (i32, i32) {
    %c0_i32 = arith.constant 0 : i32
    %c0_i32_0 = arith.constant 0 : i32
    %c0_i32_1 = arith.constant 0 : i32
    return %c0_i32, %c0_i32_0 : i32, i32
  }
  func.func @transform_9(%arg0: i32) -> (i32, i32) {
    %c0_i32 = arith.constant 0 : i32
    %c0_i32_0 = arith.constant 0 : i32
    %c0_i32_1 = arith.constant 0 : i32
    return %c0_i32, %c0_i32_0 : i32, i32
  }
  func.func @transform_10(%arg0: i32) -> (i32, i32) {
    %c0_i32 = arith.constant 0 : i32
    %c0_i32_0 = arith.constant 0 : i32
    %c0_i32_1 = arith.constant 0 : i32
    return %c0_i32, %c0_i32_0 : i32, i32
  }
  func.func @transform_11(%arg0: i32) -> (i32, i32) {
    %c0_i32 = arith.constant 0 : i32
    %c0_i32_0 = arith.constant 0 : i32
    %c0_i32_1 = arith.constant 0 : i32
    return %c0_i32, %c0_i32_0 : i32, i32
  }
  func.func @transform_12(%arg0: i32) -> (i32, i32) {
    %c0_i32 = arith.constant 0 : i32
    %c0_i32_0 = arith.constant 0 : i32
    %c0_i32_1 = arith.constant 0 : i32
    return %c0_i32, %c0_i32_0 : i32, i32
  }
  func.func @transform_13(%arg0: i32) -> (i32, i32) {
    %c0_i32 = arith.constant 0 : i32
    %c0_i32_0 = arith.constant 0 : i32
    %c0_i32_1 = arith.constant 0 : i32
    return %c0_i32, %c0_i32_0 : i32, i32
  }
  func.func @transform_14(%arg0: i32) -> (i32, i32) {
    %c0_i32 = arith.constant 0 : i32
    %c0_i32_0 = arith.constant 0 : i32
    %c0_i32_1 = arith.constant 0 : i32
    return %c0_i32, %c0_i32_0 : i32, i32
  }
  func.func @transform_15(%arg0: i32) -> (i32, i32) {
    %c0_i32 = arith.constant 0 : i32
    %c0_i32_0 = arith.constant 0 : i32
    %c0_i32_1 = arith.constant 0 : i32
    return %c0_i32, %c0_i32_0 : i32, i32
  }
  func.func @transform_16(%arg0: i32) -> (i32, i32) {
    %c0_i32 = arith.constant 0 : i32
    %c0_i32_0 = arith.constant 0 : i32
    %c0_i32_1 = arith.constant 0 : i32
    return %c0_i32, %c0_i32_0 : i32, i32
  }
  func.func @transform_17(%arg0: i32) -> (i32, i32) {
    %c0_i32 = arith.constant 0 : i32
    %c0_i32_0 = arith.constant 0 : i32
    %c0_i32_1 = arith.constant 0 : i32
    return %c0_i32, %c0_i32_0 : i32, i32
  }
  func.func @transform_18(%arg0: i32) -> (i32, i32) {
    %c0_i32 = arith.constant 0 : i32
    %c0_i32_0 = arith.constant 0 : i32
    %c0_i32_1 = arith.constant 0 : i32
    return %c0_i32, %c0_i32_0 : i32, i32
  }
  func.func @transform_19(%arg0: i32) -> (i32, i32) {
    %c0_i32 = arith.constant 0 : i32
    %c0_i32_0 = arith.constant 0 : i32
    %c0_i32_1 = arith.constant 0 : i32
    return %c0_i32, %c0_i32_0 : i32, i32
  }
  func.func @transform_20(%arg0: i32) -> (i32, i32) {
    %c0_i32 = arith.constant 0 : i32
    %c0_i32_0 = arith.constant 0 : i32
    %c0_i32_1 = arith.constant 0 : i32
    return %c0_i32, %c0_i32_0 : i32, i32
  }
  func.func @transform_21(%arg0: i32) -> (i32, i32) {
    %c0_i32 = arith.constant 0 : i32
    %c0_i32_0 = arith.constant 0 : i32
    %c0_i32_1 = arith.constant 0 : i32
    return %c0_i32, %c0_i32_0 : i32, i32
  }
  func.func @transform_22(%arg0: i32) -> (i32, i32, i32) {
    %c0_i32 = arith.constant 0 : i32
    %c0_i32_0 = arith.constant 0 : i32
    %c0_i32_1 = arith.constant 0 : i32
    return %arg0, %c0_i32, %c0_i32_0 : i32, i32, i32
  }
  func.func @transform_23(%arg0: i32) -> (i32, i32, i32) {
    %c0_i32 = arith.constant 0 : i32
    %c0_i32_0 = arith.constant 0 : i32
    %c0_i32_1 = arith.constant 0 : i32
    return %arg0, %c0_i32, %c0_i32_0 : i32, i32, i32
  }
  func.func @transform_24(%arg0: i32) -> (i32, i32, i32) {
    %c0_i32 = arith.constant 0 : i32
    %c0_i32_0 = arith.constant 0 : i32
    %c0_i32_1 = arith.constant 0 : i32
    return %arg0, %c0_i32, %c0_i32_0 : i32, i32, i32
  }
}

</mosaic_0001>

<bundles_post_ra>
// kernel: spatial_vae_forward.1
= control target key start
LH: loop header
LB: loop body
LE: loop exit
PB: predicated region body
PF: predicated region fallthrough
CT: control target
= control target key end

     0   :  { %s8045_s0 = inlined_call_operand.vmem [shape: f32[2,1,768], index: 0, kind: input, shape index: {}]   ;;  %s8046_s1 = inlined_call_operand.hbm [shape: f32[2,1,4], index: 1, kind: input, shape index: {}]   ;;  %s8047_s2 = inlined_call_operand.hbm [shape: f32[768,512], index: 2, kind: input, shape index: {}]   ;;  %s8048_s3 = inlined_call_operand.hbm [shape: f32[1,512], index: 3, kind: input, shape index: {}]   ;;  %s8049_s4 = inlined_call_operand.hbm [shape: f32[512,256], index: 4, kind: input, shape index: {}]   ;;  %s8050_s5 = inlined_call_operand.hbm [shape: f32[1,256], index: 5, kind: input, shape index: {}]   ;;  %s8051_s6 = inlined_call_operand.hbm [shape: f32[256,128], index: 6, kind: input, shape index: {}]   ;;  %s8052_s7 = inlined_call_operand.hbm [shape: f32[1,128], index: 7, kind: input, shape index: {}]   ;;  %s8053_s8 = inlined_call_operand.vmem [shape: f32[128,64], index: 8, kind: input, shape index: {}]   ;;  %s8054_s9 = inlined_call_operand.hbm [shape: f32[1,64], index: 9, kind: input, shape index: {}]   ;;  %s8055_s10 = inlined_call_operand.vmem [shape: f32[64,4], index: 10, kind: input, shape index: {}]   ;;  %s8056_s11 = inlined_call_operand.hbm [shape: f32[1,4], index: 11, kind: input, shape index: {}]   ;;  %s8057_s12 = inlined_call_operand.vmem [shape: f32[64,4], index: 12, kind: input, shape index: {}]   ;;  %s8058_s13 = inlined_call_operand.hbm [shape: f32[1,4], index: 13, kind: input, shape index: {}]   ;;  %s8059_s14 = inlined_call_operand.hbm [shape: f32[4,256], index: 14, kind: input, shape index: {}]   ;;  %s8060_s15 = inlined_call_operand.hbm [shape: f32[1,256], index: 15, kind: input, shape index: {}]   ;;  %s8061_s16 = inlined_call_operand.hbm [shape: f32[256,512], index: 16, kind: input, shape index: {}]   ;;  %s8062_s17 = inlined_call_operand.hbm [shape: f32[1,512], index: 17, kind: input, shape index: {}]   ;;  %s8063_s18 = inlined_call_operand.hbm [shape: f32[512,1024], index: 18, kind: input, shape index: {}]   ;;  %s8064_s19 = inlined_call_operand.hbm [shape: f32[1,1024], index: 19, kind: input, shape index: {}]   ;;  %s8065_s20 = inlined_call_operand.hbm [shape: f32[1024,768], index: 20, kind: input, shape index: {}]   ;;  %s8066_s21 = inlined_call_operand.hbm [shape: f32[1,768], index: 21, kind: input, shape index: {}]   ;;  %s8067_s22 = inlined_call_operand.vmem [shape: f32[2,1,768], index: 22, kind: output, shape index: {0}]   ;;  %s8068_s23 = inlined_call_operand.hbm [shape: f32[2,1,4], index: 23, kind: output, shape index: {1}]   ;;  %s8069_s24 = inlined_call_operand.hbm [shape: f32[2,1,4], index: 24, kind: output, shape index: {2}]  }
   0x1   :  { %8085 = sst [smem:[#allocation49_spill]] %s8045_s0 }
   0x2   :  { %8086 = sst [smem:[#allocation50_spill]] %s8046_s1 }
   0x3   :  { %8087 = sst [smem:[#allocation51_spill]] %s8047_s2 }
   0x4   :  { %8088 = sst [smem:[#allocation52_spill]] %s8048_s3 }
   0x5   :  { %8089 = sst [smem:[#allocation53_spill]] %s8049_s4 }
   0x6   :  { %8090 = sst [smem:[#allocation54_spill]] %s8050_s5 }
   0x7   :  { %8091 = sst [smem:[#allocation55_spill]] %s8051_s6 }
   0x8   :  { %8092 = sst [smem:[#allocation56_spill]] %s8052_s7 }
   0x9   :  { %8093 = sst [smem:[#allocation57_spill]] %s8053_s8 }
   0xa   :  { %8094 = sst [smem:[#allocation58_spill]] %s8054_s9 }
   0xb   :  { %8095 = sst [smem:[#allocation59_spill]] %s8055_s10 }
   0xc   :  { %8096 = sst [smem:[#allocation60_spill]] %s8056_s11 }
   0xd   :  { %8097 = sst [smem:[#allocation61_spill]] %s8057_s12 }
   0xe   :  { %8098 = sst [smem:[#allocation62_spill]] %s8058_s13 }
   0xf   :  { %8099 = sst [smem:[#allocation63_spill]] %s8059_s14 }
  0x10   :  { %8100 = sst [smem:[#allocation64_spill]] %s8060_s15 }
  0x11   :  { %8101 = sst [smem:[#allocation65_spill]] %s8061_s16 }
  0x12   :  { %8102 = sst [smem:[#allocation66_spill]] %s8066_s21 }
  0x13   :  { %8103 = sst [smem:[#allocation67_spill]] %s8067_s22 }
  0x14   :  { %8104 = sst [smem:[#allocation68_spill]] %s8068_s23 }
  0x15   :  { %8105 = sst [smem:[#allocation69_spill]] %s8069_s24 }
  0x16   :  { %30 = vsyncpa [#allocation3], 0 }
  0x17   :  { %32 = vsyncpa [#allocation3 + $0x1], 0 }
  0x18   :  { %33 = vsyncpa [#allocation6], 0 }
  0x19   :  { %34 = vsyncpa [#allocation9], 0 }
  0x1a   :  { %35 = vsyncpa [#allocation12], 0 }
  0x1b   :  { %36 = vsyncpa [#allocation15], 0 }
  0x1c   :  { %37 = vsyncpa [#allocation18], 0 }
  0x1d   :  { %38 = vsyncpa [#allocation21], 0 }
  0x1e   :  { %39 = vsyncpa [#allocation24], 0 }
  0x1f   :  { %40 = vsyncpa [#allocation27], 0 }
  0x20   :  { %41 = vsyncpa [#allocation30], 0 }
  0x21   :  { %42 = vsyncpa [#allocation4], 0 }
  0x22   :  { %44 = vsyncpa [#allocation4 + $0x1], 0 }
  0x23   :  { %45 = vsyncpa [#allocation33], 0 }
  0x24   :  { %47 = vsyncpa [#allocation33 + $0x1], 0  ;;  %s7302_s5 = smov 0   ;;  %s7304_s26 = smov 0  }
  0x25   :  { %s7306_s27 = smov 0   ;;  %s7308_s28 = smov 0  }
  0x26 LB: > { %8106 = sst [smem:[#allocation46_spill]] %s7136_s5  ;;  %s7326_s7 = sadd.s32 4294967295, %s7148_s28   ;;  %s7148_s28 = sphi %s7308_s28, %s8165_s28   ;;  %s7144_s27 = sphi %s7306_s27, %s8164_s27   ;;  %s7140_s26 = sphi %s7304_s26, %s8163_s26   ;;  %s7136_s5 = sphi %s7302_s5, %s8162_s5  }
  0x27   : > { %s8107_s29 = sld [smem:[#allocation51_spill]]  ;;  %p6168_p0 = scmp.ge.s32.totalorder %s7148_s28, 1 }
  0x28   : > { %8108 = sst [smem:[#allocation47_spill]] %s7326_s7  ;;  %p100_p1 = scmp.eq.s32.totalorder %s7326_s7, 0 }
  0x29   : > { %p608_p2 = scmp.lt.s32.totalorder %s7148_s28, 3  ;;  %s7150_s3 = smov [#allocation5]  }
  0x2a   : > { %s621_s25 = sshll.u32 %s7150_s3, 4  ;;  %s8111_s1 = sld [smem:[#allocation53_spill]]  ;;  %s622_s25 = int_to_ptr.vmem [resolvable:$true] %s621_s25 }
  0x2b   : > { %p7331_p3 = pnand %p6168_p0, %p608_p2  ;;  %s7152_s3 = smov 512  }
  0x2c   : > { %s7153_s24 = smov 32   ;;  %s7154_s8 = smov 256  }
  0x2d   : > { %s619_s0 = sshll.u32 %s8107_s29, 4  ;;  %p6288_p4 = pneg %p7331_p3  ;;  %s620_s0 = int_to_ptr.hbm [resolvable:$true] %s619_s0 }
  0x2e   : > { %s8109_s30 = scalar_select %p7331_p3, 1, 0 }
  0x2f   : > { %p7343_p6 = pnand %p6288_p4, %p100_p1  ;;  %s7151_s29 = smov [#allocation8]  }
  0x30   : > { %8110 = sst [smem:[#allocation48_spill]] %s8109_s30  ;;  %s645_s6 = sshll.u32 %s8111_s1, 4  ;;  %s646_s6 = int_to_ptr.hbm [resolvable:$true] %s645_s6 }
  0x31   : > { %s647_s22 = sshll.u32 %s7151_s29, 4  ;;  %s7155_s4 = smov 16   ;;  %s648_s22 = int_to_ptr.vmem [resolvable:$true] %s647_s22 }
  0x32   : > { %6291 = dma.hbm_to_vmem [thread:$0]  (!%p7343_p6), %s620_s0, 49152, %s622_s25, [#allocation6], %s7152_s3, %s7152_s3, %s7153_s24  }
  0x33   : > { %6297 = dma.hbm_to_vmem [thread:$0]  (!%p7343_p6), %s646_s6, 16384, %s648_s22, [#allocation9], %s7154_s8, %s7154_s8, %s7155_s4  }
  0x34   : > { %s8113_s12 = sld [smem:[#allocation55_spill]]  ;;  %s7156_s29 = smov [#allocation11]  }
  0x35   : > { %s673_s30 = sshll.u32 %s7156_s29, 4  ;;  %s8114_s9 = sld [smem:[#allocation58_spill]]  ;;  %s674_s30 = int_to_ptr.vmem [resolvable:$true] %s673_s30 }
  0x36   : > { %s7157_s0 = smov 128   ;;  %s7158_s25 = smov 8  }
  0x37   : > { %s7159_s22 = smov [#allocation14]   ;;  %s8115_s13 = sld [smem:[#allocation62_spill]] }
  0x38   : > { %s703_s6 = sshll.u32 %s7159_s22, 4  ;;  %s8116_s15 = sld [smem:[#allocation64_spill]]  ;;  %s704_s6 = int_to_ptr.vmem [resolvable:$true] %s703_s6 }
  0x39   : > { %s7160_s1 = smov [#allocation17]   ;;  %s781_s22 = sshll.u32 %s8062_s17, 4  ;;  %s782_s22 = int_to_ptr.hbm [resolvable:$true] %s781_s22 }
  0x3a   : > { %s671_s10 = sshll.u32 %s8113_s12, 4  ;;  %s733_s29 = sshll.u32 %s7160_s1, 4  ;;  %s672_s10 = int_to_ptr.hbm [resolvable:$true] %s671_s10  ;;  %s734_s29 = int_to_ptr.vmem [resolvable:$true] %s733_s29 }
  0x3b   : > { %s701_s5 = sshll.u32 %s8114_s9, 4  ;;  %s807_s8 = sshll.u32 %s8064_s19, 4  ;;  %s702_s5 = int_to_ptr.hbm [resolvable:$true] %s701_s5  ;;  %s808_s8 = int_to_ptr.hbm [resolvable:$true] %s807_s8 }
  0x3c   : > { %6303 = dma.hbm_to_vmem [thread:$0]  (!%p7343_p6), %s672_s10, 4096, %s674_s30, [#allocation12], %s7157_s0, %s7157_s0, %s7158_s25  }
  0x3d   : > { %s731_s12 = sshll.u32 %s8115_s13, 4  ;;  %s7161_s10 = smov [#allocation20]   ;;  %s732_s12 = int_to_ptr.hbm [resolvable:$true] %s731_s12 }
  0x3e   : > { %6309 = dma.hbm_to_vmem [thread:$0]  (!%p7343_p6), %s702_s5, 16, %s704_s6, [#allocation15]  }
  0x3f   : > { %s755_s7 = sshll.u32 %s8116_s15, 4  ;;  %s757_s30 = sshll.u32 %s7161_s10, 4  ;;  %s756_s7 = int_to_ptr.hbm [resolvable:$true] %s755_s7  ;;  %s758_s30 = int_to_ptr.vmem [resolvable:$true] %s757_s30 }
  0x40   : > { %6315 = dma.hbm_to_vmem [thread:$0]  (!%p7343_p6), %s732_s12, 16, %s734_s29, [#allocation18]  }
  0x41   : > { %6321 = dma.hbm_to_vmem [thread:$0]  (!%p7343_p6), %s756_s7, 32, %s758_s30, [#allocation21]  }
  0x42   : > { %s7162_s23 = smov [#allocation23]   ;;  %s7163_s12 = smov [#allocation26]  }
  0x43   : > { %s783_s4 = sshll.u32 %s7162_s23, 4  ;;  %s809_s21 = sshll.u32 %s7163_s12, 4  ;;  %s784_s4 = int_to_ptr.vmem [resolvable:$true] %s783_s4  ;;  %s810_s21 = int_to_ptr.vmem [resolvable:$true] %s809_s21 }
  0x44   : > { %6327 = dma.hbm_to_vmem [thread:$0]  (!%p7343_p6), %s782_s22, 64, %s784_s4, [#allocation24]  }
  0x45   : > { %s8117_s10 = sld [smem:[#allocation52_spill]]  ;;  %s7164_s6 = smov [#allocation7]  }
  0x46   : > { %6333 = dma.hbm_to_vmem [thread:$0]  (!%p7343_p6), %s808_s8, 128, %s810_s21, [#allocation27]  }
  0x47   : > { %s8118_s25 = sld [smem:[#allocation54_spill]]  ;;  %s636_s23 = sshll.u32 %s7164_s6, 4  ;;  %s637_s23 = int_to_ptr.vmem [resolvable:$true] %s636_s23 }
  0x48   : > { %s7165_s22 = smov [#allocation10]   ;;  %s8119_s29 = sld [smem:[#allocation56_spill]] }
  0x49   : > { %s662_s4 = sshll.u32 %s7165_s22, 4  ;;  %s8120_s11 = sld [smem:[#allocation60_spill]]  ;;  %s663_s4 = int_to_ptr.vmem [resolvable:$true] %s662_s4 }
  0x4a   : > { %s7166_s30 = smov [#allocation13]   ;;  %s8121_s14 = sld [smem:[#allocation63_spill]] }
  0x4b   : > { %s634_s0 = sshll.u32 %s8117_s10, 4  ;;  %s8122_s16 = sld [smem:[#allocation65_spill]]  ;;  %s635_s0 = int_to_ptr.hbm [resolvable:$true] %s634_s0 }
  0x4c   : > { %6294 = dma.hbm_to_vmem [thread:$0]  (!%p7343_p6), %s635_s0, 64, %s637_s23, [#allocation6]  }
  0x4d   : > { %s660_s5 = sshll.u32 %s8118_s25, 4  ;;  %s688_s25 = sshll.u32 %s7166_s30, 4  ;;  %s661_s5 = int_to_ptr.hbm [resolvable:$true] %s660_s5  ;;  %s689_s25 = int_to_ptr.vmem [resolvable:$true] %s688_s25 }
  0x4e   : > { %s686_s10 = sshll.u32 %s8119_s29, 4  ;;  %s7167_s0 = smov [#allocation16]   ;;  %s687_s10 = int_to_ptr.hbm [resolvable:$true] %s686_s10 }
  0x4f   : > { %6300 = dma.hbm_to_vmem [thread:$0]  (!%p7343_p6), %s661_s5, 32, %s663_s4, [#allocation9]  }
  0x50   : > { %s716_s7 = sshll.u32 %s8120_s11, 4  ;;  %s718_s6 = sshll.u32 %s7167_s0, 4  ;;  %s717_s7 = int_to_ptr.hbm [resolvable:$true] %s716_s7  ;;  %s719_s6 = int_to_ptr.vmem [resolvable:$true] %s718_s6 }
  0x51   : > { %6306 = dma.hbm_to_vmem [thread:$0]  (!%p7343_p6), %s687_s10, 16, %s689_s25, [#allocation12]  }
  0x52   : > { %s743_s12 = sshll.u32 %s8121_s14, 4  ;;  %s766_s1 = sshll.u32 %s8122_s16, 4  ;;  %s744_s12 = int_to_ptr.hbm [resolvable:$true] %s743_s12  ;;  %s767_s1 = int_to_ptr.hbm [resolvable:$true] %s766_s1 }
  0x53   : > { %6312 = dma.hbm_to_vmem [thread:$0]  (!%p7343_p6), %s717_s7, 16, %s719_s6, [#allocation15]  }
  0x54   : > { %s7168_s29 = smov [#allocation19]   ;;  %s7169_s10 = smov [#allocation22]  }
  0x55   : > { %s745_s8 = sshll.u32 %s7168_s29, 4  ;;  %s768_s21 = sshll.u32 %s7169_s10, 4  ;;  %s746_s8 = int_to_ptr.vmem [resolvable:$true] %s745_s8  ;;  %s769_s21 = int_to_ptr.vmem [resolvable:$true] %s768_s21 }
  0x56   : > { %6318 = dma.hbm_to_vmem [thread:$0]  (!%p7343_p6), %s744_s12, 128, %s746_s8, [#allocation18]  }
  0x57   : > { %s792_s0 = sshll.u32 %s8063_s18, 4  ;;  %s7170_s7 = smov [#allocation25]   ;;  %s793_s0 = int_to_ptr.hbm [resolvable:$true] %s792_s0 }
  0x58   : > { %6324 = dma.hbm_to_vmem [thread:$0]  (!%p7343_p6), %s767_s1, 16384, %s769_s21, [#allocation21], %s7152_s3, %s7152_s3, %s7153_s24  }
  0x59   : > { %s794_s6 = sshll.u32 %s7170_s7, 4  ;;  %s818_s12 = sshll.u32 %s8065_s20, 4  ;;  %s795_s6 = int_to_ptr.vmem [resolvable:$true] %s794_s6  ;;  %s819_s12 = int_to_ptr.hbm [resolvable:$true] %s818_s12 }
  0x5a   : > { %s7171_s5 = smov 1024   ;;  %s7172_s4 = smov 64  }
  0x5b   : > { %6330 = dma.hbm_to_vmem [thread:$0]  (!%p7343_p6), %s793_s0, 65536, %s795_s6, [#allocation24], %s7171_s5, %s7171_s5, %s7172_s4  }
  0x5c   : > { %s7173_s29 = smov [#allocation28]   ;;  %s7174_s3 = smov 768  }
  0x5d   : > { %s820_s24 = sshll.u32 %s7173_s29, 4  ;;  %s8123_s1 = sld [smem:[#allocation46_spill]]  ;;  %s821_s24 = int_to_ptr.vmem [resolvable:$true] %s820_s24 }
  0x5e   : > { %s7175_s8 = smov 48   ;;  %s8124_s10 = sld [smem:[#allocation47_spill]] }
  0x5f   : > { %6336 = dma.hbm_to_vmem [thread:$0]  (!%p7343_p6), %s819_s12, 98304, %s821_s24, [#allocation27], %s7174_s3, %s7174_s3, %s7175_s8  }
  0x60   : > { %s8125_s25 = sld [smem:[#allocation66_spill]]  ;;  %s7176_s7 = smov [#allocation29]  }
  0x61   : > { %s835_s6 = sshll.u32 %s7176_s7, 4  ;;  %s6167_s23 = sadd.s32 4294967294, %s7148_s28   ;;  %s836_s6 = int_to_ptr.vmem [resolvable:$true] %s835_s6 }
  0x62   : > { %s7434_s22 = sadd.s32 1, %s7148_s28   ;;  %s86_s12 = sadd.s32 1, %s7144_s27 }
  0x63   : > { %s83_s5 = ssub.s32 %s7148_s28, %s7434_s22  ;;  %p93_p7 = scmp.ne.s32.totalorder %s7144_s27, %s7140_s26 }
  0x64   : > { %p84_p8 = scmp.eq.s32.totalorder %s83_s5, 0  ;;  %p94_p9 = scmp.eq.s32.totalorder %s7148_s28, 0 }
  0x65   : > { %p99_p10 = scmp.ne.s32.totalorder %s7140_s26, %s8123_s1  ;;  %p569_p11 = scmp.eq.s32.totalorder %s8124_s10, 1 }
  0x66   : > { %s833_s0 = sshll.u32 %s8125_s25, 4  ;;  %p575_p0 = scmp.eq.s32.totalorder %s6167_s23, 1  ;;  %s834_s0 = int_to_ptr.hbm [resolvable:$true] %s833_s0 }
  0x67   : > { %6339 = dma.hbm_to_vmem [thread:$0]  (!%p7343_p6), %s834_s0, 96, %s836_s6, [#allocation30]  }
  0x68   : > { %s7446_s4 = scalar_select %p84_p8, %s7144_s27, %s86_s12  }
  0x69   : > { %p7450_p12 = por %p100_p1, %p99_p10  ;;  %p7454_p13 = por %p569_p11, %p93_p7 }
  0x6a   : > { %p95_p2 = por %p94_p9, %p93_p7  ;;  %s853_s24 = sand.u32 1, %s7144_s27  }
  0x6b   : > { %p7459_p4 = por %p575_p0, %p99_p10  ;;  %p6368_p6 = scmp.lt.s32.totalorder %s7148_s28, 2 }
  0x6c   : > { %s8129_s21 = sld [smem:[#allocation50_spill]]  ;;  %s856_s25 = scalar_lea.vmem [#allocation2], %s853_s24 }
  0x6d   : > { %s863_s0 = sshll.u32 %s856_s25, 4  ;;  %p7468_p8 = pnand %p6368_p6, %p95_p2  ;;  %s864_s0 = int_to_ptr.vmem [resolvable:$true] %s863_s0 }
  0x6e   : > { %s854_s6 = scalar_lea.sflag [#allocation3], %s853_s24 }
  0x6f   : > { %p6988_p9 = pneg %p7468_p8 }
  0x72   : > { %s859_s10 = scalar_lea.hbm %s8129_s21, %s7148_s28  ;;  %s6991_s8 = scalar_lea.hbm %s8129_s21, 2 }
  0x73   : > { %s861_s30 = sshll.u32 %s859_s10, 4  ;;  %s862_s30 = int_to_ptr.hbm [resolvable:$true] %s861_s30 }
  0x74   : > { %s6984_s23 = sshra.s32 %s862_s30, 4  ;;  %s6985_s23 = int_to_ptr.hbm [resolvable:$true] %s6984_s23 }
  0x75   : > { %s6986_s12 = scalar_lea.hbm %s6985_s23, 1  ;;  %p6992_p0 = scmp.lt.s32.totalorder %s6985_s23, %s8129_s21 }
  0x76   : > { %p6987_p7 = scmp.ne.s32.totalorder %s6985_s23, %s6986_s12  ;;  %p6993_p2 = scmp.lt.s32.totalorder %s6991_s8, %s6986_s12 }
  0x78   : > { %p6989_p10 = pnand %p6988_p9, %p6987_p7  ;;  %p6994_p6 = por %p6993_p2, %p6992_p0 }
  0x7a   : > { %p6990_p11 = pneg %p6989_p10 }
  0x7c   : > { %p6995_p5 = pnand %p6994_p6, %p6990_p11 }
  0x7e   : > { %6998 = shalt.err (!%p6995_p5)
}
  0x7f   : > { %6343 = dma.hbm_to_vmem [thread:$0]  (!%p7468_p8), %s862_s30, 16, %s864_s0, %s854_s6  }
  0x80   : > { %872 = sbr.rel (%p7331_p3) target bundleno = 2179 (0x883), region = 108  ;;  %s7485_s9 = sand.u32 (!%p7331_p3), 1, %s7140_s26  }
  0x81   : > { %s875_s5 = scalar_lea.sflag (!%p7331_p3), [#allocation3], %s7485_s9 }
  0x85   : > { %7087 = dma.done.wait (%p7450_p12), %s875_s5, 16  }
  0x86   : > { %7089 = vsyncadd (%p7450_p12), %s875_s5, 4294967280  ;;  %s8132_s23 = sld [smem:[#allocation47_spill]] }
  0x87   : > { %7091 = dma.done.wait (%p100_p1), [#allocation6], 49216  }
  0x88   : > { %7093 = vsyncadd (%p100_p1), [#allocation6], 4294918080 }
  0x89   : > { %7095 = dma.done.wait (%p100_p1), [#allocation9], 16416  }
  0x8a   : > { %7097 = vsyncadd (%p100_p1), [#allocation9], 4294950880 }
  0x8b   : > { %7099 = dma.done.wait (%p100_p1), [#allocation12], 4112  }
  0x8c   : > { %7101 = vsyncadd (%p100_p1), [#allocation12], 4294963184 }
  0x8d   : > { %7103 = dma.done.wait (%p100_p1), [#allocation15], 32  }
  0x8e   : > { %7105 = vsyncadd (%p100_p1), [#allocation15], 4294967264 }
  0x8f   : > { %7107 = dma.done.wait (%p100_p1), [#allocation18], 144  }
  0x90   : > { %7109 = vsyncadd (%p100_p1), [#allocation18], 4294967152 }
  0x91   : > { %7111 = dma.done.wait (%p100_p1), [#allocation21], 16416  }
  0x92   : > { %7113 = vsyncadd (%p100_p1), [#allocation21], 4294950880 }
  0x93   : > { %7115 = dma.done.wait (%p100_p1), [#allocation24], 65600  }
  0x94   : > { %7117 = vsyncadd (%p100_p1), [#allocation24], 4294901696 }
  0x95   : > { %7119 = dma.done.wait (%p100_p1), [#allocation27], 98432  }
  0x96   : > { %7121 = vsyncadd (%p100_p1), [#allocation27], 4294868864 }
  0x97   : > { %7123 = dma.done.wait (%p100_p1), [#allocation30], 96  }
  0x98   : > { %7125 = vsyncadd (%p100_p1), [#allocation30], 4294967200  ;;  %v1107_v0 = vld [vmem:[#allocation5 + $0x1e0] sm:$0xff]  ;;  %p1038_p1 = scmp.lt.s32.totalorder %s8132_s23, 1  ;;  %s8133_s6 = sld [smem:[#allocation49_spill]]  ;;  %vm2355_vm0 = vcmask 523264  }
  0x99   : > { %v1171_v1 = vld [vmem:[#allocation5 + $0x3e0] sm:$0xff]  ;;  %1454 = vmatpush.msra.mxu0 %v1107_v0  ;;  %s8134_s25 = sld [smem:[#allocation57_spill]]  ;;  %vm2429_vm1 = vcmask 1043456   ;;  %vm5839_vm2 = vcmask 24576   ;;  %s8082_s7 = scalar_lea.vmem [#allocation32], %s7485_s9  ;;  %vm2425_vm3 = vcmask 31744  }
  0x9a   : > { %v1235_v2 = vld [vmem:[#allocation5 + $0x5e0] sm:$0xff]  ;;  %1474 = vmatpush.msra.mxu1 %v1171_v1  ;;  %v1108_v1 = vld [vmem:[#allocation5 + $0x1e8] sm:$0xff]  ;;  %s7533_s2 = scalar_select %p1038_p1, %s8132_s23, 1 }
  0x9b   : > { %v1103_v3 = vld [vmem:[#allocation5 + $0x1c0] sm:$0xff]  ;;  %1494 = vmatpush.msra.mxu2 %v1235_v2  ;;  %s8135_s0 = sld [smem:[#allocation59_spill]]  ;;  %s8137_s1 = scalar_lea.vmem [#allocation2], %s7485_s9 }
  0x9c   : > { %v1167_v4 = vld [vmem:[#allocation5 + $0x3c0] sm:$0xff]  ;;  %1455 = vmatpush.msra.mxu0 %v1103_v3  ;;  %s8080_s30 = smul.u32 6, %s7533_s2  ;;  %s8136_s8 = sld [smem:[#allocation61_spill]] }
  0x9d   : > { %v1231_v5 = vld [vmem:[#allocation5 + $0x5c0] sm:$0xff]  ;;  %1475 = vmatpush.msra.mxu1 %v1167_v4  ;;  %s8139_s5 = sld [smem:[#allocation69_spill]] }
  0x9e   : > { %v1299_v6 = vld [vmem:[#allocation5 + $0x7e0] sm:$0xff]  ;;  %1495 = vmatpush.msra.mxu2 %v1231_v5  ;;  %v1104_v5 = vld [vmem:[#allocation5 + $0x1c8] sm:$0xff]  ;;  %s1041_s12 = scalar_lea.vmem %s8133_s6, %s8080_s30  ;;  %s5847_s30 = scalar_lea.sflag [#allocation4], %s7485_s9 }
  0x9f   : > { %v1099_v7 = vld [vmem:[#allocation5 + $0x1a0] sm:$0xff]  ;;  %1514 = vmatpush.msra.mxu3 %v1299_v6  ;;  %v1172_v6 = vld [vmem:[#allocation5 + $0x3e8] sm:$0xff] }
  0xa0   : > { %v1163_v8 = vld [vmem:[#allocation5 + $0x3a0] sm:$0xff]  ;;  %1456 = vmatpush.msra.mxu0 %v1099_v7 }
  0xa1   : > { %v1227_v9 = vld [vmem:[#allocation5 + $0x5a0] sm:$0xff]  ;;  %1476 = vmatpush.msra.mxu1 %v1163_v8 }
  0xa2   : > { %v1295_v10 = vld [vmem:[#allocation5 + $0x7c0] sm:$0xff]  ;;  %1496 = vmatpush.msra.mxu2 %v1227_v9  ;;  %v1100_v9 = vld [vmem:[#allocation5 + $0x1a8] sm:$0xff] }
  0xa3   : > { %v1095_v11 = vld [vmem:[#allocation5 + $0x180] sm:$0xff]  ;;  %1515 = vmatpush.msra.mxu3 %v1295_v10  ;;  %v1168_v10 = vld [vmem:[#allocation5 + $0x3c8] sm:$0xff] }
  0xa4   : > { %v1159_v12 = vld [vmem:[#allocation5 + $0x380] sm:$0xff]  ;;  %1457 = vmatpush.msra.mxu0 %v1095_v11 }
  0xa5   : > { %v1223_v13 = vld [vmem:[#allocation5 + $0x580] sm:$0xff]  ;;  %1477 = vmatpush.msra.mxu1 %v1159_v12 }
  0xa6   : > { %v1291_v14 = vld [vmem:[#allocation5 + $0x7a0] sm:$0xff]  ;;  %1497 = vmatpush.msra.mxu2 %v1223_v13  ;;  %v1096_v13 = vld [vmem:[#allocation5 + $0x188] sm:$0xff] }
  0xa7   : > { %v1091_v15 = vld [vmem:[#allocation5 + $0x160] sm:$0xff]  ;;  %1516 = vmatpush.msra.mxu3 %v1291_v14  ;;  %v1164_v14 = vld [vmem:[#allocation5 + $0x3a8] sm:$0xff] }
  0xa8   : > { %v1155_v16 = vld [vmem:[#allocation5 + $0x360] sm:$0xff]  ;;  %1458 = vmatpush.msra.mxu0 %v1091_v15 }
  0xa9   : > { %v1219_v17 = vld [vmem:[#allocation5 + $0x560] sm:$0xff]  ;;  %1478 = vmatpush.msra.mxu1 %v1155_v16 }
  0xaa   : > { %v1287_v18 = vld [vmem:[#allocation5 + $0x780] sm:$0xff]  ;;  %1498 = vmatpush.msra.mxu2 %v1219_v17  ;;  %v1092_v17 = vld [vmem:[#allocation5 + $0x168] sm:$0xff] }
  0xab   : > { %v1087_v19 = vld [vmem:[#allocation5 + $0x140] sm:$0xff]  ;;  %1517 = vmatpush.msra.mxu3 %v1287_v18  ;;  %v1160_v18 = vld [vmem:[#allocation5 + $0x388] sm:$0xff] }
  0xac   : > { %v1151_v20 = vld [vmem:[#allocation5 + $0x340] sm:$0xff]  ;;  %1459 = vmatpush.msra.mxu0 %v1087_v19 }
  0xad   : > { %v1215_v21 = vld [vmem:[#allocation5 + $0x540] sm:$0xff]  ;;  %1479 = vmatpush.msra.mxu1 %v1151_v20 }
  0xae   : > { %v1283_v22 = vld [vmem:[#allocation5 + $0x760] sm:$0xff]  ;;  %1499 = vmatpush.msra.mxu2 %v1215_v21  ;;  %v1088_v21 = vld [vmem:[#allocation5 + $0x148] sm:$0xff] }
  0xaf   : > { %v1083_v23 = vld [vmem:[#allocation5 + $0x120] sm:$0xff]  ;;  %1518 = vmatpush.msra.mxu3 %v1283_v22  ;;  %v1156_v22 = vld [vmem:[#allocation5 + $0x368] sm:$0xff] }
  0xb0   : > { %v1147_v24 = vld [vmem:[#allocation5 + $0x320] sm:$0xff]  ;;  %1460 = vmatpush.msra.mxu0 %v1083_v23 }
  0xb1   : > { %v1211_v25 = vld [vmem:[#allocation5 + $0x520] sm:$0xff]  ;;  %1480 = vmatpush.msra.mxu1 %v1147_v24 }
  0xb2   : > { %v1279_v26 = vld [vmem:[#allocation5 + $0x740] sm:$0xff]  ;;  %1500 = vmatpush.msra.mxu2 %v1211_v25  ;;  %v1084_v25 = vld [vmem:[#allocation5 + $0x128] sm:$0xff] }
  0xb3   : > { %v1079_v27 = vld [vmem:[#allocation5 + $0x100] sm:$0xff]  ;;  %1519 = vmatpush.msra.mxu3 %v1279_v26  ;;  %v1152_v26 = vld [vmem:[#allocation5 + $0x348] sm:$0xff] }
  0xb4   : > { %v1143_v28 = vld [vmem:[#allocation5 + $0x300] sm:$0xff]  ;;  %1461 = vmatpush.msra.mxu0 %v1079_v27 }
  0xb5   : > { %v1207_v29 = vld [vmem:[#allocation5 + $0x500] sm:$0xff]  ;;  %1481 = vmatpush.msra.mxu1 %v1143_v28 }
  0xb6   : > { %v1275_v30 = vld [vmem:[#allocation5 + $0x720] sm:$0xff]  ;;  %1501 = vmatpush.msra.mxu2 %v1207_v29  ;;  %v1080_v29 = vld [vmem:[#allocation5 + $0x108] sm:$0xff] }
  0xb7   : > { %v1075_v31 = vld [vmem:[#allocation5 + $0xe0] sm:$0xff]  ;;  %1520 = vmatpush.msra.mxu3 %v1275_v30  ;;  %v1148_v30 = vld [vmem:[#allocation5 + $0x328] sm:$0xff] }
  0xb8   : > { %v1139_v32 = vld [vmem:[#allocation5 + $0x2e0] sm:$0xff]  ;;  %1462 = vmatpush.msra.mxu0 %v1075_v31 }
  0xb9   : > { %v1203_v33 = vld [vmem:[#allocation5 + $0x4e0] sm:$0xff]  ;;  %1482 = vmatpush.msra.mxu1 %v1139_v32 }
  0xba   : > { %v1271_v34 = vld [vmem:[#allocation5 + $0x700] sm:$0xff]  ;;  %1502 = vmatpush.msra.mxu2 %v1203_v33  ;;  %v1076_v33 = vld [vmem:[#allocation5 + $0xe8] sm:$0xff] }
  0xbb   : > { %v1071_v35 = vld [vmem:[#allocation5 + $0xc0] sm:$0xff]  ;;  %1521 = vmatpush.msra.mxu3 %v1271_v34  ;;  %v1144_v34 = vld [vmem:[#allocation5 + $0x308] sm:$0xff] }
  0xbc   : > { %v1135_v36 = vld [vmem:[#allocation5 + $0x2c0] sm:$0xff]  ;;  %1463 = vmatpush.msra.mxu0 %v1071_v35 }
  0xbd   : > { %v1199_v37 = vld [vmem:[#allocation5 + $0x4c0] sm:$0xff]  ;;  %1483 = vmatpush.msra.mxu1 %v1135_v36 }
  0xbe   : > { %v1267_v38 = vld [vmem:[#allocation5 + $0x6e0] sm:$0xff]  ;;  %1503 = vmatpush.msra.mxu2 %v1199_v37  ;;  %v1072_v37 = vld [vmem:[#allocation5 + $0xc8] sm:$0xff] }
  0xbf   : > { %v1067_v39 = vld [vmem:[#allocation5 + $0xa0] sm:$0xff]  ;;  %1522 = vmatpush.msra.mxu3 %v1267_v38  ;;  %v1140_v38 = vld [vmem:[#allocation5 + $0x2e8] sm:$0xff] }
  0xc0   : > { %v1131_v40 = vld [vmem:[#allocation5 + $0x2a0] sm:$0xff]  ;;  %1464 = vmatpush.msra.mxu0 %v1067_v39 }
  0xc1   : > { %v1195_v41 = vld [vmem:[#allocation5 + $0x4a0] sm:$0xff]  ;;  %1484 = vmatpush.msra.mxu1 %v1131_v40 }
  0xc2   : > { %v1263_v42 = vld [vmem:[#allocation5 + $0x6c0] sm:$0xff]  ;;  %1504 = vmatpush.msra.mxu2 %v1195_v41  ;;  %v1068_v41 = vld [vmem:[#allocation5 + $0xa8] sm:$0xff] }
  0xc3   : > { %v1063_v43 = vld [vmem:[#allocation5 + $0x80] sm:$0xff]  ;;  %1523 = vmatpush.msra.mxu3 %v1263_v42  ;;  %v1136_v42 = vld [vmem:[#allocation5 + $0x2c8] sm:$0xff] }
  0xc4   : > { %v1127_v44 = vld [vmem:[#allocation5 + $0x280] sm:$0xff]  ;;  %1465 = vmatpush.msra.mxu0 %v1063_v43 }
  0xc5   : > { %v1191_v45 = vld [vmem:[#allocation5 + $0x480] sm:$0xff]  ;;  %1485 = vmatpush.msra.mxu1 %v1127_v44 }
  0xc6   : > { %v1259_v46 = vld [vmem:[#allocation5 + $0x6a0] sm:$0xff]  ;;  %1505 = vmatpush.msra.mxu2 %v1191_v45  ;;  %v1064_v45 = vld [vmem:[#allocation5 + $0x88] sm:$0xff] }
  0xc7   : > { %v1059_v47 = vld [vmem:[#allocation5 + $0x60] sm:$0xff]  ;;  %1524 = vmatpush.msra.mxu3 %v1259_v46  ;;  %v1132_v46 = vld [vmem:[#allocation5 + $0x2a8] sm:$0xff] }
  0xc8   : > { %v1123_v48 = vld [vmem:[#allocation5 + $0x260] sm:$0xff]  ;;  %1466 = vmatpush.msra.mxu0 %v1059_v47 }
  0xc9   : > { %v1187_v49 = vld [vmem:[#allocation5 + $0x460] sm:$0xff]  ;;  %1486 = vmatpush.msra.mxu1 %v1123_v48 }
  0xca   : > { %v1255_v50 = vld [vmem:[#allocation5 + $0x680] sm:$0xff]  ;;  %1506 = vmatpush.msra.mxu2 %v1187_v49  ;;  %v1060_v49 = vld [vmem:[#allocation5 + $0x68] sm:$0xff] }
  0xcb   : > { %v1055_v51 = vld [vmem:[#allocation5 + $0x40] sm:$0xff]  ;;  %1525 = vmatpush.msra.mxu3 %v1255_v50  ;;  %v1128_v50 = vld [vmem:[#allocation5 + $0x288] sm:$0xff] }
  0xcc   : > { %v1119_v52 = vld [vmem:[#allocation5 + $0x240] sm:$0xff]  ;;  %1467 = vmatpush.msra.mxu0 %v1055_v51 }
  0xcd   : > { %v1183_v53 = vld [vmem:[#allocation5 + $0x440] sm:$0xff]  ;;  %1487 = vmatpush.msra.mxu1 %v1119_v52 }
  0xce   : > { %v1251_v54 = vld [vmem:[#allocation5 + $0x660] sm:$0xff]  ;;  %1507 = vmatpush.msra.mxu2 %v1183_v53  ;;  %v1056_v53 = vld [vmem:[#allocation5 + $0x48] sm:$0xff] }
  0xcf   : > { %v1051_v55 = vld [vmem:[#allocation5 + $0x20] sm:$0xff]  ;;  %1526 = vmatpush.msra.mxu3 %v1251_v54  ;;  %v1124_v54 = vld [vmem:[#allocation5 + $0x268] sm:$0xff] }
  0xd0   : > { %v1115_v56 = vld [vmem:[#allocation5 + $0x220] sm:$0xff]  ;;  %1468 = vmatpush.msra.mxu0 %v1051_v55 }
  0xd1   : > { %v1179_v57 = vld [vmem:[#allocation5 + $0x420] sm:$0xff]  ;;  %1488 = vmatpush.msra.mxu1 %v1115_v56 }
  0xd2   : > { %v1247_v58 = vld [vmem:[#allocation5 + $0x640] sm:$0xff]  ;;  %1508 = vmatpush.msra.mxu2 %v1179_v57  ;;  %v7541_v57 = vld [vmem:[%s1041_s12] sm:$0x3f]  ;;  %s8138_s12 = sld [smem:[#allocation68_spill]] }
  0xd3   : > { %v1047_v59 = vld [vmem:[#allocation5] sm:$0xff]  ;;  %1527 = vmatpush.msra.mxu3 %v1247_v58  ;;  %v1052_v58 = vld [vmem:[#allocation5 + $0x28] sm:$0xff] }
  0xd4   : > { %v1111_v60 = vld [vmem:[#allocation5 + $0x200] sm:$0xff]  ;;  %1469 = vmatpush.msra.mxu0 %v1047_v59  ;;  %v1120_v59 = vld [vmem:[#allocation5 + $0x248] sm:$0xff] }
  0xd5   : > { %v1175_v61 = vld [vmem:[#allocation5 + $0x400] sm:$0xff]  ;;  %1489 = vmatpush.msra.mxu1 %v1111_v60 }
  0xd6   : > { %v1243_v62 = vld [vmem:[#allocation5 + $0x620] sm:$0xff]  ;;  %1509 = vmatpush.msra.mxu2 %v1175_v61 }
  0xd7   : > { %v1363_v63 = vld [vmem:[#allocation5 + $0x9e0] sm:$0xff]  ;;  %1528 = vmatpush.msra.mxu3 %v1243_v62  ;;  %v1048_v62 = vld [vmem:[#allocation5 + $0x8] sm:$0xff] }
  0xd8   : > { %v1427_v0 = vld [vmem:[#allocation5 + $0xbe0] sm:$0xff]  ;;  %1534 = vmatpush.msrb.mxu0 %v1363_v63  ;;  %1574 = vmatpush.msrb.mxu2 %v1108_v1  ;;  %v1116_v63 = vld [vmem:[#allocation5 + $0x228] sm:$0xff]  ;;  %v7547_v1 = vperm.slane %v7541_v57, 1  ;;  %s5862_s10 = scalar_lea.hbm %s8138_s12, %s8132_s23  ;;  %s7034_s11 = scalar_lea.hbm %s8138_s12, 2 }
  0xd9   : > { %v1239_v2 = vld [vmem:[#allocation5 + $0x600] sm:$0xff]  ;;  %1554 = vmatpush.msrb.mxu1 %v1427_v0  ;;  %v7544_v0 = vperm.slane %v7541_v57, 0  ;;  %s5866_s13 = sshll.u32 %s5862_s10, 4  ;;  %s5867_s13 = int_to_ptr.hbm [resolvable:$true] %s5866_s13 }
  0xda   : > { %v1359_v3 = vld [vmem:[#allocation5 + $0x9c0] sm:$0xff]  ;;  %1529 = vmatpush.msra.mxu3 %v1239_v2  ;;  %1575 = vmatpush.msrb.mxu2 %v1104_v5  ;;  %v7550_v2 = vperm.slane %v7541_v57, 2  ;;  %v1364_v5 = vld [vmem:[#allocation5 + $0x9e8] sm:$0xff]  ;;  %s7028_s6 = sshra.s32 %s5867_s13, 4  ;;  %s7029_s6 = int_to_ptr.hbm [resolvable:$true] %s7028_s6 }
  0xdb   : > { %v1423_v4 = vld [vmem:[#allocation5 + $0xbc0] sm:$0xff]  ;;  %1535 = vmatpush.msrb.mxu0 %v1359_v3  ;;  %v1236_v3 = vld [vmem:[#allocation5 + $0x5e8] sm:$0xff]  ;;  %1490 = vmatmul.f32.vlgmr.msra.gmra.mxu1 %v7547_v1  ;;  %s7030_s14 = scalar_lea.hbm %s7029_s6, 1  ;;  %p7035_p8 = scmp.lt.s32.totalorder %s7029_s6, %s8138_s12 }
  0xdc   : > { %v1355_v7 = vld [vmem:[#allocation5 + $0x9a0] sm:$0xff]  ;;  %1555 = vmatpush.msrb.mxu1 %v1423_v4  ;;  %1594 = vmatpush.msrb.mxu3 %v1172_v6  ;;  %v1300_v4 = vld [vmem:[#allocation5 + $0x7e8] sm:$0xff]  ;;  %p7031_p3 = scmp.ne.s32.totalorder %s7029_s6, %s7030_s14  ;;  %p7036_p7 = scmp.lt.s32.totalorder %s7034_s11, %s7030_s14 }
  0xdd   : > { %v1419_v8 = vld [vmem:[#allocation5 + $0xba0] sm:$0xff]  ;;  %1536 = vmatpush.msrb.mxu0 %v1355_v7  ;;  %1576 = vmatpush.msrb.mxu2 %v1100_v9  ;;  %v1112_v6 = vld [vmem:[#allocation5 + $0x208] sm:$0xff]  ;;  %v7555_v7 = vperm.slane %v7541_v57, 3 }
  0xde   : > { %v1351_v11 = vld [vmem:[#allocation5 + $0x980] sm:$0xff]  ;;  %1556 = vmatpush.msrb.mxu1 %v1419_v8  ;;  %1595 = vmatpush.msrb.mxu3 %v1168_v10  ;;  %v1232_v8 = vld [vmem:[#allocation5 + $0x5c8] sm:$0xff]  ;;  %p7032_p5 = pnand %p7031_p3, %p7454_p13  ;;  %p7037_p9 = por %p7036_p7, %p7035_p8 }
  0xdf   : > { %v1415_v12 = vld [vmem:[#allocation5 + $0xb80] sm:$0xff]  ;;  %1537 = vmatpush.msrb.mxu0 %v1351_v11  ;;  %1577 = vmatpush.msrb.mxu2 %v1096_v13  ;;  %v1296_v9 = vld [vmem:[#allocation5 + $0x7c8] sm:$0xff] }
  0xe0   : > { %v1347_v15 = vld [vmem:[#allocation5 + $0x960] sm:$0xff]  ;;  %1557 = vmatpush.msrb.mxu1 %v1415_v12  ;;  %1596 = vmatpush.msrb.mxu3 %v1164_v14  ;;  %v1360_v10 = vld [vmem:[#allocation5 + $0x9c8] sm:$0xff]  ;;  %p7033_p12 = pneg %p7032_p5 }
  0xe1   : > { %v1411_v16 = vld [vmem:[#allocation5 + $0xb60] sm:$0xff]  ;;  %1538 = vmatpush.msrb.mxu0 %v1347_v15  ;;  %1578 = vmatpush.msrb.mxu2 %v1092_v17  ;;  %v1428_v11 = vld [vmem:[#allocation5 + $0xbe8] sm:$0xff] }
  0xe2   : > { %v1343_v19 = vld [vmem:[#allocation5 + $0x940] sm:$0xff]  ;;  %1558 = vmatpush.msrb.mxu1 %v1411_v16  ;;  %1597 = vmatpush.msrb.mxu3 %v1160_v18  ;;  %v1228_v12 = vld [vmem:[#allocation5 + $0x5a8] sm:$0xff]  ;;  %p7038_p10 = pnand %p7037_p9, %p7033_p12 }
  0xe3   : > { %v1407_v20 = vld [vmem:[#allocation5 + $0xb40] sm:$0xff]  ;;  %1539 = vmatpush.msrb.mxu0 %v1343_v19  ;;  %1579 = vmatpush.msrb.mxu2 %v1088_v21  ;;  %v1292_v13 = vld [vmem:[#allocation5 + $0x7a8] sm:$0xff] }
  0xe4   : > { %v1339_v23 = vld [vmem:[#allocation5 + $0x920] sm:$0xff]  ;;  %1559 = vmatpush.msrb.mxu1 %v1407_v20  ;;  %1598 = vmatpush.msrb.mxu3 %v1156_v22  ;;  %v1356_v14 = vld [vmem:[#allocation5 + $0x9a8] sm:$0xff] }
  0xe5   : > { %v1403_v24 = vld [vmem:[#allocation5 + $0xb20] sm:$0xff]  ;;  %1540 = vmatpush.msrb.mxu0 %v1339_v23  ;;  %1580 = vmatpush.msrb.mxu2 %v1084_v25  ;;  %v1424_v15 = vld [vmem:[#allocation5 + $0xbc8] sm:$0xff] }
  0xe6   : > { %v1335_v27 = vld [vmem:[#allocation5 + $0x900] sm:$0xff]  ;;  %1560 = vmatpush.msrb.mxu1 %v1403_v24  ;;  %1599 = vmatpush.msrb.mxu3 %v1152_v26  ;;  %v1224_v16 = vld [vmem:[#allocation5 + $0x588] sm:$0xff]  ;;  %v7560_v24 = vperm.slane %v7541_v57, 4 }
  0xe7   : > { %v1399_v28 = vld [vmem:[#allocation5 + $0xb00] sm:$0xff]  ;;  %1541 = vmatpush.msrb.mxu0 %v1335_v27  ;;  %1581 = vmatpush.msrb.mxu2 %v1080_v29  ;;  %v1288_v17 = vld [vmem:[#allocation5 + $0x788] sm:$0xff] }
  0xe8   : > { %v1331_v31 = vld [vmem:[#allocation5 + $0x8e0] sm:$0xff]  ;;  %1561 = vmatpush.msrb.mxu1 %v1399_v28  ;;  %1600 = vmatpush.msrb.mxu3 %v1148_v30  ;;  %v1352_v18 = vld [vmem:[#allocation5 + $0x988] sm:$0xff]  ;;  %v7563_v28 = vperm.slane %v7541_v57, 5 }
  0xe9   : > { %v1395_v32 = vld [vmem:[#allocation5 + $0xae0] sm:$0xff]  ;;  %1542 = vmatpush.msrb.mxu0 %v1331_v31  ;;  %1582 = vmatpush.msrb.mxu2 %v1076_v33  ;;  %v1420_v19 = vld [vmem:[#allocation5 + $0xba8] sm:$0xff] }
  0xea   : > { %v1327_v35 = vld [vmem:[#allocation5 + $0x8c0] sm:$0xff]  ;;  %1562 = vmatpush.msrb.mxu1 %v1395_v32  ;;  %1601 = vmatpush.msrb.mxu3 %v1144_v34  ;;  %v1220_v20 = vld [vmem:[#allocation5 + $0x568] sm:$0xff] }
  0xeb   : > { %v1391_v36 = vld [vmem:[#allocation5 + $0xac0] sm:$0xff]  ;;  %1543 = vmatpush.msrb.mxu0 %v1327_v35  ;;  %1583 = vmatpush.msrb.mxu2 %v1072_v37  ;;  %v1284_v21 = vld [vmem:[#allocation5 + $0x768] sm:$0xff] }
  0xec   : > { %v1323_v39 = vld [vmem:[#allocation5 + $0x8a0] sm:$0xff]  ;;  %1563 = vmatpush.msrb.mxu1 %v1391_v36  ;;  %1602 = vmatpush.msrb.mxu3 %v1140_v38  ;;  %v1348_v22 = vld [vmem:[#allocation5 + $0x968] sm:$0xff] }
  0xed   : > { %v1387_v40 = vld [vmem:[#allocation5 + $0xaa0] sm:$0xff]  ;;  %1544 = vmatpush.msrb.mxu0 %v1323_v39  ;;  %1584 = vmatpush.msrb.mxu2 %v1068_v41  ;;  %v1416_v23 = vld [vmem:[#allocation5 + $0xb88] sm:$0xff] }
  0xee   : > { %v1319_v43 = vld [vmem:[#allocation5 + $0x880] sm:$0xff]  ;;  %1564 = vmatpush.msrb.mxu1 %v1387_v40  ;;  %1603 = vmatpush.msrb.mxu3 %v1136_v42  ;;  %v1280_v25 = vld [vmem:[#allocation5 + $0x748] sm:$0xff] }
  0xef   : > { %v1383_v44 = vld [vmem:[#allocation5 + $0xa80] sm:$0xff]  ;;  %1545 = vmatpush.msrb.mxu0 %v1319_v43  ;;  %1585 = vmatpush.msrb.mxu2 %v1064_v45  ;;  %v1216_v26 = vld [vmem:[#allocation5 + $0x548] sm:$0xff] }
  0xf0   : > { %v1315_v47 = vld [vmem:[#allocation5 + $0x860] sm:$0xff]  ;;  %1565 = vmatpush.msrb.mxu1 %v1383_v44  ;;  %1604 = vmatpush.msrb.mxu3 %v1132_v46  ;;  %v1344_v27 = vld [vmem:[#allocation5 + $0x948] sm:$0xff] }
  0xf1   : > { %v1379_v48 = vld [vmem:[#allocation5 + $0xa60] sm:$0xff]  ;;  %1546 = vmatpush.msrb.mxu0 %v1315_v47  ;;  %1586 = vmatpush.msrb.mxu2 %v1060_v49  ;;  %v1412_v29 = vld [vmem:[#allocation5 + $0xb68] sm:$0xff] }
  0xf2   : > { %v1311_v51 = vld [vmem:[#allocation5 + $0x840] sm:$0xff]  ;;  %1566 = vmatpush.msrb.mxu1 %v1379_v48  ;;  %1605 = vmatpush.msrb.mxu3 %v1128_v50  ;;  %v1212_v30 = vld [vmem:[#allocation5 + $0x528] sm:$0xff] }
  0xf3   : > { %v1375_v52 = vld [vmem:[#allocation5 + $0xa40] sm:$0xff]  ;;  %1547 = vmatpush.msrb.mxu0 %v1311_v51  ;;  %1587 = vmatpush.msrb.mxu2 %v1056_v53  ;;  %v1276_v31 = vld [vmem:[#allocation5 + $0x728] sm:$0xff] }
  0xf4   : > { %v1307_v55 = vld [vmem:[#allocation5 + $0x820] sm:$0xff]  ;;  %1567 = vmatpush.msrb.mxu1 %v1375_v52  ;;  %1606 = vmatpush.msrb.mxu3 %v1124_v54  ;;  %v1340_v32 = vld [vmem:[#allocation5 + $0x928] sm:$0xff] }
  0xf5   : > { %v1371_v56 = vld [vmem:[#allocation5 + $0xa20] sm:$0xff]  ;;  %1548 = vmatpush.msrb.mxu0 %v1307_v55  ;;  %1588 = vmatpush.msrb.mxu2 %v1052_v58  ;;  %v1408_v33 = vld [vmem:[#allocation5 + $0xb48] sm:$0xff] }
  0xf6   : > { %v1303_v60 = vld [vmem:[#allocation5 + $0x800] sm:$0xff]  ;;  %1568 = vmatpush.msrb.mxu1 %v1371_v56  ;;  %1607 = vmatpush.msrb.mxu3 %v1120_v59  ;;  %v1208_v34 = vld [vmem:[#allocation5 + $0x508] sm:$0xff] }
  0xf7   : > { %v1367_v61 = vld [vmem:[#allocation5 + $0xa00] sm:$0xff]  ;;  %1549 = vmatpush.msrb.mxu0 %v1303_v60  ;;  %1589 = vmatpush.msrb.mxu2 %v1048_v62  ;;  %v1272_v35 = vld [vmem:[#allocation5 + $0x708] sm:$0xff] }
  0xf8   : > { %1569 = vmatpush.msrb.mxu1 %v1367_v61  ;;  %1608 = vmatpush.msrb.mxu3 %v1116_v63  ;;  %v1336_v36 = vld [vmem:[#allocation5 + $0x908] sm:$0xff] }
  0xf9   : > { %1470 = vmatmul.f32.vlgmr.msra.gmra.mxu0 %v7544_v0  ;;  %1510 = vmatmul.f32.vlgmr.msra.gmra.mxu2 %v7550_v2  ;;  %v1404_v37 = vld [vmem:[#allocation5 + $0xb28] sm:$0xff] }
  0xfa   : > { %1614 = vmatpush.msra.mxu0 %v1236_v3  ;;  %1634 = vmatpush.msra.mxu1 %v1300_v4  ;;  %v1204_v38 = vld [vmem:[#allocation5 + $0x4e8] sm:$0xff] }
  0xfb   : > { %1654 = vmatpush.msra.mxu2 %v1364_v5  ;;  %1609 = vmatpush.msrb.mxu3 %v1112_v6  ;;  %v1268_v39 = vld [vmem:[#allocation5 + $0x6e8] sm:$0xff] }
  0xfc   : > { %1615 = vmatpush.msra.mxu0 %v1232_v8  ;;  %1530 = vmatmul.f32.vlgmr.msra.gmra.mxu3 %v7555_v7  ;;  %v1332_v40 = vld [vmem:[#allocation5 + $0x8e8] sm:$0xff] }
  0xfd   : > { %1635 = vmatpush.msra.mxu1 %v1296_v9  ;;  %1655 = vmatpush.msra.mxu2 %v1360_v10  ;;  %v1400_v41 = vld [vmem:[#allocation5 + $0xb08] sm:$0xff]  ;;  %v1109_v10 = vld [vmem:[#allocation5 + $0x1f0] sm:$0xff] }
  0xfe   : > { %1674 = vmatpush.msra.mxu3 %v1428_v11  ;;  %1616 = vmatpush.msra.mxu0 %v1228_v12  ;;  %v1200_v42 = vld [vmem:[#allocation5 + $0x4c8] sm:$0xff]  ;;  %v1173_v11 = vld [vmem:[#allocation5 + $0x3f0] sm:$0xff] }
  0xff   : > { %1636 = vmatpush.msra.mxu1 %v1292_v13  ;;  %1656 = vmatpush.msra.mxu2 %v1356_v14  ;;  %v1264_v43 = vld [vmem:[#allocation5 + $0x6c8] sm:$0xff]  ;;  %v1237_v12 = vld [vmem:[#allocation5 + $0x5f0] sm:$0xff] }
 0x100   : > { %1675 = vmatpush.msra.mxu3 %v1424_v15  ;;  %1617 = vmatpush.msra.mxu0 %v1224_v16  ;;  %v1328_v44 = vld [vmem:[#allocation5 + $0x8c8] sm:$0xff]  ;;  %v1105_v14 = vld [vmem:[#allocation5 + $0x1d0] sm:$0xff] }
 0x101   : > { %1637 = vmatpush.msra.mxu1 %v1288_v17  ;;  %1657 = vmatpush.msra.mxu2 %v1352_v18  ;;  %v1396_v45 = vld [vmem:[#allocation5 + $0xae8] sm:$0xff]  ;;  %v1169_v15 = vld [vmem:[#allocation5 + $0x3d0] sm:$0xff] }
 0x102   : > { %1676 = vmatpush.msra.mxu3 %v1420_v19  ;;  %1618 = vmatpush.msra.mxu0 %v1220_v20  ;;  %v1196_v46 = vld [vmem:[#allocation5 + $0x4a8] sm:$0xff]  ;;  %v1233_v16 = vld [vmem:[#allocation5 + $0x5d0] sm:$0xff] }
 0x103   : > { %1638 = vmatpush.msra.mxu1 %v1284_v21  ;;  %1658 = vmatpush.msra.mxu2 %v1348_v22  ;;  %v1260_v47 = vld [vmem:[#allocation5 + $0x6a8] sm:$0xff]  ;;  %v1301_v17 = vld [vmem:[#allocation5 + $0x7f0] sm:$0xff] }
 0x104   : > { %1677 = vmatpush.msra.mxu3 %v1416_v23  ;;  %1550 = vmatmul.f32.vlgmr.msrb.gmra.mxu0 %v7560_v24  ;;  %v1324_v48 = vld [vmem:[#allocation5 + $0x8a8] sm:$0xff]  ;;  %v1101_v18 = vld [vmem:[#allocation5 + $0x1b0] sm:$0xff] }
 0x105   : > { %1639 = vmatpush.msra.mxu1 %v1280_v25  ;;  %1619 = vmatpush.msra.mxu0 %v1216_v26  ;;  %v1392_v49 = vld [vmem:[#allocation5 + $0xac8] sm:$0xff]  ;;  %v1165_v19 = vld [vmem:[#allocation5 + $0x3b0] sm:$0xff] }
 0x106   : > { %1659 = vmatpush.msra.mxu2 %v1344_v27  ;;  %1678 = vmatpush.msra.mxu3 %v1412_v29  ;;  %v1192_v50 = vld [vmem:[#allocation5 + $0x488] sm:$0xff]  ;;  %v1229_v20 = vld [vmem:[#allocation5 + $0x5b0] sm:$0xff] }
 0x107   : > { %1570 = vmatmul.f32.vlgmr.msrb.gmra.mxu1 %v7563_v28  ;;  %1620 = vmatpush.msra.mxu0 %v1212_v30  ;;  %v1256_v51 = vld [vmem:[#allocation5 + $0x688] sm:$0xff]  ;;  %v1297_v21 = vld [vmem:[#allocation5 + $0x7d0] sm:$0xff] }
 0x108   : > { %1640 = vmatpush.msra.mxu1 %v1276_v31  ;;  %1660 = vmatpush.msra.mxu2 %v1340_v32  ;;  %v1320_v52 = vld [vmem:[#allocation5 + $0x888] sm:$0xff]  ;;  %v1097_v22 = vld [vmem:[#allocation5 + $0x190] sm:$0xff] }
 0x109   : > { %1679 = vmatpush.msra.mxu3 %v1408_v33  ;;  %1621 = vmatpush.msra.mxu0 %v1208_v34  ;;  %v1388_v53 = vld [vmem:[#allocation5 + $0xaa8] sm:$0xff]  ;;  %v1161_v23 = vld [vmem:[#allocation5 + $0x390] sm:$0xff] }
 0x10a   : > { %1641 = vmatpush.msra.mxu1 %v1272_v35  ;;  %1661 = vmatpush.msra.mxu2 %v1336_v36  ;;  %v1188_v54 = vld [vmem:[#allocation5 + $0x468] sm:$0xff]  ;;  %v1225_v25 = vld [vmem:[#allocation5 + $0x590] sm:$0xff] }
 0x10b   : > { %1680 = vmatpush.msra.mxu3 %v1404_v37  ;;  %1622 = vmatpush.msra.mxu0 %v1204_v38  ;;  %v1252_v55 = vld [vmem:[#allocation5 + $0x668] sm:$0xff]  ;;  %v1293_v26 = vld [vmem:[#allocation5 + $0x7b0] sm:$0xff] }
 0x10c   : > { %1642 = vmatpush.msra.mxu1 %v1268_v39  ;;  %1662 = vmatpush.msra.mxu2 %v1332_v40  ;;  %v1316_v56 = vld [vmem:[#allocation5 + $0x868] sm:$0xff]  ;;  %v1093_v27 = vld [vmem:[#allocation5 + $0x170] sm:$0xff] }
 0x10d   : > { %1681 = vmatpush.msra.mxu3 %v1400_v41  ;;  %1623 = vmatpush.msra.mxu0 %v1200_v42  ;;  %v1384_v57 = vld [vmem:[#allocation5 + $0xa88] sm:$0xff]  ;;  %v1157_v29 = vld [vmem:[#allocation5 + $0x370] sm:$0xff] }
 0x10e   : > { %1643 = vmatpush.msra.mxu1 %v1264_v43  ;;  %1663 = vmatpush.msra.mxu2 %v1328_v44  ;;  %v1184_v58 = vld [vmem:[#allocation5 + $0x448] sm:$0xff]  ;;  %v1221_v30 = vld [vmem:[#allocation5 + $0x570] sm:$0xff] }
 0x10f   : > { %1682 = vmatpush.msra.mxu3 %v1396_v45  ;;  %1624 = vmatpush.msra.mxu0 %v1196_v46  ;;  %v1248_v59 = vld [vmem:[#allocation5 + $0x648] sm:$0xff]  ;;  %v1289_v31 = vld [vmem:[#allocation5 + $0x790] sm:$0xff] }
 0x110   : > { %1644 = vmatpush.msra.mxu1 %v1260_v47  ;;  %1664 = vmatpush.msra.mxu2 %v1324_v48  ;;  %v1312_v60 = vld [vmem:[#allocation5 + $0x848] sm:$0xff]  ;;  %v1089_v32 = vld [vmem:[#allocation5 + $0x150] sm:$0xff] }
 0x111   : > { %1683 = vmatpush.msra.mxu3 %v1392_v49  ;;  %1625 = vmatpush.msra.mxu0 %v1192_v50  ;;  %v1380_v61 = vld [vmem:[#allocation5 + $0xa68] sm:$0xff]  ;;  %v1153_v33 = vld [vmem:[#allocation5 + $0x350] sm:$0xff] }
 0x112   : > { %1645 = vmatpush.msra.mxu1 %v1256_v51  ;;  %1665 = vmatpush.msra.mxu2 %v1320_v52  ;;  %v1180_v62 = vld [vmem:[#allocation5 + $0x428] sm:$0xff]  ;;  %v1217_v34 = vld [vmem:[#allocation5 + $0x550] sm:$0xff] }
 0x113   : > { %1684 = vmatpush.msra.mxu3 %v1388_v53  ;;  %1590 = vmatmul.f32.vlgmr.msrb.gmra.mxu2 %v7544_v0  ;;  %v1244_v63 = vld [vmem:[#allocation5 + $0x628] sm:$0xff]  ;;  %v1285_v35 = vld [vmem:[#allocation5 + $0x770] sm:$0xff] }
 0x114   : > { %1626 = vmatpush.msra.mxu0 %v1188_v54  ;;  %1646 = vmatpush.msra.mxu1 %v1252_v55  ;;  %v1308_v3 = vld [vmem:[#allocation5 + $0x828] sm:$0xff]  ;;  %v1085_v36 = vld [vmem:[#allocation5 + $0x130] sm:$0xff] }
 0x115   : > { %1666 = vmatpush.msra.mxu2 %v1316_v56  ;;  %1685 = vmatpush.msra.mxu3 %v1384_v57  ;;  %v1376_v4 = vld [vmem:[#allocation5 + $0xa48] sm:$0xff]  ;;  %v1149_v37 = vld [vmem:[#allocation5 + $0x330] sm:$0xff] }
 0x116   : > { %1627 = vmatpush.msra.mxu0 %v1184_v58  ;;  %1610 = vmatmul.f32.vlgmr.msrb.gmra.mxu3 %v7547_v1  ;;  %v1176_v5 = vld [vmem:[#allocation5 + $0x408] sm:$0xff]  ;;  %v1213_v38 = vld [vmem:[#allocation5 + $0x530] sm:$0xff] }
 0x117   : > { %1647 = vmatpush.msra.mxu1 %v1248_v59  ;;  %1667 = vmatpush.msra.mxu2 %v1312_v60  ;;  %v1240_v6 = vld [vmem:[#allocation5 + $0x608] sm:$0xff]  ;;  %v1281_v39 = vld [vmem:[#allocation5 + $0x750] sm:$0xff] }
 0x118   : > { %1686 = vmatpush.msra.mxu3 %v1380_v61  ;;  %1628 = vmatpush.msra.mxu0 %v1180_v62  ;;  %v1304_v8 = vld [vmem:[#allocation5 + $0x808] sm:$0xff]  ;;  %v1081_v40 = vld [vmem:[#allocation5 + $0x110] sm:$0xff] }
 0x119   : > { %1648 = vmatpush.msra.mxu1 %v1244_v63  ;;  %v1372_v9 = vld [vmem:[#allocation5 + $0xa28] sm:$0xff]  ;;  %1668 = vmatpush.msra.mxu2 %v1308_v3  ;;  %v1145_v41 = vld [vmem:[#allocation5 + $0x310] sm:$0xff] }
 0x11a   : > { %1687 = vmatpush.msra.mxu3 %v1376_v4  ;;  %1629 = vmatpush.msra.mxu0 %v1176_v5  ;;  %v1368_v13 = vld [vmem:[#allocation5 + $0xa08] sm:$0xff]  ;;  %v1209_v42 = vld [vmem:[#allocation5 + $0x510] sm:$0xff] }
 0x11b   : > { %1649 = vmatpush.msra.mxu1 %v1240_v6  ;;  %1669 = vmatpush.msra.mxu2 %v1304_v8  ;;  %v1277_v43 = vld [vmem:[#allocation5 + $0x730] sm:$0xff] }
 0x11c   : > { %1688 = vmatpush.msra.mxu3 %v1372_v9  ;;  %1670 = vmatmul.f32.vlgmr.msra.gmra.mxu2 %v7560_v24  ;;  %v1077_v44 = vld [vmem:[#allocation5 + $0xf0] sm:$0xff] }
 0x11d   : > { %1694 = vmatpush.msrb.mxu0 %v1109_v10  ;;  %1714 = vmatpush.msrb.mxu1 %v1173_v11  ;;  %v1141_v45 = vld [vmem:[#allocation5 + $0x2f0] sm:$0xff] }
 0x11e   : > { %1734 = vmatpush.msrb.mxu2 %v1237_v12  ;;  %1689 = vmatpush.msra.mxu3 %v1368_v13  ;;  %v1205_v46 = vld [vmem:[#allocation5 + $0x4f0] sm:$0xff] }
 0x11f   : > { %1630 = vmatmul.f32.vlgmr.msra.gmra.mxu0 %v7550_v2  ;;  %1690 = vmatmul.f32.vlgmr.msra.gmra.mxu3 %v7563_v28  ;;  %v1273_v47 = vld [vmem:[#allocation5 + $0x710] sm:$0xff] }
 0x120   : > { %1695 = vmatpush.msrb.mxu0 %v1105_v14  ;;  %1715 = vmatpush.msrb.mxu1 %v1169_v15  ;;  %v1073_v48 = vld [vmem:[#allocation5 + $0xd0] sm:$0xff] }
 0x121   : > { %1735 = vmatpush.msrb.mxu2 %v1233_v16  ;;  %1754 = vmatpush.msrb.mxu3 %v1301_v17  ;;  %v1137_v49 = vld [vmem:[#allocation5 + $0x2d0] sm:$0xff] }
 0x122   : > { %1650 = vmatmul.f32.vlgmr.msra.gmra.mxu1 %v7555_v7  ;;  %1696 = vmatpush.msrb.mxu0 %v1101_v18  ;;  %v1201_v50 = vld [vmem:[#allocation5 + $0x4d0] sm:$0xff]  ;;  %v1110_v18 = vld [vmem:[#allocation5 + $0x1f8] sm:$0xff] }
 0x123   : > { %1716 = vmatpush.msrb.mxu1 %v1165_v19  ;;  %1736 = vmatpush.msrb.mxu2 %v1229_v20  ;;  %v1269_v51 = vld [vmem:[#allocation5 + $0x6f0] sm:$0xff] }
 0x124   : > { %1755 = vmatpush.msrb.mxu3 %v1297_v21  ;;  %1697 = vmatpush.msrb.mxu0 %v1097_v22  ;;  %v1069_v52 = vld [vmem:[#allocation5 + $0xb0] sm:$0xff]  ;;  %v1106_v22 = vld [vmem:[#allocation5 + $0x1d8] sm:$0xff] }
 0x125   : > { %1717 = vmatpush.msrb.mxu1 %v1161_v23  ;;  %1737 = vmatpush.msrb.mxu2 %v1225_v25  ;;  %v1133_v53 = vld [vmem:[#allocation5 + $0x2b0] sm:$0xff]  ;;  %v1174_v23 = vld [vmem:[#allocation5 + $0x3f8] sm:$0xff] }
 0x126   : > { %1756 = vmatpush.msrb.mxu3 %v1293_v26  ;;  %1698 = vmatpush.msrb.mxu0 %v1093_v27  ;;  %v1197_v54 = vld [vmem:[#allocation5 + $0x4b0] sm:$0xff]  ;;  %v1102_v27 = vld [vmem:[#allocation5 + $0x1b8] sm:$0xff] }
 0x127   : > { %1718 = vmatpush.msrb.mxu1 %v1157_v29  ;;  %1738 = vmatpush.msrb.mxu2 %v1221_v30  ;;  %v1265_v55 = vld [vmem:[#allocation5 + $0x6d0] sm:$0xff]  ;;  %v1170_v29 = vld [vmem:[#allocation5 + $0x3d8] sm:$0xff] }
 0x128   : > { %1757 = vmatpush.msrb.mxu3 %v1289_v31  ;;  %1699 = vmatpush.msrb.mxu0 %v1089_v32  ;;  %v1065_v56 = vld [vmem:[#allocation5 + $0x90] sm:$0xff]  ;;  %v1098_v32 = vld [vmem:[#allocation5 + $0x198] sm:$0xff] }
 0x129   : > { %1719 = vmatpush.msrb.mxu1 %v1153_v33  ;;  %1739 = vmatpush.msrb.mxu2 %v1217_v34  ;;  %v1129_v57 = vld [vmem:[#allocation5 + $0x290] sm:$0xff]  ;;  %v1166_v33 = vld [vmem:[#allocation5 + $0x3b8] sm:$0xff] }
 0x12a   : > { %1758 = vmatpush.msrb.mxu3 %v1285_v35  ;;  %1700 = vmatpush.msrb.mxu0 %v1085_v36  ;;  %v1193_v58 = vld [vmem:[#allocation5 + $0x490] sm:$0xff]  ;;  %v1094_v36 = vld [vmem:[#allocation5 + $0x178] sm:$0xff] }
 0x12b   : > { %1720 = vmatpush.msrb.mxu1 %v1149_v37  ;;  %1740 = vmatpush.msrb.mxu2 %v1213_v38  ;;  %v1261_v59 = vld [vmem:[#allocation5 + $0x6b0] sm:$0xff]  ;;  %v1162_v37 = vld [vmem:[#allocation5 + $0x398] sm:$0xff] }
 0x12c   : > { %1759 = vmatpush.msrb.mxu3 %v1281_v39  ;;  %1701 = vmatpush.msrb.mxu0 %v1081_v40  ;;  %v1061_v60 = vld [vmem:[#allocation5 + $0x70] sm:$0xff]  ;;  %v1090_v40 = vld [vmem:[#allocation5 + $0x158] sm:$0xff] }
 0x12d   : > { %1721 = vmatpush.msrb.mxu1 %v1145_v41  ;;  %1741 = vmatpush.msrb.mxu2 %v1209_v42  ;;  %v1125_v61 = vld [vmem:[#allocation5 + $0x270] sm:$0xff]  ;;  %v1158_v41 = vld [vmem:[#allocation5 + $0x378] sm:$0xff] }
 0x12e   : > { %1760 = vmatpush.msrb.mxu3 %v1277_v43  ;;  %1702 = vmatpush.msrb.mxu0 %v1077_v44  ;;  %v1189_v62 = vld [vmem:[#allocation5 + $0x470] sm:$0xff]  ;;  %v1086_v44 = vld [vmem:[#allocation5 + $0x138] sm:$0xff] }
 0x12f   : > { %1722 = vmatpush.msrb.mxu1 %v1141_v45  ;;  %1742 = vmatpush.msrb.mxu2 %v1205_v46  ;;  %v1257_v63 = vld [vmem:[#allocation5 + $0x690] sm:$0xff]  ;;  %v1154_v45 = vld [vmem:[#allocation5 + $0x358] sm:$0xff] }
 0x130   : > { %1761 = vmatpush.msrb.mxu3 %v1273_v47  ;;  %1703 = vmatpush.msrb.mxu0 %v1073_v48  ;;  %v1057_v3 = vld [vmem:[#allocation5 + $0x50] sm:$0xff]  ;;  %v1082_v48 = vld [vmem:[#allocation5 + $0x118] sm:$0xff] }
 0x131   : > { %1723 = vmatpush.msrb.mxu1 %v1137_v49  ;;  %1743 = vmatpush.msrb.mxu2 %v1201_v50  ;;  %v1121_v4 = vld [vmem:[#allocation5 + $0x250] sm:$0xff]  ;;  %v1150_v49 = vld [vmem:[#allocation5 + $0x338] sm:$0xff] }
 0x132   : > { %1762 = vmatpush.msrb.mxu3 %v1269_v51  ;;  %1704 = vmatpush.msrb.mxu0 %v1069_v52  ;;  %v1185_v5 = vld [vmem:[#allocation5 + $0x450] sm:$0xff]  ;;  %v1078_v52 = vld [vmem:[#allocation5 + $0xf8] sm:$0xff] }
 0x133   : > { %1724 = vmatpush.msrb.mxu1 %v1133_v53  ;;  %1744 = vmatpush.msrb.mxu2 %v1197_v54  ;;  %v1253_v6 = vld [vmem:[#allocation5 + $0x670] sm:$0xff]  ;;  %v1146_v53 = vld [vmem:[#allocation5 + $0x318] sm:$0xff] }
 0x134   : > { %1763 = vmatpush.msrb.mxu3 %v1265_v55  ;;  %1705 = vmatpush.msrb.mxu0 %v1065_v56  ;;  %v1053_v8 = vld [vmem:[#allocation5 + $0x30] sm:$0xff]  ;;  %v1074_v56 = vld [vmem:[#allocation5 + $0xd8] sm:$0xff] }
 0x135   : > { %1725 = vmatpush.msrb.mxu1 %v1129_v57  ;;  %1745 = vmatpush.msrb.mxu2 %v1193_v58  ;;  %v1117_v9 = vld [vmem:[#allocation5 + $0x230] sm:$0xff]  ;;  %v1142_v57 = vld [vmem:[#allocation5 + $0x2f8] sm:$0xff] }
 0x136   : > { %1764 = vmatpush.msrb.mxu3 %v1261_v59  ;;  %1706 = vmatpush.msrb.mxu0 %v1061_v60  ;;  %v1181_v10 = vld [vmem:[#allocation5 + $0x430] sm:$0xff]  ;;  %v1070_v60 = vld [vmem:[#allocation5 + $0xb8] sm:$0xff] }
 0x137   : > { %1726 = vmatpush.msrb.mxu1 %v1125_v61  ;;  %1746 = vmatpush.msrb.mxu2 %v1189_v62  ;;  %v1249_v11 = vld [vmem:[#allocation5 + $0x650] sm:$0xff]  ;;  %v1138_v61 = vld [vmem:[#allocation5 + $0x2d8] sm:$0xff] }
 0x138   : > { %1765 = vmatpush.msrb.mxu3 %v1257_v63  ;;  %1707 = vmatpush.msrb.mxu0 %v1057_v3  ;;  %v1049_v12 = vld [vmem:[#allocation5 + $0x10] sm:$0xff]  ;;  %v1066_v3 = vld [vmem:[#allocation5 + $0x98] sm:$0xff] }
 0x139   : > { %1727 = vmatpush.msrb.mxu1 %v1121_v4  ;;  %1747 = vmatpush.msrb.mxu2 %v1185_v5  ;;  %v1113_v13 = vld [vmem:[#allocation5 + $0x210] sm:$0xff]  ;;  %v1134_v4 = vld [vmem:[#allocation5 + $0x2b8] sm:$0xff] }
 0x13a   : > { %1766 = vmatpush.msrb.mxu3 %v1253_v6  ;;  %1708 = vmatpush.msrb.mxu0 %v1053_v8  ;;  %v1177_v14 = vld [vmem:[#allocation5 + $0x410] sm:$0xff]  ;;  %v1062_v8 = vld [vmem:[#allocation5 + $0x78] sm:$0xff] }
 0x13b   : > { %1728 = vmatpush.msrb.mxu1 %v1117_v9  ;;  %v1245_v15 = vld [vmem:[#allocation5 + $0x630] sm:$0xff]  ;;  %1748 = vmatpush.msrb.mxu2 %v1181_v10  ;;  %v1130_v9 = vld [vmem:[#allocation5 + $0x298] sm:$0xff] }
 0x13c   : > { %1767 = vmatpush.msrb.mxu3 %v1249_v11  ;;  %v1365_v16 = vld [vmem:[#allocation5 + $0x9f0] sm:$0xff]  ;;  %1709 = vmatpush.msrb.mxu0 %v1049_v12  ;;  %v1058_v12 = vld [vmem:[#allocation5 + $0x58] sm:$0xff] }
 0x13d   : > { %v1429_v17 = vld [vmem:[#allocation5 + $0xbf0] sm:$0xff]  ;;  %1729 = vmatpush.msrb.mxu1 %v1113_v13  ;;  %1749 = vmatpush.msrb.mxu2 %v1177_v14  ;;  %v1126_v13 = vld [vmem:[#allocation5 + $0x278] sm:$0xff] }
 0x13e   : > { %v1241_v19 = vld [vmem:[#allocation5 + $0x610] sm:$0xff]  ;;  %1768 = vmatpush.msrb.mxu3 %v1245_v15  ;;  %1774 = vmatpush.msra.mxu0 %v1365_v16  ;;  %v1054_v16 = vld [vmem:[#allocation5 + $0x38] sm:$0xff] }
 0x13f   : > { %v1361_v20 = vld [vmem:[#allocation5 + $0x9d0] sm:$0xff]  ;;  %1794 = vmatpush.msra.mxu1 %v1429_v17  ;;  %1814 = vmatpush.msra.mxu2 %v1110_v18  ;;  %v1122_v17 = vld [vmem:[#allocation5 + $0x258] sm:$0xff] }
 0x140   : > { %v1425_v21 = vld [vmem:[#allocation5 + $0xbd0] sm:$0xff]  ;;  %1769 = vmatpush.msrb.mxu3 %v1241_v19  ;;  %1775 = vmatpush.msra.mxu0 %v1361_v20  ;;  %v1050_v20 = vld [vmem:[#allocation5 + $0x18] sm:$0xff] }
 0x141   : > { %v1357_v25 = vld [vmem:[#allocation5 + $0x9b0] sm:$0xff]  ;;  %1795 = vmatpush.msra.mxu1 %v1425_v21  ;;  %1815 = vmatpush.msra.mxu2 %v1106_v22  ;;  %v1118_v21 = vld [vmem:[#allocation5 + $0x238] sm:$0xff] }
 0x142   : > { %v1421_v26 = vld [vmem:[#allocation5 + $0xbb0] sm:$0xff]  ;;  %1834 = vmatpush.msra.mxu3 %v1174_v23  ;;  %1776 = vmatpush.msra.mxu0 %v1357_v25  ;;  %v1302_v22 = vld [vmem:[#allocation5 + $0x7f8] sm:$0xff] }
 0x143   : > { %v1353_v30 = vld [vmem:[#allocation5 + $0x990] sm:$0xff]  ;;  %1796 = vmatpush.msra.mxu1 %v1421_v26  ;;  %1816 = vmatpush.msra.mxu2 %v1102_v27  ;;  %v1238_v23 = vld [vmem:[#allocation5 + $0x5f8] sm:$0xff] }
 0x144   : > { %v1417_v31 = vld [vmem:[#allocation5 + $0xb90] sm:$0xff]  ;;  %1835 = vmatpush.msra.mxu3 %v1170_v29  ;;  %1777 = vmatpush.msra.mxu0 %v1353_v30  ;;  %v1366_v25 = vld [vmem:[#allocation5 + $0x9f8] sm:$0xff] }
 0x145   : > { %v1349_v34 = vld [vmem:[#allocation5 + $0x970] sm:$0xff]  ;;  %1797 = vmatpush.msra.mxu1 %v1417_v31  ;;  %1817 = vmatpush.msra.mxu2 %v1098_v32  ;;  %v1114_v26 = vld [vmem:[#allocation5 + $0x218] sm:$0xff] }
 0x146   : > { %v1413_v35 = vld [vmem:[#allocation5 + $0xb70] sm:$0xff]  ;;  %1836 = vmatpush.msra.mxu3 %v1166_v33  ;;  %1778 = vmatpush.msra.mxu0 %v1349_v34  ;;  %v1234_v27 = vld [vmem:[#allocation5 + $0x5d8] sm:$0xff] }
 0x147   : > { %v1345_v38 = vld [vmem:[#allocation5 + $0x950] sm:$0xff]  ;;  %1798 = vmatpush.msra.mxu1 %v1413_v35  ;;  %1818 = vmatpush.msra.mxu2 %v1094_v36  ;;  %v1298_v29 = vld [vmem:[#allocation5 + $0x7d8] sm:$0xff] }
 0x148   : > { %v1409_v39 = vld [vmem:[#allocation5 + $0xb50] sm:$0xff]  ;;  %1837 = vmatpush.msra.mxu3 %v1162_v37  ;;  %1779 = vmatpush.msra.mxu0 %v1345_v38  ;;  %v1362_v30 = vld [vmem:[#allocation5 + $0x9d8] sm:$0xff] }
 0x149   : > { %v1341_v42 = vld [vmem:[#allocation5 + $0x930] sm:$0xff]  ;;  %1799 = vmatpush.msra.mxu1 %v1409_v39  ;;  %1819 = vmatpush.msra.mxu2 %v1090_v40  ;;  %v1430_v31 = vld [vmem:[#allocation5 + $0xbf8] sm:$0xff] }
 0x14a   : > { %v1405_v43 = vld [vmem:[#allocation5 + $0xb30] sm:$0xff]  ;;  %1838 = vmatpush.msra.mxu3 %v1158_v41  ;;  %1780 = vmatpush.msra.mxu0 %v1341_v42  ;;  %v1230_v32 = vld [vmem:[#allocation5 + $0x5b8] sm:$0xff] }
 0x14b   : > { %v1337_v46 = vld [vmem:[#allocation5 + $0x910] sm:$0xff]  ;;  %1800 = vmatpush.msra.mxu1 %v1405_v43  ;;  %1820 = vmatpush.msra.mxu2 %v1086_v44  ;;  %v1294_v33 = vld [vmem:[#allocation5 + $0x7b8] sm:$0xff] }
 0x14c   : > { %v1401_v47 = vld [vmem:[#allocation5 + $0xb10] sm:$0xff]  ;;  %1839 = vmatpush.msra.mxu3 %v1154_v45  ;;  %1781 = vmatpush.msra.mxu0 %v1337_v46  ;;  %v1358_v34 = vld [vmem:[#allocation5 + $0x9b8] sm:$0xff] }
 0x14d   : > { %v1333_v50 = vld [vmem:[#allocation5 + $0x8f0] sm:$0xff]  ;;  %1801 = vmatpush.msra.mxu1 %v1401_v47  ;;  %1821 = vmatpush.msra.mxu2 %v1082_v48  ;;  %v1426_v35 = vld [vmem:[#allocation5 + $0xbd8] sm:$0xff] }
 0x14e   : > { %v1397_v51 = vld [vmem:[#allocation5 + $0xaf0] sm:$0xff]  ;;  %1840 = vmatpush.msra.mxu3 %v1150_v49  ;;  %1782 = vmatpush.msra.mxu0 %v1333_v50  ;;  %v1226_v36 = vld [vmem:[#allocation5 + $0x598] sm:$0xff] }
 0x14f   : > { %v1329_v54 = vld [vmem:[#allocation5 + $0x8d0] sm:$0xff]  ;;  %1802 = vmatpush.msra.mxu1 %v1397_v51  ;;  %1822 = vmatpush.msra.mxu2 %v1078_v52  ;;  %v1290_v37 = vld [vmem:[#allocation5 + $0x798] sm:$0xff] }
 0x150   : > { %v1393_v55 = vld [vmem:[#allocation5 + $0xad0] sm:$0xff]  ;;  %1841 = vmatpush.msra.mxu3 %v1146_v53  ;;  %1783 = vmatpush.msra.mxu0 %v1329_v54  ;;  %v1354_v38 = vld [vmem:[#allocation5 + $0x998] sm:$0xff] }
 0x151   : > { %v1325_v58 = vld [vmem:[#allocation5 + $0x8b0] sm:$0xff]  ;;  %1803 = vmatpush.msra.mxu1 %v1393_v55  ;;  %1823 = vmatpush.msra.mxu2 %v1074_v56  ;;  %v1422_v39 = vld [vmem:[#allocation5 + $0xbb8] sm:$0xff] }
 0x152   : > { %v1389_v59 = vld [vmem:[#allocation5 + $0xab0] sm:$0xff]  ;;  %1842 = vmatpush.msra.mxu3 %v1142_v57  ;;  %1784 = vmatpush.msra.mxu0 %v1325_v58  ;;  %v1222_v40 = vld [vmem:[#allocation5 + $0x578] sm:$0xff] }
 0x153   : > { %v1321_v62 = vld [vmem:[#allocation5 + $0x890] sm:$0xff]  ;;  %1804 = vmatpush.msra.mxu1 %v1389_v59  ;;  %1824 = vmatpush.msra.mxu2 %v1070_v60  ;;  %v1286_v41 = vld [vmem:[#allocation5 + $0x778] sm:$0xff] }
 0x154   : > { %v1385_v63 = vld [vmem:[#allocation5 + $0xa90] sm:$0xff]  ;;  %1843 = vmatpush.msra.mxu3 %v1138_v61  ;;  %1750 = vmatmul.f32.vlgmr.msrb.gmra.mxu2 %v7550_v2  ;;  %v1350_v42 = vld [vmem:[#allocation5 + $0x978] sm:$0xff] }
 0x155   : > { %1785 = vmatpush.msra.mxu0 %v1321_v62  ;;  %v1317_v5 = vld [vmem:[#allocation5 + $0x870] sm:$0xff]  ;;  %1805 = vmatpush.msra.mxu1 %v1385_v63  ;;  %v1418_v43 = vld [vmem:[#allocation5 + $0xb98] sm:$0xff] }
 0x156   : > { %1825 = vmatpush.msra.mxu2 %v1066_v3  ;;  %v1381_v6 = vld [vmem:[#allocation5 + $0xa70] sm:$0xff]  ;;  %1844 = vmatpush.msra.mxu3 %v1134_v4  ;;  %v1218_v44 = vld [vmem:[#allocation5 + $0x558] sm:$0xff] }
 0x157   : > { %1710 = vmatmul.f32.vlgmr.msrb.gmra.mxu0 %v7544_v0  ;;  %1770 = vmatmul.f32.vlgmr.msrb.gmra.mxu3 %v7555_v7  ;;  %v1313_v10 = vld [vmem:[#allocation5 + $0x850] sm:$0xff]  ;;  %v1282_v45 = vld [vmem:[#allocation5 + $0x758] sm:$0xff] }
 0x158   : > { %1786 = vmatpush.msra.mxu0 %v1317_v5  ;;  %v1377_v11 = vld [vmem:[#allocation5 + $0xa50] sm:$0xff]  ;;  %1806 = vmatpush.msra.mxu1 %v1381_v6  ;;  %v1346_v46 = vld [vmem:[#allocation5 + $0x958] sm:$0xff] }
 0x159   : > { %1826 = vmatpush.msra.mxu2 %v1062_v8  ;;  %1845 = vmatpush.msra.mxu3 %v1130_v9  ;;  %v1309_v14 = vld [vmem:[#allocation5 + $0x830] sm:$0xff]  ;;  %v1414_v47 = vld [vmem:[#allocation5 + $0xb78] sm:$0xff] }
 0x15a   : > { %1730 = vmatmul.f32.vlgmr.msrb.gmra.mxu1 %v7547_v1  ;;  %v1373_v15 = vld [vmem:[#allocation5 + $0xa30] sm:$0xff]  ;;  %1787 = vmatpush.msra.mxu0 %v1313_v10  ;;  %v1214_v48 = vld [vmem:[#allocation5 + $0x538] sm:$0xff] }
 0x15b   : > { %1807 = vmatpush.msra.mxu1 %v1377_v11  ;;  %1827 = vmatpush.msra.mxu2 %v1058_v12  ;;  %v1305_v18 = vld [vmem:[#allocation5 + $0x810] sm:$0xff]  ;;  %v1278_v49 = vld [vmem:[#allocation5 + $0x738] sm:$0xff] }
 0x15c   : > { %1846 = vmatpush.msra.mxu3 %v1126_v13  ;;  %v1369_v19 = vld [vmem:[#allocation5 + $0xa10] sm:$0xff]  ;;  %1788 = vmatpush.msra.mxu0 %v1309_v14  ;;  %v1342_v50 = vld [vmem:[#allocation5 + $0x938] sm:$0xff] }
 0x15d   : > { %1808 = vmatpush.msra.mxu1 %v1373_v15  ;;  %1828 = vmatpush.msra.mxu2 %v1054_v16  ;;  %v1410_v51 = vld [vmem:[#allocation5 + $0xb58] sm:$0xff] }
 0x15e   : > { %1847 = vmatpush.msra.mxu3 %v1122_v17  ;;  %1789 = vmatpush.msra.mxu0 %v1305_v18  ;;  %v1210_v52 = vld [vmem:[#allocation5 + $0x518] sm:$0xff] }
 0x15f   : > { %1809 = vmatpush.msra.mxu1 %v1369_v19  ;;  %1829 = vmatpush.msra.mxu2 %v1050_v20  ;;  %v1274_v53 = vld [vmem:[#allocation5 + $0x718] sm:$0xff] }
 0x160   : > { %1848 = vmatpush.msra.mxu3 %v1118_v21  ;;  %1790 = vmatmul.f32.vlgmr.msra.gmra.mxu0 %v7560_v24  ;;  %v1338_v54 = vld [vmem:[#allocation5 + $0x918] sm:$0xff] }
 0x161   : > { %1874 = vmatpush.msrb.mxu1 %v1302_v22  ;;  %1854 = vmatpush.msrb.mxu0 %v1238_v23  ;;  %v1406_v55 = vld [vmem:[#allocation5 + $0xb38] sm:$0xff] }
 0x162   : > { %1894 = vmatpush.msrb.mxu2 %v1366_v25  ;;  %1849 = vmatpush.msra.mxu3 %v1114_v26  ;;  %v1206_v56 = vld [vmem:[#allocation5 + $0x4f8] sm:$0xff] }
 0x163   : > { %1810 = vmatmul.f32.vlgmr.msra.gmra.mxu1 %v7563_v28  ;;  %1855 = vmatpush.msrb.mxu0 %v1234_v27  ;;  %v1270_v57 = vld [vmem:[#allocation5 + $0x6f8] sm:$0xff] }
 0x164   : > { %1875 = vmatpush.msrb.mxu1 %v1298_v29  ;;  %1895 = vmatpush.msrb.mxu2 %v1362_v30  ;;  %v1334_v58 = vld [vmem:[#allocation5 + $0x8f8] sm:$0xff] }
 0x165   : > { %1914 = vmatpush.msrb.mxu3 %v1430_v31  ;;  %1856 = vmatpush.msrb.mxu0 %v1230_v32  ;;  %v1402_v59 = vld [vmem:[#allocation5 + $0xb18] sm:$0xff]  ;;  %v1966_v32 = vld [vmem:[#allocation8 + $0xe0] sm:$0xff] }
 0x166   : > { %1876 = vmatpush.msrb.mxu1 %v1294_v33  ;;  %1896 = vmatpush.msrb.mxu2 %v1358_v34  ;;  %v1202_v60 = vld [vmem:[#allocation5 + $0x4d8] sm:$0xff]  ;;  %v1998_v33 = vld [vmem:[#allocation8 + $0x1e0] sm:$0xff] }
 0x167   : > { %1915 = vmatpush.msrb.mxu3 %v1426_v35  ;;  %1857 = vmatpush.msrb.mxu0 %v1226_v36  ;;  %v1266_v61 = vld [vmem:[#allocation5 + $0x6d8] sm:$0xff] }
 0x168   : > { %1877 = vmatpush.msrb.mxu1 %v1290_v37  ;;  %1897 = vmatpush.msrb.mxu2 %v1354_v38  ;;  %v1330_v62 = vld [vmem:[#allocation5 + $0x8d8] sm:$0xff]  ;;  %v1962_v38 = vld [vmem:[#allocation8 + $0xc0] sm:$0xff] }
 0x169   : > { %1916 = vmatpush.msrb.mxu3 %v1422_v39  ;;  %1858 = vmatpush.msrb.mxu0 %v1222_v40  ;;  %v1398_v63 = vld [vmem:[#allocation5 + $0xaf8] sm:$0xff] }
 0x16a   : > { %1878 = vmatpush.msrb.mxu1 %v1286_v41  ;;  %1898 = vmatpush.msrb.mxu2 %v1350_v42  ;;  %v1198_v3 = vld [vmem:[#allocation5 + $0x4b8] sm:$0xff]  ;;  %v1491_v42 = vpop.f32.mrf.mxu1 }
 0x16b   : > { %1917 = vmatpush.msrb.mxu3 %v1418_v43  ;;  %1859 = vmatpush.msrb.mxu0 %v1218_v44  ;;  %v1262_v4 = vld [vmem:[#allocation5 + $0x6b8] sm:$0xff] }
 0x16c   : > { %1879 = vmatpush.msrb.mxu1 %v1282_v45  ;;  %1899 = vmatpush.msrb.mxu2 %v1346_v46  ;;  %v1326_v5 = vld [vmem:[#allocation5 + $0x8b8] sm:$0xff] }
 0x16d   : > { %1918 = vmatpush.msrb.mxu3 %v1414_v47  ;;  %1860 = vmatpush.msrb.mxu0 %v1214_v48  ;;  %v1394_v6 = vld [vmem:[#allocation5 + $0xad8] sm:$0xff]  ;;  %v1986_v47 = vld [vmem:[#allocation8 + $0x180] sm:$0xff] }
 0x16e   : > { %1880 = vmatpush.msrb.mxu1 %v1278_v49  ;;  %1900 = vmatpush.msrb.mxu2 %v1342_v50  ;;  %v1194_v8 = vld [vmem:[#allocation5 + $0x498] sm:$0xff] }
 0x16f   : > { %1919 = vmatpush.msrb.mxu3 %v1410_v51  ;;  %1861 = vmatpush.msrb.mxu0 %v1210_v52  ;;  %v1258_v9 = vld [vmem:[#allocation5 + $0x698] sm:$0xff] }
 0x170   : > { %1881 = vmatpush.msrb.mxu1 %v1274_v53  ;;  %1901 = vmatpush.msrb.mxu2 %v1338_v54  ;;  %v1322_v10 = vld [vmem:[#allocation5 + $0x898] sm:$0xff]  ;;  %v1950_v53 = vld [vmem:[#allocation8 + $0x60] sm:$0xff] }
 0x171   : > { %1920 = vmatpush.msrb.mxu3 %v1406_v55  ;;  %1862 = vmatpush.msrb.mxu0 %v1206_v56  ;;  %v1390_v11 = vld [vmem:[#allocation5 + $0xab8] sm:$0xff]  ;;  %v1982_v54 = vld [vmem:[#allocation8 + $0x160] sm:$0xff] }
 0x172   : > { %1882 = vmatpush.msrb.mxu1 %v1270_v57  ;;  %1902 = vmatpush.msrb.mxu2 %v1334_v58  ;;  %v1190_v12 = vld [vmem:[#allocation5 + $0x478] sm:$0xff]  ;;  %v2030_v57 = vld [vmem:[#allocation8 + $0x2e0] sm:$0xff] }
 0x173   : > { %1921 = vmatpush.msrb.mxu3 %v1402_v59  ;;  %1863 = vmatpush.msrb.mxu0 %v1202_v60  ;;  %v1254_v13 = vld [vmem:[#allocation5 + $0x678] sm:$0xff] }
 0x174   : > { %1883 = vmatpush.msrb.mxu1 %v1266_v61  ;;  %1903 = vmatpush.msrb.mxu2 %v1330_v62  ;;  %v1318_v14 = vld [vmem:[#allocation5 + $0x878] sm:$0xff] }
 0x175   : > { %1922 = vmatpush.msrb.mxu3 %v1398_v63  ;;  %1864 = vmatpush.msrb.mxu0 %v1198_v3  ;;  %v1386_v15 = vld [vmem:[#allocation5 + $0xa98] sm:$0xff]  ;;  %v1946_v63 = vld [vmem:[#allocation8 + $0x40] sm:$0xff] }
 0x176   : > { %1884 = vmatpush.msrb.mxu1 %v1262_v4  ;;  %1904 = vmatpush.msrb.mxu2 %v1326_v5  ;;  %v1186_v16 = vld [vmem:[#allocation5 + $0x458] sm:$0xff]  ;;  %v1471_v37 = vpop.f32.mrf.mxu0  ;;  %v1978_v3 = vld [vmem:[#allocation8 + $0x140] sm:$0xff] }
 0x177   : > { %1923 = vmatpush.msrb.mxu3 %v1394_v6  ;;  %1865 = vmatpush.msrb.mxu0 %v1194_v8  ;;  %v1250_v17 = vld [vmem:[#allocation5 + $0x658] sm:$0xff]  ;;  %v2026_v6 = vld [vmem:[#allocation8 + $0x2c0] sm:$0xff] }
 0x178   : > { %1885 = vmatpush.msrb.mxu1 %v1258_v9  ;;  %1905 = vmatpush.msrb.mxu2 %v1322_v10  ;;  %v1314_v18 = vld [vmem:[#allocation5 + $0x858] sm:$0xff] }
 0x179   : > { %1924 = vmatpush.msrb.mxu3 %v1390_v11  ;;  %1830 = vmatmul.f32.vlgmr.msra.gmra.mxu2 %v7544_v0  ;;  %v1382_v19 = vld [vmem:[#allocation5 + $0xa78] sm:$0xff] }
 0x17a   : > { %1866 = vmatpush.msrb.mxu0 %v1190_v12  ;;  %1886 = vmatpush.msrb.mxu1 %v1254_v13  ;;  %v1182_v20 = vld [vmem:[#allocation5 + $0x438] sm:$0xff]  ;;  %v1942_v13 = vld [vmem:[#allocation8 + $0x20] sm:$0xff] }
 0x17b   : > { %1906 = vmatpush.msrb.mxu2 %v1318_v14  ;;  %1925 = vmatpush.msrb.mxu3 %v1386_v15  ;;  %v1246_v21 = vld [vmem:[#allocation5 + $0x638] sm:$0xff]  ;;  %v1974_v14 = vld [vmem:[#allocation8 + $0x120] sm:$0xff] }
 0x17c   : > { %1867 = vmatpush.msrb.mxu0 %v1186_v16  ;;  %1850 = vmatmul.f32.vlgmr.msra.gmra.mxu3 %v7547_v1  ;;  %v1310_v22 = vld [vmem:[#allocation5 + $0x838] sm:$0xff]  ;;  %v7581_v1 = vld [vmem:[#allocation7] sm:$0xf]  ;;  %v1511_v46 = vpop.f32.mrf.mxu2 }
 0x17d   : > { %1887 = vmatpush.msrb.mxu1 %v1250_v17  ;;  %v1378_v23 = vld [vmem:[#allocation5 + $0xa58] sm:$0xff]  ;;  %1907 = vmatpush.msrb.mxu2 %v1314_v18  ;;  %v1446_v34 = vperm.slane %v7581_v1, 0  ;;  %v1447_v56 = vperm.slane %v7581_v1, 1  ;;  %v2022_v17 = vld [vmem:[#allocation8 + $0x2a0] sm:$0xff] }
 0x17e   : > { %1926 = vmatpush.msrb.mxu3 %v1382_v19  ;;  %v1178_v25 = vld [vmem:[#allocation5 + $0x418] sm:$0xff]  ;;  %1868 = vmatpush.msrb.mxu0 %v1182_v20 }
 0x17f   : > { %v1242_v26 = vld [vmem:[#allocation5 + $0x618] sm:$0xff]  ;;  %1888 = vmatpush.msrb.mxu1 %v1246_v21  ;;  %1908 = vmatpush.msrb.mxu2 %v1310_v22  ;;  %v1472_v39 = vadd.f32 %v1471_v37, %v1446_v34  ;;  %v1531_v51 = vpop.f32.mrf.mxu3 }
 0x180   : > { %v1306_v0 = vld [vmem:[#allocation5 + $0x818] sm:$0xff]  ;;  %1927 = vmatpush.msrb.mxu3 %v1378_v23  ;;  %1869 = vmatpush.msrb.mxu0 %v1178_v25  ;;  %v1938_v23 = vld [vmem:[#allocation8] sm:$0xff] }
 0x181   : > { %v1374_v27 = vld [vmem:[#allocation5 + $0xa38] sm:$0xff]  ;;  %1889 = vmatpush.msrb.mxu1 %v1242_v26  ;;  %1909 = vmatpush.msrb.mxu2 %v1306_v0  ;;  %v1492_v43 = vadd.f32 %v1491_v42, %v1472_v39  ;;  %v1551_v55 = vpop.f32.mrf.mxu0  ;;  %v1970_v25 = vld [vmem:[#allocation8 + $0x100] sm:$0xff] }
 0x182   : > { %v1968_v29 = vld [vmem:[#allocation8 + $0xf0] sm:$0xff]  ;;  %1928 = vmatpush.msrb.mxu3 %v1374_v27  ;;  %1910 = vmatmul.f32.vlgmr.msrb.gmra.mxu2 %v7560_v24  ;;  %v1994_v24 = vld [vmem:[#allocation8 + $0x1c0] sm:$0xff]  ;;  %v2001_v0 = vld [vmem:[#allocation8 + $0x1f8] sm:$0xff] }
 0x183   : > { %v2000_v30 = vld [vmem:[#allocation8 + $0x1f0] sm:$0xff]  ;;  %2072 = vmatpush.msra.mxu0 %v1968_v29  ;;  %1890 = vmatmul.f32.vlgmr.msrb.gmra.mxu1 %v7555_v7  ;;  %v1954_v7 = vld [vmem:[#allocation8 + $0x80] sm:$0xff]  ;;  %v1512_v48 = vadd.f32 %v1511_v46, %v1492_v43  ;;  %v1963_v43 = vld [vmem:[#allocation8 + $0xc8] sm:$0xff] }
 0x184   : > { %v1370_v31 = vld [vmem:[#allocation5 + $0xa18] sm:$0xff]  ;;  %2092 = vmatpush.msra.mxu1 %v2000_v30  ;;  %1870 = vmatmul.f32.vlgmr.msrb.gmra.mxu0 %v7550_v2  ;;  %v1958_v2 = vld [vmem:[#allocation8 + $0xa0] sm:$0xff]  ;;  %v1571_v62 = vpop.f32.mrf.mxu1 }
 0x185   : > { %1929 = vmatpush.msrb.mxu3 %v1370_v31  ;;  %v1964_v35 = vld [vmem:[#allocation8 + $0xd0] sm:$0xff]  ;;  %2073 = vmatpush.msra.mxu0 %v1966_v32  ;;  %v1532_v58 = vadd.f32 %v1531_v51, %v1512_v48  ;;  %v2018_v30 = vld [vmem:[#allocation8 + $0x280] sm:$0xff]  ;;  %v1969_v32 = vld [vmem:[#allocation8 + $0xf8] sm:$0xff] }
 0x186   : > { %1930 = vmatmul.f32.vlgmr.msrb.gmra.mxu3 %v7563_v28  ;;  %v1996_v36 = vld [vmem:[#allocation8 + $0x1d0] sm:$0xff]  ;;  %2093 = vmatpush.msra.mxu1 %v1998_v33  ;;  %v1990_v28 = vld [vmem:[#allocation8 + $0x1a0] sm:$0xff]  ;;  %v1999_v33 = vld [vmem:[#allocation8 + $0x1e8] sm:$0xff] }
 0x187   : > { %2074 = vmatpush.msra.mxu0 %v1964_v35  ;;  %v1960_v40 = vld [vmem:[#allocation8 + $0xb0] sm:$0xff]  ;;  %v1552_v8 = vadd.f32 %v1551_v55, %v1532_v58  ;;  %v1967_v35 = vld [vmem:[#allocation8 + $0xe8] sm:$0xff]  ;;  %v1961_v46 = vld [vmem:[#allocation8 + $0xb8] sm:$0xff] }
 0x188   : > { %2094 = vmatpush.msra.mxu1 %v1996_v36  ;;  %v1992_v41 = vld [vmem:[#allocation8 + $0x1b0] sm:$0xff]  ;;  %v1959_v48 = vld [vmem:[#allocation8 + $0xa8] sm:$0xff]  ;;  %v1957_v51 = vld [vmem:[#allocation8 + $0x98] sm:$0xff] }
 0x189   : > { %2075 = vmatpush.msra.mxu0 %v1962_v38  ;;  %v1956_v44 = vld [vmem:[#allocation8 + $0x90] sm:$0xff]  ;;  %v7589_v18 = vadd.f32 %v1571_v62, %v1552_v8  ;;  %v2014_v38 = vld [vmem:[#allocation8 + $0x260] sm:$0xff]  ;;  %v1985_v55 = vld [vmem:[#allocation8 + $0x178] sm:$0xff] }
 0x18a   : > { %2095 = vmatpush.msra.mxu1 %v1994_v24  ;;  %v1988_v45 = vld [vmem:[#allocation8 + $0x190] sm:$0xff]  ;;  %v1997_v24 = vld [vmem:[#allocation8 + $0x1d8] sm:$0xff]  ;;  %v2027_v8 = vld [vmem:[#allocation8 + $0x2c8] sm:$0xff] }
 0x18b   : > { %2076 = vmatpush.msra.mxu0 %v1960_v40  ;;  %v1952_v49 = vld [vmem:[#allocation8 + $0x70] sm:$0xff]  ;;  %v1934_v31 = vmax.f32 %v7589_v18, 0.0  ;;  %v1965_v40 = vld [vmem:[#allocation8 + $0xd8] sm:$0xff]  ;;  %v2042_v18 = vld [vmem:[#allocation8 + $0x340] sm:$0xff] }
 0x18c   : > { %2096 = vmatpush.msra.mxu1 %v1992_v41  ;;  %v1984_v50 = vld [vmem:[#allocation8 + $0x170] sm:$0xff]  ;;  %v1995_v41 = vld [vmem:[#allocation8 + $0x1c8] sm:$0xff]  ;;  %v2033_v58 = vld [vmem:[#allocation8 + $0x2f8] sm:$0xff] }
 0x18d   : > { %2077 = vmatpush.msra.mxu0 %v1958_v2  ;;  %v2032_v52 = vld [vmem:[#allocation8 + $0x2f0] sm:$0xff]  ;;  %v1981_v62 = vld [vmem:[#allocation8 + $0x158] sm:$0xff] }
 0x18e   : > { %2097 = vmatpush.msra.mxu1 %v1990_v28  ;;  %2112 = vmatpush.msra.mxu2 %v2032_v52  ;;  %v1948_v59 = vld [vmem:[#allocation8 + $0x50] sm:$0xff]  ;;  %v1987_v52 = vld [vmem:[#allocation8 + $0x188] sm:$0xff] }
 0x18f   : > { %2078 = vmatpush.msra.mxu0 %v1956_v44  ;;  %v1980_v60 = vld [vmem:[#allocation8 + $0x150] sm:$0xff]  ;;  %v1993_v44 = vld [vmem:[#allocation8 + $0x1b8] sm:$0xff] }
 0x190   : > { %2098 = vmatpush.msra.mxu1 %v1988_v45  ;;  %2113 = vmatpush.msra.mxu2 %v2030_v57  ;;  %v2028_v61 = vld [vmem:[#allocation8 + $0x2d0] sm:$0xff]  ;;  %v2010_v45 = vld [vmem:[#allocation8 + $0x240] sm:$0xff]  ;;  %v1953_v57 = vld [vmem:[#allocation8 + $0x78] sm:$0xff] }
 0x191   : > { %2079 = vmatpush.msra.mxu0 %v1954_v7  ;;  %v1944_v9 = vld [vmem:[#allocation8 + $0x30] sm:$0xff]  ;;  %v1991_v7 = vld [vmem:[#allocation8 + $0x1a8] sm:$0xff] }
 0x192   : > { %2099 = vmatpush.msra.mxu1 %v1986_v47  ;;  %2114 = vmatpush.msra.mxu2 %v2028_v61  ;;  %v1976_v10 = vld [vmem:[#allocation8 + $0x130] sm:$0xff]  ;;  %v2031_v61 = vld [vmem:[#allocation8 + $0x2e8] sm:$0xff] }
 0x193   : > { %2080 = vmatpush.msra.mxu0 %v1952_v49  ;;  %v2024_v12 = vld [vmem:[#allocation8 + $0x2b0] sm:$0xff]  ;;  %v1989_v49 = vld [vmem:[#allocation8 + $0x198] sm:$0xff] }
 0x194   : > { %2100 = vmatpush.msra.mxu1 %v1984_v50  ;;  %2115 = vmatpush.msra.mxu2 %v2026_v6  ;;  %v1940_v19 = vld [vmem:[#allocation8 + $0x10] sm:$0xff]  ;;  %v2006_v50 = vld [vmem:[#allocation8 + $0x220] sm:$0xff]  ;;  %v1947_v6 = vld [vmem:[#allocation8 + $0x48] sm:$0xff] }
 0x195   : > { %2081 = vmatpush.msra.mxu0 %v1950_v53  ;;  %v1972_v20 = vld [vmem:[#allocation8 + $0x110] sm:$0xff] }
 0x196   : > { %2101 = vmatpush.msra.mxu1 %v1982_v54  ;;  %v1591_v4 = vpop.f32.mrf.mxu2  ;;  %2116 = vmatpush.msra.mxu2 %v2024_v12  ;;  %v2020_v22 = vld [vmem:[#allocation8 + $0x290] sm:$0xff]  ;;  %v1955_v54 = vld [vmem:[#allocation8 + $0x88] sm:$0xff]  ;;  %v2025_v12 = vld [vmem:[#allocation8 + $0x2b8] sm:$0xff] }
 0x197   : > { %2082 = vmatpush.msra.mxu0 %v1948_v59  ;;  %v1592_v5 = vadd.f32 %v1591_v4, %v1447_v56  ;;  %v2016_v37 = vld [vmem:[#allocation8 + $0x270] sm:$0xff]  ;;  %v2002_v56 = vld [vmem:[#allocation8 + $0x200] sm:$0xff]  ;;  %v1983_v59 = vld [vmem:[#allocation8 + $0x168] sm:$0xff] }
 0x198   : > { %2102 = vmatpush.msra.mxu1 %v1980_v60  ;;  %2117 = vmatpush.msra.mxu2 %v2022_v17  ;;  %v2012_v2 = vld [vmem:[#allocation8 + $0x250] sm:$0xff]  ;;  %v1951_v60 = vld [vmem:[#allocation8 + $0x68] sm:$0xff]  ;;  %v2062_v4 = vld [vmem:[#allocation8 + $0x3e0] sm:$0xff] }
 0x199   : > { %2083 = vmatpush.msra.mxu0 %v1946_v63  ;;  %v1611_v11 = vpop.f32.mrf.mxu3  ;;  %v2064_v28 = vld [vmem:[#allocation8 + $0x3f0] sm:$0xff]  ;;  %v1949_v63 = vld [vmem:[#allocation8 + $0x58] sm:$0xff] }
 0x19a   : > { %2103 = vmatpush.msra.mxu1 %v1978_v3  ;;  %v1612_v15 = vadd.f32 %v1611_v11, %v1592_v5  ;;  %2118 = vmatpush.msra.mxu2 %v2020_v22  ;;  %v2008_v47 = vld [vmem:[#allocation8 + $0x230] sm:$0xff]  ;;  %v2029_v3 = vld [vmem:[#allocation8 + $0x2d8] sm:$0xff]  ;;  %v1979_v5 = vld [vmem:[#allocation8 + $0x148] sm:$0xff] }
 0x19b   : > { %2084 = vmatpush.msra.mxu0 %v1944_v9  ;;  %2132 = vmatpush.msra.mxu3 %v2064_v28  ;;  %v2004_v53 = vld [vmem:[#allocation8 + $0x210] sm:$0xff]  ;;  %v1977_v9 = vld [vmem:[#allocation8 + $0x138] sm:$0xff]  ;;  %v1971_v22 = vld [vmem:[#allocation8 + $0x108] sm:$0xff] }
 0x19c   : > { %2104 = vmatpush.msra.mxu1 %v1976_v10  ;;  %v1631_v16 = vpop.f32.mrf.mxu0  ;;  %2119 = vmatpush.msra.mxu2 %v2018_v30  ;;  %v2060_v10 = vld [vmem:[#allocation8 + $0x3d0] sm:$0xff]  ;;  %v1945_v11 = vld [vmem:[#allocation8 + $0x38] sm:$0xff]  ;;  %v2015_v30 = vld [vmem:[#allocation8 + $0x268] sm:$0xff] }
 0x19d   : > { %v1632_v21 = vadd.f32 %v1631_v16, %v1612_v15  ;;  %2085 = vmatpush.msra.mxu0 %v1942_v13  ;;  %2133 = vmatpush.msra.mxu3 %v2062_v4  ;;  %v1975_v13 = vld [vmem:[#allocation8 + $0x128] sm:$0xff]  ;;  %v1973_v17 = vld [vmem:[#allocation8 + $0x118] sm:$0xff] }
 0x19e   : > { %2105 = vmatpush.msra.mxu1 %v1974_v14  ;;  %2120 = vmatpush.msra.mxu2 %v2016_v37  ;;  %v2058_v14 = vld [vmem:[#allocation8 + $0x3c0] sm:$0xff]  ;;  %v1943_v15 = vld [vmem:[#allocation8 + $0x28] sm:$0xff]  ;;  %v2009_v37 = vld [vmem:[#allocation8 + $0x238] sm:$0xff] }
 0x19f   : > { %v1651_v26 = vpop.f32.mrf.mxu1  ;;  %2086 = vmatpush.msra.mxu0 %v1940_v19  ;;  %v1671_v29 = vpop.f32.mrf.mxu2  ;;  %2134 = vmatpush.msra.mxu3 %v2060_v10  ;;  %v2023_v16 = vld [vmem:[#allocation8 + $0x2a8] sm:$0xff]  ;;  %v2056_v19 = vld [vmem:[#allocation8 + $0x3b0] sm:$0xff]  ;;  %v1449_v10 = vperm.slane %v7581_v1, 3 }
 0x1a0   : > { %2106 = vmatpush.msra.mxu1 %v1972_v20  ;;  %v1652_v27 = vadd.f32 %v1651_v26, %v1632_v21  ;;  %2121 = vmatpush.msra.mxu2 %v2014_v38  ;;  %v1941_v20 = vld [vmem:[#allocation8 + $0x18] sm:$0xff]  ;;  %v2019_v26 = vld [vmem:[#allocation8 + $0x288] sm:$0xff]  ;;  %v2040_v38 = vld [vmem:[#allocation8 + $0x330] sm:$0xff] }
 0x1a1   : > { %2087 = vmatpush.msra.mxu0 %v1938_v23  ;;  %2135 = vmatpush.msra.mxu3 %v2058_v14  ;;  %v2021_v21 = vld [vmem:[#allocation8 + $0x298] sm:$0xff]  ;;  %v1939_v23 = vld [vmem:[#allocation8 + $0x8] sm:$0xff] }
 0x1a2   : > { %2107 = vmatpush.msra.mxu1 %v1970_v25  ;;  %v1672_v34 = vadd.f32 %v1671_v29, %v1652_v27  ;;  %2088 = vmatmul.f32.vlgmr.msra.gmra.mxu0 %v1934_v31  ;;  %v1691_v36 = vpop.f32.mrf.mxu3  ;;  %v2054_v25 = vld [vmem:[#allocation8 + $0x3a0] sm:$0xff]  ;;  %v2052_v27 = vld [vmem:[#allocation8 + $0x390] sm:$0xff]  ;;  %v2043_v4 = vld [vmem:[#allocation8 + $0x348] sm:$0xff] }
 0x1a3   : > { %2152 = vmatpush.msrb.mxu0 %v1969_v32  ;;  %2122 = vmatpush.msra.mxu2 %v2012_v2  ;;  %v2050_v29 = vld [vmem:[#allocation8 + $0x380] sm:$0xff]  ;;  %v2048_v32 = vld [vmem:[#allocation8 + $0x370] sm:$0xff] }
 0x1a4   : > { %2172 = vmatpush.msrb.mxu1 %v2001_v0  ;;  %v7594_v39 = vadd.f32 %v1691_v36, %v1672_v34  ;;  %2136 = vmatpush.msra.mxu3 %v2056_v19  ;;  %v2017_v0 = vld [vmem:[#allocation8 + $0x278] sm:$0xff]  ;;  %v2046_v34 = vld [vmem:[#allocation8 + $0x360] sm:$0xff]  ;;  %v2044_v36 = vld [vmem:[#allocation8 + $0x350] sm:$0xff] }
 0x1a5   : > { %2153 = vmatpush.msrb.mxu0 %v1967_v35  ;;  %2123 = vmatpush.msra.mxu2 %v2010_v45  ;;  %v2011_v35 = vld [vmem:[#allocation8 + $0x248] sm:$0xff]  ;;  %v2034_v2 = vld [vmem:[#allocation8 + $0x300] sm:$0xff] }
 0x1a6   : > { %2173 = vmatpush.msrb.mxu1 %v1999_v33  ;;  %v1935_v42 = vmax.f32 %v7594_v39, 0.0  ;;  %2137 = vmatpush.msra.mxu3 %v2054_v25  ;;  %v2013_v33 = vld [vmem:[#allocation8 + $0x258] sm:$0xff]  ;;  %v2038_v39 = vld [vmem:[#allocation8 + $0x320] sm:$0xff]  ;;  %v2063_v45 = vld [vmem:[#allocation8 + $0x3e8] sm:$0xff] }
 0x1a7   : > { %2154 = vmatpush.msrb.mxu0 %v1965_v40  ;;  %2124 = vmatpush.msra.mxu2 %v2008_v47  ;;  %v2003_v40 = vld [vmem:[#allocation8 + $0x208] sm:$0xff] }
 0x1a8   : > { %2174 = vmatpush.msrb.mxu1 %v1997_v24  ;;  %2138 = vmatpush.msra.mxu3 %v2052_v27  ;;  %v2005_v24 = vld [vmem:[#allocation8 + $0x218] sm:$0xff] }
 0x1a9   : > { %2108 = vmatmul.f32.vlgmr.msra.gmra.mxu1 %v1935_v42  ;;  %2155 = vmatpush.msrb.mxu0 %v1963_v43  ;;  %v2065_v43 = vld [vmem:[#allocation8 + $0x3f8] sm:$0xff] }
 0x1aa   : > { %2175 = vmatpush.msrb.mxu1 %v1995_v41  ;;  %2125 = vmatpush.msra.mxu2 %v2006_v50  ;;  %v1448_v41 = vperm.slane %v7581_v1, 2  ;;  %v2059_v50 = vld [vmem:[#allocation8 + $0x3c8] sm:$0xff]  ;;  %v2265_v27 = vld [vmem:[#allocation11 + $0xf8] sm:$0xff] }
 0x1ab   : > { %2156 = vmatpush.msrb.mxu0 %v1961_v46  ;;  %2139 = vmatpush.msra.mxu3 %v2050_v29  ;;  %v2247_v1 = vld [vmem:[#allocation11 + $0x68] sm:$0xff]  ;;  %v2264_v29 = vld [vmem:[#allocation11 + $0xf0] sm:$0xff] }
 0x1ac   : > { %2176 = vmatpush.msrb.mxu1 %v1993_v44  ;;  %2126 = vmatpush.msra.mxu2 %v2004_v53 }
 0x1ad   : > { %2157 = vmatpush.msrb.mxu0 %v1959_v48  ;;  %2140 = vmatpush.msra.mxu3 %v2048_v32  ;;  %v2061_v48 = vld [vmem:[#allocation8 + $0x3d8] sm:$0xff]  ;;  %v2246_v32 = vld [vmem:[#allocation11 + $0x60] sm:$0xff] }
 0x1ae   : > { %2177 = vmatpush.msrb.mxu1 %v1991_v7  ;;  %2127 = vmatpush.msra.mxu2 %v2002_v56 }
 0x1af   : > { %2158 = vmatpush.msrb.mxu0 %v1957_v51  ;;  %2141 = vmatpush.msra.mxu3 %v2046_v34  ;;  %v2245_v34 = vld [vmem:[#allocation11 + $0x58] sm:$0xff] }
 0x1b0   : > { %2178 = vmatpush.msrb.mxu1 %v1989_v49  ;;  %2192 = vmatpush.msrb.mxu2 %v2033_v58  ;;  %v2055_v58 = vld [vmem:[#allocation8 + $0x3a8] sm:$0xff] }
 0x1b1   : > { %2159 = vmatpush.msrb.mxu0 %v1955_v54  ;;  %2142 = vmatpush.msra.mxu3 %v2044_v36  ;;  %v2057_v54 = vld [vmem:[#allocation8 + $0x3b8] sm:$0xff] }
 0x1b2   : > { %2179 = vmatpush.msrb.mxu1 %v1987_v52  ;;  %2193 = vmatpush.msrb.mxu2 %v2031_v61  ;;  %v2051_v61 = vld [vmem:[#allocation8 + $0x388] sm:$0xff]  ;;  %v2244_v36 = vld [vmem:[#allocation11 + $0x50] sm:$0xff] }
 0x1b3   : > { %2160 = vmatpush.msrb.mxu0 %v1953_v57  ;;  %2143 = vmatpush.msra.mxu3 %v2042_v18  ;;  %v2243_v18 = vld [vmem:[#allocation11 + $0x48] sm:$0xff] }
 0x1b4   : > { %2180 = vmatpush.msrb.mxu1 %v1985_v55  ;;  %2194 = vmatpush.msrb.mxu2 %v2029_v3  ;;  %v2045_v3 = vld [vmem:[#allocation8 + $0x358] sm:$0xff] }
 0x1b5   : > { %2161 = vmatpush.msrb.mxu0 %v1951_v60  ;;  %2144 = vmatpush.msra.mxu3 %v2040_v38  ;;  %v2053_v60 = vld [vmem:[#allocation8 + $0x398] sm:$0xff]  ;;  %v2242_v38 = vld [vmem:[#allocation11 + $0x40] sm:$0xff] }
 0x1b6   : > { %2181 = vmatpush.msrb.mxu1 %v1983_v59  ;;  %2195 = vmatpush.msrb.mxu2 %v2027_v8  ;;  %v2037_v8 = vld [vmem:[#allocation8 + $0x318] sm:$0xff] }
 0x1b7   : > { %2162 = vmatpush.msrb.mxu0 %v1949_v63  ;;  %2145 = vmatpush.msra.mxu3 %v2038_v39  ;;  %v2047_v63 = vld [vmem:[#allocation8 + $0x368] sm:$0xff]  ;;  %v2241_v39 = vld [vmem:[#allocation11 + $0x38] sm:$0xff] }
 0x1b8   : > { %2182 = vmatpush.msrb.mxu1 %v1981_v62  ;;  %2196 = vmatpush.msrb.mxu2 %v2025_v12  ;;  %v2049_v62 = vld [vmem:[#allocation8 + $0x378] sm:$0xff] }
 0x1b9   : > { %2163 = vmatpush.msrb.mxu0 %v1947_v6  ;;  %v2039_v6 = vld [vmem:[#allocation8 + $0x328] sm:$0xff] }
 0x1ba   : > { %2183 = vmatpush.msrb.mxu1 %v1979_v5  ;;  %2197 = vmatpush.msrb.mxu2 %v2023_v16  ;;  %v2041_v5 = vld [vmem:[#allocation8 + $0x338] sm:$0xff] }
 0x1bb   : > { %2164 = vmatpush.msrb.mxu0 %v1945_v11 }
 0x1bc   : > { %2184 = vmatpush.msrb.mxu1 %v1977_v9  ;;  %2198 = vmatpush.msrb.mxu2 %v2021_v21  ;;  %v2035_v9 = vld [vmem:[#allocation8 + $0x308] sm:$0xff] }
 0x1bd   : > { %2165 = vmatpush.msrb.mxu0 %v1943_v15 }
 0x1be   : > { %2185 = vmatpush.msrb.mxu1 %v1975_v13  ;;  %2199 = vmatpush.msrb.mxu2 %v2019_v26  ;;  %v2249_v26 = vld [vmem:[#allocation11 + $0x78] sm:$0xff] }
 0x1bf   : > { %2166 = vmatpush.msrb.mxu0 %v1941_v20 }
 0x1c0   : > { %2186 = vmatpush.msrb.mxu1 %v1973_v17  ;;  %2200 = vmatpush.msrb.mxu2 %v2017_v0  ;;  %v2248_v0 = vld [vmem:[#allocation11 + $0x70] sm:$0xff] }
 0x1c1   : > { %2167 = vmatpush.msrb.mxu0 %v1939_v23 }
 0x1c2   : > { %2187 = vmatpush.msrb.mxu1 %v1971_v22  ;;  %2168 = vmatmul.f32.vlgmr.msrb.gmra.mxu0 %v1934_v31  ;;  %v2007_v31 = vld [vmem:[#allocation8 + $0x228] sm:$0xff] }
 0x1c3   : > { %2188 = vmatmul.f32.vlgmr.msrb.gmra.mxu1 %v1935_v42  ;;  %2201 = vmatpush.msrb.mxu2 %v2015_v30  ;;  %v2036_v42 = vld [vmem:[#allocation8 + $0x310] sm:$0xff] }
 0x1c4   : > { %2146 = vmatpush.msra.mxu3 %v2036_v42  ;;  %2267 = vmatpush.msra.mxu0 %v2249_v26  ;;  %v2263_v30 = vld [vmem:[#allocation11 + $0xe8] sm:$0xff]  ;;  %v2312_v26 = vld [vmem:[%s8134_s25 + $0x20] sm:$0xff] }
 0x1c5   : > { %2202 = vmatpush.msrb.mxu2 %v2013_v33  ;;  %2287 = vmatpush.msra.mxu1 %v2265_v27  ;;  %v2262_v33 = vld [vmem:[#allocation11 + $0xe0] sm:$0xff]  ;;  %v2239_v42 = vld [vmem:[#allocation11 + $0x28] sm:$0xff] }
 0x1c6   : > { %2147 = vmatpush.msra.mxu3 %v2034_v2  ;;  %2268 = vmatpush.msra.mxu0 %v2248_v0  ;;  %v2238_v2 = vld [vmem:[#allocation11 + $0x20] sm:$0xff]  ;;  %v2311_v0 = vld [vmem:[%s8134_s25 + $0x18] sm:$0xff] }
 0x1c7   : > { %2203 = vmatpush.msrb.mxu2 %v2011_v35  ;;  %2288 = vmatpush.msra.mxu1 %v2264_v29  ;;  %v2261_v35 = vld [vmem:[#allocation11 + $0xd8] sm:$0xff]  ;;  %v2310_v27 = vld [vmem:[%s8134_s25 + $0x10] sm:$0xff]  ;;  %v2308_v29 = vld [vmem:[%s8134_s25] sm:$0xff] }
 0x1c8   : > { %2212 = vmatpush.msrb.mxu3 %v2065_v43  ;;  %2269 = vmatpush.msra.mxu0 %v2247_v1  ;;  %v2236_v43 = vld [vmem:[#allocation11 + $0x10] sm:$0xff]  ;;  %v2309_v1 = vld [vmem:[%s8134_s25 + $0x8] sm:$0xff] }
 0x1c9   : > { %2204 = vmatpush.msrb.mxu2 %v2009_v37  ;;  %2289 = vmatpush.msra.mxu1 %v2263_v30  ;;  %v2260_v37 = vld [vmem:[#allocation11 + $0xd0] sm:$0xff]  ;;  %v2353_v30 = vld [vmem:[%s8135_s0 + $0x38] sm:$0xff] }
 0x1ca   : > { %2213 = vmatpush.msrb.mxu3 %v2063_v45  ;;  %2270 = vmatpush.msra.mxu0 %v2246_v32  ;;  %v2235_v45 = vld [vmem:[#allocation11 + $0x8] sm:$0xff]  ;;  %v2352_v32 = vld [vmem:[%s8135_s0 + $0x30] sm:$0xff] }
 0x1cb   : > { %2205 = vmatpush.msrb.mxu2 %v2007_v31  ;;  %2290 = vmatpush.msra.mxu1 %v2262_v33  ;;  %v2259_v31 = vld [vmem:[#allocation11 + $0xc8] sm:$0xff]  ;;  %v2351_v33 = vld [vmem:[%s8135_s0 + $0x28] sm:$0xff] }
 0x1cc   : > { %2214 = vmatpush.msrb.mxu3 %v2061_v48  ;;  %2271 = vmatpush.msra.mxu0 %v2245_v34  ;;  %v2253_v48 = vld [vmem:[#allocation11 + $0x98] sm:$0xff]  ;;  %v2350_v34 = vld [vmem:[%s8135_s0 + $0x20] sm:$0xff] }
 0x1cd   : > { %2206 = vmatpush.msrb.mxu2 %v2005_v24  ;;  %2291 = vmatpush.msra.mxu1 %v2261_v35  ;;  %v2258_v24 = vld [vmem:[#allocation11 + $0xc0] sm:$0xff]  ;;  %v2349_v35 = vld [vmem:[%s8135_s0 + $0x18] sm:$0xff] }
 0x1ce   : > { %2215 = vmatpush.msrb.mxu3 %v2059_v50  ;;  %2272 = vmatpush.msra.mxu0 %v2244_v36  ;;  %v2251_v50 = vld [vmem:[#allocation11 + $0x88] sm:$0xff]  ;;  %v2348_v36 = vld [vmem:[%s8135_s0 + $0x10] sm:$0xff] }
 0x1cf   : > { %2207 = vmatpush.msrb.mxu2 %v2003_v40  ;;  %2292 = vmatpush.msra.mxu1 %v2260_v37  ;;  %v2257_v40 = vld [vmem:[#allocation11 + $0xb8] sm:$0xff] }
 0x1d0   : > { %2216 = vmatpush.msrb.mxu3 %v2057_v54  ;;  %2273 = vmatpush.msra.mxu0 %v2243_v18  ;;  %v2321_v54 = vld [vmem:[%s8134_s25 + $0x68] sm:$0xff]  ;;  %v2346_v18 = vld [vmem:[%s8135_s0] sm:$0xff] }
 0x1d1   : > { %2293 = vmatpush.msra.mxu1 %v2259_v31  ;;  %v2347_v37 = vld [vmem:[%s8135_s0 + $0x8] sm:$0xff]  ;;  %v2386_v31 = vld [vmem:[%s8136_s8 + $0x38] sm:$0xff]  ;;  %s1031_s0 = scalar_lea.vmem [#allocation31], %s7485_s9 }
 0x1d2   : > { %2217 = vmatpush.msrb.mxu3 %v2055_v58  ;;  %2274 = vmatpush.msra.mxu0 %v2242_v38  ;;  %v2318_v58 = vld [vmem:[%s8134_s25 + $0x50] sm:$0xff] }
 0x1d3   : > { %2294 = vmatpush.msra.mxu1 %v2258_v24  ;;  %v2266_v38 = vld [vmem:[#allocation13] sm:$0x1] }
 0x1d4   : > { %v1711_v28 = vpop.f32.mrf.mxu0  ;;  %2218 = vmatpush.msrb.mxu3 %v2053_v60  ;;  %2275 = vmatpush.msra.mxu0 %v2241_v39 }
 0x1d5   : > { %v1712_v44 = vadd.f32 %v1711_v28, %v1448_v41  ;;  %v2240_v41 = vld [vmem:[#allocation11 + $0x30] sm:$0xff]  ;;  %2295 = vmatpush.msra.mxu1 %v2257_v40  ;;  %v2237_v28 = vld [vmem:[#allocation11 + $0x18] sm:$0xff] }
 0x1d6   : > { %2219 = vmatpush.msrb.mxu3 %v2051_v61  ;;  %2276 = vmatpush.msra.mxu0 %v2240_v41  ;;  %v2317_v61 = vld [vmem:[%s8134_s25 + $0x48] sm:$0xff] }
 0x1d7   : > { %v1731_v46 = vpop.f32.mrf.mxu1  ;;  %v1751_v47 = vpop.f32.mrf.mxu2 }
 0x1d8   : > { %v1732_v7 = vadd.f32 %v1731_v46, %v1712_v44  ;;  %2220 = vmatpush.msrb.mxu3 %v2049_v62  ;;  %2277 = vmatpush.msra.mxu0 %v2239_v42  ;;  %v2256_v44 = vld [vmem:[#allocation11 + $0xb0] sm:$0xff]  ;;  %v2255_v46 = vld [vmem:[#allocation11 + $0xa8] sm:$0xff] }
 0x1d9   : > { %2296 = vmatpush.msra.mxu1 %v2256_v44  ;;  %v2316_v62 = vld [vmem:[%s8134_s25 + $0x40] sm:$0xff]  ;;  %v2382_v44 = vld [vmem:[%s8136_s8 + $0x18] sm:$0xff] }
 0x1da   : > { %v1752_v49 = vadd.f32 %v1751_v47, %v1732_v7  ;;  %v1771_v51 = vpop.f32.mrf.mxu3  ;;  %2221 = vmatpush.msrb.mxu3 %v2047_v63  ;;  %2278 = vmatpush.msra.mxu0 %v2238_v2  ;;  %v2234_v7 = vld [vmem:[#allocation11] sm:$0xff] }
 0x1db   : > { %2297 = vmatpush.msra.mxu1 %v2255_v46  ;;  %v2254_v47 = vld [vmem:[#allocation11 + $0xa0] sm:$0xff]  ;;  %v2380_v46 = vld [vmem:[%s8136_s8 + $0x8] sm:$0xff] }
 0x1dc   : > { %v1772_v52 = vadd.f32 %v1771_v51, %v1752_v49  ;;  %2222 = vmatpush.msrb.mxu3 %v2045_v3  ;;  %2279 = vmatpush.msra.mxu0 %v2237_v28  ;;  %v2252_v49 = vld [vmem:[#allocation11 + $0x90] sm:$0xff]  ;;  %v2250_v51 = vld [vmem:[#allocation11 + $0x80] sm:$0xff]  ;;  %v2384_v28 = vld [vmem:[%s8136_s8 + $0x28] sm:$0xff] }
 0x1dd   : > { %v1791_v53 = vpop.f32.mrf.mxu0  ;;  %2298 = vmatpush.msra.mxu1 %v2254_v47  ;;  %v2385_v2 = vld [vmem:[%s8136_s8 + $0x30] sm:$0xff] }
 0x1de   : > { %v1792_v55 = vadd.f32 %v1791_v53, %v1772_v52  ;;  %2223 = vmatpush.msrb.mxu3 %v2043_v4  ;;  %2280 = vmatpush.msra.mxu0 %v2236_v43  ;;  %v2323_v52 = vld [vmem:[%s8134_s25 + $0x78] sm:$0xff]  ;;  %v2322_v53 = vld [vmem:[%s8134_s25 + $0x70] sm:$0xff]  ;;  %v2383_v43 = vld [vmem:[%s8136_s8 + $0x20] sm:$0xff] }
 0x1df   : > { %2299 = vmatpush.msra.mxu1 %v2253_v48  ;;  %v2324_v47 = vld [vmem:[#allocation14] sm:$0x1] }
 0x1e0   : > { %v1811_v56 = vpop.f32.mrf.mxu1  ;;  %2224 = vmatpush.msrb.mxu3 %v2041_v5  ;;  %2281 = vmatpush.msra.mxu0 %v2235_v45  ;;  %v2315_v5 = vld [vmem:[%s8134_s25 + $0x38] sm:$0xff]  ;;  %v2381_v45 = vld [vmem:[%s8136_s8 + $0x10] sm:$0xff] }
 0x1e1   : > { %v1812_v57 = vadd.f32 %v1811_v56, %v1792_v55  ;;  %2300 = vmatpush.msra.mxu1 %v2252_v49  ;;  %v2320_v55 = vld [vmem:[%s8134_s25 + $0x60] sm:$0xff]  ;;  %v2319_v56 = vld [vmem:[%s8134_s25 + $0x58] sm:$0xff] }
 0x1e2   : > { %2225 = vmatpush.msrb.mxu3 %v2039_v6  ;;  %2282 = vmatpush.msra.mxu0 %v2234_v7  ;;  %v2379_v7 = vld [vmem:[%s8136_s8] sm:$0xff]  ;;  %s5864_s8 = sshll.u32 %s1031_s0, 4  ;;  %s5865_s8 = int_to_ptr.vmem [resolvable:$true] %s5864_s8 }
 0x1e3   : > { %v1936_v59 = vmax.f32 %v1812_v57, 0.0  ;;  %2301 = vmatpush.msra.mxu1 %v2251_v50  ;;  %v2066_v57 = vld [vmem:[#allocation10] sm:$0x3] }
 0x1e4   : > { %2226 = vmatpush.msrb.mxu3 %v2037_v8  ;;  %v2068_v60 = vperm.slane %v2066_v57, 0  ;;  %v2069_v8 = vperm.slane %v2066_v57, 1  ;;  %v2601_v57 = vld [vmem:[#allocation22 + $0x3e8] sm:$0xff] }
 0x1e5   : > { %2128 = vmatmul.f32.vlgmr.msra.gmra.mxu2 %v1936_v59  ;;  %2302 = vmatpush.msra.mxu1 %v2250_v51  ;;  %v2414_v51 = vld [vmem:[#allocation19] sm:$0xff] }
 0x1e6   : > { %2227 = vmatpush.msrb.mxu3 %v2035_v9  ;;  %2325 = vmatpush.msra.mxu2 %v2323_v52  ;;  %2417 = vst [vmem:[#allocation1] ss:$2 sm:$0xff] %v2414_v51  ;;  %v2484_v51 = vld [vmem:[#allocation22 + $0x40] sm:$0xff] }
 0x1e8   : > { %2326 = vmatpush.msra.mxu2 %v2322_v53 }
 0x1ea   : > { %2327 = vmatpush.msra.mxu2 %v2321_v54  ;;  %v2536_v54 = vld [vmem:[#allocation22 + $0x1e0] sm:$0xff] }
 0x1ec   : > { %2328 = vmatpush.msra.mxu2 %v2320_v55  ;;  %v2600_v55 = vld [vmem:[#allocation22 + $0x3e0] sm:$0xff] }
 0x1ed   : > { %2208 = vmatmul.f32.vlgmr.msrb.gmra.mxu2 %v1936_v59  ;;  %v2418_v52 = vld.sshfl [vmem:[#allocation1] sm:$0xff pattern:$0x75316420]  ;;  %v2419_v53 = vld.sshfl [vmem:[#allocation1 + $0x8] sm:$0xff pattern:$0x75316420] }
 0x1ee   : > { %2329 = vmatpush.msra.mxu2 %v2319_v56  ;;  %6207 = vmatpush.msk.msrb.mxu0 %vm2429_vm1, %v2418_v52  ;;  %v2537_v56 = vld [vmem:[#allocation22 + $0x1e8] sm:$0xff]  ;;  %v2548_v52 = vld [vmem:[#allocation22 + $0x240] sm:$0xff] }
 0x1ef   : > { %6209 = vmatpush.msk.msrb.mxu1 %vm2429_vm1, %v2419_v53  ;;  %v2485_v53 = vld [vmem:[#allocation22 + $0x48] sm:$0xff] }
 0x1f0   : > { %2330 = vmatpush.msra.mxu2 %v2318_v58  ;;  %v2532_v58 = vld [vmem:[#allocation22 + $0x1c0] sm:$0xff] }
 0x1f2   : > { %2331 = vmatpush.msra.mxu2 %v2317_v61  ;;  %v2597_v61 = vld [vmem:[#allocation22 + $0x3c8] sm:$0xff] }
 0x1f4   : > { %2332 = vmatpush.msra.mxu2 %v2316_v62  ;;  %v2528_v62 = vld [vmem:[#allocation22 + $0x1a0] sm:$0xff] }
 0x1f6   : > { %2333 = vmatpush.msra.mxu2 %v2315_v5  ;;  %v2524_v5 = vld [vmem:[#allocation22 + $0x180] sm:$0xff] }
 0x1fc   : > { %v1831_v11 = vpop.f32.mrf.mxu2 }
 0x1fd   : > { %v1832_v12 = vadd.f32 %v1831_v11, %v1449_v10 }
 0x1ff   : > { %v1851_v13 = vpop.f32.mrf.mxu3 }
 0x200   : > { %v1852_v14 = vadd.f32 %v1851_v13, %v1832_v12  ;;  %v1891_v17 = vpop.f32.mrf.mxu1 }
 0x201   : > { %v1871_v15 = vpop.f32.mrf.mxu0 }
 0x202   : > { %v1872_v16 = vadd.f32 %v1871_v15, %v1852_v14 }
 0x204   : > { %v1892_v19 = vadd.f32 %v1891_v17, %v1872_v16 }
 0x205   : > { %v1911_v20 = vpop.f32.mrf.mxu2 }
 0x206   : > { %v1912_v21 = vadd.f32 %v1911_v20, %v1892_v19 }
 0x209   : > { %v1931_v22 = vpop.f32.mrf.mxu3 }
 0x20a   : > { %v1932_v23 = vadd.f32 %v1931_v22, %v1912_v21 }
 0x20c   : > { %v1937_v25 = vmax.f32 %v1932_v23, 0.0  ;;  %v2314_v23 = vld [vmem:[%s8134_s25 + $0x30] sm:$0xff] }
 0x20d   : > { %2334 = vmatpush.msra.mxu2 %v2314_v23  ;;  %v2513_v23 = vld [vmem:[#allocation22 + $0x128] sm:$0xff] }
 0x20e   : > { %2148 = vmatmul.f32.vlgmr.msra.gmra.mxu3 %v1937_v25 }
 0x20f   : > { %2367 = vmatpush.msra.mxu3 %v2353_v30 }
 0x211   : > { %2368 = vmatpush.msra.mxu3 %v2352_v32  ;;  %v2504_v32 = vld [vmem:[#allocation22 + $0xe0] sm:$0xff] }
 0x213   : > { %2369 = vmatpush.msra.mxu3 %v2351_v33  ;;  %v2568_v33 = vld [vmem:[#allocation22 + $0x2e0] sm:$0xff] }
 0x215   : > { %2370 = vmatpush.msra.mxu3 %v2350_v34  ;;  %v2354_v34 = vld [vmem:[#allocation16] sm:$0x1] }
 0x216   : > { %2228 = vmatmul.f32.vlgmr.msrb.gmra.mxu3 %v1937_v25  ;;  %v2313_v25 = vld [vmem:[%s8134_s25 + $0x28] sm:$0xff] }
 0x217   : > { %2335 = vmatpush.msra.mxu2 %v2313_v25  ;;  %2371 = vmatpush.msra.mxu3 %v2349_v35  ;;  %v2577_v25 = vld [vmem:[#allocation22 + $0x328] sm:$0xff] }
 0x218   : > { %v2505_v35 = vld [vmem:[#allocation22 + $0xe8] sm:$0xff] }
 0x219   : > { %2336 = vmatpush.msra.mxu2 %v2312_v26  ;;  %2372 = vmatpush.msra.mxu3 %v2348_v36  ;;  %v2508_v26 = vld [vmem:[#allocation22 + $0x100] sm:$0xff]  ;;  %v2569_v36 = vld [vmem:[#allocation22 + $0x2e8] sm:$0xff] }
 0x21b   : > { %2337 = vmatpush.msra.mxu2 %v2311_v0  ;;  %2373 = vmatpush.msra.mxu3 %v2347_v37  ;;  %v2572_v0 = vld [vmem:[#allocation22 + $0x300] sm:$0xff] }
 0x21d   : > { %2338 = vmatpush.msra.mxu2 %v2310_v27  ;;  %2374 = vmatpush.msra.mxu3 %v2346_v18  ;;  %v2500_v18 = vld [vmem:[#allocation22 + $0xc0] sm:$0xff] }
 0x21f   : > { %v2089_v59 = vpop.f32.mrf.mxu0  ;;  %2339 = vmatpush.msra.mxu2 %v2309_v1  ;;  %2396 = vmatpush.msrb.mxu3 %v2386_v31  ;;  %v2509_v1 = vld [vmem:[#allocation22 + $0x108] sm:$0xff]  ;;  %v2564_v31 = vld [vmem:[#allocation22 + $0x2c0] sm:$0xff] }
 0x220   : > { %v2090_v4 = vadd.f32 %v2089_v59, %v2068_v60  ;;  %v2596_v59 = vld [vmem:[#allocation22 + $0x3c0] sm:$0xff]  ;;  %v2533_v60 = vld [vmem:[#allocation22 + $0x1c8] sm:$0xff] }
 0x221   : > { %2340 = vmatpush.msra.mxu2 %v2308_v29  ;;  %2397 = vmatpush.msrb.mxu3 %v2385_v2  ;;  %v2573_v29 = vld [vmem:[#allocation22 + $0x308] sm:$0xff] }
 0x222   : > { %v2497_v2 = vld [vmem:[#allocation22 + $0xa8] sm:$0xff] }
 0x223   : > { %2398 = vmatpush.msrb.mxu3 %v2384_v28  ;;  %2614 = vmatpush.msrb.mxu2 %v2536_v54  ;;  %v2561_v28 = vld [vmem:[#allocation22 + $0x2a8] sm:$0xff] }
 0x224   : > { %v2549_v54 = vld [vmem:[#allocation22 + $0x248] sm:$0xff] }
 0x225   : > { %2399 = vmatpush.msrb.mxu3 %v2383_v43  ;;  %2615 = vmatpush.msrb.mxu2 %v2532_v58  ;;  %v2492_v43 = vld [vmem:[#allocation22 + $0x80] sm:$0xff] }
 0x226   : > { %v2109_v63 = vpop.f32.mrf.mxu1 }
 0x227   : > { %v2110_v6 = vadd.f32 %v2109_v63, %v2090_v4  ;;  %2400 = vmatpush.msrb.mxu3 %v2382_v44  ;;  %v2592_v63 = vld [vmem:[#allocation22 + $0x3a0] sm:$0xff]  ;;  %v2593_v4 = vld [vmem:[#allocation22 + $0x3a8] sm:$0xff]  ;;  %2616 = vmatpush.msrb.mxu2 %v2528_v62 }
 0x228   : > { %v2556_v44 = vld [vmem:[#allocation22 + $0x280] sm:$0xff] }
 0x229   : > { %2401 = vmatpush.msrb.mxu3 %v2381_v45  ;;  %2617 = vmatpush.msrb.mxu2 %v2524_v5  ;;  %v2493_v45 = vld [vmem:[#allocation22 + $0x88] sm:$0xff]  ;;  %v2476_v62 = vld [vmem:[#allocation22] sm:$0xff]  ;;  %v2538_v5 = vld [vmem:[#allocation22 + $0x1f0] sm:$0xff] }
 0x22b   : > { %2402 = vmatpush.msrb.mxu3 %v2380_v46  ;;  %v2557_v46 = vld [vmem:[#allocation22 + $0x288] sm:$0xff] }
 0x22d   : > { %2403 = vmatpush.msrb.mxu3 %v2379_v7  ;;  %v2488_v7 = vld [vmem:[#allocation22 + $0x60] sm:$0xff] }
 0x23f   : > { %v2169_v9 = vpop.f32.mrf.mxu0 }
 0x240   : > { %v2170_v12 = vadd.f32 %v2169_v9, %v2069_v8  ;;  %v2189_v15 = vpop.f32.mrf.mxu1  ;;  %v2525_v9 = vld [vmem:[#allocation22 + $0x188] sm:$0xff] }
 0x242   : > { %v2190_v17 = vadd.f32 %v2189_v15, %v2170_v12  ;;  %v2584_v12 = vld [vmem:[#allocation22 + $0x360] sm:$0xff] }
 0x243   : > { %v2516_v15 = vld [vmem:[#allocation22 + $0x140] sm:$0xff] }
 0x268   : > { %v2129_v3 = vpop.f32.mrf.mxu2 }
 0x269   : > { %v2130_v10 = vadd.f32 %v2129_v3, %v2110_v6  ;;  %v2529_v3 = vld [vmem:[#allocation22 + $0x1a8] sm:$0xff]  ;;  %v2588_v6 = vld [vmem:[#allocation22 + $0x380] sm:$0xff] }
 0x270   : > { %v2209_v16 = vpop.f32.mrf.mxu2 }
 0x271   : > { %v2210_v19 = vadd.f32 %v2209_v16, %v2190_v17  ;;  %v2580_v16 = vld [vmem:[#allocation22 + $0x340] sm:$0xff]  ;;  %v2517_v17 = vld [vmem:[#allocation22 + $0x148] sm:$0xff] }
 0x291   : > { %v2149_v11 = vpop.f32.mrf.mxu3 }
 0x292   : > { %v2150_v13 = vadd.f32 %v2149_v11, %v2130_v10  ;;  %v2589_v10 = vld [vmem:[#allocation22 + $0x388] sm:$0xff]  ;;  %v2520_v11 = vld [vmem:[#allocation22 + $0x160] sm:$0xff] }
 0x293   : > { %2618 = vmatpush.msrb.mxu2 %v2520_v11  ;;  %v2598_v11 = vld [vmem:[#allocation22 + $0x3d0] sm:$0xff] }
 0x294   : > { %v2232_v14 = vmax.f32 %v2150_v13, 0.0  ;;  %v2521_v13 = vld [vmem:[#allocation22 + $0x168] sm:$0xff] }
 0x295   : > { %2619 = vmatpush.msrb.mxu2 %v2516_v15  ;;  %v2594_v15 = vld [vmem:[#allocation22 + $0x3b0] sm:$0xff] }
 0x296   : > { %2283 = vmatmul.f32.vlgmr.msra.gmra.mxu0 %v2232_v14  ;;  %v2585_v14 = vld [vmem:[#allocation22 + $0x368] sm:$0xff] }
 0x297   : > { %2654 = vmatpush.msra.mxu0 %v2537_v56  ;;  %v2480_v56 = vld [vmem:[#allocation22 + $0x20] sm:$0xff] }
 0x299   : > { %v2229_v20 = vpop.f32.mrf.mxu3  ;;  %2655 = vmatpush.msra.mxu0 %v2533_v60  ;;  %v2545_v60 = vld [vmem:[#allocation22 + $0x228] sm:$0xff] }
 0x29a   : > { %v2230_v21 = vadd.f32 %v2229_v20, %v2210_v19  ;;  %v2581_v19 = vld [vmem:[#allocation22 + $0x348] sm:$0xff]  ;;  %v2512_v20 = vld [vmem:[#allocation22 + $0x120] sm:$0xff] }
 0x29b   : > { %2656 = vmatpush.msra.mxu0 %v2529_v3  ;;  %2620 = vmatpush.msrb.mxu2 %v2512_v20  ;;  %v2477_v3 = vld [vmem:[#allocation22 + $0x8] sm:$0xff]  ;;  %v2590_v20 = vld [vmem:[#allocation22 + $0x390] sm:$0xff] }
 0x29c   : > { %v2233_v22 = vmax.f32 %v2230_v21, 0.0  ;;  %v2576_v21 = vld [vmem:[#allocation22 + $0x320] sm:$0xff] }
 0x29d   : > { %2657 = vmatpush.msra.mxu0 %v2525_v9  ;;  %2621 = vmatpush.msrb.mxu2 %v2508_v26  ;;  %v2603_v9 = vld [vmem:[#allocation22 + $0x3f8] sm:$0xff] }
 0x29e   : > { %2303 = vmatmul.f32.vlgmr.msra.gmra.mxu1 %v2233_v22  ;;  %v2387_v22 = vld [vmem:[#allocation17] sm:$0x1]  ;;  %v2523_v26 = vld [vmem:[#allocation22 + $0x178] sm:$0xff] }
 0x29f   : > { %2674 = vmatpush.msra.mxu1 %v2601_v57  ;;  %2658 = vmatpush.msra.mxu0 %v2521_v13  ;;  %v2544_v57 = vld [vmem:[#allocation22 + $0x220] sm:$0xff]  ;;  %v2599_v13 = vld [vmem:[#allocation22 + $0x3d8] sm:$0xff] }
 0x2a0   : > { %2622 = vmatpush.msrb.mxu2 %v2504_v32  ;;  %v2514_v32 = vld [vmem:[#allocation22 + $0x130] sm:$0xff] }
 0x2a1   : > { %2675 = vmatpush.msra.mxu1 %v2597_v61  ;;  %2659 = vmatpush.msra.mxu0 %v2517_v17  ;;  %v2595_v17 = vld [vmem:[#allocation22 + $0x3b8] sm:$0xff] }
 0x2a2   : > { %2623 = vmatpush.msrb.mxu2 %v2500_v18  ;;  %v2511_v18 = vld [vmem:[#allocation22 + $0x118] sm:$0xff] }
 0x2a3   : > { %2676 = vmatpush.msra.mxu1 %v2593_v4  ;;  %2660 = vmatpush.msra.mxu0 %v2513_v23  ;;  %v2541_v4 = vld [vmem:[#allocation22 + $0x208] sm:$0xff]  ;;  %v2522_v23 = vld [vmem:[#allocation22 + $0x170] sm:$0xff] }
 0x2a5   : > { %2677 = vmatpush.msra.mxu1 %v2589_v10  ;;  %2661 = vmatpush.msra.mxu0 %v2509_v1  ;;  %v2534_v10 = vld [vmem:[#allocation22 + $0x1d0] sm:$0xff] }
 0x2a6   : > { %v2582_v1 = vld [vmem:[#allocation22 + $0x350] sm:$0xff] }
 0x2a7   : > { %2678 = vmatpush.msra.mxu1 %v2585_v14  ;;  %2662 = vmatpush.msra.mxu0 %v2505_v35  ;;  %v2530_v14 = vld [vmem:[#allocation22 + $0x1b0] sm:$0xff]  ;;  %v2579_v35 = vld [vmem:[#allocation22 + $0x338] sm:$0xff] }
 0x2a9   : > { %2679 = vmatpush.msra.mxu1 %v2581_v19  ;;  %v2526_v19 = vld [vmem:[#allocation22 + $0x190] sm:$0xff] }
 0x2ab   : > { %2680 = vmatpush.msra.mxu1 %v2577_v25  ;;  %v2586_v25 = vld [vmem:[#allocation22 + $0x370] sm:$0xff] }
 0x2ad   : > { %2681 = vmatpush.msra.mxu1 %v2573_v29  ;;  %v2519_v29 = vld [vmem:[#allocation22 + $0x158] sm:$0xff] }
 0x2af   : > { %2682 = vmatpush.msra.mxu1 %v2569_v36  ;;  %v2510_v36 = vld [vmem:[#allocation22 + $0x110] sm:$0xff] }
 0x313   : > { %v2284_v24 = vpop.f32.mrf.mxu0 }
 0x314   : > { %v2285_v39 = vadd.f32 %v2284_v24, %v2266_v38  ;;  %v2501_v38 = vld [vmem:[#allocation22 + $0xc8] sm:$0xff] }
 0x315   : > { %v2565_v24 = vld [vmem:[#allocation22 + $0x2c8] sm:$0xff]  ;;  %2663 = vmatpush.msra.mxu0 %v2501_v38  ;;  %v2506_v38 = vld [vmem:[#allocation22 + $0xf0] sm:$0xff] }
 0x316   : > { %2683 = vmatpush.msra.mxu1 %v2565_v24  ;;  %v2570_v24 = vld [vmem:[#allocation22 + $0x2f0] sm:$0xff] }
 0x317   : > { %2664 = vmatpush.msra.mxu0 %v2497_v2  ;;  %v2503_v2 = vld [vmem:[#allocation22 + $0xd8] sm:$0xff] }
 0x318   : > { %2684 = vmatpush.msra.mxu1 %v2561_v28  ;;  %v2567_v28 = vld [vmem:[#allocation22 + $0x2d8] sm:$0xff] }
 0x319   : > { %2665 = vmatpush.msra.mxu0 %v2493_v45  ;;  %v2499_v45 = vld [vmem:[#allocation22 + $0xb8] sm:$0xff] }
 0x31a   : > { %2685 = vmatpush.msra.mxu1 %v2557_v46  ;;  %v2563_v46 = vld [vmem:[#allocation22 + $0x2b8] sm:$0xff] }
 0x31b   : > { %v2304_v40 = vpop.f32.mrf.mxu1 }
 0x31c   : > { %v2305_v41 = vadd.f32 %v2304_v40, %v2285_v39 }
 0x31e   : > { %v2307_v42 = vmax.f32 %v2305_v41, 0.0  ;;  %v2496_v41 = vld [vmem:[#allocation22 + $0xa0] sm:$0xff] }
 0x31f   : > { %2624 = vmatpush.msrb.mxu2 %v2496_v41  ;;  %v2502_v41 = vld [vmem:[#allocation22 + $0xd0] sm:$0xff] }
 0x320   : > { %2341 = vmatmul.f32.vlgmr.msra.gmra.mxu2 %v2307_v42  ;;  %v2560_v42 = vld [vmem:[#allocation22 + $0x2a0] sm:$0xff] }
 0x321   : > { %2625 = vmatpush.msrb.mxu2 %v2492_v43  ;;  %v2498_v43 = vld [vmem:[#allocation22 + $0xb0] sm:$0xff] }
 0x323   : > { %2626 = vmatpush.msrb.mxu2 %v2488_v7  ;;  %v2494_v7 = vld [vmem:[#allocation22 + $0x90] sm:$0xff] }
 0x325   : > { %2627 = vmatpush.msrb.mxu2 %v2484_v51  ;;  %v2554_v51 = vld [vmem:[#allocation22 + $0x270] sm:$0xff] }
 0x327   : > { %2628 = vmatpush.msrb.mxu2 %v2480_v56  ;;  %v2487_v56 = vld [vmem:[#allocation22 + $0x58] sm:$0xff] }
 0x329   : > { %2629 = vmatpush.msrb.mxu2 %v2476_v62  ;;  %v2478_v62 = vld [vmem:[#allocation22 + $0x10] sm:$0xff] }
 0x32b   : > { %2694 = vmatpush.msra.mxu2 %v2538_v5  ;;  %v2415_v5 = vld [vmem:[#allocation20] sm:$0x3] }
 0x32d   : > { %2695 = vmatpush.msra.mxu2 %v2534_v10 }
 0x32f   : > { %2696 = vmatpush.msra.mxu2 %v2530_v14 }
 0x331   : > { %2697 = vmatpush.msra.mxu2 %v2526_v19  ;;  %v3154_v19 = vld [vmem:[#allocation25 + $0xbc0] sm:$0xff] }
 0x333   : > { %2698 = vmatpush.msra.mxu2 %v2522_v23  ;;  %v3146_v23 = vld [vmem:[#allocation25 + $0xb80] sm:$0xff] }
 0x3a3   : > { %v2342_v48 = vpop.f32.mrf.mxu2 }
 0x3a4   : > { %v2343_v49 = vadd.f32 %v2342_v48, %v2324_v47  ;;  %v2552_v47 = vld [vmem:[#allocation22 + $0x260] sm:$0xff]  ;;  %v2489_v48 = vld [vmem:[#allocation22 + $0x68] sm:$0xff] }
 0x3a5   : > { %2666 = vmatpush.msra.mxu0 %v2489_v48  ;;  %v2495_v48 = vld [vmem:[#allocation22 + $0x98] sm:$0xff] }
 0x3a6   : > { %v2345_v50 = vmax.f32 %v2343_v49, 0.0  ;;  %v2553_v49 = vld [vmem:[#allocation22 + $0x268] sm:$0xff] }
 0x3a7   : > { %2686 = vmatpush.msra.mxu1 %v2553_v49  ;;  %2667 = vmatpush.msra.mxu0 %v2485_v53  ;;  %v2559_v49 = vld [vmem:[#allocation22 + $0x298] sm:$0xff] }
 0x3a8   : > { %6205 = vmatmul.msk.f32.vlgmr.msra.gmra.mxu3 %vm2355_vm0, %v2345_v50  ;;  %v2555_v53 = vld [vmem:[#allocation22 + $0x278] sm:$0xff] }
 0x3a9   : > { %2634 = vmatpush.msra.mxu3 %v2600_v55  ;;  %2687 = vmatpush.msra.mxu1 %v2549_v54  ;;  %v2486_v54 = vld [vmem:[#allocation22 + $0x50] sm:$0xff] }
 0x3ab   : > { %2635 = vmatpush.msra.mxu3 %v2596_v59  ;;  %v2481_v59 = vld [vmem:[#allocation22 + $0x28] sm:$0xff]  ;;  %2688 = vmatpush.msra.mxu1 %v2545_v60  ;;  %v2483_v60 = vld [vmem:[#allocation22 + $0x38] sm:$0xff] }
 0x3ac   : > { %2668 = vmatpush.msra.mxu0 %v2481_v59  ;;  %v2546_v59 = vld [vmem:[#allocation22 + $0x230] sm:$0xff] }
 0x3ad   : > { %2636 = vmatpush.msra.mxu3 %v2592_v63  ;;  %v2540_v63 = vld [vmem:[#allocation22 + $0x200] sm:$0xff]  ;;  %2689 = vmatpush.msra.mxu1 %v2541_v4  ;;  %v2543_v4 = vld [vmem:[#allocation22 + $0x218] sm:$0xff] }
 0x3ae   : > { %2669 = vmatpush.msra.mxu0 %v2477_v3  ;;  %v2479_v3 = vld [vmem:[#allocation22 + $0x18] sm:$0xff] }
 0x3af   : > { %2637 = vmatpush.msra.mxu3 %v2588_v6  ;;  %v2602_v6 = vld [vmem:[#allocation22 + $0x3f0] sm:$0xff] }
 0x3b0   : > { %6206 = vmatmul.msk.f32.vlgmr.msrb.gmra.mxu3 %vm2355_vm0, %v2345_v50  ;;  %v2408_v50 = vld [vmem:[%s8137_s1] sm:$0x1]  ;;  %s8140_s1 = smov %s8139_s5 }
 0x3b1   : > { %2638 = vmatpush.msra.mxu3 %v2584_v12  ;;  %v2535_v12 = vld [vmem:[#allocation22 + $0x1d8] sm:$0xff] }
 0x3b3   : > { %2639 = vmatpush.msra.mxu3 %v2580_v16  ;;  %v2531_v16 = vld [vmem:[#allocation22 + $0x1b8] sm:$0xff] }
 0x3b5   : > { %2640 = vmatpush.msra.mxu3 %v2576_v21  ;;  %v2527_v21 = vld [vmem:[#allocation22 + $0x198] sm:$0xff] }
 0x3b7   : > { %2641 = vmatpush.msra.mxu3 %v2572_v0  ;;  %v2587_v0 = vld [vmem:[#allocation22 + $0x378] sm:$0xff] }
 0x3b9   : > { %2642 = vmatpush.msra.mxu3 %v2568_v33  ;;  %v2578_v33 = vld [vmem:[#allocation22 + $0x330] sm:$0xff] }
 0x3bb   : > { %2643 = vmatpush.msra.mxu3 %v2564_v31  ;;  %v2575_v31 = vld [vmem:[#allocation22 + $0x318] sm:$0xff] }
 0x3bd   : > { %2644 = vmatpush.msra.mxu3 %v2560_v42  ;;  %v2566_v42 = vld [vmem:[#allocation22 + $0x2d0] sm:$0xff] }
 0x3bf   : > { %2645 = vmatpush.msra.mxu3 %v2556_v44  ;;  %v2562_v44 = vld [vmem:[#allocation22 + $0x2b0] sm:$0xff] }
 0x3c1   : > { %2646 = vmatpush.msra.mxu3 %v2552_v47  ;;  %v2558_v47 = vld [vmem:[#allocation22 + $0x290] sm:$0xff] }
 0x3c3   : > { %2647 = vmatpush.msra.mxu3 %v2548_v52  ;;  %v2491_v52 = vld [vmem:[#allocation22 + $0x78] sm:$0xff] }
 0x3c5   : > { %2648 = vmatpush.msra.mxu3 %v2544_v57  ;;  %v2551_v57 = vld [vmem:[#allocation22 + $0x258] sm:$0xff] }
 0x3c7   : > { %2649 = vmatpush.msra.mxu3 %v2540_v63  ;;  %v2542_v63 = vld [vmem:[#allocation22 + $0x210] sm:$0xff] }
 0x3c9   : > { %2714 = vmatpush.msrb.mxu3 %v2602_v6  ;;  %v2421_v6 = vperm.slane %v2415_v5, 0 }
 0x3cb   : > { %2715 = vmatpush.msrb.mxu3 %v2598_v11 }
 0x3cd   : > { %2716 = vmatpush.msrb.mxu3 %v2594_v15  ;;  %v3026_v15 = vld [vmem:[#allocation25 + $0x7c0] sm:$0xff] }
 0x3cf   : > { %2717 = vmatpush.msrb.mxu3 %v2590_v20  ;;  %v3018_v20 = vld [vmem:[#allocation25 + $0x780] sm:$0xff] }
 0x3d1   : > { %2718 = vmatpush.msrb.mxu3 %v2586_v25  ;;  %v3010_v25 = vld [vmem:[#allocation25 + $0x740] sm:$0xff] }
 0x3d3   : > { %2719 = vmatpush.msrb.mxu3 %v2582_v1  ;;  %v3002_v1 = vld [vmem:[#allocation25 + $0x700] sm:$0xff] }
 0x3d5   : > { %2720 = vmatpush.msrb.mxu3 %v2578_v33  ;;  %v2994_v33 = vld [vmem:[#allocation25 + $0x6c0] sm:$0xff] }
 0x42b   : > { %v2376_v8 = vpop.f32.mrf.mxu3 }
 0x42c   : > { %v2377_v39 = vadd.f32 %v2376_v8, %v2354_v34  ;;  %v2539_v8 = vld [vmem:[#allocation22 + $0x1f8] sm:$0xff] }
 0x42d   : > { %v2515_v34 = vld [vmem:[#allocation22 + $0x138] sm:$0xff] }
 0x42e   : > { %5840 = vst.msk [vmem:[%s1031_s0] sm:$0x1] %vm5839_vm2, %v2377_v39 }
 0x433   : > { %v2405_v27 = vpop.f32.mrf.mxu3 }
 0x434   : > { %v2406_v30 = vadd.f32 %v2405_v27, %v2387_v22  ;;  %v2591_v22 = vld [vmem:[#allocation22 + $0x398] sm:$0xff]  ;;  %v2518_v27 = vld [vmem:[#allocation22 + $0x150] sm:$0xff] }
 0x435   : > { %2699 = vmatpush.msra.mxu2 %v2518_v27  ;;  %v3138_v27 = vld [vmem:[#allocation25 + $0xb40] sm:$0xff] }
 0x436   : > { %v2409_v37 = vmul.f32 0.5, %v2406_v30  ;;  %5841 = vst.msk [vmem:[%s8082_s7] sm:$0x1] %vm5839_vm2, %v2406_v30  ;;  %v2583_v30 = vld [vmem:[#allocation22 + $0x358] sm:$0xff]  ;;  %s5875_s7 = scalar_lea.hbm %s8139_s5, %s8132_s23 }
 0x437   : > { %2700 = vmatpush.msra.mxu2 %v2514_v32  ;;  %v3130_v32 = vld [vmem:[#allocation25 + $0xb00] sm:$0xff] }
 0x438   : > { %v2410_v40 = vmul.f32 1.442695, %v2409_v37  ;;  %v2574_v37 = vld [vmem:[#allocation22 + $0x310] sm:$0xff] }
 0x439   : > { %2701 = vmatpush.msra.mxu2 %v2510_v36  ;;  %2721 = vmatpush.msrb.mxu3 %v2574_v37  ;;  %v3122_v36 = vld [vmem:[#allocation25 + $0xac0] sm:$0xff] }
 0x43a   : > { %6446 = vpow2.f32 %v2410_v40  ;;  %v2571_v40 = vld [vmem:[#allocation22 + $0x2f8] sm:$0xff]  ;;  %v2986_v37 = vld [vmem:[#allocation25 + $0x680] sm:$0xff] }
 0x43b   : > { %2702 = vmatpush.msra.mxu2 %v2506_v38  ;;  %2722 = vmatpush.msrb.mxu3 %v2570_v24  ;;  %v3114_v38 = vld [vmem:[#allocation25 + $0xa80] sm:$0xff] }
 0x43c   : > { %v2978_v24 = vld [vmem:[#allocation25 + $0x640] sm:$0xff] }
 0x43d   : > { %2703 = vmatpush.msra.mxu2 %v2502_v41  ;;  %2723 = vmatpush.msrb.mxu3 %v2566_v42  ;;  %v3106_v41 = vld [vmem:[#allocation25 + $0xa40] sm:$0xff] }
 0x43e   : > { %v2970_v42 = vld [vmem:[#allocation25 + $0x600] sm:$0xff] }
 0x43f   : > { %2704 = vmatpush.msra.mxu2 %v2498_v43  ;;  %2724 = vmatpush.msrb.mxu3 %v2562_v44  ;;  %v3098_v43 = vld [vmem:[#allocation25 + $0xa00] sm:$0xff] }
 0x440   : > { %v6447_v55 = vpop.eup %6446  ;;  %v2962_v44 = vld [vmem:[#allocation25 + $0x5c0] sm:$0xff] }
 0x441   : > { %v2412_v58 = vmul.f32 %v6447_v55, %v2408_v50  ;;  %2705 = vmatpush.msra.mxu2 %v2494_v7  ;;  %2725 = vmatpush.msrb.mxu3 %v2558_v47  ;;  %v2490_v50 = vld [vmem:[#allocation22 + $0x70] sm:$0xff]  ;;  %v3090_v7 = vld [vmem:[#allocation25 + $0x9c0] sm:$0xff] }
 0x442   : > { %v2550_v55 = vld [vmem:[#allocation22 + $0x250] sm:$0xff]  ;;  %v2954_v47 = vld [vmem:[#allocation25 + $0x580] sm:$0xff] }
 0x443   : > { %v2413_v61 = vadd.f32 %v2412_v58, %v2377_v39  ;;  %v2507_v39 = vld [vmem:[#allocation22 + $0xf8] sm:$0xff]  ;;  %2706 = vmatpush.msra.mxu2 %v2490_v50  ;;  %2726 = vmatpush.msrb.mxu3 %v2554_v51  ;;  %v2482_v58 = vld [vmem:[#allocation22 + $0x30] sm:$0xff]  ;;  %v3082_v50 = vld [vmem:[#allocation25 + $0x980] sm:$0xff] }
 0x444   : > { %v2946_v51 = vld [vmem:[#allocation25 + $0x540] sm:$0xff] }
 0x445   : > { %6208 = vmatmul.msk.f32.vlgmr.msrb.gmra.mxu0 %vm2425_vm3, %v2413_v61  ;;  %6210 = vmatmul.msk.f32.vlgmr.msrb.gmra.mxu1 %vm2425_vm3, %v2413_v61  ;;  %v2547_v61 = vld [vmem:[#allocation22 + $0x238] sm:$0xff] }
 0x446   : > { %2734 = vmatpush.msrb.mxu0 %v2539_v8  ;;  %2754 = vmatpush.msrb.mxu1 %v2603_v9  ;;  %v2422_v8 = vperm.slane %v2415_v5, 1  ;;  %v3050_v5 = vld [vmem:[#allocation25 + $0x880] sm:$0xff] }
 0x447   : > { %2707 = vmatpush.msra.mxu2 %v2486_v54  ;;  %2727 = vmatpush.msrb.mxu3 %v2550_v55  ;;  %v3074_v54 = vld [vmem:[#allocation25 + $0x940] sm:$0xff] }
 0x448   : > { %2735 = vmatpush.msrb.mxu0 %v2535_v12  ;;  %2755 = vmatpush.msrb.mxu1 %v2599_v13  ;;  %v2938_v55 = vld [vmem:[#allocation25 + $0x500] sm:$0xff] }
 0x449   : > { %2708 = vmatpush.msra.mxu2 %v2482_v58  ;;  %2728 = vmatpush.msrb.mxu3 %v2546_v59  ;;  %v3066_v58 = vld [vmem:[#allocation25 + $0x900] sm:$0xff] }
 0x44a   : > { %2736 = vmatpush.msrb.mxu0 %v2531_v16  ;;  %2756 = vmatpush.msrb.mxu1 %v2595_v17  ;;  %v2898_v16 = vld [vmem:[#allocation25 + $0x3c0] sm:$0xff] }
 0x44b   : > { %2709 = vmatpush.msra.mxu2 %v2478_v62  ;;  %2729 = vmatpush.msrb.mxu3 %v2542_v63  ;;  %v3282_v17 = vld [vmem:[#allocation25 + $0xfc0] sm:$0xff] }
 0x44c   : > { %2737 = vmatpush.msrb.mxu0 %v2527_v21  ;;  %2757 = vmatpush.msrb.mxu1 %v2591_v22  ;;  %v2890_v21 = vld [vmem:[#allocation25 + $0x380] sm:$0xff] }
 0x44d   : > { %v3274_v22 = vld [vmem:[#allocation25 + $0xf80] sm:$0xff] }
 0x44e   : > { %2738 = vmatpush.msrb.mxu0 %v2523_v26  ;;  %2758 = vmatpush.msrb.mxu1 %v2587_v0  ;;  %v2882_v26 = vld [vmem:[#allocation25 + $0x340] sm:$0xff] }
 0x44f   : > { %v3266_v0 = vld [vmem:[#allocation25 + $0xf40] sm:$0xff] }
 0x450   : > { %2739 = vmatpush.msrb.mxu0 %v2519_v29  ;;  %2759 = vmatpush.msrb.mxu1 %v2583_v30  ;;  %v2874_v29 = vld [vmem:[#allocation25 + $0x300] sm:$0xff] }
 0x451   : > { %v3258_v30 = vld [vmem:[#allocation25 + $0xf00] sm:$0xff] }
 0x452   : > { %2740 = vmatpush.msrb.mxu0 %v2515_v34  ;;  %2760 = vmatpush.msrb.mxu1 %v2579_v35  ;;  %v2866_v34 = vld [vmem:[#allocation25 + $0x2c0] sm:$0xff] }
 0x453   : > { %v3250_v35 = vld [vmem:[#allocation25 + $0xec0] sm:$0xff] }
 0x454   : > { %2741 = vmatpush.msrb.mxu0 %v2511_v18  ;;  %2761 = vmatpush.msrb.mxu1 %v2575_v31  ;;  %v2858_v18 = vld [vmem:[#allocation25 + $0x280] sm:$0xff] }
 0x455   : > { %v3242_v31 = vld [vmem:[#allocation25 + $0xe80] sm:$0xff] }
 0x456   : > { %2742 = vmatpush.msrb.mxu0 %v2507_v39  ;;  %2762 = vmatpush.msrb.mxu1 %v2571_v40  ;;  %v2850_v39 = vld [vmem:[#allocation25 + $0x240] sm:$0xff] }
 0x457   : > { %v3234_v40 = vld [vmem:[#allocation25 + $0xe40] sm:$0xff] }
 0x458   : > { %2743 = vmatpush.msrb.mxu0 %v2503_v2  ;;  %2763 = vmatpush.msrb.mxu1 %v2567_v28  ;;  %v2842_v2 = vld [vmem:[#allocation25 + $0x200] sm:$0xff] }
 0x459   : > { %v3226_v28 = vld [vmem:[#allocation25 + $0xe00] sm:$0xff] }
 0x45a   : > { %2744 = vmatpush.msrb.mxu0 %v2499_v45  ;;  %2764 = vmatpush.msrb.mxu1 %v2563_v46  ;;  %v2834_v45 = vld [vmem:[#allocation25 + $0x1c0] sm:$0xff] }
 0x45b   : > { %v3218_v46 = vld [vmem:[#allocation25 + $0xdc0] sm:$0xff] }
 0x45c   : > { %2745 = vmatpush.msrb.mxu0 %v2495_v48  ;;  %2765 = vmatpush.msrb.mxu1 %v2559_v49  ;;  %v2826_v48 = vld [vmem:[#allocation25 + $0x180] sm:$0xff] }
 0x45d   : > { %v3210_v49 = vld [vmem:[#allocation25 + $0xd80] sm:$0xff] }
 0x45e   : > { %2746 = vmatpush.msrb.mxu0 %v2491_v52  ;;  %2766 = vmatpush.msrb.mxu1 %v2555_v53  ;;  %v2818_v52 = vld [vmem:[#allocation25 + $0x140] sm:$0xff] }
 0x45f   : > { %v3202_v53 = vld [vmem:[#allocation25 + $0xd40] sm:$0xff] }
 0x460   : > { %2747 = vmatpush.msrb.mxu0 %v2487_v56  ;;  %2767 = vmatpush.msrb.mxu1 %v2551_v57  ;;  %v2810_v56 = vld [vmem:[#allocation25 + $0x100] sm:$0xff] }
 0x461   : > { %v3194_v57 = vld [vmem:[#allocation25 + $0xd00] sm:$0xff] }
 0x462   : > { %2748 = vmatpush.msrb.mxu0 %v2483_v60  ;;  %2768 = vmatpush.msrb.mxu1 %v2547_v61  ;;  %v2930_v59 = vld [vmem:[#allocation25 + $0x4c0] sm:$0xff] }
 0x463   : > { %v2802_v60 = vld [vmem:[#allocation25 + $0xc0] sm:$0xff] }
 0x464   : > { %2749 = vmatpush.msrb.mxu0 %v2479_v3  ;;  %2769 = vmatpush.msrb.mxu1 %v2543_v4  ;;  %v3186_v61 = vld [vmem:[#allocation25 + $0xcc0] sm:$0xff] }
 0x465   : > { %v3058_v62 = vld [vmem:[#allocation25 + $0x8c0] sm:$0xff] }
 0x466   : > { %v2922_v63 = vld [vmem:[#allocation25 + $0x480] sm:$0xff] }
 0x467   : > { %v2794_v3 = vld [vmem:[#allocation25 + $0x80] sm:$0xff] }
 0x468   : > { %v3178_v4 = vld [vmem:[#allocation25 + $0xc80] sm:$0xff] }
 0x4c2   : > { %v2451_v9 = vpop.f32.mrf.mxu0  ;;  %v2471_v10 = vpop.f32.mrf.mxu1 }
 0x4c3   : > { %v2452_v11 = vadd.f32 %v2451_v9, %v2421_v6  ;;  %v2472_v12 = vadd.f32 %v2471_v10, %v2422_v8  ;;  %v2914_v6 = vld [vmem:[#allocation25 + $0x440] sm:$0xff] }
 0x4c4   : > { %v2786_v8 = vld [vmem:[#allocation25 + $0x40] sm:$0xff] }
 0x4c5   : > { %v2474_v13 = vmax.f32 %v2452_v11, 0.0  ;;  %v2475_v14 = vmax.f32 %v2472_v12, 0.0  ;;  %v3170_v9 = vld [vmem:[#allocation25 + $0xc40] sm:$0xff] }
 0x4c6   : > { %v3042_v10 = vld [vmem:[#allocation25 + $0x840] sm:$0xff] }
 0x4c7   : > { %2630 = vmatmul.f32.vlgmr.msrb.gmra.mxu2 %v2474_v13  ;;  %2650 = vmatmul.f32.vlgmr.msra.gmra.mxu3 %v2475_v14  ;;  %v2906_v11 = vld [vmem:[#allocation25 + $0x400] sm:$0xff] }
 0x4c8   : > { %2670 = vmatmul.f32.vlgmr.msra.gmra.mxu0 %v2474_v13  ;;  %2690 = vmatmul.f32.vlgmr.msra.gmra.mxu1 %v2475_v14  ;;  %v2778_v12 = vld [vmem:[#allocation25] sm:$0xff] }
 0x4c9   : > { %3328 = vmatpush.msra.mxu3 %v3026_v15  ;;  %3308 = vmatpush.msrb.mxu2 %v2898_v16  ;;  %v3162_v15 = vld [vmem:[#allocation25 + $0xc00] sm:$0xff] }
 0x4ca   : > { %3368 = vmatpush.msra.mxu1 %v3282_v17  ;;  %3348 = vmatpush.msra.mxu0 %v3154_v19  ;;  %v3034_v16 = vld [vmem:[#allocation25 + $0x800] sm:$0xff]  ;;  %v3019_v17 = vld [vmem:[#allocation25 + $0x788] sm:$0xff] }
 0x4cb   : > { %3329 = vmatpush.msra.mxu3 %v3018_v20  ;;  %3309 = vmatpush.msrb.mxu2 %v2890_v21  ;;  %v2891_v19 = vld [vmem:[#allocation25 + $0x388] sm:$0xff] }
 0x4cc   : > { %3369 = vmatpush.msra.mxu1 %v3274_v22  ;;  %3349 = vmatpush.msra.mxu0 %v3146_v23  ;;  %v3283_v20 = vld [vmem:[#allocation25 + $0xfc8] sm:$0xff] }
 0x4cd   : > { %3330 = vmatpush.msra.mxu3 %v3010_v25  ;;  %3310 = vmatpush.msrb.mxu2 %v2882_v26  ;;  %v3155_v21 = vld [vmem:[#allocation25 + $0xbc8] sm:$0xff] }
 0x4ce   : > { %3370 = vmatpush.msra.mxu1 %v3266_v0  ;;  %3350 = vmatpush.msra.mxu0 %v3138_v27  ;;  %v3011_v22 = vld [vmem:[#allocation25 + $0x748] sm:$0xff] }
 0x4cf   : > { %2710 = vmatmul.f32.vlgmr.msra.gmra.mxu2 %v2474_v13  ;;  %2730 = vmatmul.f32.vlgmr.msrb.gmra.mxu3 %v2475_v14  ;;  %v2883_v23 = vld [vmem:[#allocation25 + $0x348] sm:$0xff] }
 0x4d0   : > { %2750 = vmatmul.f32.vlgmr.msrb.gmra.mxu0 %v2474_v13  ;;  %2770 = vmatmul.f32.vlgmr.msrb.gmra.mxu1 %v2475_v14  ;;  %v3027_v13 = vld [vmem:[#allocation25 + $0x7c8] sm:$0xff] }
 0x4d1   : > { %3331 = vmatpush.msra.mxu3 %v3002_v1  ;;  %3311 = vmatpush.msrb.mxu2 %v2874_v29  ;;  %v2899_v14 = vld [vmem:[#allocation25 + $0x3c8] sm:$0xff] }
 0x4d2   : > { %3371 = vmatpush.msra.mxu1 %v3258_v30  ;;  %3351 = vmatpush.msra.mxu0 %v3130_v32  ;;  %v3275_v25 = vld [vmem:[#allocation25 + $0xf88] sm:$0xff] }
 0x4d3   : > { %3332 = vmatpush.msra.mxu3 %v2994_v33  ;;  %3312 = vmatpush.msrb.mxu2 %v2866_v34  ;;  %v3147_v26 = vld [vmem:[#allocation25 + $0xb88] sm:$0xff] }
 0x4d4   : > { %3372 = vmatpush.msra.mxu1 %v3250_v35  ;;  %3352 = vmatpush.msra.mxu0 %v3122_v36  ;;  %v3003_v0 = vld [vmem:[#allocation25 + $0x708] sm:$0xff] }
 0x4d5   : > { %3333 = vmatpush.msra.mxu3 %v2986_v37  ;;  %3313 = vmatpush.msrb.mxu2 %v2858_v18  ;;  %v2875_v27 = vld [vmem:[#allocation25 + $0x308] sm:$0xff] }
 0x4d6   : > { %3373 = vmatpush.msra.mxu1 %v3242_v31  ;;  %3353 = vmatpush.msra.mxu0 %v3114_v38  ;;  %v3267_v1 = vld [vmem:[#allocation25 + $0xf48] sm:$0xff] }
 0x4d7   : > { %3334 = vmatpush.msra.mxu3 %v2978_v24  ;;  %3314 = vmatpush.msrb.mxu2 %v2850_v39  ;;  %v3139_v29 = vld [vmem:[#allocation25 + $0xb48] sm:$0xff] }
 0x4d8   : > { %3374 = vmatpush.msra.mxu1 %v3234_v40  ;;  %3354 = vmatpush.msra.mxu0 %v3106_v41  ;;  %v2995_v30 = vld [vmem:[#allocation25 + $0x6c8] sm:$0xff] }
 0x4d9   : > { %3335 = vmatpush.msra.mxu3 %v2970_v42  ;;  %3315 = vmatpush.msrb.mxu2 %v2842_v2  ;;  %v2867_v32 = vld [vmem:[#allocation25 + $0x2c8] sm:$0xff] }
 0x4da   : > { %3375 = vmatpush.msra.mxu1 %v3226_v28  ;;  %3355 = vmatpush.msra.mxu0 %v3098_v43  ;;  %v3259_v33 = vld [vmem:[#allocation25 + $0xf08] sm:$0xff] }
 0x4db   : > { %3336 = vmatpush.msra.mxu3 %v2962_v44  ;;  %3316 = vmatpush.msrb.mxu2 %v2834_v45  ;;  %v3131_v34 = vld [vmem:[#allocation25 + $0xb08] sm:$0xff] }
 0x4dc   : > { %3376 = vmatpush.msra.mxu1 %v3218_v46  ;;  %3356 = vmatpush.msra.mxu0 %v3090_v7  ;;  %v2987_v35 = vld [vmem:[#allocation25 + $0x688] sm:$0xff] }
 0x4dd   : > { %3337 = vmatpush.msra.mxu3 %v2954_v47  ;;  %3317 = vmatpush.msrb.mxu2 %v2826_v48  ;;  %v2859_v36 = vld [vmem:[#allocation25 + $0x288] sm:$0xff] }
 0x4de   : > { %3377 = vmatpush.msra.mxu1 %v3210_v49  ;;  %3357 = vmatpush.msra.mxu0 %v3082_v50  ;;  %v3251_v37 = vld [vmem:[#allocation25 + $0xec8] sm:$0xff] }
 0x4df   : > { %3338 = vmatpush.msra.mxu3 %v2946_v51  ;;  %3318 = vmatpush.msrb.mxu2 %v2818_v52  ;;  %v3123_v18 = vld [vmem:[#allocation25 + $0xac8] sm:$0xff] }
 0x4e0   : > { %3378 = vmatpush.msra.mxu1 %v3202_v53  ;;  %3358 = vmatpush.msra.mxu0 %v3074_v54  ;;  %v2979_v31 = vld [vmem:[#allocation25 + $0x648] sm:$0xff] }
 0x4e1   : > { %3339 = vmatpush.msra.mxu3 %v2938_v55  ;;  %3319 = vmatpush.msrb.mxu2 %v2810_v56  ;;  %v2851_v38 = vld [vmem:[#allocation25 + $0x248] sm:$0xff] }
 0x4e2   : > { %3379 = vmatpush.msra.mxu1 %v3194_v57  ;;  %3359 = vmatpush.msra.mxu0 %v3066_v58  ;;  %v3243_v24 = vld [vmem:[#allocation25 + $0xe88] sm:$0xff] }
 0x4e3   : > { %3340 = vmatpush.msra.mxu3 %v2930_v59  ;;  %3320 = vmatpush.msrb.mxu2 %v2802_v60  ;;  %v2971_v39 = vld [vmem:[#allocation25 + $0x608] sm:$0xff] }
 0x4e4   : > { %3380 = vmatpush.msra.mxu1 %v3186_v61  ;;  %3360 = vmatpush.msra.mxu0 %v3058_v62  ;;  %v2843_v40 = vld [vmem:[#allocation25 + $0x208] sm:$0xff] }
 0x4e5   : > { %3341 = vmatpush.msra.mxu3 %v2922_v63  ;;  %3321 = vmatpush.msrb.mxu2 %v2794_v3  ;;  %v3235_v41 = vld [vmem:[#allocation25 + $0xe48] sm:$0xff] }
 0x4e6   : > { %3381 = vmatpush.msra.mxu1 %v3178_v4  ;;  %3361 = vmatpush.msra.mxu0 %v3050_v5  ;;  %v2963_v42 = vld [vmem:[#allocation25 + $0x5c8] sm:$0xff] }
 0x4e7   : > { %3342 = vmatpush.msra.mxu3 %v2914_v6  ;;  %3322 = vmatpush.msrb.mxu2 %v2786_v8  ;;  %v2835_v2 = vld [vmem:[#allocation25 + $0x1c8] sm:$0xff] }
 0x4e8   : > { %3382 = vmatpush.msra.mxu1 %v3170_v9  ;;  %3362 = vmatpush.msra.mxu0 %v3042_v10  ;;  %v3227_v28 = vld [vmem:[#allocation25 + $0xe08] sm:$0xff] }
 0x4e9   : > { %3343 = vmatpush.msra.mxu3 %v2906_v11  ;;  %3323 = vmatpush.msrb.mxu2 %v2778_v12  ;;  %v2955_v43 = vld [vmem:[#allocation25 + $0x588] sm:$0xff] }
 0x4ea   : > { %3383 = vmatpush.msra.mxu1 %v3162_v15  ;;  %3363 = vmatpush.msra.mxu0 %v3034_v16  ;;  %v2947_v44 = vld [vmem:[#allocation25 + $0x548] sm:$0xff]  ;;  %v2604_v15 = vld [vmem:[#allocation23] sm:$0xf] }
 0x4eb   : > { %3408 = vmatpush.msrb.mxu3 %v3027_v13  ;;  %3388 = vmatpush.msra.mxu2 %v2899_v14  ;;  %v2939_v45 = vld [vmem:[#allocation25 + $0x508] sm:$0xff]  ;;  %v2607_v16 = vperm.slane %v2604_v15, 1 }
 0x4ec   : > { %3448 = vmatpush.msrb.mxu1 %v3283_v20  ;;  %3428 = vmatpush.msrb.mxu0 %v3155_v21  ;;  %v2827_v46 = vld [vmem:[#allocation25 + $0x188] sm:$0xff]  ;;  %v2606_v21 = vperm.slane %v2604_v15, 0 }
 0x4ed   : > { %3409 = vmatpush.msrb.mxu3 %v3019_v17  ;;  %3389 = vmatpush.msra.mxu2 %v2891_v19  ;;  %v2931_v7 = vld [vmem:[#allocation25 + $0x4c8] sm:$0xff] }
 0x4ee   : > { %3449 = vmatpush.msrb.mxu1 %v3275_v25  ;;  %3429 = vmatpush.msrb.mxu0 %v3147_v26  ;;  %v3115_v47 = vld [vmem:[#allocation25 + $0xa88] sm:$0xff] }
 0x4ef   : > { %3410 = vmatpush.msrb.mxu3 %v3011_v22  ;;  %3390 = vmatpush.msra.mxu2 %v2883_v23  ;;  %v3219_v48 = vld [vmem:[#allocation25 + $0xdc8] sm:$0xff] }
 0x4f0   : > { %3450 = vmatpush.msrb.mxu1 %v3267_v1  ;;  %3430 = vmatpush.msrb.mxu0 %v3139_v29  ;;  %v2819_v49 = vld [vmem:[#allocation25 + $0x148] sm:$0xff]  ;;  %v3020_v29 = vld [vmem:[#allocation25 + $0x790] sm:$0xff] }
 0x4f1   : > { %3411 = vmatpush.msrb.mxu3 %v3003_v0  ;;  %3391 = vmatpush.msra.mxu2 %v2875_v27  ;;  %v2923_v50 = vld [vmem:[#allocation25 + $0x488] sm:$0xff]  ;;  %v3028_v0 = vld [vmem:[#allocation25 + $0x7d0] sm:$0xff]  ;;  %v2609_v27 = vperm.slane %v2604_v15, 3 }
 0x4f2   : > { %3451 = vmatpush.msrb.mxu1 %v3259_v33  ;;  %3431 = vmatpush.msrb.mxu0 %v3131_v34  ;;  %v3107_v51 = vld [vmem:[#allocation25 + $0xa48] sm:$0xff]  ;;  %v3012_v34 = vld [vmem:[#allocation25 + $0x750] sm:$0xff] }
 0x4f3   : > { %3412 = vmatpush.msrb.mxu3 %v2995_v30  ;;  %3392 = vmatpush.msra.mxu2 %v2867_v32  ;;  %v3211_v52 = vld [vmem:[#allocation25 + $0xd88] sm:$0xff] }
 0x4f4   : > { %3452 = vmatpush.msrb.mxu1 %v3251_v37  ;;  %3432 = vmatpush.msrb.mxu0 %v3123_v18  ;;  %v2811_v53 = vld [vmem:[#allocation25 + $0x108] sm:$0xff]  ;;  %v2900_v37 = vld [vmem:[#allocation25 + $0x3d0] sm:$0xff]  ;;  %v2608_v18 = vperm.slane %v2604_v15, 2 }
 0x4f5   : > { %3413 = vmatpush.msrb.mxu3 %v2987_v35  ;;  %3393 = vmatpush.msra.mxu2 %v2859_v36  ;;  %v2915_v54 = vld [vmem:[#allocation25 + $0x448] sm:$0xff]  ;;  %v2924_v15 = vld [vmem:[#allocation25 + $0x490] sm:$0xff] }
 0x4f6   : > { %3453 = vmatpush.msrb.mxu1 %v3243_v24  ;;  %3433 = vmatpush.msrb.mxu0 %v3115_v47  ;;  %v3099_v55 = vld [vmem:[#allocation25 + $0xa08] sm:$0xff]  ;;  %v2980_v47 = vld [vmem:[#allocation25 + $0x650] sm:$0xff] }
 0x4f7   : > { %3414 = vmatpush.msrb.mxu3 %v2979_v31  ;;  %3394 = vmatpush.msra.mxu2 %v2851_v38  ;;  %v3203_v56 = vld [vmem:[#allocation25 + $0xd48] sm:$0xff]  ;;  %v3004_v38 = vld [vmem:[#allocation25 + $0x710] sm:$0xff] }
 0x4f8   : > { %3454 = vmatpush.msrb.mxu1 %v3235_v41  ;;  %3434 = vmatpush.msrb.mxu0 %v3107_v51  ;;  %v2803_v57 = vld [vmem:[#allocation25 + $0xc8] sm:$0xff]  ;;  %v2996_v41 = vld [vmem:[#allocation25 + $0x6d0] sm:$0xff] }
 0x4f9   : > { %3415 = vmatpush.msrb.mxu3 %v2971_v39  ;;  %3395 = vmatpush.msra.mxu2 %v2843_v40  ;;  %v2907_v58 = vld [vmem:[#allocation25 + $0x408] sm:$0xff]  ;;  %v2892_v40 = vld [vmem:[#allocation25 + $0x390] sm:$0xff] }
 0x4fa   : > { %3455 = vmatpush.msrb.mxu1 %v3227_v28  ;;  %3435 = vmatpush.msrb.mxu0 %v3099_v55  ;;  %v3091_v59 = vld [vmem:[#allocation25 + $0x9c8] sm:$0xff]  ;;  %v2868_v51 = vld [vmem:[#allocation25 + $0x2d0] sm:$0xff] }
 0x4fb   : > { %3416 = vmatpush.msrb.mxu3 %v2963_v42  ;;  %3396 = vmatpush.msra.mxu2 %v2835_v2  ;;  %v3195_v60 = vld [vmem:[#allocation25 + $0xd08] sm:$0xff]  ;;  %v3284_v2 = vld [vmem:[#allocation25 + $0xfd0] sm:$0xff] }
 0x4fc   : > { %3456 = vmatpush.msrb.mxu1 %v3219_v48  ;;  %3436 = vmatpush.msrb.mxu0 %v3091_v59  ;;  %v2795_v61 = vld [vmem:[#allocation25 + $0x88] sm:$0xff]  ;;  %v2860_v55 = vld [vmem:[#allocation25 + $0x290] sm:$0xff] }
 0x4fd   : > { %3417 = vmatpush.msrb.mxu3 %v2955_v43  ;;  %3397 = vmatpush.msra.mxu2 %v2827_v46  ;;  %v3083_v62 = vld [vmem:[#allocation25 + $0x988] sm:$0xff]  ;;  %v2884_v43 = vld [vmem:[#allocation25 + $0x350] sm:$0xff] }
 0x4fe   : > { %3457 = vmatpush.msrb.mxu1 %v3211_v52  ;;  %v3187_v63 = vld [vmem:[#allocation25 + $0xcc8] sm:$0xff]  ;;  %3437 = vmatpush.msrb.mxu0 %v3083_v62  ;;  %v3276_v46 = vld [vmem:[#allocation25 + $0xf90] sm:$0xff] }
 0x4ff   : > { %3418 = vmatpush.msrb.mxu3 %v2947_v44  ;;  %3398 = vmatpush.msra.mxu2 %v2819_v49  ;;  %v2787_v3 = vld [vmem:[#allocation25 + $0x48] sm:$0xff]  ;;  %v2988_v44 = vld [vmem:[#allocation25 + $0x690] sm:$0xff] }
 0x500   : > { %3458 = vmatpush.msrb.mxu1 %v3203_v56  ;;  %v3075_v4 = vld [vmem:[#allocation25 + $0x948] sm:$0xff]  ;;  %v3268_v49 = vld [vmem:[#allocation25 + $0xf50] sm:$0xff] }
 0x501   : > { %3419 = vmatpush.msrb.mxu3 %v2939_v45  ;;  %3399 = vmatpush.msra.mxu2 %v2811_v53  ;;  %v3179_v5 = vld [vmem:[#allocation25 + $0xc88] sm:$0xff]  ;;  %v3156_v52 = vld [vmem:[#allocation25 + $0xbd0] sm:$0xff] }
 0x502   : > { %3459 = vmatpush.msrb.mxu1 %v3195_v60  ;;  %3438 = vmatpush.msrb.mxu0 %v3075_v4  ;;  %v2779_v6 = vld [vmem:[#allocation25 + $0x8] sm:$0xff]  ;;  %v3260_v53 = vld [vmem:[#allocation25 + $0xf10] sm:$0xff] }
 0x503   : > { %3420 = vmatpush.msrb.mxu3 %v2931_v7  ;;  %3400 = vmatpush.msra.mxu2 %v2803_v57  ;;  %v3067_v8 = vld [vmem:[#allocation25 + $0x908] sm:$0xff]  ;;  %v2876_v7 = vld [vmem:[#allocation25 + $0x310] sm:$0xff] }
 0x504   : > { %3460 = vmatpush.msrb.mxu1 %v3187_v63  ;;  %v3171_v9 = vld [vmem:[#allocation25 + $0xc48] sm:$0xff]  ;;  %3439 = vmatpush.msrb.mxu0 %v3067_v8  ;;  %v3148_v56 = vld [vmem:[#allocation25 + $0xb90] sm:$0xff] }
 0x505   : > { %3421 = vmatpush.msrb.mxu3 %v2923_v50  ;;  %3401 = vmatpush.msra.mxu2 %v2795_v61  ;;  %v3059_v10 = vld [vmem:[#allocation25 + $0x8c8] sm:$0xff]  ;;  %v2972_v50 = vld [vmem:[#allocation25 + $0x610] sm:$0xff] }
 0x506   : > { %3461 = vmatpush.msrb.mxu1 %v3179_v5  ;;  %v3163_v11 = vld [vmem:[#allocation25 + $0xc08] sm:$0xff]  ;;  %3440 = vmatpush.msrb.mxu0 %v3059_v10  ;;  %v3252_v57 = vld [vmem:[#allocation25 + $0xed0] sm:$0xff] }
 0x507   : > { %3422 = vmatpush.msrb.mxu3 %v2915_v54  ;;  %3402 = vmatpush.msra.mxu2 %v2787_v3  ;;  %v3051_v12 = vld [vmem:[#allocation25 + $0x888] sm:$0xff]  ;;  %v2964_v54 = vld [vmem:[#allocation25 + $0x5d0] sm:$0xff] }
 0x508   : > { %3462 = vmatpush.msrb.mxu1 %v3171_v9  ;;  %3441 = vmatpush.msrb.mxu0 %v3051_v12  ;;  %v3043_v13 = vld [vmem:[#allocation25 + $0x848] sm:$0xff]  ;;  %v2956_v59 = vld [vmem:[#allocation25 + $0x590] sm:$0xff] }
 0x509   : > { %3423 = vmatpush.msrb.mxu3 %v2907_v58  ;;  %3403 = vmatpush.msra.mxu2 %v2779_v6  ;;  %v3035_v14 = vld [vmem:[#allocation25 + $0x808] sm:$0xff]  ;;  %v2852_v58 = vld [vmem:[#allocation25 + $0x250] sm:$0xff] }
 0x50a   : > { %3463 = vmatpush.msrb.mxu1 %v3163_v11  ;;  %3442 = vmatpush.msrb.mxu0 %v3043_v13  ;;  %v3140_v60 = vld [vmem:[#allocation25 + $0xb50] sm:$0xff] }
 0x50b   : > { %v3244_v61 = vld [vmem:[#allocation25 + $0xe90] sm:$0xff] }
 0x50c   : > { %3443 = vmatpush.msrb.mxu0 %v3035_v14  ;;  %v2844_v62 = vld [vmem:[#allocation25 + $0x210] sm:$0xff] }
 0x50d   : > { %v2948_v63 = vld [vmem:[#allocation25 + $0x550] sm:$0xff] }
 0x50e   : > { %v3132_v3 = vld [vmem:[#allocation25 + $0xb10] sm:$0xff] }
 0x50f   : > { %v3236_v4 = vld [vmem:[#allocation25 + $0xe50] sm:$0xff] }
 0x510   : > { %v2836_v5 = vld [vmem:[#allocation25 + $0x1d0] sm:$0xff] }
 0x511   : > { %v2940_v6 = vld [vmem:[#allocation25 + $0x510] sm:$0xff] }
 0x512   : > { %v3124_v8 = vld [vmem:[#allocation25 + $0xad0] sm:$0xff] }
 0x513   : > { %v3228_v9 = vld [vmem:[#allocation25 + $0xe10] sm:$0xff] }
 0x514   : > { %v2828_v10 = vld [vmem:[#allocation25 + $0x190] sm:$0xff] }
 0x515   : > { %v2932_v11 = vld [vmem:[#allocation25 + $0x4d0] sm:$0xff] }
 0x516   : > { %v3116_v12 = vld [vmem:[#allocation25 + $0xa90] sm:$0xff] }
 0x517   : > { %v3220_v13 = vld [vmem:[#allocation25 + $0xdd0] sm:$0xff] }
 0x518   : > { %v2820_v14 = vld [vmem:[#allocation25 + $0x150] sm:$0xff] }
 0x545   : > { %v2671_v17 = vpop.f32.mrf.mxu0  ;;  %v2691_v19 = vpop.f32.mrf.mxu1 }
 0x546   : > { %v2672_v20 = vadd.f32 %v2671_v17, %v2607_v16  ;;  %v3108_v16 = vld [vmem:[#allocation25 + $0xa50] sm:$0xff] }
 0x547   : > { %v3212_v17 = vld [vmem:[#allocation25 + $0xd90] sm:$0xff] }
 0x548   : > { %v2692_v22 = vadd.f32 %v2691_v19, %v2672_v20  ;;  %v2812_v19 = vld [vmem:[#allocation25 + $0x110] sm:$0xff] }
 0x549   : > { %v2916_v20 = vld [vmem:[#allocation25 + $0x450] sm:$0xff] }
 0x54a   : > { %v7709_v23 = vmax.f32 %v2692_v22, 0.0  ;;  %v2631_v25 = vpop.f32.mrf.mxu2  ;;  %v2651_v26 = vpop.f32.mrf.mxu3  ;;  %v3204_v22 = vld [vmem:[#allocation25 + $0xd50] sm:$0xff] }
 0x54b   : > { %v2632_v1 = vadd.f32 %v2631_v25, %v2606_v21  ;;  %v3100_v21 = vld [vmem:[#allocation25 + $0xa10] sm:$0xff] }
 0x54c   : > { %3344 = vmatmul.f32.vlgmr.msra.gmra.mxu3 %v7709_v23  ;;  %v2804_v25 = vld [vmem:[#allocation25 + $0xd0] sm:$0xff] }
 0x54d   : > { %v2652_v30 = vadd.f32 %v2651_v26, %v2632_v1  ;;  %3488 = vmatpush.msra.mxu3 %v3028_v0  ;;  %v2751_v32 = vpop.f32.mrf.mxu0  ;;  %v2771_v36 = vpop.f32.mrf.mxu1  ;;  %v2908_v26 = vld [vmem:[#allocation25 + $0x410] sm:$0xff]  ;;  %v3029_v1 = vld [vmem:[#allocation25 + $0x7d8] sm:$0xff] }
 0x54e   : > { %v2752_v33 = vadd.f32 %v2751_v32, %v2609_v27  ;;  %v3092_v0 = vld [vmem:[#allocation25 + $0x9d0] sm:$0xff] }
 0x54f   : > { %v7712_v35 = vmax.f32 %v2652_v30, 0.0  ;;  %3489 = vmatpush.msra.mxu3 %v3020_v29  ;;  %v3196_v27 = vld [vmem:[#allocation25 + $0xd10] sm:$0xff] }
 0x550   : > { %v2772_v31 = vadd.f32 %v2771_v36, %v2752_v33  ;;  %v2796_v29 = vld [vmem:[#allocation25 + $0x90] sm:$0xff]  ;;  %v3021_v33 = vld [vmem:[#allocation25 + $0x798] sm:$0xff] }
 0x551   : > { %3490 = vmatpush.msra.mxu3 %v3012_v34  ;;  %3324 = vmatmul.f32.vlgmr.msrb.gmra.mxu2 %v7712_v35  ;;  %v3084_v30 = vld [vmem:[#allocation25 + $0x990] sm:$0xff] }
 0x552   : > { %v7715_v24 = vmax.f32 %v2772_v31, 0.0  ;;  %3468 = vmatpush.msrb.mxu2 %v2900_v37  ;;  %v2711_v39 = vpop.f32.mrf.mxu2  ;;  %v2731_v28 = vpop.f32.mrf.mxu3  ;;  %v3188_v32 = vld [vmem:[#allocation25 + $0xcd0] sm:$0xff] }
 0x553   : > { %3491 = vmatpush.msra.mxu3 %v3004_v38  ;;  %v2712_v42 = vadd.f32 %v2711_v39, %v2608_v18  ;;  %v2788_v34 = vld [vmem:[#allocation25 + $0x50] sm:$0xff]  ;;  %v3013_v18 = vld [vmem:[#allocation25 + $0x758] sm:$0xff] }
 0x554   : > { %3384 = vmatmul.f32.vlgmr.msra.gmra.mxu1 %v7715_v24  ;;  %3424 = vmatmul.f32.vlgmr.msrb.gmra.mxu3 %v7709_v23  ;;  %v3076_v36 = vld [vmem:[#allocation25 + $0x950] sm:$0xff] }
 0x555   : > { %v2732_v45 = vadd.f32 %v2731_v28, %v2712_v42  ;;  %3469 = vmatpush.msrb.mxu2 %v2892_v40  ;;  %3492 = vmatpush.msra.mxu3 %v2996_v41  ;;  %v3180_v37 = vld [vmem:[#allocation25 + $0xc90] sm:$0xff]  ;;  %v3005_v40 = vld [vmem:[#allocation25 + $0x718] sm:$0xff] }
 0x556   : > { %3528 = vmatpush.msra.mxu1 %v3284_v2  ;;  %v2780_v31 = vld [vmem:[#allocation25 + $0x10] sm:$0xff]  ;;  %v2901_v41 = vld [vmem:[#allocation25 + $0x3d8] sm:$0xff] }
 0x557   : > { %v7719_v48 = vmax.f32 %v2732_v45, 0.0  ;;  %3470 = vmatpush.msrb.mxu2 %v2884_v43  ;;  %3493 = vmatpush.msra.mxu3 %v2988_v44  ;;  %v3068_v38 = vld [vmem:[#allocation25 + $0x910] sm:$0xff]  ;;  %v2997_v28 = vld [vmem:[#allocation25 + $0x6d8] sm:$0xff] }
 0x558   : > { %3529 = vmatpush.msra.mxu1 %v3276_v46  ;;  %v3172_v39 = vld [vmem:[#allocation25 + $0xc50] sm:$0xff]  ;;  %v2893_v43 = vld [vmem:[#allocation25 + $0x398] sm:$0xff] }
 0x559   : > { %3471 = vmatpush.msrb.mxu2 %v2876_v7  ;;  %3494 = vmatpush.msra.mxu3 %v2980_v47  ;;  %v3060_v42 = vld [vmem:[#allocation25 + $0x8d0] sm:$0xff]  ;;  %v3285_v44 = vld [vmem:[#allocation25 + $0xfd8] sm:$0xff] }
 0x55a   : > { %3530 = vmatpush.msra.mxu1 %v3268_v49  ;;  %3364 = vmatmul.f32.vlgmr.msra.gmra.mxu0 %v7719_v48  ;;  %v3164_v2 = vld [vmem:[#allocation25 + $0xc10] sm:$0xff]  ;;  %v2885_v46 = vld [vmem:[#allocation25 + $0x358] sm:$0xff] }
 0x55b   : > { %3404 = vmatmul.f32.vlgmr.msra.gmra.mxu2 %v7712_v35  ;;  %3495 = vmatpush.msra.mxu3 %v2972_v50  ;;  %v3052_v45 = vld [vmem:[#allocation25 + $0x890] sm:$0xff]  ;;  %v2989_v7 = vld [vmem:[#allocation25 + $0x698] sm:$0xff] }
 0x55c   : > { %3472 = vmatpush.msrb.mxu2 %v2868_v51  ;;  %3508 = vmatpush.msra.mxu0 %v3156_v52  ;;  %v3277_v47 = vld [vmem:[#allocation25 + $0xf98] sm:$0xff]  ;;  %v3044_v49 = vld [vmem:[#allocation25 + $0x850] sm:$0xff] }
 0x55d   : > { %3531 = vmatpush.msra.mxu1 %v3260_v53  ;;  %3496 = vmatpush.msra.mxu3 %v2964_v54  ;;  %v2877_v50 = vld [vmem:[#allocation25 + $0x318] sm:$0xff]  ;;  %v3036_v53 = vld [vmem:[#allocation25 + $0x810] sm:$0xff] }
 0x55e   : > { %3464 = vmatmul.f32.vlgmr.msrb.gmra.mxu1 %v7715_v24  ;;  %3473 = vmatpush.msrb.mxu2 %v2860_v55  ;;  %v2981_v51 = vld [vmem:[#allocation25 + $0x658] sm:$0xff] }
 0x55f   : > { %3509 = vmatpush.msra.mxu0 %v3148_v56  ;;  %3532 = vmatpush.msra.mxu1 %v3252_v57  ;;  %v3269_v52 = vld [vmem:[#allocation25 + $0xf58] sm:$0xff] }
 0x560   : > { %3474 = vmatpush.msrb.mxu2 %v2852_v58  ;;  %3497 = vmatpush.msra.mxu3 %v2956_v59  ;;  %v2869_v54 = vld [vmem:[#allocation25 + $0x2d8] sm:$0xff] }
 0x561   : > { %3510 = vmatpush.msra.mxu0 %v3140_v60  ;;  %3533 = vmatpush.msra.mxu1 %v3244_v61  ;;  %v2973_v55 = vld [vmem:[#allocation25 + $0x618] sm:$0xff] }
 0x562   : > { %3475 = vmatpush.msrb.mxu2 %v2844_v62  ;;  %3498 = vmatpush.msra.mxu3 %v2948_v63  ;;  %v3157_v56 = vld [vmem:[#allocation25 + $0xbd8] sm:$0xff] }
 0x563   : > { %3511 = vmatpush.msra.mxu0 %v3132_v3  ;;  %3534 = vmatpush.msra.mxu1 %v3236_v4  ;;  %v3261_v57 = vld [vmem:[#allocation25 + $0xf18] sm:$0xff] }
 0x564   : > { %3444 = vmatmul.f32.vlgmr.msrb.gmra.mxu0 %v7719_v48  ;;  %3476 = vmatpush.msrb.mxu2 %v2836_v5  ;;  %v2861_v58 = vld [vmem:[#allocation25 + $0x298] sm:$0xff] }
 0x565   : > { %3499 = vmatpush.msra.mxu3 %v2940_v6  ;;  %3512 = vmatpush.msra.mxu0 %v3124_v8  ;;  %v2965_v59 = vld [vmem:[#allocation25 + $0x5d8] sm:$0xff] }
 0x566   : > { %3535 = vmatpush.msra.mxu1 %v3228_v9  ;;  %3477 = vmatpush.msrb.mxu2 %v2828_v10  ;;  %v3149_v60 = vld [vmem:[#allocation25 + $0xb98] sm:$0xff] }
 0x567   : > { %3500 = vmatpush.msra.mxu3 %v2932_v11  ;;  %3513 = vmatpush.msra.mxu0 %v3116_v12  ;;  %v3253_v61 = vld [vmem:[#allocation25 + $0xed8] sm:$0xff] }
 0x568   : > { %3536 = vmatpush.msra.mxu1 %v3220_v13  ;;  %3478 = vmatpush.msrb.mxu2 %v2820_v14  ;;  %v2853_v62 = vld [vmem:[#allocation25 + $0x258] sm:$0xff] }
 0x569   : > { %3501 = vmatpush.msra.mxu3 %v2924_v15  ;;  %3514 = vmatpush.msra.mxu0 %v3108_v16  ;;  %v2957_v63 = vld [vmem:[#allocation25 + $0x598] sm:$0xff] }
 0x56a   : > { %3537 = vmatpush.msra.mxu1 %v3212_v17  ;;  %3479 = vmatpush.msrb.mxu2 %v2812_v19  ;;  %v3141_v3 = vld [vmem:[#allocation25 + $0xb58] sm:$0xff] }
 0x56b   : > { %3502 = vmatpush.msra.mxu3 %v2916_v20  ;;  %3515 = vmatpush.msra.mxu0 %v3100_v21  ;;  %v3245_v4 = vld [vmem:[#allocation25 + $0xe98] sm:$0xff] }
 0x56c   : > { %3538 = vmatpush.msra.mxu1 %v3204_v22  ;;  %3480 = vmatpush.msrb.mxu2 %v2804_v25  ;;  %v2845_v5 = vld [vmem:[#allocation25 + $0x218] sm:$0xff] }
 0x56d   : > { %3503 = vmatpush.msra.mxu3 %v2908_v26  ;;  %3516 = vmatpush.msra.mxu0 %v3092_v0  ;;  %v2949_v6 = vld [vmem:[#allocation25 + $0x558] sm:$0xff] }
 0x56e   : > { %3539 = vmatpush.msra.mxu1 %v3196_v27  ;;  %3504 = vmatmul.f32.vlgmr.msra.gmra.mxu3 %v7709_v23  ;;  %v3133_v8 = vld [vmem:[#allocation25 + $0xb18] sm:$0xff] }
 0x56f   : > { %3568 = vmatpush.msrb.mxu3 %v3029_v1  ;;  %3481 = vmatpush.msrb.mxu2 %v2796_v29  ;;  %v3237_v9 = vld [vmem:[#allocation25 + $0xe58] sm:$0xff] }
 0x570   : > { %3517 = vmatpush.msra.mxu0 %v3084_v30  ;;  %3540 = vmatpush.msra.mxu1 %v3188_v32  ;;  %v2837_v10 = vld [vmem:[#allocation25 + $0x1d8] sm:$0xff] }
 0x571   : > { %3569 = vmatpush.msrb.mxu3 %v3021_v33  ;;  %3482 = vmatpush.msrb.mxu2 %v2788_v34  ;;  %v2941_v11 = vld [vmem:[#allocation25 + $0x518] sm:$0xff]  ;;  %v3030_v33 = vld [vmem:[#allocation25 + $0x7e0] sm:$0xff] }
 0x572   : > { %3518 = vmatpush.msra.mxu0 %v3076_v36  ;;  %3541 = vmatpush.msra.mxu1 %v3180_v37  ;;  %v3125_v12 = vld [vmem:[#allocation25 + $0xad8] sm:$0xff] }
 0x573   : > { %3570 = vmatpush.msrb.mxu3 %v3013_v18  ;;  %3483 = vmatpush.msrb.mxu2 %v2780_v31  ;;  %v3229_v13 = vld [vmem:[#allocation25 + $0xe18] sm:$0xff]  ;;  %v3022_v18 = vld [vmem:[#allocation25 + $0x7a0] sm:$0xff] }
 0x574   : > { %3519 = vmatpush.msra.mxu0 %v3068_v38  ;;  %3542 = vmatpush.msra.mxu1 %v3172_v39  ;;  %v2829_v14 = vld [vmem:[#allocation25 + $0x198] sm:$0xff] }
 0x575   : > { %3484 = vmatmul.f32.vlgmr.msrb.gmra.mxu2 %v7712_v35  ;;  %3571 = vmatpush.msrb.mxu3 %v3005_v40  ;;  %v2933_v15 = vld [vmem:[#allocation25 + $0x4d8] sm:$0xff]  ;;  %v3014_v40 = vld [vmem:[#allocation25 + $0x760] sm:$0xff] }
 0x576   : > { %3548 = vmatpush.msra.mxu2 %v2901_v41  ;;  %3520 = vmatpush.msra.mxu0 %v3060_v42  ;;  %v3117_v16 = vld [vmem:[#allocation25 + $0xa98] sm:$0xff] }
 0x577   : > { %3543 = vmatpush.msra.mxu1 %v3164_v2  ;;  %3572 = vmatpush.msrb.mxu3 %v2997_v28  ;;  %v3221_v17 = vld [vmem:[#allocation25 + $0xdd8] sm:$0xff]  ;;  %v3006_v28 = vld [vmem:[#allocation25 + $0x720] sm:$0xff] }
 0x578   : > { %3544 = vmatmul.f32.vlgmr.msra.gmra.mxu1 %v7715_v24  ;;  %3549 = vmatpush.msra.mxu2 %v2893_v43  ;;  %v2821_v19 = vld [vmem:[#allocation25 + $0x158] sm:$0xff]  ;;  %v2902_v43 = vld [vmem:[#allocation25 + $0x3e0] sm:$0xff] }
 0x579   : > { %3608 = vmatpush.msrb.mxu1 %v3285_v44  ;;  %3521 = vmatpush.msra.mxu0 %v3052_v45  ;;  %v2925_v20 = vld [vmem:[#allocation25 + $0x498] sm:$0xff] }
 0x57a   : > { %3550 = vmatpush.msra.mxu2 %v2885_v46  ;;  %3573 = vmatpush.msrb.mxu3 %v2989_v7  ;;  %v3109_v21 = vld [vmem:[#allocation25 + $0xa58] sm:$0xff]  ;;  %v2998_v46 = vld [vmem:[#allocation25 + $0x6e0] sm:$0xff] }
 0x57b   : > { %3609 = vmatpush.msrb.mxu1 %v3277_v47  ;;  %3522 = vmatpush.msra.mxu0 %v3044_v49  ;;  %v3213_v22 = vld [vmem:[#allocation25 + $0xd98] sm:$0xff]  ;;  %v2894_v7 = vld [vmem:[#allocation25 + $0x3a0] sm:$0xff] }
 0x57c   : > { %3551 = vmatpush.msra.mxu2 %v2877_v50  ;;  %3574 = vmatpush.msrb.mxu3 %v2981_v51  ;;  %v2813_v25 = vld [vmem:[#allocation25 + $0x118] sm:$0xff]  ;;  %v3286_v47 = vld [vmem:[#allocation25 + $0xfe0] sm:$0xff] }
 0x57d   : > { %3610 = vmatpush.msrb.mxu1 %v3269_v52  ;;  %3523 = vmatpush.msra.mxu0 %v3036_v53  ;;  %v2917_v26 = vld [vmem:[#allocation25 + $0x458] sm:$0xff]  ;;  %v2886_v50 = vld [vmem:[#allocation25 + $0x360] sm:$0xff] }
 0x57e   : > { %3524 = vmatmul.f32.vlgmr.msra.gmra.mxu0 %v7719_v48  ;;  %3552 = vmatpush.msra.mxu2 %v2869_v54  ;;  %v3101_v0 = vld [vmem:[#allocation25 + $0xa18] sm:$0xff]  ;;  %v2990_v51 = vld [vmem:[#allocation25 + $0x6a0] sm:$0xff] }
 0x57f   : > { %3575 = vmatpush.msrb.mxu3 %v2973_v55  ;;  %3588 = vmatpush.msrb.mxu0 %v3157_v56  ;;  %v3205_v27 = vld [vmem:[#allocation25 + $0xd58] sm:$0xff]  ;;  %v3278_v52 = vld [vmem:[#allocation25 + $0xfa0] sm:$0xff] }
 0x580   : > { %3611 = vmatpush.msrb.mxu1 %v3261_v57  ;;  %3553 = vmatpush.msra.mxu2 %v2861_v58  ;;  %v2805_v1 = vld [vmem:[#allocation25 + $0xd8] sm:$0xff]  ;;  %v2878_v54 = vld [vmem:[#allocation25 + $0x320] sm:$0xff] }
 0x581   : > { %3576 = vmatpush.msrb.mxu3 %v2965_v59  ;;  %3589 = vmatpush.msrb.mxu0 %v3149_v60  ;;  %v2909_v29 = vld [vmem:[#allocation25 + $0x418] sm:$0xff]  ;;  %v2982_v55 = vld [vmem:[#allocation25 + $0x660] sm:$0xff] }
 0x582   : > { %3612 = vmatpush.msrb.mxu1 %v3253_v61  ;;  %3554 = vmatpush.msra.mxu2 %v2853_v62  ;;  %v3093_v30 = vld [vmem:[#allocation25 + $0x9d8] sm:$0xff]  ;;  %v3270_v56 = vld [vmem:[#allocation25 + $0xf60] sm:$0xff] }
 0x583   : > { %3577 = vmatpush.msrb.mxu3 %v2957_v63  ;;  %3590 = vmatpush.msrb.mxu0 %v3141_v3  ;;  %v3197_v32 = vld [vmem:[#allocation25 + $0xd18] sm:$0xff]  ;;  %v2870_v58 = vld [vmem:[#allocation25 + $0x2e0] sm:$0xff] }
 0x584   : > { %3613 = vmatpush.msrb.mxu1 %v3245_v4  ;;  %3555 = vmatpush.msra.mxu2 %v2845_v5  ;;  %v2797_v34 = vld [vmem:[#allocation25 + $0x98] sm:$0xff]  ;;  %v2974_v59 = vld [vmem:[#allocation25 + $0x620] sm:$0xff] }
 0x585   : > { %3578 = vmatpush.msrb.mxu3 %v2949_v6  ;;  %3591 = vmatpush.msrb.mxu0 %v3133_v8  ;;  %v3085_v36 = vld [vmem:[#allocation25 + $0x998] sm:$0xff]  ;;  %v3158_v60 = vld [vmem:[#allocation25 + $0xbe0] sm:$0xff] }
 0x586   : > { %3614 = vmatpush.msrb.mxu1 %v3237_v9  ;;  %3556 = vmatpush.msra.mxu2 %v2837_v10  ;;  %v3189_v37 = vld [vmem:[#allocation25 + $0xcd8] sm:$0xff]  ;;  %v3262_v61 = vld [vmem:[#allocation25 + $0xf20] sm:$0xff] }
 0x587   : > { %3579 = vmatpush.msrb.mxu3 %v2941_v11  ;;  %3592 = vmatpush.msrb.mxu0 %v3125_v12  ;;  %v2789_v31 = vld [vmem:[#allocation25 + $0x58] sm:$0xff]  ;;  %v2862_v62 = vld [vmem:[#allocation25 + $0x2a0] sm:$0xff] }
 0x588   : > { %3615 = vmatpush.msrb.mxu1 %v3229_v13  ;;  %3557 = vmatpush.msra.mxu2 %v2829_v14  ;;  %v3077_v38 = vld [vmem:[#allocation25 + $0x958] sm:$0xff]  ;;  %v2966_v63 = vld [vmem:[#allocation25 + $0x5e0] sm:$0xff] }
 0x589   : > { %3580 = vmatpush.msrb.mxu3 %v2933_v15  ;;  %3593 = vmatpush.msrb.mxu0 %v3117_v16  ;;  %v3181_v39 = vld [vmem:[#allocation25 + $0xc98] sm:$0xff]  ;;  %v3150_v3 = vld [vmem:[#allocation25 + $0xba0] sm:$0xff] }
 0x58a   : > { %3616 = vmatpush.msrb.mxu1 %v3221_v17  ;;  %3558 = vmatpush.msra.mxu2 %v2821_v19  ;;  %v2781_v41 = vld [vmem:[#allocation25 + $0x18] sm:$0xff]  ;;  %v3254_v4 = vld [vmem:[#allocation25 + $0xee0] sm:$0xff] }
 0x58b   : > { %3581 = vmatpush.msrb.mxu3 %v2925_v20  ;;  %3594 = vmatpush.msrb.mxu0 %v3109_v21  ;;  %v3069_v42 = vld [vmem:[#allocation25 + $0x918] sm:$0xff]  ;;  %v2854_v5 = vld [vmem:[#allocation25 + $0x260] sm:$0xff] }
 0x58c   : > { %3617 = vmatpush.msrb.mxu1 %v3213_v22  ;;  %3559 = vmatpush.msra.mxu2 %v2813_v25  ;;  %v3173_v2 = vld [vmem:[#allocation25 + $0xc58] sm:$0xff]  ;;  %v2958_v6 = vld [vmem:[#allocation25 + $0x5a0] sm:$0xff] }
 0x58d   : > { %3582 = vmatpush.msrb.mxu3 %v2917_v26  ;;  %3595 = vmatpush.msrb.mxu0 %v3101_v0  ;;  %v3061_v44 = vld [vmem:[#allocation25 + $0x8d8] sm:$0xff]  ;;  %v3142_v8 = vld [vmem:[#allocation25 + $0xb60] sm:$0xff] }
 0x58e   : > { %3618 = vmatpush.msrb.mxu1 %v3205_v27  ;;  %3560 = vmatpush.msra.mxu2 %v2805_v1  ;;  %v3165_v45 = vld [vmem:[#allocation25 + $0xc18] sm:$0xff]  ;;  %v3246_v9 = vld [vmem:[#allocation25 + $0xea0] sm:$0xff] }
 0x58f   : > { %3583 = vmatpush.msrb.mxu3 %v2909_v29  ;;  %3596 = vmatpush.msrb.mxu0 %v3093_v30  ;;  %v3053_v49 = vld [vmem:[#allocation25 + $0x898] sm:$0xff]  ;;  %v2846_v10 = vld [vmem:[#allocation25 + $0x220] sm:$0xff] }
 0x590   : > { %3619 = vmatpush.msrb.mxu1 %v3197_v32  ;;  %3584 = vmatmul.f32.vlgmr.msrb.gmra.mxu3 %v7709_v23  ;;  %v3045_v53 = vld [vmem:[#allocation25 + $0x858] sm:$0xff]  ;;  %v2950_v11 = vld [vmem:[#allocation25 + $0x560] sm:$0xff] }
 0x591   : > { %3648 = vmatpush.msra.mxu3 %v3030_v33  ;;  %3561 = vmatpush.msra.mxu2 %v2797_v34  ;;  %v3037_v57 = vld [vmem:[#allocation25 + $0x818] sm:$0xff]  ;;  %v3134_v12 = vld [vmem:[#allocation25 + $0xb20] sm:$0xff] }
 0x592   : > { %3597 = vmatpush.msrb.mxu0 %v3085_v36  ;;  %3620 = vmatpush.msrb.mxu1 %v3189_v37  ;;  %v3238_v13 = vld [vmem:[#allocation25 + $0xe60] sm:$0xff] }
 0x593   : > { %3649 = vmatpush.msra.mxu3 %v3022_v18  ;;  %3562 = vmatpush.msra.mxu2 %v2789_v31  ;;  %v2838_v14 = vld [vmem:[#allocation25 + $0x1e0] sm:$0xff]  ;;  %v3031_v18 = vld [vmem:[#allocation25 + $0x7e8] sm:$0xff] }
 0x594   : > { %3598 = vmatpush.msrb.mxu0 %v3077_v38  ;;  %3621 = vmatpush.msrb.mxu1 %v3181_v39  ;;  %v2942_v15 = vld [vmem:[#allocation25 + $0x520] sm:$0xff] }
 0x595   : > { %3650 = vmatpush.msra.mxu3 %v3014_v40  ;;  %3563 = vmatpush.msra.mxu2 %v2781_v41  ;;  %v3126_v16 = vld [vmem:[#allocation25 + $0xae0] sm:$0xff]  ;;  %v3023_v40 = vld [vmem:[#allocation25 + $0x7a8] sm:$0xff] }
 0x596   : > { %3599 = vmatpush.msrb.mxu0 %v3069_v42  ;;  %3622 = vmatpush.msrb.mxu1 %v3173_v2  ;;  %v3230_v17 = vld [vmem:[#allocation25 + $0xe20] sm:$0xff] }
 0x597   : > { %3564 = vmatmul.f32.vlgmr.msra.gmra.mxu2 %v7712_v35  ;;  %3651 = vmatpush.msra.mxu3 %v3006_v28  ;;  %v2830_v19 = vld [vmem:[#allocation25 + $0x1a0] sm:$0xff]  ;;  %v3015_v28 = vld [vmem:[#allocation25 + $0x768] sm:$0xff] }
 0x598   : > { %3628 = vmatpush.msrb.mxu2 %v2902_v43  ;;  %3600 = vmatpush.msrb.mxu0 %v3061_v44  ;;  %v2934_v20 = vld [vmem:[#allocation25 + $0x4e0] sm:$0xff] }
 0x599   : > { %3623 = vmatpush.msrb.mxu1 %v3165_v45  ;;  %3652 = vmatpush.msra.mxu3 %v2998_v46  ;;  %v3118_v21 = vld [vmem:[#allocation25 + $0xaa0] sm:$0xff]  ;;  %v3007_v46 = vld [vmem:[#allocation25 + $0x728] sm:$0xff] }
 0x59a   : > { %3624 = vmatmul.f32.vlgmr.msrb.gmra.mxu1 %v7715_v24  ;;  %3629 = vmatpush.msrb.mxu2 %v2894_v7  ;;  %v3222_v22 = vld [vmem:[#allocation25 + $0xde0] sm:$0xff]  ;;  %v2903_v7 = vld [vmem:[#allocation25 + $0x3e8] sm:$0xff] }
 0x59b   : > { %3688 = vmatpush.msra.mxu1 %v3286_v47  ;;  %3601 = vmatpush.msrb.mxu0 %v3053_v49  ;;  %v2822_v25 = vld [vmem:[#allocation25 + $0x160] sm:$0xff] }
 0x59c   : > { %3630 = vmatpush.msrb.mxu2 %v2886_v50  ;;  %3653 = vmatpush.msra.mxu3 %v2990_v51  ;;  %v2926_v26 = vld [vmem:[#allocation25 + $0x4a0] sm:$0xff]  ;;  %v2999_v50 = vld [vmem:[#allocation25 + $0x6e8] sm:$0xff] }
 0x59d   : > { %3689 = vmatpush.msra.mxu1 %v3278_v52  ;;  %3602 = vmatpush.msrb.mxu0 %v3045_v53  ;;  %v3110_v0 = vld [vmem:[#allocation25 + $0xa60] sm:$0xff]  ;;  %v2895_v51 = vld [vmem:[#allocation25 + $0x3a8] sm:$0xff] }
 0x59e   : > { %3631 = vmatpush.msrb.mxu2 %v2878_v54  ;;  %3654 = vmatpush.msra.mxu3 %v2982_v55  ;;  %v3214_v27 = vld [vmem:[#allocation25 + $0xda0] sm:$0xff]  ;;  %v3287_v52 = vld [vmem:[#allocation25 + $0xfe8] sm:$0xff] }
 0x59f   : > { %3690 = vmatpush.msra.mxu1 %v3270_v56  ;;  %3603 = vmatpush.msrb.mxu0 %v3037_v57  ;;  %v2814_v1 = vld [vmem:[#allocation25 + $0x120] sm:$0xff]  ;;  %v2887_v54 = vld [vmem:[#allocation25 + $0x368] sm:$0xff] }
 0x5a0   : > { %3604 = vmatmul.f32.vlgmr.msrb.gmra.mxu0 %v7719_v48  ;;  %3632 = vmatpush.msrb.mxu2 %v2870_v58  ;;  %v2918_v29 = vld [vmem:[#allocation25 + $0x460] sm:$0xff]  ;;  %v2991_v55 = vld [vmem:[#allocation25 + $0x6a8] sm:$0xff] }
 0x5a1   : > { %3655 = vmatpush.msra.mxu3 %v2974_v59  ;;  %3668 = vmatpush.msra.mxu0 %v3158_v60  ;;  %v3102_v30 = vld [vmem:[#allocation25 + $0xa20] sm:$0xff]  ;;  %v3279_v56 = vld [vmem:[#allocation25 + $0xfa8] sm:$0xff] }
 0x5a2   : > { %3691 = vmatpush.msra.mxu1 %v3262_v61  ;;  %3633 = vmatpush.msrb.mxu2 %v2862_v62  ;;  %v3206_v32 = vld [vmem:[#allocation25 + $0xd60] sm:$0xff]  ;;  %v2879_v58 = vld [vmem:[#allocation25 + $0x328] sm:$0xff] }
 0x5a3   : > { %3656 = vmatpush.msra.mxu3 %v2966_v63  ;;  %3669 = vmatpush.msra.mxu0 %v3150_v3  ;;  %v2806_v33 = vld [vmem:[#allocation25 + $0xe0] sm:$0xff]  ;;  %v2983_v59 = vld [vmem:[#allocation25 + $0x668] sm:$0xff] }
 0x5a4   : > { %3692 = vmatpush.msra.mxu1 %v3254_v4  ;;  %3634 = vmatpush.msrb.mxu2 %v2854_v5  ;;  %v2910_v34 = vld [vmem:[#allocation25 + $0x420] sm:$0xff]  ;;  %v3271_v60 = vld [vmem:[#allocation25 + $0xf68] sm:$0xff] }
 0x5a5   : > { %3657 = vmatpush.msra.mxu3 %v2958_v6  ;;  %3670 = vmatpush.msra.mxu0 %v3142_v8  ;;  %v3094_v36 = vld [vmem:[#allocation25 + $0x9e0] sm:$0xff]  ;;  %v2871_v62 = vld [vmem:[#allocation25 + $0x2e8] sm:$0xff] }
 0x5a6   : > { %3693 = vmatpush.msra.mxu1 %v3246_v9  ;;  %3635 = vmatpush.msrb.mxu2 %v2846_v10  ;;  %v3198_v37 = vld [vmem:[#allocation25 + $0xd20] sm:$0xff]  ;;  %v2975_v63 = vld [vmem:[#allocation25 + $0x628] sm:$0xff] }
 0x5a7   : > { %3658 = vmatpush.msra.mxu3 %v2950_v11  ;;  %3671 = vmatpush.msra.mxu0 %v3134_v12  ;;  %v2798_v31 = vld [vmem:[#allocation25 + $0xa0] sm:$0xff]  ;;  %v3159_v3 = vld [vmem:[#allocation25 + $0xbe8] sm:$0xff] }
 0x5a8   : > { %3694 = vmatpush.msra.mxu1 %v3238_v13  ;;  %3636 = vmatpush.msrb.mxu2 %v2838_v14  ;;  %v3086_v38 = vld [vmem:[#allocation25 + $0x9a0] sm:$0xff]  ;;  %v3263_v4 = vld [vmem:[#allocation25 + $0xf28] sm:$0xff] }
 0x5a9   : > { %3659 = vmatpush.msra.mxu3 %v2942_v15  ;;  %3672 = vmatpush.msra.mxu0 %v3126_v16  ;;  %v3190_v39 = vld [vmem:[#allocation25 + $0xce0] sm:$0xff]  ;;  %v2863_v5 = vld [vmem:[#allocation25 + $0x2a8] sm:$0xff] }
 0x5aa   : > { %3695 = vmatpush.msra.mxu1 %v3230_v17  ;;  %3637 = vmatpush.msrb.mxu2 %v2830_v19  ;;  %v2790_v41 = vld [vmem:[#allocation25 + $0x60] sm:$0xff]  ;;  %v2967_v6 = vld [vmem:[#allocation25 + $0x5e8] sm:$0xff] }
 0x5ab   : > { %3660 = vmatpush.msra.mxu3 %v2934_v20  ;;  %3673 = vmatpush.msra.mxu0 %v3118_v21  ;;  %v3078_v42 = vld [vmem:[#allocation25 + $0x960] sm:$0xff]  ;;  %v3151_v8 = vld [vmem:[#allocation25 + $0xba8] sm:$0xff] }
 0x5ac   : > { %3696 = vmatpush.msra.mxu1 %v3222_v22  ;;  %3638 = vmatpush.msrb.mxu2 %v2822_v25  ;;  %v3182_v2 = vld [vmem:[#allocation25 + $0xca0] sm:$0xff]  ;;  %v3255_v9 = vld [vmem:[#allocation25 + $0xee8] sm:$0xff] }
 0x5ad   : > { %3661 = vmatpush.msra.mxu3 %v2926_v26  ;;  %3674 = vmatpush.msra.mxu0 %v3110_v0  ;;  %v2782_v43 = vld [vmem:[#allocation25 + $0x20] sm:$0xff]  ;;  %v2855_v10 = vld [vmem:[#allocation25 + $0x268] sm:$0xff] }
 0x5ae   : > { %3697 = vmatpush.msra.mxu1 %v3214_v27  ;;  %3639 = vmatpush.msrb.mxu2 %v2814_v1  ;;  %v3070_v44 = vld [vmem:[#allocation25 + $0x920] sm:$0xff]  ;;  %v2959_v11 = vld [vmem:[#allocation25 + $0x5a8] sm:$0xff] }
 0x5af   : > { %3662 = vmatpush.msra.mxu3 %v2918_v29  ;;  %3675 = vmatpush.msra.mxu0 %v3102_v30  ;;  %v3174_v45 = vld [vmem:[#allocation25 + $0xc60] sm:$0xff]  ;;  %v3143_v12 = vld [vmem:[#allocation25 + $0xb68] sm:$0xff] }
 0x5b0   : > { %3698 = vmatpush.msra.mxu1 %v3206_v32  ;;  %3640 = vmatpush.msrb.mxu2 %v2806_v33  ;;  %v3062_v47 = vld [vmem:[#allocation25 + $0x8e0] sm:$0xff]  ;;  %v3247_v13 = vld [vmem:[#allocation25 + $0xea8] sm:$0xff] }
 0x5b1   : > { %3663 = vmatpush.msra.mxu3 %v2910_v34  ;;  %3676 = vmatpush.msra.mxu0 %v3094_v36  ;;  %v3166_v49 = vld [vmem:[#allocation25 + $0xc20] sm:$0xff]  ;;  %v2847_v14 = vld [vmem:[#allocation25 + $0x228] sm:$0xff] }
 0x5b2   : > { %3699 = vmatpush.msra.mxu1 %v3198_v37  ;;  %3664 = vmatmul.f32.vlgmr.msra.gmra.mxu3 %v7709_v23  ;;  %v3054_v53 = vld [vmem:[#allocation25 + $0x8a0] sm:$0xff]  ;;  %v2951_v15 = vld [vmem:[#allocation25 + $0x568] sm:$0xff] }
 0x5b3   : > { %3728 = vmatpush.msrb.mxu3 %v3031_v18  ;;  %3641 = vmatpush.msrb.mxu2 %v2798_v31  ;;  %v3046_v57 = vld [vmem:[#allocation25 + $0x860] sm:$0xff]  ;;  %v3135_v16 = vld [vmem:[#allocation25 + $0xb28] sm:$0xff] }
 0x5b4   : > { %3677 = vmatpush.msra.mxu0 %v3086_v38  ;;  %3700 = vmatpush.msra.mxu1 %v3190_v39  ;;  %v3038_v61 = vld [vmem:[#allocation25 + $0x820] sm:$0xff]  ;;  %v3239_v17 = vld [vmem:[#allocation25 + $0xe68] sm:$0xff] }
 0x5b5   : > { %3729 = vmatpush.msrb.mxu3 %v3023_v40  ;;  %3642 = vmatpush.msrb.mxu2 %v2790_v41  ;;  %v2839_v19 = vld [vmem:[#allocation25 + $0x1e8] sm:$0xff]  ;;  %v3032_v40 = vld [vmem:[#allocation25 + $0x7f0] sm:$0xff] }
 0x5b6   : > { %3678 = vmatpush.msra.mxu0 %v3078_v42  ;;  %3701 = vmatpush.msra.mxu1 %v3182_v2  ;;  %v2943_v20 = vld [vmem:[#allocation25 + $0x528] sm:$0xff] }
 0x5b7   : > { %3730 = vmatpush.msrb.mxu3 %v3015_v28  ;;  %3643 = vmatpush.msrb.mxu2 %v2782_v43  ;;  %v3127_v21 = vld [vmem:[#allocation25 + $0xae8] sm:$0xff]  ;;  %v3024_v28 = vld [vmem:[#allocation25 + $0x7b0] sm:$0xff] }
 0x5b8   : > { %3679 = vmatpush.msra.mxu0 %v3070_v44  ;;  %3702 = vmatpush.msra.mxu1 %v3174_v45  ;;  %v3231_v22 = vld [vmem:[#allocation25 + $0xe28] sm:$0xff] }
 0x5b9   : > { %3644 = vmatmul.f32.vlgmr.msrb.gmra.mxu2 %v7712_v35  ;;  %3731 = vmatpush.msrb.mxu3 %v3007_v46  ;;  %v2831_v25 = vld [vmem:[#allocation25 + $0x1a8] sm:$0xff]  ;;  %v3016_v46 = vld [vmem:[#allocation25 + $0x770] sm:$0xff] }
 0x5ba   : > { %3708 = vmatpush.msra.mxu2 %v2903_v7  ;;  %3680 = vmatpush.msra.mxu0 %v3062_v47  ;;  %v2935_v26 = vld [vmem:[#allocation25 + $0x4e8] sm:$0xff] }
 0x5bb   : > { %3703 = vmatpush.msra.mxu1 %v3166_v49  ;;  %3732 = vmatpush.msrb.mxu3 %v2999_v50  ;;  %v3119_v0 = vld [vmem:[#allocation25 + $0xaa8] sm:$0xff]  ;;  %v3008_v50 = vld [vmem:[#allocation25 + $0x730] sm:$0xff] }
 0x5bc   : > { %3704 = vmatmul.f32.vlgmr.msra.gmra.mxu1 %v7715_v24  ;;  %3709 = vmatpush.msra.mxu2 %v2895_v51  ;;  %v3223_v27 = vld [vmem:[#allocation25 + $0xde8] sm:$0xff]  ;;  %v2904_v51 = vld [vmem:[#allocation25 + $0x3f0] sm:$0xff] }
 0x5bd   : > { %3768 = vmatpush.msrb.mxu1 %v3287_v52  ;;  %3681 = vmatpush.msra.mxu0 %v3054_v53  ;;  %v2823_v1 = vld [vmem:[#allocation25 + $0x168] sm:$0xff] }
 0x5be   : > { %3710 = vmatpush.msra.mxu2 %v2887_v54  ;;  %3733 = vmatpush.msrb.mxu3 %v2991_v55  ;;  %v2927_v29 = vld [vmem:[#allocation25 + $0x4a8] sm:$0xff]  ;;  %v3000_v54 = vld [vmem:[#allocation25 + $0x6f0] sm:$0xff] }
 0x5bf   : > { %3769 = vmatpush.msrb.mxu1 %v3279_v56  ;;  %3682 = vmatpush.msra.mxu0 %v3046_v57  ;;  %v3111_v30 = vld [vmem:[#allocation25 + $0xa68] sm:$0xff]  ;;  %v2896_v55 = vld [vmem:[#allocation25 + $0x3b0] sm:$0xff] }
 0x5c0   : > { %3711 = vmatpush.msra.mxu2 %v2879_v58  ;;  %3734 = vmatpush.msrb.mxu3 %v2983_v59  ;;  %v3215_v32 = vld [vmem:[#allocation25 + $0xda8] sm:$0xff]  ;;  %v3288_v56 = vld [vmem:[#allocation25 + $0xff0] sm:$0xff] }
 0x5c1   : > { %3770 = vmatpush.msrb.mxu1 %v3271_v60  ;;  %3683 = vmatpush.msra.mxu0 %v3038_v61  ;;  %v2815_v33 = vld [vmem:[#allocation25 + $0x128] sm:$0xff]  ;;  %v2888_v58 = vld [vmem:[#allocation25 + $0x370] sm:$0xff] }
 0x5c2   : > { %3684 = vmatmul.f32.vlgmr.msra.gmra.mxu0 %v7719_v48  ;;  %3712 = vmatpush.msra.mxu2 %v2871_v62  ;;  %v2919_v34 = vld [vmem:[#allocation25 + $0x468] sm:$0xff]  ;;  %v2992_v59 = vld [vmem:[#allocation25 + $0x6b0] sm:$0xff] }
 0x5c3   : > { %3735 = vmatpush.msrb.mxu3 %v2975_v63  ;;  %3748 = vmatpush.msrb.mxu0 %v3159_v3  ;;  %v3103_v36 = vld [vmem:[#allocation25 + $0xa28] sm:$0xff]  ;;  %v3280_v60 = vld [vmem:[#allocation25 + $0xfb0] sm:$0xff] }
 0x5c4   : > { %3771 = vmatpush.msrb.mxu1 %v3263_v4  ;;  %3713 = vmatpush.msra.mxu2 %v2863_v5  ;;  %v3207_v37 = vld [vmem:[#allocation25 + $0xd68] sm:$0xff]  ;;  %v2880_v62 = vld [vmem:[#allocation25 + $0x330] sm:$0xff] }
 0x5c5   : > { %3736 = vmatpush.msrb.mxu3 %v2967_v6  ;;  %3749 = vmatpush.msrb.mxu0 %v3151_v8  ;;  %v2807_v18 = vld [vmem:[#allocation25 + $0xe8] sm:$0xff]  ;;  %v2984_v63 = vld [vmem:[#allocation25 + $0x670] sm:$0xff] }
 0x5c6   : > { %3772 = vmatpush.msrb.mxu1 %v3255_v9  ;;  %3714 = vmatpush.msra.mxu2 %v2855_v10  ;;  %v2911_v31 = vld [vmem:[#allocation25 + $0x428] sm:$0xff]  ;;  %v3272_v3 = vld [vmem:[#allocation25 + $0xf70] sm:$0xff] }
 0x5c7   : > { %3737 = vmatpush.msrb.mxu3 %v2959_v11  ;;  %3750 = vmatpush.msrb.mxu0 %v3143_v12  ;;  %v3095_v38 = vld [vmem:[#allocation25 + $0x9e8] sm:$0xff]  ;;  %v2872_v5 = vld [vmem:[#allocation25 + $0x2f0] sm:$0xff] }
 0x5c8   : > { %3773 = vmatpush.msrb.mxu1 %v3247_v13  ;;  %3715 = vmatpush.msra.mxu2 %v2847_v14  ;;  %v3199_v39 = vld [vmem:[#allocation25 + $0xd28] sm:$0xff]  ;;  %v2976_v6 = vld [vmem:[#allocation25 + $0x630] sm:$0xff] }
 0x5c9   : > { %3738 = vmatpush.msrb.mxu3 %v2951_v15  ;;  %3751 = vmatpush.msrb.mxu0 %v3135_v16  ;;  %v2799_v41 = vld [vmem:[#allocation25 + $0xa8] sm:$0xff]  ;;  %v3160_v8 = vld [vmem:[#allocation25 + $0xbf0] sm:$0xff] }
 0x5ca   : > { %3774 = vmatpush.msrb.mxu1 %v3239_v17  ;;  %3716 = vmatpush.msra.mxu2 %v2839_v19  ;;  %v3087_v42 = vld [vmem:[#allocation25 + $0x9a8] sm:$0xff]  ;;  %v3264_v9 = vld [vmem:[#allocation25 + $0xf30] sm:$0xff] }
 0x5cb   : > { %3739 = vmatpush.msrb.mxu3 %v2943_v20  ;;  %3752 = vmatpush.msrb.mxu0 %v3127_v21  ;;  %v3191_v2 = vld [vmem:[#allocation25 + $0xce8] sm:$0xff]  ;;  %v2864_v10 = vld [vmem:[#allocation25 + $0x2b0] sm:$0xff] }
 0x5cc   : > { %3775 = vmatpush.msrb.mxu1 %v3231_v22  ;;  %3717 = vmatpush.msra.mxu2 %v2831_v25  ;;  %v2791_v43 = vld [vmem:[#allocation25 + $0x68] sm:$0xff]  ;;  %v2968_v11 = vld [vmem:[#allocation25 + $0x5f0] sm:$0xff] }
 0x5cd   : > { %3740 = vmatpush.msrb.mxu3 %v2935_v26  ;;  %3753 = vmatpush.msrb.mxu0 %v3119_v0  ;;  %v3079_v44 = vld [vmem:[#allocation25 + $0x968] sm:$0xff]  ;;  %v3152_v12 = vld [vmem:[#allocation25 + $0xbb0] sm:$0xff] }
 0x5ce   : > { %3776 = vmatpush.msrb.mxu1 %v3223_v27  ;;  %3718 = vmatpush.msra.mxu2 %v2823_v1  ;;  %v3183_v45 = vld [vmem:[#allocation25 + $0xca8] sm:$0xff]  ;;  %v3256_v13 = vld [vmem:[#allocation25 + $0xef0] sm:$0xff] }
 0x5cf   : > { %3741 = vmatpush.msrb.mxu3 %v2927_v29  ;;  %3754 = vmatpush.msrb.mxu0 %v3111_v30  ;;  %v2783_v7 = vld [vmem:[#allocation25 + $0x28] sm:$0xff]  ;;  %v2856_v14 = vld [vmem:[#allocation25 + $0x270] sm:$0xff] }
 0x5d0   : > { %3777 = vmatpush.msrb.mxu1 %v3215_v32  ;;  %3719 = vmatpush.msra.mxu2 %v2815_v33  ;;  %v3071_v47 = vld [vmem:[#allocation25 + $0x928] sm:$0xff]  ;;  %v2960_v15 = vld [vmem:[#allocation25 + $0x5b0] sm:$0xff] }
 0x5d1   : > { %3742 = vmatpush.msrb.mxu3 %v2919_v34  ;;  %3755 = vmatpush.msrb.mxu0 %v3103_v36  ;;  %v3175_v49 = vld [vmem:[#allocation25 + $0xc68] sm:$0xff]  ;;  %v3144_v16 = vld [vmem:[#allocation25 + $0xb70] sm:$0xff] }
 0x5d2   : > { %3778 = vmatpush.msrb.mxu1 %v3207_v37  ;;  %3720 = vmatpush.msra.mxu2 %v2807_v18  ;;  %v3063_v52 = vld [vmem:[#allocation25 + $0x8e8] sm:$0xff]  ;;  %v3248_v17 = vld [vmem:[#allocation25 + $0xeb0] sm:$0xff] }
 0x5d3   : > { %3743 = vmatpush.msrb.mxu3 %v2911_v31  ;;  %3756 = vmatpush.msrb.mxu0 %v3095_v38  ;;  %v3167_v53 = vld [vmem:[#allocation25 + $0xc28] sm:$0xff]  ;;  %v2848_v19 = vld [vmem:[#allocation25 + $0x230] sm:$0xff] }
 0x5d4   : > { %3779 = vmatpush.msrb.mxu1 %v3199_v39  ;;  %3744 = vmatmul.f32.vlgmr.msrb.gmra.mxu3 %v7709_v23  ;;  %v3055_v57 = vld [vmem:[#allocation25 + $0x8a8] sm:$0xff]  ;;  %v2952_v20 = vld [vmem:[#allocation25 + $0x570] sm:$0xff] }
 0x5d5   : > { %3808 = vmatpush.msra.mxu3 %v3032_v40  ;;  %3721 = vmatpush.msra.mxu2 %v2799_v41  ;;  %v3047_v61 = vld [vmem:[#allocation25 + $0x868] sm:$0xff]  ;;  %v3136_v21 = vld [vmem:[#allocation25 + $0xb30] sm:$0xff] }
 0x5d6   : > { %3757 = vmatpush.msrb.mxu0 %v3087_v42  ;;  %3780 = vmatpush.msrb.mxu1 %v3191_v2  ;;  %v3039_v4 = vld [vmem:[#allocation25 + $0x828] sm:$0xff]  ;;  %v3240_v22 = vld [vmem:[#allocation25 + $0xe70] sm:$0xff] }
 0x5d7   : > { %3809 = vmatpush.msra.mxu3 %v3024_v28  ;;  %3722 = vmatpush.msra.mxu2 %v2791_v43  ;;  %v2840_v25 = vld [vmem:[#allocation25 + $0x1f0] sm:$0xff]  ;;  %v3033_v28 = vld [vmem:[#allocation25 + $0x7f8] sm:$0xff] }
 0x5d8   : > { %3758 = vmatpush.msrb.mxu0 %v3079_v44  ;;  %3781 = vmatpush.msrb.mxu1 %v3183_v45  ;;  %v2944_v26 = vld [vmem:[#allocation25 + $0x530] sm:$0xff] }
 0x5d9   : > { %3810 = vmatpush.msra.mxu3 %v3016_v46  ;;  %3723 = vmatpush.msra.mxu2 %v2783_v7  ;;  %v3128_v0 = vld [vmem:[#allocation25 + $0xaf0] sm:$0xff]  ;;  %v3025_v46 = vld [vmem:[#allocation25 + $0x7b8] sm:$0xff] }
 0x5da   : > { %3759 = vmatpush.msrb.mxu0 %v3071_v47  ;;  %3782 = vmatpush.msrb.mxu1 %v3175_v49  ;;  %v3232_v27 = vld [vmem:[#allocation25 + $0xe30] sm:$0xff] }
 0x5db   : > { %3724 = vmatmul.f32.vlgmr.msra.gmra.mxu2 %v7712_v35  ;;  %3811 = vmatpush.msra.mxu3 %v3008_v50  ;;  %v2832_v1 = vld [vmem:[#allocation25 + $0x1b0] sm:$0xff]  ;;  %v3017_v50 = vld [vmem:[#allocation25 + $0x778] sm:$0xff] }
 0x5dc   : > { %3788 = vmatpush.msrb.mxu2 %v2904_v51  ;;  %3760 = vmatpush.msrb.mxu0 %v3063_v52  ;;  %v2936_v29 = vld [vmem:[#allocation25 + $0x4f0] sm:$0xff] }
 0x5dd   : > { %3783 = vmatpush.msrb.mxu1 %v3167_v53  ;;  %3812 = vmatpush.msra.mxu3 %v3000_v54  ;;  %v3120_v30 = vld [vmem:[#allocation25 + $0xab0] sm:$0xff]  ;;  %v3009_v54 = vld [vmem:[#allocation25 + $0x738] sm:$0xff] }
 0x5de   : > { %3784 = vmatmul.f32.vlgmr.msrb.gmra.mxu1 %v7715_v24  ;;  %3789 = vmatpush.msrb.mxu2 %v2896_v55  ;;  %v3224_v32 = vld [vmem:[#allocation25 + $0xdf0] sm:$0xff]  ;;  %v2905_v55 = vld [vmem:[#allocation25 + $0x3f8] sm:$0xff] }
 0x5df   : > { %3848 = vmatpush.msra.mxu1 %v3288_v56  ;;  %3761 = vmatpush.msrb.mxu0 %v3055_v57  ;;  %v2824_v33 = vld [vmem:[#allocation25 + $0x170] sm:$0xff] }
 0x5e0   : > { %3790 = vmatpush.msrb.mxu2 %v2888_v58  ;;  %3813 = vmatpush.msra.mxu3 %v2992_v59  ;;  %v2928_v34 = vld [vmem:[#allocation25 + $0x4b0] sm:$0xff]  ;;  %v3001_v58 = vld [vmem:[#allocation25 + $0x6f8] sm:$0xff] }
 0x5e1   : > { %3849 = vmatpush.msra.mxu1 %v3280_v60  ;;  %3762 = vmatpush.msrb.mxu0 %v3047_v61  ;;  %v3112_v36 = vld [vmem:[#allocation25 + $0xa70] sm:$0xff]  ;;  %v2897_v59 = vld [vmem:[#allocation25 + $0x3b8] sm:$0xff] }
 0x5e2   : > { %3791 = vmatpush.msrb.mxu2 %v2880_v62  ;;  %3814 = vmatpush.msra.mxu3 %v2984_v63  ;;  %v3216_v37 = vld [vmem:[#allocation25 + $0xdb0] sm:$0xff]  ;;  %v3289_v60 = vld [vmem:[#allocation25 + $0xff8] sm:$0xff] }
 0x5e3   : > { %3850 = vmatpush.msra.mxu1 %v3272_v3  ;;  %3763 = vmatpush.msrb.mxu0 %v3039_v4  ;;  %v2816_v18 = vld [vmem:[#allocation25 + $0x130] sm:$0xff]  ;;  %v2889_v62 = vld [vmem:[#allocation25 + $0x378] sm:$0xff] }
 0x5e4   : > { %3764 = vmatmul.f32.vlgmr.msrb.gmra.mxu0 %v7719_v48  ;;  %3792 = vmatpush.msrb.mxu2 %v2872_v5  ;;  %v2920_v31 = vld [vmem:[#allocation25 + $0x470] sm:$0xff]  ;;  %v2993_v63 = vld [vmem:[#allocation25 + $0x6b8] sm:$0xff] }
 0x5e5   : > { %3815 = vmatpush.msra.mxu3 %v2976_v6  ;;  %3828 = vmatpush.msra.mxu0 %v3160_v8  ;;  %v3104_v38 = vld [vmem:[#allocation25 + $0xa30] sm:$0xff]  ;;  %v3281_v3 = vld [vmem:[#allocation25 + $0xfb8] sm:$0xff] }
 0x5e6   : > { %3851 = vmatpush.msra.mxu1 %v3264_v9  ;;  %3793 = vmatpush.msrb.mxu2 %v2864_v10  ;;  %v3208_v39 = vld [vmem:[#allocation25 + $0xd70] sm:$0xff]  ;;  %v2881_v5 = vld [vmem:[#allocation25 + $0x338] sm:$0xff] }
 0x5e7   : > { %3816 = vmatpush.msra.mxu3 %v2968_v11  ;;  %3829 = vmatpush.msra.mxu0 %v3152_v12  ;;  %v2808_v40 = vld [vmem:[#allocation25 + $0xf0] sm:$0xff]  ;;  %v2985_v6 = vld [vmem:[#allocation25 + $0x678] sm:$0xff] }
 0x5e8   : > { %3852 = vmatpush.msra.mxu1 %v3256_v13  ;;  %3794 = vmatpush.msrb.mxu2 %v2856_v14  ;;  %v2912_v41 = vld [vmem:[#allocation25 + $0x430] sm:$0xff]  ;;  %v3273_v8 = vld [vmem:[#allocation25 + $0xf78] sm:$0xff] }
 0x5e9   : > { %3817 = vmatpush.msra.mxu3 %v2960_v15  ;;  %3830 = vmatpush.msra.mxu0 %v3144_v16  ;;  %v3096_v42 = vld [vmem:[#allocation25 + $0x9f0] sm:$0xff]  ;;  %v2873_v10 = vld [vmem:[#allocation25 + $0x2f8] sm:$0xff] }
 0x5ea   : > { %3853 = vmatpush.msra.mxu1 %v3248_v17  ;;  %3795 = vmatpush.msrb.mxu2 %v2848_v19  ;;  %v3200_v2 = vld [vmem:[#allocation25 + $0xd30] sm:$0xff]  ;;  %v2977_v11 = vld [vmem:[#allocation25 + $0x638] sm:$0xff] }
 0x5eb   : > { %3818 = vmatpush.msra.mxu3 %v2952_v20  ;;  %3831 = vmatpush.msra.mxu0 %v3136_v21  ;;  %v2800_v43 = vld [vmem:[#allocation25 + $0xb0] sm:$0xff]  ;;  %v3161_v12 = vld [vmem:[#allocation25 + $0xbf8] sm:$0xff] }
 0x5ec   : > { %3854 = vmatpush.msra.mxu1 %v3240_v22  ;;  %3796 = vmatpush.msrb.mxu2 %v2840_v25  ;;  %v3088_v44 = vld [vmem:[#allocation25 + $0x9b0] sm:$0xff]  ;;  %v3265_v13 = vld [vmem:[#allocation25 + $0xf38] sm:$0xff] }
 0x5ed   : > { %3819 = vmatpush.msra.mxu3 %v2944_v26  ;;  %3832 = vmatpush.msra.mxu0 %v3128_v0  ;;  %v3192_v45 = vld [vmem:[#allocation25 + $0xcf0] sm:$0xff]  ;;  %v2865_v14 = vld [vmem:[#allocation25 + $0x2b8] sm:$0xff] }
 0x5ee   : > { %3855 = vmatpush.msra.mxu1 %v3232_v27  ;;  %3797 = vmatpush.msrb.mxu2 %v2832_v1  ;;  %v2792_v7 = vld [vmem:[#allocation25 + $0x70] sm:$0xff]  ;;  %v2969_v15 = vld [vmem:[#allocation25 + $0x5f8] sm:$0xff] }
 0x5ef   : > { %3820 = vmatpush.msra.mxu3 %v2936_v29  ;;  %3833 = vmatpush.msra.mxu0 %v3120_v30  ;;  %v3080_v47 = vld [vmem:[#allocation25 + $0x970] sm:$0xff]  ;;  %v3153_v16 = vld [vmem:[#allocation25 + $0xbb8] sm:$0xff] }
 0x5f0   : > { %3856 = vmatpush.msra.mxu1 %v3224_v32  ;;  %3798 = vmatpush.msrb.mxu2 %v2824_v33  ;;  %v3184_v49 = vld [vmem:[#allocation25 + $0xcb0] sm:$0xff]  ;;  %v3257_v17 = vld [vmem:[#allocation25 + $0xef8] sm:$0xff] }
 0x5f1   : > { %3821 = vmatpush.msra.mxu3 %v2928_v34  ;;  %3834 = vmatpush.msra.mxu0 %v3112_v36  ;;  %v2784_v51 = vld [vmem:[#allocation25 + $0x30] sm:$0xff]  ;;  %v2857_v19 = vld [vmem:[#allocation25 + $0x278] sm:$0xff] }
 0x5f2   : > { %3857 = vmatpush.msra.mxu1 %v3216_v37  ;;  %3799 = vmatpush.msrb.mxu2 %v2816_v18  ;;  %v3072_v52 = vld [vmem:[#allocation25 + $0x930] sm:$0xff]  ;;  %v2961_v20 = vld [vmem:[#allocation25 + $0x5b8] sm:$0xff] }
 0x5f3   : > { %3822 = vmatpush.msra.mxu3 %v2920_v31  ;;  %3835 = vmatpush.msra.mxu0 %v3104_v38  ;;  %v3176_v53 = vld [vmem:[#allocation25 + $0xc70] sm:$0xff]  ;;  %v3145_v21 = vld [vmem:[#allocation25 + $0xb78] sm:$0xff] }
 0x5f4   : > { %3858 = vmatpush.msra.mxu1 %v3208_v39  ;;  %3800 = vmatpush.msrb.mxu2 %v2808_v40  ;;  %v3064_v56 = vld [vmem:[#allocation25 + $0x8f0] sm:$0xff]  ;;  %v3249_v22 = vld [vmem:[#allocation25 + $0xeb8] sm:$0xff] }
 0x5f5   : > { %3823 = vmatpush.msra.mxu3 %v2912_v41  ;;  %3836 = vmatpush.msra.mxu0 %v3096_v42  ;;  %v3168_v57 = vld [vmem:[#allocation25 + $0xc30] sm:$0xff]  ;;  %v2849_v25 = vld [vmem:[#allocation25 + $0x238] sm:$0xff] }
 0x5f6   : > { %3859 = vmatpush.msra.mxu1 %v3200_v2  ;;  %3824 = vmatmul.f32.vlgmr.msra.gmra.mxu3 %v7709_v23  ;;  %v3056_v61 = vld [vmem:[#allocation25 + $0x8b0] sm:$0xff]  ;;  %v2953_v26 = vld [vmem:[#allocation25 + $0x578] sm:$0xff] }
 0x5f7   : > { %3888 = vmatpush.msrb.mxu3 %v3033_v28  ;;  %3801 = vmatpush.msrb.mxu2 %v2800_v43  ;;  %v3048_v4 = vld [vmem:[#allocation25 + $0x870] sm:$0xff]  ;;  %v3137_v0 = vld [vmem:[#allocation25 + $0xb38] sm:$0xff] }
 0x5f8   : > { %3837 = vmatpush.msra.mxu0 %v3088_v44  ;;  %3860 = vmatpush.msra.mxu1 %v3192_v45  ;;  %v3040_v9 = vld [vmem:[#allocation25 + $0x830] sm:$0xff]  ;;  %v3241_v27 = vld [vmem:[#allocation25 + $0xe78] sm:$0xff]  ;;  %v7745_v45 = vpop.f32.mrf.mxu2 }
 0x5f9   : > { %3889 = vmatpush.msrb.mxu3 %v3025_v46  ;;  %3802 = vmatpush.msrb.mxu2 %v2792_v7  ;;  %v2841_v1 = vld [vmem:[#allocation25 + $0x1f8] sm:$0xff] }
 0x5fa   : > { %3838 = vmatpush.msra.mxu0 %v3080_v47  ;;  %3861 = vmatpush.msra.mxu1 %v3184_v49  ;;  %v2945_v29 = vld [vmem:[#allocation25 + $0x538] sm:$0xff] }
 0x5fb   : > { %3890 = vmatpush.msrb.mxu3 %v3017_v50  ;;  %3803 = vmatpush.msrb.mxu2 %v2784_v51  ;;  %v3129_v30 = vld [vmem:[#allocation25 + $0xaf8] sm:$0xff]  ;;  %v4136_v51 = vld [vmem:[#allocation28 + $0x5a0] sm:$0xff] }
 0x5fc   : > { %3839 = vmatpush.msra.mxu0 %v3072_v52  ;;  %3862 = vmatpush.msra.mxu1 %v3176_v53  ;;  %v3233_v32 = vld [vmem:[#allocation25 + $0xe38] sm:$0xff] }
 0x5fd   : > { %3804 = vmatmul.f32.vlgmr.msrb.gmra.mxu2 %v7712_v35  ;;  %3891 = vmatpush.msrb.mxu3 %v3009_v54  ;;  %v2833_v33 = vld [vmem:[#allocation25 + $0x1b8] sm:$0xff] }
 0x5fe   : > { %3868 = vmatpush.msra.mxu2 %v2905_v55  ;;  %3840 = vmatpush.msra.mxu0 %v3064_v56  ;;  %v2937_v34 = vld [vmem:[#allocation25 + $0x4f8] sm:$0xff] }
 0x5ff   : > { %3863 = vmatpush.msra.mxu1 %v3168_v57  ;;  %3892 = vmatpush.msrb.mxu3 %v3001_v58  ;;  %v3121_v36 = vld [vmem:[#allocation25 + $0xab8] sm:$0xff]  ;;  %v7748_v57 = vpop.f32.mrf.mxu3 }
 0x600   : > { %3864 = vmatmul.f32.vlgmr.msra.gmra.mxu1 %v7715_v24  ;;  %3869 = vmatpush.msra.mxu2 %v2897_v59  ;;  %v3225_v37 = vld [vmem:[#allocation25 + $0xdf8] sm:$0xff] }
 0x601   : > { %3928 = vmatpush.msrb.mxu1 %v3289_v60  ;;  %3841 = vmatpush.msra.mxu0 %v3056_v61  ;;  %v2825_v18 = vld [vmem:[#allocation25 + $0x178] sm:$0xff]  ;;  %v4124_v60 = vld [vmem:[#allocation28 + $0x540] sm:$0xff] }
 0x602   : > { %3870 = vmatpush.msra.mxu2 %v2889_v62  ;;  %3893 = vmatpush.msrb.mxu3 %v2993_v63  ;;  %v2929_v31 = vld [vmem:[#allocation25 + $0x4b8] sm:$0xff] }
 0x603   : > { %3929 = vmatpush.msrb.mxu1 %v3281_v3  ;;  %3842 = vmatpush.msra.mxu0 %v3048_v4  ;;  %v3113_v38 = vld [vmem:[#allocation25 + $0xa78] sm:$0xff]  ;;  %v7750_v3 = vpop.f32.mrf.mxu0  ;;  %v3405_v4 = vpop.f32.mrf.mxu2 }
 0x604   : > { %3871 = vmatpush.msra.mxu2 %v2881_v5  ;;  %3894 = vmatpush.msrb.mxu3 %v2985_v6  ;;  %v3217_v39 = vld [vmem:[#allocation25 + $0xdb8] sm:$0xff]  ;;  %v4040_v5 = vld [vmem:[#allocation28 + $0x2a0] sm:$0xff] }
 0x605   : > { %3930 = vmatpush.msrb.mxu1 %v3273_v8  ;;  %3843 = vmatpush.msra.mxu0 %v3040_v9  ;;  %v2817_v40 = vld [vmem:[#allocation25 + $0x138] sm:$0xff] }
 0x606   : > { %3844 = vmatmul.f32.vlgmr.msra.gmra.mxu0 %v7719_v48  ;;  %3872 = vmatpush.msra.mxu2 %v2873_v10  ;;  %v2921_v41 = vld [vmem:[#allocation25 + $0x478] sm:$0xff]  ;;  %v4112_v10 = vld [vmem:[#allocation28 + $0x4e0] sm:$0xff] }
 0x607   : > { %3895 = vmatpush.msrb.mxu3 %v2977_v11  ;;  %3908 = vmatpush.msrb.mxu0 %v3161_v12  ;;  %v3105_v42 = vld [vmem:[#allocation25 + $0xa38] sm:$0xff]  ;;  %v4328_v11 = vld [vmem:[#allocation28 + $0xba0] sm:$0xff] }
 0x608   : > { %3931 = vmatpush.msrb.mxu1 %v3265_v13  ;;  %3873 = vmatpush.msra.mxu2 %v2865_v14  ;;  %v3209_v2 = vld [vmem:[#allocation25 + $0xd78] sm:$0xff]  ;;  %v7754_v13 = vpop.f32.mrf.mxu1  ;;  %v7756_v14 = vld [vmem:[#allocation26] sm:$0xff] }
 0x609   : > { %3896 = vmatpush.msrb.mxu3 %v2969_v15  ;;  %3909 = vmatpush.msrb.mxu0 %v3153_v16  ;;  %v2809_v28 = vld [vmem:[#allocation25 + $0xf8] sm:$0xff]  ;;  %v3293_v16 = vperm.slane %v7756_v14, 1 }
 0x60a   : > { %3932 = vmatpush.msrb.mxu1 %v3257_v17  ;;  %3874 = vmatpush.msra.mxu2 %v2857_v19  ;;  %v2913_v43 = vld [vmem:[#allocation25 + $0x438] sm:$0xff] }
 0x60b   : > { %3897 = vmatpush.msrb.mxu3 %v2961_v20  ;;  %3910 = vmatpush.msrb.mxu0 %v3145_v21  ;;  %v3097_v44 = vld [vmem:[#allocation25 + $0x9f8] sm:$0xff]  ;;  %v3425_v20 = vpop.f32.mrf.mxu3  ;;  %v4100_v21 = vld [vmem:[#allocation28 + $0x480] sm:$0xff] }
 0x60c   : > { %3933 = vmatpush.msrb.mxu1 %v3249_v22  ;;  %3875 = vmatpush.msra.mxu2 %v2849_v25  ;;  %v3201_v46 = vld [vmem:[#allocation25 + $0xd38] sm:$0xff]  ;;  %v7759_v25 = vpop.f32.mrf.mxu2 }
 0x60d   : > { %3898 = vmatpush.msrb.mxu3 %v2953_v26  ;;  %3911 = vmatpush.msrb.mxu0 %v3137_v0  ;;  %v4142_v7 = vld [vmem:[#allocation28 + $0x5d0] sm:$0xff]  ;;  %v4316_v26 = vld [vmem:[#allocation28 + $0xb40] sm:$0xff] }
 0x60e   : > { %3934 = vmatpush.msrb.mxu1 %v3241_v27  ;;  %3876 = vmatpush.msra.mxu2 %v2841_v1  ;;  %v2801_v47 = vld [vmem:[#allocation25 + $0xb8] sm:$0xff]  ;;  %v4016_v0 = vld [vmem:[#allocation28 + $0x1e0] sm:$0xff]  ;;  %v3406_v27 = vadd.f32 %v3405_v4, %v3293_v16 }
 0x60f   : > { %3899 = vmatpush.msrb.mxu3 %v2945_v29  ;;  %3912 = vmatpush.msrb.mxu0 %v3129_v30  ;;  %v3089_v49 = vld [vmem:[#allocation25 + $0x9b8] sm:$0xff]  ;;  %v4232_v29 = vld [vmem:[#allocation28 + $0x8a0] sm:$0xff]  ;;  %v3445_v30 = vpop.f32.mrf.mxu0 }
 0x610   : > { %3935 = vmatpush.msrb.mxu1 %v3233_v32  ;;  %3877 = vmatpush.msra.mxu2 %v2833_v33  ;;  %v3193_v50 = vld [vmem:[#allocation25 + $0xcf8] sm:$0xff]  ;;  %v4196_v4 = vld [vmem:[#allocation28 + $0x780] sm:$0xff] }
 0x611   : > { %3900 = vmatpush.msrb.mxu3 %v2937_v34  ;;  %3913 = vmatpush.msrb.mxu0 %v3121_v36  ;;  %v2793_v52 = vld [vmem:[#allocation25 + $0x78] sm:$0xff]  ;;  %v4088_v34 = vld [vmem:[#allocation28 + $0x420] sm:$0xff] }
 0x612   : > { %3936 = vmatpush.msrb.mxu1 %v3225_v37  ;;  %3878 = vmatpush.msra.mxu2 %v2825_v18  ;;  %v3081_v53 = vld [vmem:[#allocation25 + $0x978] sm:$0xff]  ;;  %v3292_v37 = vperm.slane %v7756_v14, 0  ;;  %v4304_v18 = vld [vmem:[#allocation28 + $0xae0] sm:$0xff] }
 0x613   : > { %3901 = vmatpush.msrb.mxu3 %v2929_v31  ;;  %3914 = vmatpush.msrb.mxu0 %v3113_v38  ;;  %v3185_v54 = vld [vmem:[#allocation25 + $0xcb8] sm:$0xff]  ;;  %v4004_v31 = vld [vmem:[#allocation28 + $0x180] sm:$0xff]  ;;  %v3426_v38 = vadd.f32 %v3425_v20, %v3406_v27 }
 0x614   : > { %3937 = vmatpush.msrb.mxu1 %v3217_v39  ;;  %3879 = vmatpush.msra.mxu2 %v2817_v40  ;;  %v4130_v55 = vld [vmem:[#allocation28 + $0x570] sm:$0xff]  ;;  %v4220_v39 = vld [vmem:[#allocation28 + $0x840] sm:$0xff]  ;;  %v3465_v40 = vpop.f32.mrf.mxu1 }
 0x615   : > { %3902 = vmatpush.msrb.mxu3 %v2921_v41  ;;  %3915 = vmatpush.msrb.mxu0 %v3105_v42  ;;  %v2785_v56 = vld [vmem:[#allocation25 + $0x38] sm:$0xff]  ;;  %v7763_v41 = vpop.f32.mrf.mxu3  ;;  %v4256_v27 = vld [vmem:[#allocation28 + $0x960] sm:$0xff] }
 0x616   : > { %3938 = vmatpush.msrb.mxu1 %v3209_v2  ;;  %3880 = vmatpush.msra.mxu2 %v2809_v28  ;;  %v3073_v58 = vld [vmem:[#allocation25 + $0x938] sm:$0xff]  ;;  %v3295_v28 = vperm.slane %v7756_v14, 3 }
 0x617   : > { %3903 = vmatpush.msrb.mxu3 %v2913_v43  ;;  %3916 = vmatpush.msrb.mxu0 %v3097_v44  ;;  %v3177_v59 = vld [vmem:[#allocation25 + $0xc78] sm:$0xff]  ;;  %v4076_v43 = vld [vmem:[#allocation28 + $0x3c0] sm:$0xff] }
 0x618   : > { %3939 = vmatpush.msrb.mxu1 %v3201_v46  ;;  %3904 = vmatmul.f32.vlgmr.msrb.gmra.mxu3 %v7709_v23  ;;  %v4046_v23 = vld [vmem:[#allocation28 + $0x2d0] sm:$0xff]  ;;  %v3326_v46 = vadd.f32 %v7745_v45, %v3292_v37  ;;  %v4064_v45 = vld [vmem:[#allocation28 + $0x360] sm:$0xff] }
 0x619   : > { %4758 = vmatpush.msra.mxu3 %v4142_v7  ;;  %3881 = vmatpush.msra.mxu2 %v2801_v47  ;;  %v3065_v61 = vld [vmem:[#allocation25 + $0x8f8] sm:$0xff]  ;;  %v4292_v47 = vld [vmem:[#allocation28 + $0xa80] sm:$0xff] }
 0x61a   : > { %3917 = vmatpush.msrb.mxu0 %v3089_v49  ;;  %3940 = vmatpush.msrb.mxu1 %v3193_v50  ;;  %v3169_v62 = vld [vmem:[#allocation25 + $0xc38] sm:$0xff]  ;;  %v3565_v7 = vpop.f32.mrf.mxu2  ;;  %v3992_v49 = vld [vmem:[#allocation28 + $0x120] sm:$0xff]  ;;  %v3446_v50 = vadd.f32 %v3445_v30, %v3426_v38 }
 0x61b   : > { %4759 = vmatpush.msra.mxu3 %v4136_v51  ;;  %3882 = vmatpush.msra.mxu2 %v2793_v52  ;;  %v4118_v63 = vld [vmem:[#allocation28 + $0x510] sm:$0xff]  ;;  %v4208_v52 = vld [vmem:[#allocation28 + $0x7e0] sm:$0xff] }
 0x61c   : > { %3918 = vmatpush.msrb.mxu0 %v3081_v53  ;;  %3941 = vmatpush.msrb.mxu1 %v3185_v54  ;;  %v4334_v6 = vld [vmem:[#allocation28 + $0xbd0] sm:$0xff]  ;;  %v7767_v53 = vpop.f32.mrf.mxu0  ;;  %v3956_v30 = vld [vmem:[#allocation28] sm:$0xff] }
 0x61d   : > { %4760 = vmatpush.msra.mxu3 %v4130_v55  ;;  %3883 = vmatpush.msra.mxu2 %v2785_v56  ;;  %v3057_v8 = vld [vmem:[#allocation25 + $0x8b8] sm:$0xff]  ;;  %v3566_v56 = vadd.f32 %v3565_v7, %v3295_v28  ;;  %v4508_v37 = vld [vmem:[#allocation28 + $0x1140] sm:$0xff] }
 0x61e   : > { %3919 = vmatpush.msrb.mxu0 %v3073_v58  ;;  %3942 = vmatpush.msrb.mxu1 %v3177_v59  ;;  %v4034_v9 = vld [vmem:[#allocation28 + $0x270] sm:$0xff]  ;;  %v3346_v59 = vadd.f32 %v7748_v57, %v3326_v46  ;;  %v4052_v57 = vld [vmem:[#allocation28 + $0x300] sm:$0xff] }
 0x61f   : > { %3884 = vmatmul.f32.vlgmr.msra.gmra.mxu2 %v7712_v35  ;;  %4761 = vmatpush.msra.mxu3 %v4124_v60  ;;  %v3049_v12 = vld [vmem:[#allocation25 + $0x878] sm:$0xff]  ;;  %v4028_v35 = vld [vmem:[#allocation28 + $0x240] sm:$0xff] }
 0x620   : > { %4738 = vmatpush.msrb.mxu2 %v4046_v23  ;;  %3920 = vmatpush.msrb.mxu0 %v3065_v61  ;;  %v4106_v15 = vld [vmem:[#allocation28 + $0x4b0] sm:$0xff]  ;;  %v4280_v60 = vld [vmem:[#allocation28 + $0xa20] sm:$0xff]  ;;  %v3466_v61 = vadd.f32 %v3465_v40, %v3446_v50 }
 0x621   : > { %3943 = vmatpush.msrb.mxu1 %v3169_v62  ;;  %4762 = vmatpush.msra.mxu3 %v4118_v63  ;;  %v4322_v17 = vld [vmem:[#allocation28 + $0xb70] sm:$0xff]  ;;  %v3980_v23 = vld [vmem:[#allocation28 + $0xc0] sm:$0xff]  ;;  %v3294_v62 = vperm.slane %v7756_v14, 2 }
 0x622   : > { %3944 = vmatmul.f32.vlgmr.msrb.gmra.mxu1 %v7715_v24  ;;  %4739 = vmatpush.msrb.mxu2 %v4040_v5  ;;  %v3041_v19 = vld [vmem:[#allocation25 + $0x838] sm:$0xff]  ;;  %v7771_v5 = vpop.f32.mrf.mxu1  ;;  %v4424_v40 = vld [vmem:[#allocation28 + $0xea0] sm:$0xff] }
 0x623   : > { %4798 = vmatpush.msra.mxu1 %v4334_v6  ;;  %3921 = vmatpush.msrb.mxu0 %v3057_v8  ;;  %v4022_v24 = vld [vmem:[#allocation28 + $0x210] sm:$0xff]  ;;  %v3585_v6 = vpop.f32.mrf.mxu3  ;;  %v3486_v16 = vadd.f32 %v7759_v25, %v3294_v62  ;;  %v4412_v7 = vld [vmem:[#allocation28 + $0xe40] sm:$0xff] }
 0x624   : > { %4740 = vmatpush.msrb.mxu2 %v4034_v9  ;;  %4763 = vmatpush.msra.mxu3 %v4112_v10  ;;  %v4238_v22 = vld [vmem:[#allocation28 + $0x8d0] sm:$0xff]  ;;  %v3586_v10 = vadd.f32 %v3585_v6, %v3566_v56  ;;  %v3605_v20 = vpop.f32.mrf.mxu0  ;;  %v4616_v56 = vld [vmem:[#allocation28 + $0x14a0] sm:$0xff] }
 0x625   : > { %4799 = vmatpush.msra.mxu1 %v4328_v11  ;;  %3922 = vmatpush.msrb.mxu0 %v3049_v12  ;;  %v4094_v1 = vld [vmem:[#allocation28 + $0x450] sm:$0xff]  ;;  %v3366_v12 = vadd.f32 %v7750_v3, %v3346_v59  ;;  %v4520_v3 = vld [vmem:[#allocation28 + $0x11a0] sm:$0xff] }
 0x626   : > { %4741 = vmatpush.msrb.mxu2 %v4028_v35  ;;  %4764 = vmatpush.msra.mxu3 %v4106_v15  ;;  %v4310_v32 = vld [vmem:[#allocation28 + $0xb10] sm:$0xff]  ;;  %v4268_v35 = vld [vmem:[#allocation28 + $0x9c0] sm:$0xff]  ;;  %v7774_v15 = vmax.f32 %v3466_v61, 0.0 }
 0x627   : > { %4800 = vmatpush.msra.mxu1 %v4322_v17  ;;  %3923 = vmatpush.msrb.mxu0 %v3041_v19  ;;  %v4010_v33 = vld [vmem:[#allocation28 + $0x1b0] sm:$0xff]  ;;  %v3968_v19 = vld [vmem:[#allocation28 + $0x60] sm:$0xff] }
 0x628   : > { %3924 = vmatmul.f32.vlgmr.msrb.gmra.mxu0 %v7719_v48  ;;  %4742 = vmatpush.msrb.mxu2 %v4022_v24  ;;  %v4226_v36 = vld [vmem:[#allocation28 + $0x870] sm:$0xff]  ;;  %v4184_v24 = vld [vmem:[#allocation28 + $0x720] sm:$0xff] }
 0x629   : > { %4765 = vmatpush.msra.mxu3 %v4100_v21  ;;  %4778 = vmatpush.msra.mxu0 %v4238_v22  ;;  %v4082_v48 = vld [vmem:[#allocation28 + $0x3f0] sm:$0xff]  ;;  %v3606_v22 = vadd.f32 %v3605_v20, %v3586_v10  ;;  %v4388_v61 = vld [vmem:[#allocation28 + $0xd80] sm:$0xff] }
 0x62a   : > { %4801 = vmatpush.msra.mxu1 %v4316_v26  ;;  %4743 = vmatpush.msrb.mxu2 %v4016_v0  ;;  %v4298_v42 = vld [vmem:[#allocation28 + $0xab0] sm:$0xff]  ;;  %v3386_v0 = vadd.f32 %v7754_v13, %v3366_v12  ;;  %v4460_v62 = vld [vmem:[#allocation28 + $0xfc0] sm:$0xff] }
 0x62b   : > { %4766 = vmatpush.msra.mxu3 %v4094_v1  ;;  %4779 = vmatpush.msra.mxu0 %v4232_v29  ;;  %v3998_v2 = vld [vmem:[#allocation28 + $0x150] sm:$0xff]  ;;  %v3506_v1 = vadd.f32 %v7763_v41, %v3486_v16  ;;  %v4712_v20 = vld [vmem:[#allocation28 + $0x17a0] sm:$0xff] }
 0x62c   : > { %4802 = vmatpush.msra.mxu1 %v4310_v32  ;;  %4744 = vmatpush.msrb.mxu2 %v4010_v33  ;;  %v4214_v44 = vld [vmem:[#allocation28 + $0x810] sm:$0xff]  ;;  %v3625_v32 = vpop.f32.mrf.mxu1  ;;  %v4172_v33 = vld [vmem:[#allocation28 + $0x6c0] sm:$0xff]  ;;  %v7780_v13 = vmax.f32 %v3386_v0, 0.0 }
 0x62d   : > { %4767 = vmatpush.msra.mxu3 %v4088_v34  ;;  %4780 = vmatpush.msra.mxu0 %v4226_v36  ;;  %v4070_v51 = vld [vmem:[#allocation28 + $0x390] sm:$0xff]  ;;  %v3626_v36 = vadd.f32 %v3625_v32, %v3606_v22  ;;  %v3526_v38 = vadd.f32 %v7767_v53, %v3506_v1  ;;  %v4436_v22 = vld [vmem:[#allocation28 + $0xf00] sm:$0xff]  ;;  %v4137_v32 = vld [vmem:[#allocation28 + $0x5a8] sm:$0xff] }
 0x62e   : > { %4803 = vmatpush.msra.mxu1 %v4304_v18  ;;  %4745 = vmatpush.msrb.mxu2 %v4004_v31  ;;  %v4286_v54 = vld [vmem:[#allocation28 + $0xa50] sm:$0xff] }
 0x62f   : > { %4768 = vmatpush.msra.mxu3 %v4082_v48  ;;  %4781 = vmatpush.msra.mxu0 %v4220_v39  ;;  %v3986_v55 = vld [vmem:[#allocation28 + $0xf0] sm:$0xff]  ;;  %v4244_v48 = vld [vmem:[#allocation28 + $0x900] sm:$0xff]  ;;  %v7784_v41 = vmax.f32 %v3626_v36, 0.0 }
 0x630   : > { %4804 = vmatpush.msra.mxu1 %v4298_v42  ;;  %4746 = vmatpush.msrb.mxu2 %v3998_v2  ;;  %v4202_v58 = vld [vmem:[#allocation28 + $0x7b0] sm:$0xff]  ;;  %v4160_v42 = vld [vmem:[#allocation28 + $0x660] sm:$0xff] }
 0x631   : > { %4769 = vmatpush.msra.mxu3 %v4076_v43  ;;  %4782 = vmatpush.msra.mxu0 %v4214_v44  ;;  %v4058_v63 = vld [vmem:[#allocation28 + $0x330] sm:$0xff]  ;;  %v4496_v2 = vld [vmem:[#allocation28 + $0x10e0] sm:$0xff]  ;;  %v3546_v43 = vadd.f32 %v7771_v5, %v3526_v38  ;;  %v3297_v38 = vperm.slane %v7756_v14, 5 }
 0x632   : > { %4805 = vmatpush.msra.mxu1 %v4292_v47  ;;  %4747 = vmatpush.msrb.mxu2 %v3992_v49  ;;  %v4274_v8 = vld [vmem:[#allocation28 + $0x9f0] sm:$0xff]  ;;  %v4148_v47 = vld [vmem:[#allocation28 + $0x600] sm:$0xff] }
 0x633   : > { %4770 = vmatpush.msra.mxu3 %v4070_v51  ;;  %4783 = vmatpush.msra.mxu0 %v4208_v52  ;;  %v3974_v9 = vld [vmem:[#allocation28 + $0x90] sm:$0xff]  ;;  %v4484_v49 = vld [vmem:[#allocation28 + $0x1080] sm:$0xff]  ;;  %v7788_v51 = vmax.f32 %v3546_v43, 0.0 }
 0x634   : > { %4806 = vmatpush.msra.mxu1 %v4286_v54  ;;  %4748 = vmatpush.msrb.mxu2 %v3986_v55  ;;  %v4190_v11 = vld [vmem:[#allocation28 + $0x750] sm:$0xff]  ;;  %v4400_v54 = vld [vmem:[#allocation28 + $0xde0] sm:$0xff] }
 0x635   : > { %4771 = vmatpush.msra.mxu3 %v4064_v45  ;;  %4784 = vmatpush.msra.mxu0 %v4202_v58  ;;  %v4526_v17 = vld [vmem:[#allocation28 + $0x11d0] sm:$0xff]  ;;  %v4472_v55 = vld [vmem:[#allocation28 + $0x1020] sm:$0xff]  ;;  %v3296_v45 = vperm.slane %v7756_v14, 4  ;;  %v3665_v10 = vpop.f32.mrf.mxu3 }
 0x636   : > { %4807 = vmatpush.msra.mxu1 %v4280_v60  ;;  %4749 = vmatpush.msrb.mxu2 %v3980_v23  ;;  %v4262_v21 = vld [vmem:[#allocation28 + $0x990] sm:$0xff] }
 0x637   : > { %4772 = vmatpush.msra.mxu3 %v4058_v63  ;;  %4785 = vmatpush.msra.mxu0 %v4196_v4  ;;  %v3962_v26 = vld [vmem:[#allocation28 + $0x30] sm:$0xff]  ;;  %v4604_v63 = vld [vmem:[#allocation28 + $0x1440] sm:$0xff] }
 0x638   : > { %4808 = vmatpush.msra.mxu1 %v4274_v8  ;;  %4750 = vmatpush.msrb.mxu2 %v3974_v9  ;;  %v4178_v25 = vld [vmem:[#allocation28 + $0x6f0] sm:$0xff]  ;;  %v4376_v9 = vld [vmem:[#allocation28 + $0xd20] sm:$0xff] }
 0x639   : > { %4773 = vmatpush.msra.mxu3 %v4052_v57  ;;  %4786 = vmatpush.msra.mxu0 %v4190_v11  ;;  %v4514_v29 = vld [vmem:[#allocation28 + $0x1170] sm:$0xff]  ;;  %v4448_v57 = vld [vmem:[#allocation28 + $0xf60] sm:$0xff] }
 0x63a   : > { %4809 = vmatpush.msra.mxu1 %v4268_v35  ;;  %4774 = vmatmul.f32.vlgmr.msra.gmra.mxu3 %v7774_v15  ;;  %v4250_v34 = vld [vmem:[#allocation28 + $0x930] sm:$0xff]  ;;  %v4592_v11 = vld [vmem:[#allocation28 + $0x13e0] sm:$0xff] }
 0x63b   : > { %4838 = vmatpush.msrb.mxu3 %v4526_v17  ;;  %4751 = vmatpush.msrb.mxu2 %v3968_v19  ;;  %v4430_v18 = vld [vmem:[#allocation28 + $0xed0] sm:$0xff] }
 0x63c   : > { %4787 = vmatpush.msra.mxu0 %v4184_v24  ;;  %4810 = vmatpush.msra.mxu1 %v4262_v21  ;;  %v4166_v31 = vld [vmem:[#allocation28 + $0x690] sm:$0xff]  ;;  %v3645_v59 = vpop.f32.mrf.mxu2  ;;  %v4364_v24 = vld [vmem:[#allocation28 + $0xcc0] sm:$0xff] }
 0x63d   : > { %4839 = vmatpush.msrb.mxu3 %v4520_v3  ;;  %4752 = vmatpush.msrb.mxu2 %v3962_v26  ;;  %v4502_v39 = vld [vmem:[#allocation28 + $0x1110] sm:$0xff]  ;;  %v3646_v4 = vadd.f32 %v3645_v59, %v3296_v45  ;;  %v4580_v3 = vld [vmem:[#allocation28 + $0x1380] sm:$0xff]  ;;  %v4107_v59 = vld [vmem:[#allocation28 + $0x4b8] sm:$0xff] }
 0x63e   : > { %4788 = vmatpush.msra.mxu0 %v4178_v25  ;;  %4811 = vmatpush.msra.mxu1 %v4256_v27  ;;  %v4418_v28 = vld [vmem:[#allocation28 + $0xe70] sm:$0xff]  ;;  %v4143_v27 = vld [vmem:[#allocation28 + $0x5d8] sm:$0xff]  ;;  %v4676_v45 = vld [vmem:[#allocation28 + $0x1680] sm:$0xff] }
 0x63f   : > { %4840 = vmatpush.msrb.mxu3 %v4514_v29  ;;  %4753 = vmatpush.msrb.mxu2 %v3956_v30  ;;  %v4154_v44 = vld [vmem:[#allocation28 + $0x630] sm:$0xff]  ;;  %v3666_v35 = vadd.f32 %v3665_v10, %v3646_v4  ;;  %v3685_v21 = vpop.f32.mrf.mxu0  ;;  %v4700_v29 = vld [vmem:[#allocation28 + $0x1740] sm:$0xff]  ;;  %v4101_v4 = vld [vmem:[#allocation28 + $0x488] sm:$0xff] }
 0x640   : > { %4789 = vmatpush.msra.mxu0 %v4172_v33  ;;  %4812 = vmatpush.msra.mxu1 %v4250_v34  ;;  %v4490_v46 = vld [vmem:[#allocation28 + $0x10b0] sm:$0xff]  ;;  %v4352_v30 = vld [vmem:[#allocation28 + $0xc60] sm:$0xff]  ;;  %v3705_v33 = vpop.f32.mrf.mxu1  ;;  %v4095_v10 = vld [vmem:[#allocation28 + $0x458] sm:$0xff] }
 0x641   : > { %4754 = vmatmul.f32.vlgmr.msrb.gmra.mxu2 %v7780_v13  ;;  %4841 = vmatpush.msrb.mxu3 %v4508_v37  ;;  %v4406_v50 = vld [vmem:[#allocation28 + $0xe10] sm:$0xff]  ;;  %v3686_v0 = vadd.f32 %v3685_v21, %v3666_v35  ;;  %v4568_v34 = vld [vmem:[#allocation28 + $0x1320] sm:$0xff]  ;;  %v4089_v35 = vld [vmem:[#allocation28 + $0x428] sm:$0xff] }
 0x642   : > { %4818 = vmatpush.msra.mxu2 %v4430_v18  ;;  %4790 = vmatpush.msra.mxu0 %v4166_v31  ;;  %v4478_v52 = vld [vmem:[#allocation28 + $0x1050] sm:$0xff]  ;;  %v4131_v31 = vld [vmem:[#allocation28 + $0x578] sm:$0xff]  ;;  %v4652_v21 = vld [vmem:[#allocation28 + $0x15c0] sm:$0xff] }
 0x643   : > { %4813 = vmatpush.msra.mxu1 %v4244_v48  ;;  %4842 = vmatpush.msrb.mxu3 %v4502_v39  ;;  %v4622_v53 = vld [vmem:[#allocation28 + $0x14d0] sm:$0xff]  ;;  %v3706_v37 = vadd.f32 %v3705_v33, %v3686_v0  ;;  %v4688_v39 = vld [vmem:[#allocation28 + $0x16e0] sm:$0xff]  ;;  %v4209_v33 = vld [vmem:[#allocation28 + $0x7e8] sm:$0xff] }
 0x644   : > { %4814 = vmatmul.f32.vlgmr.msra.gmra.mxu1 %v7784_v41  ;;  %4819 = vmatpush.msra.mxu2 %v4424_v40  ;;  %v4394_v58 = vld [vmem:[#allocation28 + $0xdb0] sm:$0xff]  ;;  %v4340_v40 = vld [vmem:[#allocation28 + $0xc00] sm:$0xff] }
 0x645   : > { %4791 = vmatpush.msra.mxu0 %v4160_v42  ;;  %4843 = vmatpush.msrb.mxu3 %v4496_v2  ;;  %v4466_v60 = vld [vmem:[#allocation28 + $0xff0] sm:$0xff]  ;;  %v4125_v42 = vld [vmem:[#allocation28 + $0x548] sm:$0xff]  ;;  %v7793_v43 = vmax.f32 %v3706_v37, 0.0  ;;  %v4059_v37 = vld [vmem:[#allocation28 + $0x338] sm:$0xff] }
 0x646   : > { %4820 = vmatpush.msra.mxu2 %v4418_v28  ;;  %v4610_v23 = vld [vmem:[#allocation28 + $0x1470] sm:$0xff]  ;;  %v4556_v28 = vld [vmem:[#allocation28 + $0x12c0] sm:$0xff] }
 0x647   : > { %4792 = vmatpush.msra.mxu0 %v4154_v44  ;;  %4844 = vmatpush.msrb.mxu3 %v4490_v46  ;;  %v4382_v5 = vld [vmem:[#allocation28 + $0xd50] sm:$0xff]  ;;  %v4047_v44 = vld [vmem:[#allocation28 + $0x2d8] sm:$0xff] }
 0x648   : > { %4821 = vmatpush.msra.mxu2 %v4412_v7  ;;  %v4454_v6 = vld [vmem:[#allocation28 + $0xf90] sm:$0xff]  ;;  %v4119_v46 = vld [vmem:[#allocation28 + $0x518] sm:$0xff] }
 0x649   : > { %4793 = vmatpush.msra.mxu0 %v4148_v47  ;;  %4845 = vmatpush.msrb.mxu3 %v4484_v49  ;;  %v4598_v8 = vld [vmem:[#allocation28 + $0x1410] sm:$0xff] }
 0x64a   : > { %4794 = vmatmul.f32.vlgmr.msra.gmra.mxu0 %v7788_v51  ;;  %4822 = vmatpush.msra.mxu2 %v4406_v50  ;;  %v4718_v12 = vld [vmem:[#allocation28 + $0x17d0] sm:$0xff] }
 0x64b   : > { %4846 = vmatpush.msrb.mxu3 %v4478_v52  ;;  %4858 = vmatpush.msrb.mxu0 %v4622_v53  ;;  %v4370_v16 = vld [vmem:[#allocation28 + $0xcf0] sm:$0xff]  ;;  %v4041_v52 = vld [vmem:[#allocation28 + $0x2a8] sm:$0xff] }
 0x64c   : > { %4823 = vmatpush.msra.mxu2 %v4400_v54  ;;  %v4442_v17 = vld [vmem:[#allocation28 + $0xf30] sm:$0xff]  ;;  %4878 = vmatpush.msrb.mxu1 %v4718_v12  ;;  %v4113_v53 = vld [vmem:[#allocation28 + $0x4e8] sm:$0xff] }
 0x64d   : > { %4847 = vmatpush.msrb.mxu3 %v4472_v55  ;;  %4859 = vmatpush.msrb.mxu0 %v4616_v56  ;;  %v4586_v19 = vld [vmem:[#allocation28 + $0x13b0] sm:$0xff]  ;;  %v4544_v56 = vld [vmem:[#allocation28 + $0x1260] sm:$0xff]  ;;  %v4017_v12 = vld [vmem:[#allocation28 + $0x1e8] sm:$0xff] }
 0x64e   : > { %4824 = vmatpush.msra.mxu2 %v4394_v58  ;;  %4879 = vmatpush.msrb.mxu1 %v4712_v20  ;;  %v4706_v26 = vld [vmem:[#allocation28 + $0x1770] sm:$0xff]  ;;  %v4035_v58 = vld [vmem:[#allocation28 + $0x278] sm:$0xff] }
 0x64f   : > { %4848 = vmatpush.msrb.mxu3 %v4466_v60  ;;  %4860 = vmatpush.msrb.mxu0 %v4610_v23  ;;  %v4358_v25 = vld [vmem:[#allocation28 + $0xc90] sm:$0xff]  ;;  %v4083_v20 = vld [vmem:[#allocation28 + $0x3f8] sm:$0xff] }
 0x650   : > { %4825 = vmatpush.msra.mxu2 %v4388_v61  ;;  %v4574_v1 = vld [vmem:[#allocation28 + $0x1350] sm:$0xff]  ;;  %4880 = vmatpush.msrb.mxu1 %v4706_v26  ;;  %v4221_v26 = vld [vmem:[#allocation28 + $0x848] sm:$0xff] }
 0x651   : > { %4849 = vmatpush.msrb.mxu3 %v4460_v62  ;;  %4861 = vmatpush.msrb.mxu0 %v4604_v63  ;;  %v4694_v36 = vld [vmem:[#allocation28 + $0x1710] sm:$0xff]  ;;  %v4029_v63 = vld [vmem:[#allocation28 + $0x248] sm:$0xff] }
 0x652   : > { %4826 = vmatpush.msra.mxu2 %v4382_v5  ;;  %v4346_v18 = vld [vmem:[#allocation28 + $0xc30] sm:$0xff]  ;;  %4881 = vmatpush.msrb.mxu1 %v4700_v29  ;;  %v4640_v29 = vld [vmem:[#allocation28 + $0x1560] sm:$0xff] }
 0x653   : > { %4850 = vmatpush.msrb.mxu3 %v4454_v6  ;;  %4862 = vmatpush.msrb.mxu0 %v4598_v8  ;;  %v4562_v48 = vld [vmem:[#allocation28 + $0x12f0] sm:$0xff]  ;;  %v4532_v6 = vld [vmem:[#allocation28 + $0x1200] sm:$0xff]  ;;  %v4023_v8 = vld [vmem:[#allocation28 + $0x218] sm:$0xff] }
 0x654   : > { %4827 = vmatpush.msra.mxu2 %v4376_v9  ;;  %4882 = vmatpush.msrb.mxu1 %v4694_v36  ;;  %v4550_v49 = vld [vmem:[#allocation28 + $0x1290] sm:$0xff]  ;;  %v3987_v36 = vld [vmem:[#allocation28 + $0xf8] sm:$0xff] }
 0x655   : > { %4851 = vmatpush.msrb.mxu3 %v4448_v57  ;;  %4863 = vmatpush.msrb.mxu0 %v4592_v11  ;;  %v4682_v50 = vld [vmem:[#allocation28 + $0x16b0] sm:$0xff]  ;;  %v4239_v57 = vld [vmem:[#allocation28 + $0x8d8] sm:$0xff]  ;;  %v4664_v11 = vld [vmem:[#allocation28 + $0x1620] sm:$0xff] }
 0x656   : > { %4828 = vmatpush.msra.mxu2 %v4370_v16  ;;  %4883 = vmatpush.msrb.mxu1 %v4688_v39  ;;  %v4538_v61 = vld [vmem:[#allocation28 + $0x1230] sm:$0xff]  ;;  %v4233_v16 = vld [vmem:[#allocation28 + $0x8a8] sm:$0xff]  ;;  %v4527_v39 = vld [vmem:[#allocation28 + $0x11d8] sm:$0xff] }
 0x657   : > { %4852 = vmatpush.msrb.mxu3 %v4442_v17  ;;  %4864 = vmatpush.msrb.mxu0 %v4586_v19  ;;  %v3745_v47 = vpop.f32.mrf.mxu3  ;;  %v4670_v62 = vld [vmem:[#allocation28 + $0x1650] sm:$0xff]  ;;  %v4011_v19 = vld [vmem:[#allocation28 + $0x1b8] sm:$0xff] }
 0x658   : > { %4829 = vmatpush.msra.mxu2 %v4364_v24  ;;  %4884 = vmatpush.msrb.mxu1 %v4682_v50  ;;  %v4658_v17 = vld [vmem:[#allocation28 + $0x15f0] sm:$0xff]  ;;  %v4227_v24 = vld [vmem:[#allocation28 + $0x878] sm:$0xff]  ;;  %v4329_v50 = vld [vmem:[#allocation28 + $0xba8] sm:$0xff] }
 0x659   : > { %4853 = vmatpush.msrb.mxu3 %v4436_v22  ;;  %4865 = vmatpush.msrb.mxu0 %v4580_v3  ;;  %v4005_v22 = vld [vmem:[#allocation28 + $0x188] sm:$0xff]  ;;  %v4646_v0 = vld [vmem:[#allocation28 + $0x1590] sm:$0xff] }
 0x65a   : > { %4830 = vmatpush.msra.mxu2 %v4358_v25  ;;  %4885 = vmatpush.msrb.mxu1 %v4676_v45  ;;  %v4077_v3 = vld [vmem:[#allocation28 + $0x3c8] sm:$0xff]  ;;  %v3999_v25 = vld [vmem:[#allocation28 + $0x158] sm:$0xff] }
 0x65b   : > { %4918 = vmatpush.msra.mxu3 %v4143_v27  ;;  %4866 = vmatpush.msrb.mxu0 %v4574_v1  ;;  %v3785_v23 = vpop.f32.mrf.mxu1  ;;  %v4071_v27 = vld [vmem:[#allocation28 + $0x398] sm:$0xff] }
 0x65c   : > { %4831 = vmatpush.msra.mxu2 %v4352_v30  ;;  %4886 = vmatpush.msrb.mxu1 %v4670_v62  ;;  %v4215_v1 = vld [vmem:[#allocation28 + $0x818] sm:$0xff]  ;;  %v3993_v30 = vld [vmem:[#allocation28 + $0x128] sm:$0xff] }
 0x65d   : > { %4919 = vmatpush.msra.mxu3 %v4137_v32  ;;  %4867 = vmatpush.msrb.mxu0 %v4568_v34  ;;  %v4065_v32 = vld [vmem:[#allocation28 + $0x368] sm:$0xff]  ;;  %v4634_v34 = vld [vmem:[#allocation28 + $0x1530] sm:$0xff]  ;;  %v4503_v45 = vld [vmem:[#allocation28 + $0x1118] sm:$0xff] }
 0x65e   : > { %4832 = vmatpush.msra.mxu2 %v4346_v18  ;;  %v3725_v2 = vpop.f32.mrf.mxu2  ;;  %4887 = vmatpush.msrb.mxu1 %v4664_v11  ;;  %v4203_v18 = vld [vmem:[#allocation28 + $0x7b8] sm:$0xff]  ;;  %v4425_v62 = vld [vmem:[#allocation28 + $0xea8] sm:$0xff] }
 0x65f   : > { %4920 = vmatpush.msra.mxu3 %v4131_v31  ;;  %v3726_v7 = vadd.f32 %v3725_v2, %v3297_v38  ;;  %4868 = vmatpush.msrb.mxu0 %v4562_v48  ;;  %v4628_v31 = vld [vmem:[#allocation28 + $0x1500] sm:$0xff]  ;;  %v3981_v38 = vld [vmem:[#allocation28 + $0xc8] sm:$0xff] }
 0x660   : > { %4833 = vmatpush.msra.mxu2 %v4340_v40  ;;  %4888 = vmatpush.msrb.mxu1 %v4658_v17  ;;  %v4053_v48 = vld [vmem:[#allocation28 + $0x308] sm:$0xff] }
 0x661   : > { %4921 = vmatpush.msra.mxu3 %v4125_v42  ;;  %4834 = vmatmul.f32.vlgmr.msra.gmra.mxu2 %v7793_v43  ;;  %v3746_v54 = vadd.f32 %v3745_v47, %v3726_v7  ;;  %v3765_v55 = vpop.f32.mrf.mxu0  ;;  %v4197_v40 = vld [vmem:[#allocation28 + $0x788] sm:$0xff]  ;;  %v3975_v42 = vld [vmem:[#allocation28 + $0x98] sm:$0xff] }
 0x662   : > { %4869 = vmatpush.msrb.mxu0 %v4556_v28  ;;  %4898 = vmatpush.msrb.mxu2 %v4047_v44  ;;  %v4521_v2 = vld [vmem:[#allocation28 + $0x11a8] sm:$0xff]  ;;  %v4191_v28 = vld [vmem:[#allocation28 + $0x758] sm:$0xff] }
 0x663   : > { %4922 = vmatpush.msra.mxu3 %v4119_v46  ;;  %v3766_v60 = vadd.f32 %v3765_v55, %v3746_v54  ;;  %4889 = vmatpush.msrb.mxu1 %v4652_v21  ;;  %v3969_v44 = vld [vmem:[#allocation28 + $0x68] sm:$0xff]  ;;  %v4335_v46 = vld [vmem:[#allocation28 + $0xbd8] sm:$0xff]  ;;  %v3298_v55 = vperm.slane %v7756_v14, 6 }
 0x664   : > { %4870 = vmatpush.msrb.mxu0 %v4550_v49  ;;  %4899 = vmatpush.msrb.mxu2 %v4041_v52  ;;  %v4515_v7 = vld [vmem:[#allocation28 + $0x1178] sm:$0xff]  ;;  %v4185_v47 = vld [vmem:[#allocation28 + $0x728] sm:$0xff] }
 0x665   : > { %4923 = vmatpush.msra.mxu3 %v4113_v53  ;;  %v3786_v5 = vadd.f32 %v3785_v23, %v3766_v60  ;;  %4890 = vmatpush.msrb.mxu1 %v4646_v0  ;;  %v3963_v49 = vld [vmem:[#allocation28 + $0x38] sm:$0xff]  ;;  %v4509_v52 = vld [vmem:[#allocation28 + $0x1148] sm:$0xff] }
 0x666   : > { %4871 = vmatpush.msrb.mxu0 %v4544_v56  ;;  %4900 = vmatpush.msrb.mxu2 %v4035_v58  ;;  %v4179_v53 = vld [vmem:[#allocation28 + $0x6f8] sm:$0xff]  ;;  %v3957_v54 = vld [vmem:[#allocation28 + $0x8] sm:$0xff] }
 0x667   : > { %4924 = vmatpush.msra.mxu3 %v4107_v59  ;;  %v7796_v9 = vmax.f32 %v3786_v5, 0.0  ;;  %4891 = vmatpush.msrb.mxu1 %v4640_v29  ;;  %v4323_v56 = vld [vmem:[#allocation28 + $0xb78] sm:$0xff]  ;;  %v4173_v59 = vld [vmem:[#allocation28 + $0x6c8] sm:$0xff] }
 0x668   : > { %4872 = vmatpush.msrb.mxu0 %v4538_v61  ;;  %4901 = vmatpush.msrb.mxu2 %v4029_v63  ;;  %v4431_v58 = vld [vmem:[#allocation28 + $0xed8] sm:$0xff]  ;;  %v4497_v60 = vld [vmem:[#allocation28 + $0x10e8] sm:$0xff] }
 0x669   : > { %4925 = vmatpush.msra.mxu3 %v4101_v4  ;;  %4892 = vmatpush.msrb.mxu1 %v4634_v34  ;;  %v4317_v61 = vld [vmem:[#allocation28 + $0xb48] sm:$0xff]  ;;  %v4167_v4 = vld [vmem:[#allocation28 + $0x698] sm:$0xff] }
 0x66a   : > { %4873 = vmatpush.msrb.mxu0 %v4532_v6  ;;  %4854 = vmatmul.f32.vlgmr.msrb.gmra.mxu3 %v7796_v9  ;;  %v4491_v5 = vld [vmem:[#allocation28 + $0x10b8] sm:$0xff]  ;;  %v4485_v11 = vld [vmem:[#allocation28 + $0x1088] sm:$0xff] }
 0x66b   : > { %4902 = vmatpush.msrb.mxu2 %v4023_v8  ;;  %4926 = vmatpush.msra.mxu3 %v4095_v10  ;;  %v4311_v6 = vld [vmem:[#allocation28 + $0xb18] sm:$0xff]  ;;  %v4473_v0 = vld [vmem:[#allocation28 + $0x1028] sm:$0xff] }
 0x66c   : > { %4938 = vmatpush.msra.mxu0 %v4239_v57  ;;  %4893 = vmatpush.msrb.mxu1 %v4628_v31  ;;  %v4419_v8 = vld [vmem:[#allocation28 + $0xe78] sm:$0xff]  ;;  %v4161_v57 = vld [vmem:[#allocation28 + $0x668] sm:$0xff] }
 0x66d   : > { %4903 = vmatpush.msrb.mxu2 %v4017_v12  ;;  %4927 = vmatpush.msra.mxu3 %v4089_v35  ;;  %v4305_v35 = vld [vmem:[#allocation28 + $0xae8] sm:$0xff]  ;;  %v4299_v21 = vld [vmem:[#allocation28 + $0xab8] sm:$0xff] }
 0x66e   : > { %4939 = vmatpush.msra.mxu0 %v4233_v16  ;;  %4958 = vmatpush.msra.mxu1 %v4335_v46  ;;  %v4413_v16 = vld [vmem:[#allocation28 + $0xe48] sm:$0xff]  ;;  %v4467_v29 = vld [vmem:[#allocation28 + $0xff8] sm:$0xff] }
 0x66f   : > { %4904 = vmatpush.msrb.mxu2 %v4011_v19  ;;  %4928 = vmatpush.msra.mxu3 %v4083_v20  ;;  %v4155_v19 = vld [vmem:[#allocation28 + $0x638] sm:$0xff]  ;;  %v4461_v34 = vld [vmem:[#allocation28 + $0xfc8] sm:$0xff] }
 0x670   : > { %4940 = vmatpush.msra.mxu0 %v4227_v24  ;;  %4959 = vmatpush.msra.mxu1 %v4329_v50  ;;  %v4479_v24 = vld [vmem:[#allocation28 + $0x1058] sm:$0xff]  ;;  %v4365_v50 = vld [vmem:[#allocation28 + $0xcc8] sm:$0xff] }
 0x671   : > { %4905 = vmatpush.msrb.mxu2 %v4005_v22  ;;  %4929 = vmatpush.msra.mxu3 %v4077_v3  ;;  %v4407_v22 = vld [vmem:[#allocation28 + $0xe18] sm:$0xff] }
 0x672   : > { %4941 = vmatpush.msra.mxu0 %v4221_v26  ;;  %4960 = vmatpush.msra.mxu1 %v4323_v56  ;;  %v4149_v26 = vld [vmem:[#allocation28 + $0x608] sm:$0xff]  ;;  %v4455_v31 = vld [vmem:[#allocation28 + $0xf98] sm:$0xff]  ;;  %v4138_v56 = vld [vmem:[#allocation28 + $0x5b0] sm:$0xff] }
 0x673   : > { %4906 = vmatpush.msrb.mxu2 %v3999_v25  ;;  %4930 = vmatpush.msra.mxu3 %v4071_v27  ;;  %v4401_v27 = vld [vmem:[#allocation28 + $0xde8] sm:$0xff]  ;;  %v4371_v46 = vld [vmem:[#allocation28 + $0xcf8] sm:$0xff] }
 0x674   : > { %4942 = vmatpush.msra.mxu0 %v4215_v1  ;;  %4961 = vmatpush.msra.mxu1 %v4317_v61  ;;  %v4623_v1 = vld [vmem:[#allocation28 + $0x14d8] sm:$0xff] }
 0x675   : > { %4907 = vmatpush.msrb.mxu2 %v3993_v30  ;;  %4931 = vmatpush.msra.mxu3 %v4065_v32  ;;  %v4293_v30 = vld [vmem:[#allocation28 + $0xa88] sm:$0xff]  ;;  %v4395_v32 = vld [vmem:[#allocation28 + $0xdb8] sm:$0xff] }
 0x676   : > { %4943 = vmatpush.msra.mxu0 %v4209_v33  ;;  %4962 = vmatpush.msra.mxu1 %v4311_v6  ;;  %v4617_v33 = vld [vmem:[#allocation28 + $0x14a8] sm:$0xff]  ;;  %v4347_v61 = vld [vmem:[#allocation28 + $0xc38] sm:$0xff]  ;;  %v4120_v6 = vld [vmem:[#allocation28 + $0x520] sm:$0xff] }
 0x677   : > { %4908 = vmatpush.msrb.mxu2 %v3987_v36  ;;  %4932 = vmatpush.msra.mxu3 %v4059_v37  ;;  %v4287_v36 = vld [vmem:[#allocation28 + $0xa58] sm:$0xff]  ;;  %v4389_v37 = vld [vmem:[#allocation28 + $0xd88] sm:$0xff] }
 0x678   : > { %4944 = vmatpush.msra.mxu0 %v4203_v18  ;;  %4963 = vmatpush.msra.mxu1 %v4305_v35  ;;  %v4611_v18 = vld [vmem:[#allocation28 + $0x1478] sm:$0xff]  ;;  %v4042_v35 = vld [vmem:[#allocation28 + $0x2b0] sm:$0xff] }
 0x679   : > { %4909 = vmatpush.msrb.mxu2 %v3981_v38  ;;  %4933 = vmatpush.msra.mxu3 %v4053_v48  ;;  %v3825_v14 = vpop.f32.mrf.mxu3  ;;  %v4281_v38 = vld [vmem:[#allocation28 + $0xa28] sm:$0xff]  ;;  %v4383_v48 = vld [vmem:[#allocation28 + $0xd58] sm:$0xff] }
 0x67a   : > { %4945 = vmatpush.msra.mxu0 %v4197_v40  ;;  %4934 = vmatmul.f32.vlgmr.msra.gmra.mxu3 %v7774_v15  ;;  %v4449_v40 = vld [vmem:[#allocation28 + $0xf68] sm:$0xff] }
 0x67b   : > { %4998 = vmatpush.msrb.mxu3 %v4527_v39  ;;  %4910 = vmatpush.msrb.mxu2 %v3975_v42  ;;  %v4605_v39 = vld [vmem:[#allocation28 + $0x1448] sm:$0xff] }
 0x67c   : > { %4946 = vmatpush.msra.mxu0 %v4191_v28  ;;  %4964 = vmatpush.msra.mxu1 %v4299_v21  ;;  %v4377_v42 = vld [vmem:[#allocation28 + $0xd28] sm:$0xff]  ;;  %v4443_v28 = vld [vmem:[#allocation28 + $0xf38] sm:$0xff] }
 0x67d   : > { %4999 = vmatpush.msrb.mxu3 %v4521_v2  ;;  %4911 = vmatpush.msrb.mxu2 %v3969_v44  ;;  %v3865_v20 = vpop.f32.mrf.mxu1  ;;  %v4599_v2 = vld [vmem:[#allocation28 + $0x1418] sm:$0xff] }
 0x67e   : > { %4947 = vmatpush.msra.mxu0 %v4185_v47  ;;  %4965 = vmatpush.msra.mxu1 %v4293_v30  ;;  %v4275_v44 = vld [vmem:[#allocation28 + $0x9f8] sm:$0xff]  ;;  %v4437_v47 = vld [vmem:[#allocation28 + $0xf08] sm:$0xff]  ;;  %v4024_v30 = vld [vmem:[#allocation28 + $0x220] sm:$0xff] }
 0x67f   : > { %5000 = vmatpush.msrb.mxu3 %v4515_v7  ;;  %4912 = vmatpush.msrb.mxu2 %v3963_v49  ;;  %v4593_v7 = vld [vmem:[#allocation28 + $0x13e8] sm:$0xff]  ;;  %v4551_v21 = vld [vmem:[#allocation28 + $0x1298] sm:$0xff] }
 0x680   : > { %4948 = vmatpush.msra.mxu0 %v4179_v53  ;;  %v3805_v23 = vpop.f32.mrf.mxu2  ;;  %4966 = vmatpush.msra.mxu1 %v4287_v36  ;;  %v4269_v49 = vld [vmem:[#allocation28 + $0x9c8] sm:$0xff]  ;;  %v4587_v53 = vld [vmem:[#allocation28 + $0x13b8] sm:$0xff]  ;;  %v4090_v36 = vld [vmem:[#allocation28 + $0x430] sm:$0xff] }
 0x681   : > { %5001 = vmatpush.msrb.mxu3 %v4509_v52  ;;  %4913 = vmatpush.msrb.mxu2 %v3957_v54  ;;  %v3806_v63 = vadd.f32 %v3805_v23, %v3298_v55  ;;  %v4144_v52 = vld [vmem:[#allocation28 + $0x5e0] sm:$0xff]  ;;  %v4359_v54 = vld [vmem:[#allocation28 + $0xc98] sm:$0xff] }
 0x682   : > { %4914 = vmatmul.f32.vlgmr.msrb.gmra.mxu2 %v7780_v13  ;;  %4949 = vmatpush.msra.mxu0 %v4173_v59  ;;  %v4263_v55 = vld [vmem:[#allocation28 + $0x998] sm:$0xff]  ;;  %v4257_v59 = vld [vmem:[#allocation28 + $0x968] sm:$0xff] }
 0x683   : > { %5002 = vmatpush.msrb.mxu3 %v4503_v45  ;;  %4978 = vmatpush.msra.mxu2 %v4431_v58  ;;  %v3826_v10 = vadd.f32 %v3825_v14, %v3806_v63  ;;  %v3845_v12 = vpop.f32.mrf.mxu0  ;;  %v4581_v45 = vld [vmem:[#allocation28 + $0x1388] sm:$0xff]  ;;  %v4575_v23 = vld [vmem:[#allocation28 + $0x1358] sm:$0xff]  ;;  %v4126_v63 = vld [vmem:[#allocation28 + $0x550] sm:$0xff] }
 0x684   : > { %4950 = vmatpush.msra.mxu0 %v4167_v4  ;;  %4967 = vmatpush.msra.mxu1 %v4281_v38  ;;  %v4353_v58 = vld [vmem:[#allocation28 + $0xc68] sm:$0xff]  ;;  %v4084_v38 = vld [vmem:[#allocation28 + $0x400] sm:$0xff] }
 0x685   : > { %5003 = vmatpush.msrb.mxu3 %v4497_v60  ;;  %4979 = vmatpush.msra.mxu2 %v4425_v62  ;;  %v3846_v17 = vadd.f32 %v3845_v12, %v3826_v10  ;;  %v4132_v60 = vld [vmem:[#allocation28 + $0x580] sm:$0xff]  ;;  %v4251_v62 = vld [vmem:[#allocation28 + $0x938] sm:$0xff]  ;;  %v4569_v4 = vld [vmem:[#allocation28 + $0x1328] sm:$0xff] }
 0x686   : > { %4951 = vmatpush.msra.mxu0 %v4161_v57  ;;  %4968 = vmatpush.msra.mxu1 %v4275_v44  ;;  %v4341_v14 = vld [vmem:[#allocation28 + $0xc08] sm:$0xff]  ;;  %v6472_v10 = vld [vmem:[#allocation26] sm:$0xff]  ;;  %v4114_v12 = vld [vmem:[#allocation28 + $0x4f0] sm:$0xff] }
 0x687   : > { %5004 = vmatpush.msrb.mxu3 %v4491_v5  ;;  %4980 = vmatpush.msra.mxu2 %v4419_v8  ;;  %v3866_v3 = vadd.f32 %v3865_v20, %v3846_v17  ;;  %v4245_v5 = vld [vmem:[#allocation28 + $0x908] sm:$0xff]  ;;  %v4048_v8 = vld [vmem:[#allocation28 + $0x2e0] sm:$0xff]  ;;  %v3299_v57 = vperm.slane %v6472_v10, 7 }
 0x688   : > { %4952 = vmatpush.msra.mxu0 %v4155_v19  ;;  %4969 = vmatpush.msra.mxu1 %v4269_v49  ;;  %v4108_v17 = vld [vmem:[#allocation28 + $0x4c0] sm:$0xff]  ;;  %v4066_v49 = vld [vmem:[#allocation28 + $0x370] sm:$0xff] }
 0x689   : > { %5005 = vmatpush.msrb.mxu3 %v4485_v11  ;;  %4981 = vmatpush.msra.mxu2 %v4413_v16  ;;  %v7802_v25 = vmax.f32 %v3866_v3, 0.0  ;;  %v4563_v11 = vld [vmem:[#allocation28 + $0x12f8] sm:$0xff]  ;;  %v4557_v16 = vld [vmem:[#allocation28 + $0x12c8] sm:$0xff]  ;;  %v4036_v20 = vld [vmem:[#allocation28 + $0x280] sm:$0xff] }
 0x68a   : > { %4953 = vmatpush.msra.mxu0 %v4149_v26  ;;  %4970 = vmatpush.msra.mxu1 %v4263_v55  ;;  %v4102_v3 = vld [vmem:[#allocation28 + $0x490] sm:$0xff]  ;;  %v4072_v44 = vld [vmem:[#allocation28 + $0x3a0] sm:$0xff]  ;;  %v4701_v55 = vld [vmem:[#allocation28 + $0x1748] sm:$0xff] }
 0x68b   : > { %5006 = vmatpush.msrb.mxu3 %v4479_v24  ;;  %4982 = vmatpush.msra.mxu2 %v4407_v22  ;;  %v4030_v26 = vld [vmem:[#allocation28 + $0x250] sm:$0xff]  ;;  %v3964_v10 = vld [vmem:[#allocation28 + $0x40] sm:$0xff] }
 0x68c   : > { %4874 = vmatmul.f32.vlgmr.msrb.gmra.mxu0 %v7802_v25  ;;  %4971 = vmatpush.msra.mxu1 %v4257_v59  ;;  %v3982_v59 = vld [vmem:[#allocation28 + $0xd0] sm:$0xff] }
 0x68d   : > { %5007 = vmatpush.msrb.mxu3 %v4473_v0  ;;  %4983 = vmatpush.msra.mxu2 %v4401_v27  ;;  %v4545_v27 = vld [vmem:[#allocation28 + $0x1268] sm:$0xff] }
 0x68e   : > { %5018 = vmatpush.msrb.mxu0 %v4623_v1  ;;  %4972 = vmatpush.msra.mxu1 %v4251_v62  ;;  %v4216_v62 = vld [vmem:[#allocation28 + $0x820] sm:$0xff] }
 0x68f   : > { %5008 = vmatpush.msrb.mxu3 %v4467_v29  ;;  %4984 = vmatpush.msra.mxu2 %v4395_v32  ;;  %v4096_v29 = vld [vmem:[#allocation28 + $0x460] sm:$0xff] }
 0x690   : > { %5019 = vmatpush.msrb.mxu0 %v4617_v33  ;;  %4973 = vmatpush.msra.mxu1 %v4245_v5  ;;  %v4539_v33 = vld [vmem:[#allocation28 + $0x1238] sm:$0xff]  ;;  %v4210_v5 = vld [vmem:[#allocation28 + $0x7f0] sm:$0xff] }
 0x691   : > { %5009 = vmatpush.msrb.mxu3 %v4461_v34  ;;  %4985 = vmatpush.msra.mxu2 %v4389_v37 }
 0x692   : > { %5020 = vmatpush.msrb.mxu0 %v4611_v18  ;;  %v4018_v18 = vld [vmem:[#allocation28 + $0x1f0] sm:$0xff] }
 0x693   : > { %5010 = vmatpush.msrb.mxu3 %v4455_v31  ;;  %4986 = vmatpush.msra.mxu2 %v4383_v48  ;;  %v4533_v31 = vld [vmem:[#allocation28 + $0x1208] sm:$0xff] }
 0x694   : > { %5021 = vmatpush.msrb.mxu0 %v4605_v39  ;;  %v4012_v39 = vld [vmem:[#allocation28 + $0x1c0] sm:$0xff] }
 0x695   : > { %5011 = vmatpush.msrb.mxu3 %v4449_v40  ;;  %4954 = vmatmul.f32.vlgmr.msra.gmra.mxu0 %v7788_v51  ;;  %v4078_v40 = vld [vmem:[#allocation28 + $0x3d0] sm:$0xff] }
 0x696   : > { %4987 = vmatpush.msra.mxu2 %v4377_v42  ;;  %5022 = vmatpush.msrb.mxu0 %v4599_v2  ;;  %v4719_v42 = vld [vmem:[#allocation28 + $0x17d8] sm:$0xff]  ;;  %v4006_v2 = vld [vmem:[#allocation28 + $0x190] sm:$0xff] }
 0x697   : > { %5012 = vmatpush.msrb.mxu3 %v4443_v28  ;;  %v4240_v28 = vld [vmem:[#allocation28 + $0x8e0] sm:$0xff] }
 0x698   : > { %4988 = vmatpush.msra.mxu2 %v4371_v46  ;;  %5023 = vmatpush.msrb.mxu0 %v4593_v7  ;;  %v4713_v46 = vld [vmem:[#allocation28 + $0x17a8] sm:$0xff]  ;;  %v4000_v7 = vld [vmem:[#allocation28 + $0x160] sm:$0xff] }
 0x699   : > { %5013 = vmatpush.msrb.mxu3 %v4437_v47  ;;  %v4234_v47 = vld [vmem:[#allocation28 + $0x8b0] sm:$0xff] }
 0x69a   : > { %4989 = vmatpush.msra.mxu2 %v4365_v50  ;;  %5014 = vmatmul.f32.vlgmr.msrb.gmra.mxu3 %v7796_v9  ;;  %v4707_v50 = vld [vmem:[#allocation28 + $0x1778] sm:$0xff] }
 0x69b   : > { %5078 = vmatpush.msra.mxu3 %v4144_v52  ;;  %5024 = vmatpush.msrb.mxu0 %v4587_v53  ;;  %v3905_v22 = vpop.f32.mrf.mxu3  ;;  %v3994_v52 = vld [vmem:[#allocation28 + $0x130] sm:$0xff]  ;;  %v4228_v53 = vld [vmem:[#allocation28 + $0x880] sm:$0xff] }
 0x69c   : > { %4990 = vmatpush.msra.mxu2 %v4359_v54  ;;  %v4060_v54 = vld [vmem:[#allocation28 + $0x340] sm:$0xff] }
 0x69d   : > { %5079 = vmatpush.msra.mxu3 %v4138_v56  ;;  %5025 = vmatpush.msrb.mxu0 %v4581_v45  ;;  %v3988_v56 = vld [vmem:[#allocation28 + $0x100] sm:$0xff]  ;;  %v4222_v45 = vld [vmem:[#allocation28 + $0x850] sm:$0xff] }
 0x69e   : > { %4991 = vmatpush.msra.mxu2 %v4353_v58  ;;  %v4054_v58 = vld [vmem:[#allocation28 + $0x310] sm:$0xff] }
 0x69f   : > { %5080 = vmatpush.msra.mxu3 %v4132_v60  ;;  %5026 = vmatpush.msrb.mxu0 %v4575_v23  ;;  %v3945_v34 = vpop.f32.mrf.mxu1  ;;  %v4528_v60 = vld [vmem:[#allocation28 + $0x11e0] sm:$0xff]  ;;  %v4695_v23 = vld [vmem:[#allocation28 + $0x1718] sm:$0xff] }
 0x6a0   : > { %4992 = vmatpush.msra.mxu2 %v4347_v61  ;;  %v3976_v61 = vld [vmem:[#allocation28 + $0xa0] sm:$0xff] }
 0x6a1   : > { %5081 = vmatpush.msra.mxu3 %v4126_v63  ;;  %5027 = vmatpush.msrb.mxu0 %v4569_v4  ;;  %v4522_v63 = vld [vmem:[#allocation28 + $0x11b0] sm:$0xff]  ;;  %v4689_v4 = vld [vmem:[#allocation28 + $0x16e8] sm:$0xff] }
 0x6a2   : > { %4993 = vmatpush.msra.mxu2 %v4341_v14  ;;  %v3885_v19 = vpop.f32.mrf.mxu2  ;;  %v3970_v14 = vld [vmem:[#allocation28 + $0x70] sm:$0xff] }
 0x6a3   : > { %4994 = vmatmul.f32.vlgmr.msra.gmra.mxu2 %v7793_v43  ;;  %5082 = vmatpush.msra.mxu3 %v4120_v6  ;;  %v3886_v24 = vadd.f32 %v3885_v19, %v3299_v57  ;;  %v4516_v6 = vld [vmem:[#allocation28 + $0x1180] sm:$0xff] }
 0x6a4   : > { %5058 = vmatpush.msrb.mxu2 %v4048_v8  ;;  %5028 = vmatpush.msrb.mxu0 %v4563_v11  ;;  %v4683_v8 = vld [vmem:[#allocation28 + $0x16b8] sm:$0xff]  ;;  %v4204_v57 = vld [vmem:[#allocation28 + $0x7c0] sm:$0xff]  ;;  %v4510_v11 = vld [vmem:[#allocation28 + $0x1150] sm:$0xff] }
 0x6a5   : > { %5083 = vmatpush.msra.mxu3 %v4114_v12  ;;  %v3906_v0 = vadd.f32 %v3905_v22, %v3886_v24  ;;  %v3925_v1 = vpop.f32.mrf.mxu0  ;;  %v4677_v12 = vld [vmem:[#allocation28 + $0x1688] sm:$0xff]  ;;  %v4724_v19 = vld [vmem:[#allocation29] sm:$0x3f]  ;;  %v4671_v24 = vld [vmem:[#allocation28 + $0x1658] sm:$0xff] }
 0x6a6   : > { %5059 = vmatpush.msrb.mxu2 %v4042_v35  ;;  %5029 = vmatpush.msrb.mxu0 %v4557_v16  ;;  %v3958_v35 = vld [vmem:[#allocation28 + $0x10] sm:$0xff] }
 0x6a7   : > { %5084 = vmatpush.msra.mxu3 %v4108_v17  ;;  %v3926_v32 = vadd.f32 %v3925_v1, %v3906_v0  ;;  %v4198_v16 = vld [vmem:[#allocation28 + $0x790] sm:$0xff]  ;;  %v4504_v17 = vld [vmem:[#allocation28 + $0x1120] sm:$0xff]  ;;  %v4726_v0 = vperm.slane %v4724_v19, 0 }
 0x6a8   : > { %5060 = vmatpush.msrb.mxu2 %v4036_v20  ;;  %5030 = vmatpush.msrb.mxu0 %v4551_v21  ;;  %v4432_v20 = vld [vmem:[#allocation28 + $0xee0] sm:$0xff]  ;;  %v4498_v22 = vld [vmem:[#allocation28 + $0x10f0] sm:$0xff] }
 0x6a9   : > { %5085 = vmatpush.msra.mxu3 %v4102_v3  ;;  %v3946_v37 = vadd.f32 %v3945_v34, %v3926_v32  ;;  %v4192_v21 = vld [vmem:[#allocation28 + $0x760] sm:$0xff]  ;;  %v4426_v3 = vld [vmem:[#allocation28 + $0xeb0] sm:$0xff] }
 0x6aa   : > { %5061 = vmatpush.msrb.mxu2 %v4030_v26  ;;  %5031 = vmatpush.msrb.mxu0 %v4545_v27  ;;  %v4665_v26 = vld [vmem:[#allocation28 + $0x1628] sm:$0xff]  ;;  %v4186_v27 = vld [vmem:[#allocation28 + $0x730] sm:$0xff]  ;;  %v4492_v1 = vld [vmem:[#allocation28 + $0x10c0] sm:$0xff] }
 0x6ab   : > { %5086 = vmatpush.msra.mxu3 %v4096_v29  ;;  %v7808_v48 = vmax.f32 %v3946_v37, 0.0  ;;  %v4420_v29 = vld [vmem:[#allocation28 + $0xe80] sm:$0xff]  ;;  %v4486_v34 = vld [vmem:[#allocation28 + $0x1090] sm:$0xff] }
 0x6ac   : > { %5062 = vmatpush.msrb.mxu2 %v4024_v30  ;;  %5032 = vmatpush.msrb.mxu0 %v4539_v33  ;;  %v4659_v30 = vld [vmem:[#allocation28 + $0x15f8] sm:$0xff]  ;;  %v4180_v33 = vld [vmem:[#allocation28 + $0x700] sm:$0xff] }
 0x6ad   : > { %5087 = vmatpush.msra.mxu3 %v4090_v36  ;;  %4894 = vmatmul.f32.vlgmr.msrb.gmra.mxu1 %v7808_v48  ;;  %v4414_v36 = vld [vmem:[#allocation28 + $0xe50] sm:$0xff]  ;;  %v4312_v19 = vld [vmem:[#allocation28 + $0xb20] sm:$0xff] }
 0x6ae   : > { %5063 = vmatpush.msrb.mxu2 %v4018_v18  ;;  %5033 = vmatpush.msrb.mxu0 %v4533_v31  ;;  %v4653_v18 = vld [vmem:[#allocation28 + $0x15c8] sm:$0xff] }
 0x6af   : > { %5088 = vmatpush.msra.mxu3 %v4084_v38  ;;  %5034 = vmatmul.f32.vlgmr.msrb.gmra.mxu0 %v7802_v25  ;;  %v4174_v38 = vld [vmem:[#allocation28 + $0x6d0] sm:$0xff] }
 0x6b0   : > { %5064 = vmatpush.msrb.mxu2 %v4012_v39  ;;  %5038 = vmatpush.msrb.mxu1 %v4719_v42  ;;  %v4480_v39 = vld [vmem:[#allocation28 + $0x1060] sm:$0xff] }
 0x6b1   : > { %5089 = vmatpush.msra.mxu3 %v4078_v40  ;;  %5098 = vmatpush.msra.mxu0 %v4240_v28  ;;  %v4408_v40 = vld [vmem:[#allocation28 + $0xe20] sm:$0xff] }
 0x6b2   : > { %5065 = vmatpush.msrb.mxu2 %v4006_v2  ;;  %5039 = vmatpush.msrb.mxu1 %v4713_v46  ;;  %v4647_v2 = vld [vmem:[#allocation28 + $0x1598] sm:$0xff]  ;;  %v4474_v46 = vld [vmem:[#allocation28 + $0x1030] sm:$0xff] }
 0x6b3   : > { %5090 = vmatpush.msra.mxu3 %v4072_v44  ;;  %5099 = vmatpush.msra.mxu0 %v4234_v47  ;;  %v4168_v44 = vld [vmem:[#allocation28 + $0x6a0] sm:$0xff]  ;;  %v4402_v47 = vld [vmem:[#allocation28 + $0xdf0] sm:$0xff] }
 0x6b4   : > { %5066 = vmatpush.msrb.mxu2 %v4000_v7  ;;  %5040 = vmatpush.msrb.mxu1 %v4707_v50  ;;  %v4162_v50 = vld [vmem:[#allocation28 + $0x670] sm:$0xff] }
 0x6b5   : > { %5091 = vmatpush.msra.mxu3 %v4066_v49  ;;  %5100 = vmatpush.msra.mxu0 %v4228_v53  ;;  %v4641_v49 = vld [vmem:[#allocation28 + $0x1568] sm:$0xff]  ;;  %v4396_v53 = vld [vmem:[#allocation28 + $0xdc0] sm:$0xff] }
 0x6b6   : > { %5067 = vmatpush.msrb.mxu2 %v3994_v52  ;;  %5041 = vmatpush.msrb.mxu1 %v4701_v55  ;;  %v4468_v52 = vld [vmem:[#allocation28 + $0x1000] sm:$0xff] }
 0x6b7   : > { %5092 = vmatpush.msra.mxu3 %v4060_v54  ;;  %5101 = vmatpush.msra.mxu0 %v4222_v45  ;;  %v4635_v54 = vld [vmem:[#allocation28 + $0x1538] sm:$0xff]  ;;  %v4156_v55 = vld [vmem:[#allocation28 + $0x640] sm:$0xff]  ;;  %v4390_v45 = vld [vmem:[#allocation28 + $0xd90] sm:$0xff] }
 0x6b8   : > { %5068 = vmatpush.msrb.mxu2 %v3988_v56  ;;  %4974 = vmatmul.f32.vlgmr.msra.gmra.mxu1 %v7784_v41  ;;  %v4462_v56 = vld [vmem:[#allocation28 + $0xfd0] sm:$0xff] }
 0x6b9   : > { %5093 = vmatpush.msra.mxu3 %v4054_v58  ;;  %5042 = vmatpush.msrb.mxu1 %v4695_v23  ;;  %v4629_v58 = vld [vmem:[#allocation28 + $0x1508] sm:$0xff]  ;;  %v4336_v23 = vld [vmem:[#allocation28 + $0xbe0] sm:$0xff] }
 0x6ba   : > { %5069 = vmatpush.msrb.mxu2 %v3982_v59  ;;  %5094 = vmatmul.f32.vlgmr.msra.gmra.mxu3 %v7774_v15  ;;  %v4150_v59 = vld [vmem:[#allocation28 + $0x610] sm:$0xff] }
 0x6bb   : > { %5158 = vmatpush.msrb.mxu3 %v4528_v60  ;;  %5102 = vmatpush.msra.mxu0 %v4216_v62  ;;  %v4384_v60 = vld [vmem:[#allocation28 + $0xd60] sm:$0xff]  ;;  %v4378_v62 = vld [vmem:[#allocation28 + $0xd30] sm:$0xff] }
 0x6bc   : > { %5070 = vmatpush.msrb.mxu2 %v3976_v61  ;;  %5043 = vmatpush.msrb.mxu1 %v4689_v4  ;;  %v4456_v61 = vld [vmem:[#allocation28 + $0xfa0] sm:$0xff]  ;;  %v4330_v4 = vld [vmem:[#allocation28 + $0xbb0] sm:$0xff] }
 0x6bd   : > { %5159 = vmatpush.msrb.mxu3 %v4522_v63  ;;  %5103 = vmatpush.msra.mxu0 %v4210_v5  ;;  %v4775_v31 = vpop.f32.mrf.mxu3  ;;  %v4624_v63 = vld [vmem:[#allocation28 + $0x14e0] sm:$0xff] }
 0x6be   : > { %5071 = vmatpush.msrb.mxu2 %v3970_v14  ;;  %5044 = vmatpush.msrb.mxu1 %v4683_v8  ;;  %v4450_v14 = vld [vmem:[#allocation28 + $0xf70] sm:$0xff]  ;;  %v4372_v5 = vld [vmem:[#allocation28 + $0xd00] sm:$0xff] }
 0x6bf   : > { %5160 = vmatpush.msrb.mxu3 %v4516_v6  ;;  %5104 = vmatpush.msra.mxu0 %v4204_v57  ;;  %v4618_v6 = vld [vmem:[#allocation28 + $0x14b0] sm:$0xff]  ;;  %v4324_v8 = vld [vmem:[#allocation28 + $0xb80] sm:$0xff] }
 0x6c0   : > { %5072 = vmatpush.msrb.mxu2 %v3964_v10  ;;  %5045 = vmatpush.msrb.mxu1 %v4677_v12  ;;  %v4444_v10 = vld [vmem:[#allocation28 + $0xf40] sm:$0xff]  ;;  %v4366_v57 = vld [vmem:[#allocation28 + $0xcd0] sm:$0xff] }
 0x6c1   : > { %5161 = vmatpush.msrb.mxu3 %v4510_v11  ;;  %5105 = vmatpush.msra.mxu0 %v4198_v16  ;;  %v4612_v11 = vld [vmem:[#allocation28 + $0x1480] sm:$0xff]  ;;  %v4318_v12 = vld [vmem:[#allocation28 + $0xb50] sm:$0xff] }
 0x6c2   : > { %5073 = vmatpush.msrb.mxu2 %v3958_v35  ;;  %5046 = vmatpush.msrb.mxu1 %v4671_v24  ;;  %v4438_v35 = vld [vmem:[#allocation28 + $0xf10] sm:$0xff]  ;;  %v4360_v16 = vld [vmem:[#allocation28 + $0xca0] sm:$0xff] }
 0x6c3   : > { %5074 = vmatmul.f32.vlgmr.msrb.gmra.mxu2 %v7780_v13  ;;  %5162 = vmatpush.msrb.mxu3 %v4504_v17  ;;  %v4606_v17 = vld [vmem:[#allocation28 + $0x1450] sm:$0xff] }
 0x6c4   : > { %5138 = vmatpush.msra.mxu2 %v4432_v20  ;;  %5106 = vmatpush.msra.mxu0 %v4192_v21  ;;  %v4755_v32 = vpop.f32.mrf.mxu2  ;;  %v4145_v20 = vld [vmem:[#allocation28 + $0x5e8] sm:$0xff]  ;;  %v4354_v24 = vld [vmem:[#allocation28 + $0xc70] sm:$0xff]  ;;  %v4600_v21 = vld [vmem:[#allocation28 + $0x1420] sm:$0xff] }
 0x6c5   : > { %5163 = vmatpush.msrb.mxu3 %v4498_v22  ;;  %5047 = vmatpush.msrb.mxu1 %v4665_v26  ;;  %v4756_v37 = vadd.f32 %v4755_v32, %v4726_v0  ;;  %v4306_v22 = vld [vmem:[#allocation28 + $0xaf0] sm:$0xff]  ;;  %v4348_v26 = vld [vmem:[#allocation28 + $0xc40] sm:$0xff]  ;;  %v4049_v32 = vld [vmem:[#allocation28 + $0x2e8] sm:$0xff] }
 0x6c6   : > { %5139 = vmatpush.msra.mxu2 %v4426_v3  ;;  %5107 = vmatpush.msra.mxu0 %v4186_v27  ;;  %v4139_v3 = vld [vmem:[#allocation28 + $0x5b8] sm:$0xff]  ;;  %v4594_v0 = vld [vmem:[#allocation28 + $0x13f0] sm:$0xff]  ;;  %v4300_v27 = vld [vmem:[#allocation28 + $0xac0] sm:$0xff] }
 0x6c7   : > { %5164 = vmatpush.msrb.mxu3 %v4492_v1  ;;  %5048 = vmatpush.msrb.mxu1 %v4659_v30  ;;  %v4776_v42 = vadd.f32 %v4775_v31, %v4756_v37  ;;  %v4795_v28 = vpop.f32.mrf.mxu0  ;;  %v4133_v1 = vld [vmem:[#allocation28 + $0x588] sm:$0xff]  ;;  %v4588_v30 = vld [vmem:[#allocation28 + $0x13c0] sm:$0xff]  ;;  %v4043_v37 = vld [vmem:[#allocation28 + $0x2b8] sm:$0xff]  ;;  %v4815_v31 = vpop.f32.mrf.mxu1 }
 0x6c8   : > { %5140 = vmatpush.msra.mxu2 %v4420_v29  ;;  %5108 = vmatpush.msra.mxu0 %v4180_v33  ;;  %v4342_v29 = vld [vmem:[#allocation28 + $0xc10] sm:$0xff]  ;;  %v4127_v33 = vld [vmem:[#allocation28 + $0x558] sm:$0xff] }
 0x6c9   : > { %5165 = vmatpush.msrb.mxu3 %v4486_v34  ;;  %5049 = vmatpush.msrb.mxu1 %v4653_v18  ;;  %v7815_v7 = vadd.f32 %v4795_v28, %v4776_v42  ;;  %v4294_v34 = vld [vmem:[#allocation28 + $0xa90] sm:$0xff]  ;;  %v4121_v18 = vld [vmem:[#allocation28 + $0x528] sm:$0xff]  ;;  %v4115_v42 = vld [vmem:[#allocation28 + $0x4f8] sm:$0xff] }
 0x6ca   : > { %5141 = vmatpush.msra.mxu2 %v4414_v36  ;;  %5109 = vmatpush.msra.mxu0 %v4174_v38  ;;  %v4582_v36 = vld [vmem:[#allocation28 + $0x1390] sm:$0xff]  ;;  %v4288_v38 = vld [vmem:[#allocation28 + $0xa60] sm:$0xff] }
 0x6cb   : > { %5166 = vmatpush.msrb.mxu3 %v4480_v39  ;;  %5050 = vmatpush.msrb.mxu1 %v4647_v2  ;;  %v4576_v39 = vld [vmem:[#allocation28 + $0x1360] sm:$0xff]  ;;  %v4816_v2 = vadd.f32 %v4815_v31, %v7815_v7  ;;  %v4282_v28 = vld [vmem:[#allocation28 + $0xa30] sm:$0xff] }
 0x6cc   : > { %5142 = vmatpush.msra.mxu2 %v4408_v40  ;;  %5110 = vmatpush.msra.mxu0 %v4168_v44  ;;  %v4037_v40 = vld [vmem:[#allocation28 + $0x288] sm:$0xff]  ;;  %v4570_v44 = vld [vmem:[#allocation28 + $0x1330] sm:$0xff] }
 0x6cd   : > { %5167 = vmatpush.msrb.mxu3 %v4474_v46  ;;  %5051 = vmatpush.msrb.mxu1 %v4641_v49  ;;  %v4109_v49 = vld [vmem:[#allocation28 + $0x4c8] sm:$0xff]  ;;  %v4270_v7 = vld [vmem:[#allocation28 + $0x9d0] sm:$0xff] }
 0x6ce   : > { %5143 = vmatpush.msra.mxu2 %v4402_v47  ;;  %5111 = vmatpush.msra.mxu0 %v4162_v50  ;;  %v4031_v47 = vld [vmem:[#allocation28 + $0x258] sm:$0xff]  ;;  %v4690_v31 = vld [vmem:[#allocation28 + $0x16f0] sm:$0xff] }
 0x6cf   : > { %5168 = vmatpush.msrb.mxu3 %v4468_v52  ;;  %5052 = vmatpush.msrb.mxu1 %v4635_v54  ;;  %v4276_v52 = vld [vmem:[#allocation28 + $0xa00] sm:$0xff]  ;;  %v4025_v54 = vld [vmem:[#allocation28 + $0x228] sm:$0xff] }
 0x6d0   : > { %5144 = vmatpush.msra.mxu2 %v4396_v53  ;;  %5112 = vmatpush.msra.mxu0 %v4156_v55  ;;  %v4564_v53 = vld [vmem:[#allocation28 + $0x1300] sm:$0xff]  ;;  %v4103_v55 = vld [vmem:[#allocation28 + $0x498] sm:$0xff] }
 0x6d1   : > { %5169 = vmatpush.msrb.mxu3 %v4462_v56  ;;  %5053 = vmatpush.msrb.mxu1 %v4629_v58  ;;  %v4558_v56 = vld [vmem:[#allocation28 + $0x12d0] sm:$0xff]  ;;  %v4097_v58 = vld [vmem:[#allocation28 + $0x468] sm:$0xff] }
 0x6d2   : > { %5145 = vmatpush.msra.mxu2 %v4390_v45  ;;  %5113 = vmatpush.msra.mxu0 %v4150_v59  ;;  %v4019_v45 = vld [vmem:[#allocation28 + $0x1f8] sm:$0xff]  ;;  %v4264_v59 = vld [vmem:[#allocation28 + $0x9a0] sm:$0xff] }
 0x6d3   : > { %5054 = vmatmul.f32.vlgmr.msrb.gmra.mxu1 %v7808_v48  ;;  %5114 = vmatmul.f32.vlgmr.msra.gmra.mxu0 %v7788_v51 }
 0x6d4   : > { %5146 = vmatpush.msra.mxu2 %v4384_v60  ;;  %5118 = vmatpush.msra.mxu1 %v4336_v23  ;;  %v4552_v60 = vld [vmem:[#allocation28 + $0x12a0] sm:$0xff]  ;;  %v4013_v23 = vld [vmem:[#allocation28 + $0x1c8] sm:$0xff] }
 0x6d5   : > { %5170 = vmatpush.msrb.mxu3 %v4456_v61  ;;  %5178 = vmatpush.msrb.mxu0 %v4624_v63  ;;  %v4091_v61 = vld [vmem:[#allocation28 + $0x438] sm:$0xff]  ;;  %v4546_v63 = vld [vmem:[#allocation28 + $0x1270] sm:$0xff] }
 0x6d6   : > { %5147 = vmatpush.msra.mxu2 %v4378_v62  ;;  %5119 = vmatpush.msra.mxu1 %v4330_v4  ;;  %v4258_v62 = vld [vmem:[#allocation28 + $0x970] sm:$0xff] }
 0x6d7   : > { %5171 = vmatpush.msrb.mxu3 %v4450_v14  ;;  %5179 = vmatpush.msrb.mxu0 %v4618_v6  ;;  %v4007_v14 = vld [vmem:[#allocation28 + $0x198] sm:$0xff] }
 0x6d8   : > { %5148 = vmatpush.msra.mxu2 %v4372_v5  ;;  %5120 = vmatpush.msra.mxu1 %v4324_v8  ;;  %v4085_v5 = vld [vmem:[#allocation28 + $0x408] sm:$0xff]  ;;  %v4252_v8 = vld [vmem:[#allocation28 + $0x940] sm:$0xff] }
 0x6d9   : > { %5172 = vmatpush.msrb.mxu3 %v4444_v10  ;;  %5180 = vmatpush.msrb.mxu0 %v4612_v11  ;;  %v4540_v10 = vld [vmem:[#allocation28 + $0x1240] sm:$0xff]  ;;  %v4079_v11 = vld [vmem:[#allocation28 + $0x3d8] sm:$0xff] }
 0x6da   : > { %5149 = vmatpush.msra.mxu2 %v4366_v57  ;;  %5121 = vmatpush.msra.mxu1 %v4318_v12  ;;  %v4001_v57 = vld [vmem:[#allocation28 + $0x168] sm:$0xff]  ;;  %v4246_v12 = vld [vmem:[#allocation28 + $0x910] sm:$0xff] }
 0x6db   : > { %5173 = vmatpush.msrb.mxu3 %v4438_v35  ;;  %5181 = vmatpush.msrb.mxu0 %v4606_v17  ;;  %v4534_v35 = vld [vmem:[#allocation28 + $0x1210] sm:$0xff]  ;;  %v3995_v17 = vld [vmem:[#allocation28 + $0x138] sm:$0xff] }
 0x6dc   : > { %5150 = vmatpush.msra.mxu2 %v4360_v16  ;;  %5174 = vmatmul.f32.vlgmr.msrb.gmra.mxu3 %v7796_v9  ;;  %v4720_v16 = vld [vmem:[#allocation28 + $0x17e0] sm:$0xff] }
 0x6dd   : > { %5122 = vmatpush.msra.mxu1 %v4312_v19  ;;  %5238 = vmatpush.msra.mxu3 %v4145_v20  ;;  %v4073_v19 = vld [vmem:[#allocation28 + $0x3a8] sm:$0xff] }
 0x6de   : > { %5151 = vmatpush.msra.mxu2 %v4354_v24  ;;  %5182 = vmatpush.msrb.mxu0 %v4600_v21  ;;  %v4241_v20 = vld [vmem:[#allocation28 + $0x8e8] sm:$0xff]  ;;  %v4714_v24 = vld [vmem:[#allocation28 + $0x17b0] sm:$0xff] }
 0x6df   : > { %5123 = vmatpush.msra.mxu1 %v4306_v22  ;;  %5239 = vmatpush.msra.mxu3 %v4139_v3  ;;  %v3989_v21 = vld [vmem:[#allocation28 + $0x108] sm:$0xff]  ;;  %v4067_v22 = vld [vmem:[#allocation28 + $0x378] sm:$0xff] }
 0x6e0   : > { %5152 = vmatpush.msra.mxu2 %v4348_v26  ;;  %5183 = vmatpush.msrb.mxu0 %v4594_v0  ;;  %v4235_v3 = vld [vmem:[#allocation28 + $0x8b8] sm:$0xff]  ;;  %v4708_v26 = vld [vmem:[#allocation28 + $0x1780] sm:$0xff] }
 0x6e1   : > { %5124 = vmatpush.msra.mxu1 %v4300_v27  ;;  %5240 = vmatpush.msra.mxu3 %v4133_v1  ;;  %v3983_v0 = vld [vmem:[#allocation28 + $0xd8] sm:$0xff]  ;;  %v4061_v27 = vld [vmem:[#allocation28 + $0x348] sm:$0xff] }
 0x6e2   : > { %5153 = vmatpush.msra.mxu2 %v4342_v29  ;;  %5184 = vmatpush.msrb.mxu0 %v4588_v30  ;;  %v4229_v1 = vld [vmem:[#allocation28 + $0x888] sm:$0xff]  ;;  %v4702_v29 = vld [vmem:[#allocation28 + $0x1750] sm:$0xff] }
 0x6e3   : > { %5154 = vmatmul.f32.vlgmr.msra.gmra.mxu2 %v7793_v43  ;;  %5241 = vmatpush.msra.mxu3 %v4127_v33  ;;  %v3977_v30 = vld [vmem:[#allocation28 + $0xa8] sm:$0xff]  ;;  %v4223_v33 = vld [vmem:[#allocation28 + $0x858] sm:$0xff] }
 0x6e4   : > { %5218 = vmatpush.msrb.mxu2 %v4049_v32  ;;  %5125 = vmatpush.msra.mxu1 %v4294_v34  ;;  %v4835_v46 = vpop.f32.mrf.mxu2  ;;  %v4055_v32 = vld [vmem:[#allocation28 + $0x318] sm:$0xff]  ;;  %v4696_v34 = vld [vmem:[#allocation28 + $0x1720] sm:$0xff] }
 0x6e5   : > { %5185 = vmatpush.msrb.mxu0 %v4582_v36  ;;  %5242 = vmatpush.msra.mxu3 %v4121_v18  ;;  %v4836_v50 = vadd.f32 %v4835_v46, %v4816_v2  ;;  %v4529_v36 = vld [vmem:[#allocation28 + $0x11e8] sm:$0xff] }
 0x6e6   : > { %5219 = vmatpush.msrb.mxu2 %v4043_v37  ;;  %5126 = vmatpush.msra.mxu1 %v4288_v38  ;;  %v3971_v37 = vld [vmem:[#allocation28 + $0x78] sm:$0xff]  ;;  %v4217_v18 = vld [vmem:[#allocation28 + $0x828] sm:$0xff] }
 0x6e7   : > { %5186 = vmatpush.msrb.mxu0 %v4576_v39  ;;  %5243 = vmatpush.msra.mxu3 %v4115_v42  ;;  %v4523_v38 = vld [vmem:[#allocation28 + $0x11b8] sm:$0xff]  ;;  %v3965_v39 = vld [vmem:[#allocation28 + $0x48] sm:$0xff]  ;;  %v4684_v42 = vld [vmem:[#allocation28 + $0x16c0] sm:$0xff] }
 0x6e8   : > { %5220 = vmatpush.msrb.mxu2 %v4037_v40  ;;  %5127 = vmatpush.msra.mxu1 %v4282_v28  ;;  %v4211_v40 = vld [vmem:[#allocation28 + $0x7f8] sm:$0xff]  ;;  %v4517_v2 = vld [vmem:[#allocation28 + $0x1188] sm:$0xff] }
 0x6e9   : > { %5187 = vmatpush.msrb.mxu0 %v4570_v44  ;;  %5244 = vmatpush.msra.mxu3 %v4109_v49  ;;  %v3959_v28 = vld [vmem:[#allocation28 + $0x18] sm:$0xff]  ;;  %v4205_v44 = vld [vmem:[#allocation28 + $0x7c8] sm:$0xff]  ;;  %v4678_v49 = vld [vmem:[#allocation28 + $0x1690] sm:$0xff] }
 0x6ea   : > { %5221 = vmatpush.msrb.mxu2 %v4031_v47  ;;  %5128 = vmatpush.msra.mxu1 %v4276_v52  ;;  %v4433_v46 = vld [vmem:[#allocation28 + $0xee8] sm:$0xff]  ;;  %v4511_v47 = vld [vmem:[#allocation28 + $0x1158] sm:$0xff] }
 0x6eb   : > { %5188 = vmatpush.msrb.mxu0 %v4564_v53  ;;  %5245 = vmatpush.msra.mxu3 %v4103_v55  ;;  %v4427_v52 = vld [vmem:[#allocation28 + $0xeb8] sm:$0xff]  ;;  %v4505_v53 = vld [vmem:[#allocation28 + $0x1128] sm:$0xff] }
 0x6ec   : > { %5222 = vmatpush.msrb.mxu2 %v4025_v54  ;;  %5129 = vmatpush.msra.mxu1 %v4270_v7  ;;  %v4672_v54 = vld [vmem:[#allocation28 + $0x1660] sm:$0xff]  ;;  %v4193_v55 = vld [vmem:[#allocation28 + $0x768] sm:$0xff] }
 0x6ed   : > { %5189 = vmatpush.msrb.mxu0 %v4558_v56  ;;  %5246 = vmatpush.msra.mxu3 %v4097_v58  ;;  %v4855_v4 = vpop.f32.mrf.mxu3  ;;  %v4421_v7 = vld [vmem:[#allocation28 + $0xe88] sm:$0xff]  ;;  %v4499_v56 = vld [vmem:[#allocation28 + $0x10f8] sm:$0xff] }
 0x6ee   : > { %5223 = vmatpush.msrb.mxu2 %v4019_v45  ;;  %5130 = vmatpush.msra.mxu1 %v4264_v59  ;;  %v7822_v6 = vadd.f32 %v4855_v4, %v4836_v50  ;;  %v4199_v50 = vld [vmem:[#allocation28 + $0x798] sm:$0xff]  ;;  %v4666_v45 = vld [vmem:[#allocation28 + $0x1630] sm:$0xff] }
 0x6ef   : > { %5190 = vmatpush.msrb.mxu0 %v4552_v60  ;;  %5247 = vmatpush.msra.mxu3 %v4091_v61  ;;  %v4187_v58 = vld [vmem:[#allocation28 + $0x738] sm:$0xff]  ;;  %v4493_v60 = vld [vmem:[#allocation28 + $0x10c8] sm:$0xff] }
 0x6f0   : > { %5224 = vmatpush.msrb.mxu2 %v4013_v23  ;;  %5131 = vmatpush.msra.mxu1 %v4258_v62  ;;  %v4415_v59 = vld [vmem:[#allocation28 + $0xe58] sm:$0xff]  ;;  %v4660_v23 = vld [vmem:[#allocation28 + $0x1600] sm:$0xff]  ;;  %v4181_v61 = vld [vmem:[#allocation28 + $0x708] sm:$0xff] }
 0x6f1   : > { %5191 = vmatpush.msrb.mxu0 %v4546_v63  ;;  %5248 = vmatpush.msra.mxu3 %v4085_v5  ;;  %v4409_v63 = vld [vmem:[#allocation28 + $0xe28] sm:$0xff]  ;;  %v4487_v4 = vld [vmem:[#allocation28 + $0x1098] sm:$0xff]  ;;  %v4654_v5 = vld [vmem:[#allocation28 + $0x15d0] sm:$0xff] }
 0x6f2   : > { %5225 = vmatpush.msrb.mxu2 %v4007_v14  ;;  %5132 = vmatpush.msra.mxu1 %v4252_v8  ;;  %v4175_v8 = vld [vmem:[#allocation28 + $0x6d8] sm:$0xff] }
 0x6f3   : > { %5192 = vmatpush.msrb.mxu0 %v4540_v10  ;;  %5249 = vmatpush.msra.mxu3 %v4079_v11  ;;  %v4403_v10 = vld [vmem:[#allocation28 + $0xdf8] sm:$0xff]  ;;  %v4648_v11 = vld [vmem:[#allocation28 + $0x15a0] sm:$0xff] }
 0x6f4   : > { %5226 = vmatpush.msrb.mxu2 %v4001_v57  ;;  %5133 = vmatpush.msra.mxu1 %v4246_v12  ;;  %v4481_v57 = vld [vmem:[#allocation28 + $0x1068] sm:$0xff] }
 0x6f5   : > { %5193 = vmatpush.msrb.mxu0 %v4534_v35  ;;  %5134 = vmatmul.f32.vlgmr.msra.gmra.mxu1 %v7784_v41  ;;  %v4169_v12 = vld [vmem:[#allocation28 + $0x6a8] sm:$0xff] }
 0x6f6   : > { %5194 = vmatmul.f32.vlgmr.msrb.gmra.mxu0 %v7802_v25  ;;  %5198 = vmatpush.msrb.mxu1 %v4720_v16  ;;  %v4397_v35 = vld [vmem:[#allocation28 + $0xdc8] sm:$0xff]  ;;  %v4475_v16 = vld [vmem:[#allocation28 + $0x1038] sm:$0xff] }
 0x6f7   : > { %5227 = vmatpush.msrb.mxu2 %v3995_v17  ;;  %5250 = vmatpush.msra.mxu3 %v4073_v19  ;;  %v4163_v17 = vld [vmem:[#allocation28 + $0x678] sm:$0xff] }
 0x6f8   : > { %5258 = vmatpush.msra.mxu0 %v4241_v20  ;;  %5199 = vmatpush.msrb.mxu1 %v4714_v24  ;;  %v4391_v19 = vld [vmem:[#allocation28 + $0xd98] sm:$0xff]  ;;  %v4469_v20 = vld [vmem:[#allocation28 + $0x1008] sm:$0xff]  ;;  %v4636_v24 = vld [vmem:[#allocation28 + $0x1540] sm:$0xff] }
 0x6f9   : > { %5228 = vmatpush.msrb.mxu2 %v3989_v21  ;;  %5251 = vmatpush.msra.mxu3 %v4067_v22  ;;  %v4157_v21 = vld [vmem:[#allocation28 + $0x648] sm:$0xff] }
 0x6fa   : > { %5259 = vmatpush.msra.mxu0 %v4235_v3  ;;  %5200 = vmatpush.msrb.mxu1 %v4708_v26  ;;  %v4385_v22 = vld [vmem:[#allocation28 + $0xd68] sm:$0xff]  ;;  %v4463_v3 = vld [vmem:[#allocation28 + $0xfd8] sm:$0xff]  ;;  %v4630_v26 = vld [vmem:[#allocation28 + $0x1510] sm:$0xff] }
 0x6fb   : > { %5229 = vmatpush.msrb.mxu2 %v3983_v0  ;;  %5252 = vmatpush.msra.mxu3 %v4061_v27  ;;  %v4151_v0 = vld [vmem:[#allocation28 + $0x618] sm:$0xff]  ;;  %v4337_v27 = vld [vmem:[#allocation28 + $0xbe8] sm:$0xff] }
 0x6fc   : > { %5260 = vmatpush.msra.mxu0 %v4229_v1  ;;  %5201 = vmatpush.msrb.mxu1 %v4702_v29  ;;  %v4379_v1 = vld [vmem:[#allocation28 + $0xd38] sm:$0xff]  ;;  %v4457_v29 = vld [vmem:[#allocation28 + $0xfa8] sm:$0xff] }
 0x6fd   : > { %5230 = vmatpush.msrb.mxu2 %v3977_v30  ;;  %5253 = vmatpush.msra.mxu3 %v4055_v32  ;;  %v4625_v30 = vld [vmem:[#allocation28 + $0x14e8] sm:$0xff]  ;;  %v4331_v32 = vld [vmem:[#allocation28 + $0xbb8] sm:$0xff] }
 0x6fe   : > { %5261 = vmatpush.msra.mxu0 %v4223_v33  ;;  %5254 = vmatmul.f32.vlgmr.msra.gmra.mxu3 %v7774_v15  ;;  %v4373_v33 = vld [vmem:[#allocation28 + $0xd08] sm:$0xff] }
 0x6ff   : > { %5202 = vmatpush.msrb.mxu1 %v4696_v34  ;;  %5318 = vmatpush.msrb.mxu3 %v4529_v36  ;;  %v4451_v34 = vld [vmem:[#allocation28 + $0xf78] sm:$0xff] }
 0x700   : > { %5231 = vmatpush.msrb.mxu2 %v3971_v37  ;;  %5262 = vmatpush.msra.mxu0 %v4217_v18  ;;  %v4619_v36 = vld [vmem:[#allocation28 + $0x14b8] sm:$0xff]  ;;  %v4325_v37 = vld [vmem:[#allocation28 + $0xb88] sm:$0xff] }
 0x701   : > { %5203 = vmatpush.msrb.mxu1 %v4690_v31  ;;  %5319 = vmatpush.msrb.mxu3 %v4523_v38  ;;  %v4367_v18 = vld [vmem:[#allocation28 + $0xcd8] sm:$0xff]  ;;  %v4445_v31 = vld [vmem:[#allocation28 + $0xf48] sm:$0xff] }
 0x702   : > { %5232 = vmatpush.msrb.mxu2 %v3965_v39  ;;  %5263 = vmatpush.msra.mxu0 %v4211_v40  ;;  %v4613_v38 = vld [vmem:[#allocation28 + $0x1488] sm:$0xff]  ;;  %v4319_v39 = vld [vmem:[#allocation28 + $0xb58] sm:$0xff] }
 0x703   : > { %5204 = vmatpush.msrb.mxu1 %v4684_v42  ;;  %5320 = vmatpush.msrb.mxu3 %v4517_v2  ;;  %v4361_v40 = vld [vmem:[#allocation28 + $0xca8] sm:$0xff]  ;;  %v4439_v42 = vld [vmem:[#allocation28 + $0xf18] sm:$0xff] }
 0x704   : > { %5233 = vmatpush.msrb.mxu2 %v3959_v28  ;;  %5264 = vmatpush.msra.mxu0 %v4205_v44  ;;  %v4607_v2 = vld [vmem:[#allocation28 + $0x1458] sm:$0xff]  ;;  %v4313_v28 = vld [vmem:[#allocation28 + $0xb28] sm:$0xff]  ;;  %v4146_v44 = vld [vmem:[#allocation28 + $0x5f0] sm:$0xff] }
 0x705   : > { %5234 = vmatmul.f32.vlgmr.msrb.gmra.mxu2 %v7780_v13  ;;  %5321 = vmatpush.msrb.mxu3 %v4511_v47  ;;  %v4601_v47 = vld [vmem:[#allocation28 + $0x1428] sm:$0xff] }
 0x706   : > { %5298 = vmatpush.msra.mxu2 %v4433_v46  ;;  %5205 = vmatpush.msrb.mxu1 %v4678_v49  ;;  %v4355_v46 = vld [vmem:[#allocation28 + $0xc78] sm:$0xff] }
 0x707   : > { %5265 = vmatpush.msra.mxu0 %v4199_v50  ;;  %5322 = vmatpush.msrb.mxu3 %v4505_v53  ;;  %v4307_v49 = vld [vmem:[#allocation28 + $0xaf8] sm:$0xff]  ;;  %v4140_v50 = vld [vmem:[#allocation28 + $0x5c0] sm:$0xff] }
 0x708   : > { %5299 = vmatpush.msra.mxu2 %v4427_v52  ;;  %5206 = vmatpush.msrb.mxu1 %v4672_v54  ;;  %v4349_v52 = vld [vmem:[#allocation28 + $0xc48] sm:$0xff]  ;;  %v4595_v53 = vld [vmem:[#allocation28 + $0x13f8] sm:$0xff] }
 0x709   : > { %5266 = vmatpush.msra.mxu0 %v4193_v55  ;;  %5323 = vmatpush.msrb.mxu3 %v4499_v56  ;;  %v4875_v62 = vpop.f32.mrf.mxu0  ;;  %v4301_v54 = vld [vmem:[#allocation28 + $0xac8] sm:$0xff]  ;;  %v4134_v55 = vld [vmem:[#allocation28 + $0x590] sm:$0xff] }
 0x70a   : > { %5300 = vmatpush.msra.mxu2 %v4421_v7  ;;  %5207 = vmatpush.msrb.mxu1 %v4666_v45  ;;  %v7829_v14 = vadd.f32 %v4875_v62, %v7822_v6  ;;  %v4642_v6 = vld [vmem:[#allocation28 + $0x1570] sm:$0xff]  ;;  %v4343_v7 = vld [vmem:[#allocation28 + $0xc18] sm:$0xff]  ;;  %v4589_v56 = vld [vmem:[#allocation28 + $0x13c8] sm:$0xff] }
 0x70b   : > { %5267 = vmatpush.msra.mxu0 %v4187_v58  ;;  %5324 = vmatpush.msrb.mxu3 %v4493_v60  ;;  %v4050_v45 = vld [vmem:[#allocation28 + $0x2f0] sm:$0xff]  ;;  %v4128_v58 = vld [vmem:[#allocation28 + $0x560] sm:$0xff]  ;;  %v4583_v60 = vld [vmem:[#allocation28 + $0x1398] sm:$0xff] }
 0x70c   : > { %5301 = vmatpush.msra.mxu2 %v4415_v59  ;;  %5208 = vmatpush.msrb.mxu1 %v4660_v23  ;;  %v4295_v59 = vld [vmem:[#allocation28 + $0xa98] sm:$0xff]  ;;  %v4044_v23 = vld [vmem:[#allocation28 + $0x2c0] sm:$0xff]  ;;  %v4289_v62 = vld [vmem:[#allocation28 + $0xa68] sm:$0xff] }
 0x70d   : > { %5268 = vmatpush.msra.mxu0 %v4181_v61  ;;  %5325 = vmatpush.msrb.mxu3 %v4487_v4  ;;  %v4122_v61 = vld [vmem:[#allocation28 + $0x530] sm:$0xff] }
 0x70e   : > { %5302 = vmatpush.msra.mxu2 %v4409_v63  ;;  %5209 = vmatpush.msrb.mxu1 %v4654_v5  ;;  %v4577_v63 = vld [vmem:[#allocation28 + $0x1368] sm:$0xff]  ;;  %v4038_v4 = vld [vmem:[#allocation28 + $0x290] sm:$0xff]  ;;  %v4116_v5 = vld [vmem:[#allocation28 + $0x500] sm:$0xff] }
 0x70f   : > { %5269 = vmatpush.msra.mxu0 %v4175_v8  ;;  %5326 = vmatpush.msrb.mxu3 %v4481_v57  ;;  %v4283_v8 = vld [vmem:[#allocation28 + $0xa38] sm:$0xff]  ;;  %v4032_v57 = vld [vmem:[#allocation28 + $0x260] sm:$0xff] }
 0x710   : > { %5303 = vmatpush.msra.mxu2 %v4403_v10  ;;  %5210 = vmatpush.msrb.mxu1 %v4648_v11  ;;  %v4571_v10 = vld [vmem:[#allocation28 + $0x1338] sm:$0xff]  ;;  %v4110_v11 = vld [vmem:[#allocation28 + $0x4d0] sm:$0xff] }
 0x711   : > { %5270 = vmatpush.msra.mxu0 %v4169_v12  ;;  %5327 = vmatpush.msrb.mxu3 %v4475_v16  ;;  %v4277_v12 = vld [vmem:[#allocation28 + $0xa08] sm:$0xff] }
 0x712   : > { %5304 = vmatpush.msra.mxu2 %v4397_v35  ;;  %5211 = vmatpush.msrb.mxu1 %v4642_v6  ;;  %v4565_v35 = vld [vmem:[#allocation28 + $0x1308] sm:$0xff]  ;;  %v4026_v6 = vld [vmem:[#allocation28 + $0x230] sm:$0xff] }
 0x713   : > { %5271 = vmatpush.msra.mxu0 %v4163_v17  ;;  %5328 = vmatpush.msrb.mxu3 %v4469_v20  ;;  %v4104_v17 = vld [vmem:[#allocation28 + $0x4a0] sm:$0xff]  ;;  %v4271_v20 = vld [vmem:[#allocation28 + $0x9d8] sm:$0xff] }
 0x714   : > { %5305 = vmatpush.msra.mxu2 %v4391_v19  ;;  %5212 = vmatpush.msrb.mxu1 %v4636_v24  ;;  %v4559_v24 = vld [vmem:[#allocation28 + $0x12d8] sm:$0xff] }
 0x715   : > { %5272 = vmatpush.msra.mxu0 %v4157_v21  ;;  %5329 = vmatpush.msrb.mxu3 %v4463_v3  ;;  %v4020_v21 = vld [vmem:[#allocation28 + $0x200] sm:$0xff]  ;;  %v4265_v3 = vld [vmem:[#allocation28 + $0x9a8] sm:$0xff] }
 0x716   : > { %5306 = vmatpush.msra.mxu2 %v4385_v22  ;;  %5213 = vmatpush.msrb.mxu1 %v4630_v26  ;;  %v4098_v22 = vld [vmem:[#allocation28 + $0x470] sm:$0xff]  ;;  %v4553_v26 = vld [vmem:[#allocation28 + $0x12a8] sm:$0xff] }
 0x717   : > { %5273 = vmatpush.msra.mxu0 %v4151_v0  ;;  %5214 = vmatmul.f32.vlgmr.msrb.gmra.mxu1 %v7808_v48  ;;  %v4014_v0 = vld [vmem:[#allocation28 + $0x1d0] sm:$0xff] }
 0x718   : > { %5274 = vmatmul.f32.vlgmr.msra.gmra.mxu0 %v7788_v51  ;;  %5278 = vmatpush.msra.mxu1 %v4337_v27  ;;  %v4092_v27 = vld [vmem:[#allocation28 + $0x440] sm:$0xff] }
 0x719   : > { %5307 = vmatpush.msra.mxu2 %v4379_v1  ;;  %5330 = vmatpush.msrb.mxu3 %v4457_v29  ;;  %v4547_v1 = vld [vmem:[#allocation28 + $0x1278] sm:$0xff]  ;;  %v4008_v29 = vld [vmem:[#allocation28 + $0x1a0] sm:$0xff] }
 0x71a   : > { %5338 = vmatpush.msrb.mxu0 %v4625_v30  ;;  %5279 = vmatpush.msra.mxu1 %v4331_v32  ;;  %v4086_v30 = vld [vmem:[#allocation28 + $0x410] sm:$0xff]  ;;  %v4253_v32 = vld [vmem:[#allocation28 + $0x948] sm:$0xff] }
 0x71b   : > { %5308 = vmatpush.msra.mxu2 %v4373_v33  ;;  %5331 = vmatpush.msrb.mxu3 %v4451_v34  ;;  %v4541_v33 = vld [vmem:[#allocation28 + $0x1248] sm:$0xff]  ;;  %v4002_v34 = vld [vmem:[#allocation28 + $0x170] sm:$0xff] }
 0x71c   : > { %5339 = vmatpush.msrb.mxu0 %v4619_v36  ;;  %5280 = vmatpush.msra.mxu1 %v4325_v37  ;;  %v4080_v36 = vld [vmem:[#allocation28 + $0x3e0] sm:$0xff]  ;;  %v4247_v37 = vld [vmem:[#allocation28 + $0x918] sm:$0xff] }
 0x71d   : > { %5309 = vmatpush.msra.mxu2 %v4367_v18  ;;  %5332 = vmatpush.msrb.mxu3 %v4445_v31  ;;  %v4535_v18 = vld [vmem:[#allocation28 + $0x1218] sm:$0xff]  ;;  %v4721_v31 = vld [vmem:[#allocation28 + $0x17e8] sm:$0xff] }
 0x71e   : > { %5340 = vmatpush.msrb.mxu0 %v4613_v38  ;;  %5281 = vmatpush.msra.mxu1 %v4319_v39  ;;  %v3996_v38 = vld [vmem:[#allocation28 + $0x140] sm:$0xff]  ;;  %v4074_v39 = vld [vmem:[#allocation28 + $0x3b0] sm:$0xff] }
 0x71f   : > { %5310 = vmatpush.msra.mxu2 %v4361_v40  ;;  %5333 = vmatpush.msrb.mxu3 %v4439_v42  ;;  %v4242_v40 = vld [vmem:[#allocation28 + $0x8f0] sm:$0xff]  ;;  %v4715_v42 = vld [vmem:[#allocation28 + $0x17b8] sm:$0xff] }
 0x720   : > { %5341 = vmatpush.msrb.mxu0 %v4607_v2  ;;  %5334 = vmatmul.f32.vlgmr.msrb.gmra.mxu3 %v7796_v9  ;;  %v3990_v2 = vld [vmem:[#allocation28 + $0x110] sm:$0xff] }
 0x721   : > { %5282 = vmatpush.msra.mxu1 %v4313_v28  ;;  %5398 = vmatpush.msra.mxu3 %v4146_v44  ;;  %v4068_v28 = vld [vmem:[#allocation28 + $0x380] sm:$0xff] }
 0x722   : > { %5311 = vmatpush.msra.mxu2 %v4355_v46  ;;  %5342 = vmatpush.msrb.mxu0 %v4601_v47  ;;  %v4236_v44 = vld [vmem:[#allocation28 + $0x8c0] sm:$0xff]  ;;  %v4709_v46 = vld [vmem:[#allocation28 + $0x1788] sm:$0xff] }
 0x723   : > { %5283 = vmatpush.msra.mxu1 %v4307_v49  ;;  %5399 = vmatpush.msra.mxu3 %v4140_v50  ;;  %v3984_v47 = vld [vmem:[#allocation28 + $0xe0] sm:$0xff]  ;;  %v4062_v49 = vld [vmem:[#allocation28 + $0x350] sm:$0xff] }
 0x724   : > { %5312 = vmatpush.msra.mxu2 %v4349_v52  ;;  %5343 = vmatpush.msrb.mxu0 %v4595_v53  ;;  %v4230_v50 = vld [vmem:[#allocation28 + $0x890] sm:$0xff]  ;;  %v4703_v52 = vld [vmem:[#allocation28 + $0x1758] sm:$0xff] }
 0x725   : > { %5284 = vmatpush.msra.mxu1 %v4301_v54  ;;  %5400 = vmatpush.msra.mxu3 %v4134_v55  ;;  %v3978_v53 = vld [vmem:[#allocation28 + $0xb0] sm:$0xff]  ;;  %v4056_v54 = vld [vmem:[#allocation28 + $0x320] sm:$0xff] }
 0x726   : > { %5313 = vmatpush.msra.mxu2 %v4343_v7  ;;  %5344 = vmatpush.msrb.mxu0 %v4589_v56  ;;  %v4224_v55 = vld [vmem:[#allocation28 + $0x860] sm:$0xff]  ;;  %v4697_v7 = vld [vmem:[#allocation28 + $0x1728] sm:$0xff]  ;;  %v4530_v56 = vld [vmem:[#allocation28 + $0x11f0] sm:$0xff] }
 0x727   : > { %5314 = vmatmul.f32.vlgmr.msra.gmra.mxu2 %v7793_v43  ;;  %5401 = vmatpush.msra.mxu3 %v4128_v58  ;;  %v4218_v58 = vld [vmem:[#allocation28 + $0x830] sm:$0xff] }
 0x728   : > { %5378 = vmatpush.msrb.mxu2 %v4050_v45  ;;  %5285 = vmatpush.msra.mxu1 %v4295_v59  ;;  %v3972_v45 = vld [vmem:[#allocation28 + $0x80] sm:$0xff]  ;;  %v4691_v59 = vld [vmem:[#allocation28 + $0x16f8] sm:$0xff] }
 0x729   : > { %5345 = vmatpush.msrb.mxu0 %v4583_v60  ;;  %5402 = vmatpush.msra.mxu3 %v4122_v61  ;;  %v4524_v60 = vld [vmem:[#allocation28 + $0x11c0] sm:$0xff] }
 0x72a   : > { %5379 = vmatpush.msrb.mxu2 %v4044_v23  ;;  %5286 = vmatpush.msra.mxu1 %v4289_v62  ;;  %v4895_v16 = vpop.f32.mrf.mxu1  ;;  %v3966_v23 = vld [vmem:[#allocation28 + $0x50] sm:$0xff]  ;;  %v4212_v61 = vld [vmem:[#allocation28 + $0x800] sm:$0xff]  ;;  %v4685_v62 = vld [vmem:[#allocation28 + $0x16c8] sm:$0xff] }
 0x72b   : > { %5346 = vmatpush.msrb.mxu0 %v4577_v63  ;;  %5403 = vmatpush.msra.mxu3 %v4116_v5  ;;  %v7836_v19 = vadd.f32 %v4895_v16, %v7829_v14  ;;  %v4259_v14 = vld [vmem:[#allocation28 + $0x978] sm:$0xff]  ;;  %v4518_v63 = vld [vmem:[#allocation28 + $0x1190] sm:$0xff]  ;;  %v4673_v16 = vld [vmem:[#allocation28 + $0x1668] sm:$0xff] }
 0x72c   : > { %5380 = vmatpush.msrb.mxu2 %v4038_v4  ;;  %5287 = vmatpush.msra.mxu1 %v4283_v8  ;;  %v3960_v4 = vld [vmem:[#allocation28 + $0x20] sm:$0xff]  ;;  %v4206_v5 = vld [vmem:[#allocation28 + $0x7d0] sm:$0xff] }
 0x72d   : > { %5347 = vmatpush.msrb.mxu0 %v4571_v10  ;;  %5404 = vmatpush.msra.mxu3 %v4110_v11  ;;  %v4434_v8 = vld [vmem:[#allocation28 + $0xef0] sm:$0xff]  ;;  %v4512_v10 = vld [vmem:[#allocation28 + $0x1160] sm:$0xff] }
 0x72e   : > { %5381 = vmatpush.msrb.mxu2 %v4032_v57  ;;  %5288 = vmatpush.msra.mxu1 %v4277_v12  ;;  %v4679_v57 = vld [vmem:[#allocation28 + $0x1698] sm:$0xff]  ;;  %v4200_v11 = vld [vmem:[#allocation28 + $0x7a0] sm:$0xff] }
 0x72f   : > { %5348 = vmatpush.msrb.mxu0 %v4565_v35  ;;  %5405 = vmatpush.msra.mxu3 %v4104_v17  ;;  %v4428_v12 = vld [vmem:[#allocation28 + $0xec0] sm:$0xff]  ;;  %v4506_v35 = vld [vmem:[#allocation28 + $0x1130] sm:$0xff] }
 0x730   : > { %5382 = vmatpush.msrb.mxu2 %v4026_v6  ;;  %5289 = vmatpush.msra.mxu1 %v4271_v20  ;;  %v4194_v6 = vld [vmem:[#allocation28 + $0x770] sm:$0xff]  ;;  %v4500_v20 = vld [vmem:[#allocation28 + $0x1100] sm:$0xff] }
 0x731   : > { %5349 = vmatpush.msrb.mxu0 %v4559_v24  ;;  %5406 = vmatpush.msra.mxu3 %v4098_v22  ;;  %v4422_v17 = vld [vmem:[#allocation28 + $0xe90] sm:$0xff]  ;;  %v4667_v24 = vld [vmem:[#allocation28 + $0x1638] sm:$0xff]  ;;  %v4416_v22 = vld [vmem:[#allocation28 + $0xe60] sm:$0xff] }
 0x732   : > { %5383 = vmatpush.msrb.mxu2 %v4020_v21  ;;  %5290 = vmatpush.msra.mxu1 %v4265_v3  ;;  %v4188_v21 = vld [vmem:[#allocation28 + $0x740] sm:$0xff]  ;;  %v4494_v3 = vld [vmem:[#allocation28 + $0x10d0] sm:$0xff] }
 0x733   : > { %5350 = vmatpush.msrb.mxu0 %v4553_v26  ;;  %5407 = vmatpush.msra.mxu3 %v4092_v27  ;;  %v4661_v26 = vld [vmem:[#allocation28 + $0x1608] sm:$0xff]  ;;  %v4410_v27 = vld [vmem:[#allocation28 + $0xe30] sm:$0xff] }
 0x734   : > { %5384 = vmatpush.msrb.mxu2 %v4014_v0  ;;  %5291 = vmatpush.msra.mxu1 %v4259_v14  ;;  %v4182_v0 = vld [vmem:[#allocation28 + $0x710] sm:$0xff]  ;;  %v4488_v14 = vld [vmem:[#allocation28 + $0x10a0] sm:$0xff] }
 0x735   : > { %5351 = vmatpush.msrb.mxu0 %v4547_v1  ;;  %5408 = vmatpush.msra.mxu3 %v4086_v30  ;;  %v4655_v1 = vld [vmem:[#allocation28 + $0x15d8] sm:$0xff]  ;;  %v4404_v30 = vld [vmem:[#allocation28 + $0xe00] sm:$0xff] }
 0x736   : > { %5385 = vmatpush.msrb.mxu2 %v4008_v29  ;;  %5292 = vmatpush.msra.mxu1 %v4253_v32  ;;  %v4176_v29 = vld [vmem:[#allocation28 + $0x6e0] sm:$0xff]  ;;  %v4482_v32 = vld [vmem:[#allocation28 + $0x1070] sm:$0xff] }
 0x737   : > { %5352 = vmatpush.msrb.mxu0 %v4541_v33  ;;  %5409 = vmatpush.msra.mxu3 %v4080_v36  ;;  %v4649_v33 = vld [vmem:[#allocation28 + $0x15a8] sm:$0xff]  ;;  %v4398_v36 = vld [vmem:[#allocation28 + $0xdd0] sm:$0xff] }
 0x738   : > { %5386 = vmatpush.msrb.mxu2 %v4002_v34  ;;  %5293 = vmatpush.msra.mxu1 %v4247_v37  ;;  %v4170_v34 = vld [vmem:[#allocation28 + $0x6b0] sm:$0xff]  ;;  %v4476_v37 = vld [vmem:[#allocation28 + $0x1040] sm:$0xff] }
 0x739   : > { %5353 = vmatpush.msrb.mxu0 %v4535_v18  ;;  %5294 = vmatmul.f32.vlgmr.msra.gmra.mxu1 %v7784_v41  ;;  %v4643_v18 = vld [vmem:[#allocation28 + $0x1578] sm:$0xff] }
 0x73a   : > { %5354 = vmatmul.f32.vlgmr.msrb.gmra.mxu0 %v7802_v25  ;;  %5358 = vmatpush.msrb.mxu1 %v4721_v31  ;;  %v4164_v31 = vld [vmem:[#allocation28 + $0x680] sm:$0xff] }
 0x73b   : > { %5387 = vmatpush.msrb.mxu2 %v3996_v38  ;;  %5410 = vmatpush.msra.mxu3 %v4074_v39  ;;  %v4392_v38 = vld [vmem:[#allocation28 + $0xda0] sm:$0xff]  ;;  %v4470_v39 = vld [vmem:[#allocation28 + $0x1010] sm:$0xff] }
 0x73c   : > { %5418 = vmatpush.msra.mxu0 %v4242_v40  ;;  %5359 = vmatpush.msrb.mxu1 %v4715_v42  ;;  %v4637_v40 = vld [vmem:[#allocation28 + $0x1548] sm:$0xff]  ;;  %v4158_v42 = vld [vmem:[#allocation28 + $0x650] sm:$0xff] }
 0x73d   : > { %5388 = vmatpush.msrb.mxu2 %v3990_v2  ;;  %5411 = vmatpush.msra.mxu3 %v4068_v28  ;;  %v4386_v2 = vld [vmem:[#allocation28 + $0xd70] sm:$0xff]  ;;  %v4464_v28 = vld [vmem:[#allocation28 + $0xfe0] sm:$0xff] }
 0x73e   : > { %5419 = vmatpush.msra.mxu0 %v4236_v44  ;;  %5360 = vmatpush.msrb.mxu1 %v4709_v46  ;;  %v4631_v44 = vld [vmem:[#allocation28 + $0x1518] sm:$0xff]  ;;  %v4152_v46 = vld [vmem:[#allocation28 + $0x620] sm:$0xff] }
 0x73f   : > { %5389 = vmatpush.msrb.mxu2 %v3984_v47  ;;  %5412 = vmatpush.msra.mxu3 %v4062_v49  ;;  %v4338_v47 = vld [vmem:[#allocation28 + $0xbf0] sm:$0xff]  ;;  %v4380_v49 = vld [vmem:[#allocation28 + $0xd40] sm:$0xff] }
 0x740   : > { %5420 = vmatpush.msra.mxu0 %v4230_v50  ;;  %5361 = vmatpush.msrb.mxu1 %v4703_v52  ;;  %v4458_v50 = vld [vmem:[#allocation28 + $0xfb0] sm:$0xff] }
 0x741   : > { %5390 = vmatpush.msrb.mxu2 %v3978_v53  ;;  %5413 = vmatpush.msra.mxu3 %v4056_v54  ;;  %v4626_v52 = vld [vmem:[#allocation28 + $0x14f0] sm:$0xff]  ;;  %v4332_v53 = vld [vmem:[#allocation28 + $0xbc0] sm:$0xff] }
 0x742   : > { %5421 = vmatpush.msra.mxu0 %v4224_v55  ;;  %5414 = vmatmul.f32.vlgmr.msra.gmra.mxu3 %v7774_v15  ;;  %v4374_v54 = vld [vmem:[#allocation28 + $0xd10] sm:$0xff]  ;;  %v4452_v55 = vld [vmem:[#allocation28 + $0xf80] sm:$0xff] }
 0x743   : > { %5362 = vmatpush.msrb.mxu1 %v4697_v7  ;;  %5478 = vmatpush.msrb.mxu3 %v4530_v56  ;;  %v4620_v7 = vld [vmem:[#allocation28 + $0x14c0] sm:$0xff]  ;;  %v4326_v56 = vld [vmem:[#allocation28 + $0xb90] sm:$0xff] }
 0x744   : > { %5391 = vmatpush.msrb.mxu2 %v3972_v45  ;;  %5422 = vmatpush.msra.mxu0 %v4218_v58  ;;  %v4368_v45 = vld [vmem:[#allocation28 + $0xce0] sm:$0xff]  ;;  %v4446_v58 = vld [vmem:[#allocation28 + $0xf50] sm:$0xff] }
 0x745   : > { %5363 = vmatpush.msrb.mxu1 %v4691_v59  ;;  %5479 = vmatpush.msrb.mxu3 %v4524_v60  ;;  %v4614_v59 = vld [vmem:[#allocation28 + $0x1490] sm:$0xff]  ;;  %v4320_v60 = vld [vmem:[#allocation28 + $0xb60] sm:$0xff] }
 0x746   : > { %5392 = vmatpush.msrb.mxu2 %v3966_v23  ;;  %5423 = vmatpush.msra.mxu0 %v4212_v61  ;;  %v4362_v23 = vld [vmem:[#allocation28 + $0xcb0] sm:$0xff]  ;;  %v4440_v61 = vld [vmem:[#allocation28 + $0xf20] sm:$0xff] }
 0x747   : > { %5364 = vmatpush.msrb.mxu1 %v4685_v62  ;;  %5480 = vmatpush.msrb.mxu3 %v4518_v63  ;;  %v4608_v62 = vld [vmem:[#allocation28 + $0x1460] sm:$0xff]  ;;  %v4314_v63 = vld [vmem:[#allocation28 + $0xb30] sm:$0xff] }
 0x748   : > { %5393 = vmatpush.msrb.mxu2 %v3960_v4  ;;  %5424 = vmatpush.msra.mxu0 %v4206_v5  ;;  %v4147_v4 = vld [vmem:[#allocation28 + $0x5f8] sm:$0xff]  ;;  %v4356_v5 = vld [vmem:[#allocation28 + $0xc80] sm:$0xff] }
 0x749   : > { %5394 = vmatmul.f32.vlgmr.msrb.gmra.mxu2 %v7780_v13  ;;  %5481 = vmatpush.msrb.mxu3 %v4512_v10  ;;  %v4308_v10 = vld [vmem:[#allocation28 + $0xb00] sm:$0xff] }
 0x74a   : > { %5458 = vmatpush.msra.mxu2 %v4434_v8  ;;  %5365 = vmatpush.msrb.mxu1 %v4679_v57  ;;  %v4602_v8 = vld [vmem:[#allocation28 + $0x1430] sm:$0xff]  ;;  %v4141_v57 = vld [vmem:[#allocation28 + $0x5c8] sm:$0xff] }
 0x74b   : > { %5425 = vmatpush.msra.mxu0 %v4200_v11  ;;  %5482 = vmatpush.msrb.mxu3 %v4506_v35  ;;  %v4350_v11 = vld [vmem:[#allocation28 + $0xc50] sm:$0xff] }
 0x74c   : > { %5459 = vmatpush.msra.mxu2 %v4428_v12  ;;  %5366 = vmatpush.msrb.mxu1 %v4673_v16  ;;  %v4596_v12 = vld [vmem:[#allocation28 + $0x1400] sm:$0xff]  ;;  %v4302_v35 = vld [vmem:[#allocation28 + $0xad0] sm:$0xff]  ;;  %v4135_v16 = vld [vmem:[#allocation28 + $0x598] sm:$0xff] }
 0x74d   : > { %5426 = vmatpush.msra.mxu0 %v4194_v6  ;;  %5483 = vmatpush.msrb.mxu3 %v4500_v20  ;;  %v4344_v6 = vld [vmem:[#allocation28 + $0xc20] sm:$0xff]  ;;  %v4051_v20 = vld [vmem:[#allocation28 + $0x2f8] sm:$0xff] }
 0x74e   : > { %5460 = vmatpush.msra.mxu2 %v4422_v17  ;;  %5367 = vmatpush.msrb.mxu1 %v4667_v24  ;;  %v4590_v17 = vld [vmem:[#allocation28 + $0x13d0] sm:$0xff]  ;;  %v4129_v24 = vld [vmem:[#allocation28 + $0x568] sm:$0xff] }
 0x74f   : > { %5427 = vmatpush.msra.mxu0 %v4188_v21  ;;  %5484 = vmatpush.msrb.mxu3 %v4494_v3  ;;  %v4296_v21 = vld [vmem:[#allocation28 + $0xaa0] sm:$0xff]  ;;  %v4045_v3 = vld [vmem:[#allocation28 + $0x2c8] sm:$0xff] }
 0x750   : > { %5461 = vmatpush.msra.mxu2 %v4416_v22  ;;  %5368 = vmatpush.msrb.mxu1 %v4661_v26  ;;  %v4584_v22 = vld [vmem:[#allocation28 + $0x13a0] sm:$0xff]  ;;  %v4123_v26 = vld [vmem:[#allocation28 + $0x538] sm:$0xff] }
 0x751   : > { %5428 = vmatpush.msra.mxu0 %v4182_v0  ;;  %5485 = vmatpush.msrb.mxu3 %v4488_v14  ;;  %v4290_v0 = vld [vmem:[#allocation28 + $0xa70] sm:$0xff]  ;;  %v4039_v14 = vld [vmem:[#allocation28 + $0x298] sm:$0xff] }
 0x752   : > { %5462 = vmatpush.msra.mxu2 %v4410_v27  ;;  %5369 = vmatpush.msrb.mxu1 %v4655_v1  ;;  %v4578_v27 = vld [vmem:[#allocation28 + $0x1370] sm:$0xff]  ;;  %v4117_v1 = vld [vmem:[#allocation28 + $0x508] sm:$0xff] }
 0x753   : > { %5429 = vmatpush.msra.mxu0 %v4176_v29  ;;  %5486 = vmatpush.msrb.mxu3 %v4482_v32  ;;  %v4284_v29 = vld [vmem:[#allocation28 + $0xa40] sm:$0xff]  ;;  %v4033_v32 = vld [vmem:[#allocation28 + $0x268] sm:$0xff] }
 0x754   : > { %5463 = vmatpush.msra.mxu2 %v4404_v30  ;;  %5370 = vmatpush.msrb.mxu1 %v4649_v33  ;;  %v4572_v30 = vld [vmem:[#allocation28 + $0x1340] sm:$0xff]  ;;  %v4111_v33 = vld [vmem:[#allocation28 + $0x4d8] sm:$0xff] }
 0x755   : > { %5430 = vmatpush.msra.mxu0 %v4170_v34  ;;  %5487 = vmatpush.msrb.mxu3 %v4476_v37  ;;  %v4278_v34 = vld [vmem:[#allocation28 + $0xa10] sm:$0xff]  ;;  %v4027_v37 = vld [vmem:[#allocation28 + $0x238] sm:$0xff] }
 0x756   : > { %5464 = vmatpush.msra.mxu2 %v4398_v36  ;;  %5371 = vmatpush.msrb.mxu1 %v4643_v18  ;;  %v4566_v36 = vld [vmem:[#allocation28 + $0x1310] sm:$0xff]  ;;  %v4105_v18 = vld [vmem:[#allocation28 + $0x4a8] sm:$0xff] }
 0x757   : > { %5431 = vmatpush.msra.mxu0 %v4164_v31  ;;  %5488 = vmatpush.msrb.mxu3 %v4470_v39  ;;  %v4272_v31 = vld [vmem:[#allocation28 + $0x9e0] sm:$0xff]  ;;  %v4021_v39 = vld [vmem:[#allocation28 + $0x208] sm:$0xff] }
 0x758   : > { %5465 = vmatpush.msra.mxu2 %v4392_v38  ;;  %5372 = vmatpush.msrb.mxu1 %v4637_v40  ;;  %v4560_v38 = vld [vmem:[#allocation28 + $0x12e0] sm:$0xff]  ;;  %v4099_v40 = vld [vmem:[#allocation28 + $0x478] sm:$0xff] }
 0x759   : > { %5432 = vmatpush.msra.mxu0 %v4158_v42  ;;  %5489 = vmatpush.msrb.mxu3 %v4464_v28  ;;  %v4266_v42 = vld [vmem:[#allocation28 + $0x9b0] sm:$0xff]  ;;  %v4015_v28 = vld [vmem:[#allocation28 + $0x1d8] sm:$0xff] }
 0x75a   : > { %5466 = vmatpush.msra.mxu2 %v4386_v2  ;;  %5373 = vmatpush.msrb.mxu1 %v4631_v44  ;;  %v4554_v2 = vld [vmem:[#allocation28 + $0x12b0] sm:$0xff]  ;;  %v4093_v44 = vld [vmem:[#allocation28 + $0x448] sm:$0xff] }
 0x75b   : > { %5433 = vmatpush.msra.mxu0 %v4152_v46  ;;  %5374 = vmatmul.f32.vlgmr.msrb.gmra.mxu1 %v7808_v48  ;;  %v4260_v46 = vld [vmem:[#allocation28 + $0x980] sm:$0xff] }
 0x75c   : > { %5434 = vmatmul.f32.vlgmr.msra.gmra.mxu0 %v7788_v51  ;;  %5438 = vmatpush.msra.mxu1 %v4338_v47  ;;  %v4548_v47 = vld [vmem:[#allocation28 + $0x1280] sm:$0xff] }
 0x75d   : > { %5467 = vmatpush.msra.mxu2 %v4380_v49  ;;  %5490 = vmatpush.msrb.mxu3 %v4458_v50  ;;  %v4009_v49 = vld [vmem:[#allocation28 + $0x1a8] sm:$0xff]  ;;  %v4087_v50 = vld [vmem:[#allocation28 + $0x418] sm:$0xff] }
 0x75e   : > { %5498 = vmatpush.msrb.mxu0 %v4626_v52  ;;  %5439 = vmatpush.msra.mxu1 %v4332_v53  ;;  %v4254_v52 = vld [vmem:[#allocation28 + $0x950] sm:$0xff] }
 0x75f   : > { %5468 = vmatpush.msra.mxu2 %v4374_v54  ;;  %5491 = vmatpush.msrb.mxu3 %v4452_v55  ;;  %v4542_v53 = vld [vmem:[#allocation28 + $0x1250] sm:$0xff]  ;;  %v4003_v54 = vld [vmem:[#allocation28 + $0x178] sm:$0xff]  ;;  %v4081_v55 = vld [vmem:[#allocation28 + $0x3e8] sm:$0xff] }
 0x760   : > { %5499 = vmatpush.msrb.mxu0 %v4620_v7  ;;  %5440 = vmatpush.msra.mxu1 %v4326_v56  ;;  %v4248_v7 = vld [vmem:[#allocation28 + $0x920] sm:$0xff] }
 0x761   : > { %5469 = vmatpush.msra.mxu2 %v4368_v45  ;;  %5492 = vmatpush.msrb.mxu3 %v4446_v58  ;;  %v4536_v56 = vld [vmem:[#allocation28 + $0x1220] sm:$0xff]  ;;  %v4722_v45 = vld [vmem:[#allocation28 + $0x17f0] sm:$0xff]  ;;  %v3997_v58 = vld [vmem:[#allocation28 + $0x148] sm:$0xff] }
 0x762   : > { %5500 = vmatpush.msrb.mxu0 %v4614_v59  ;;  %5441 = vmatpush.msra.mxu1 %v4320_v60  ;;  %v4075_v59 = vld [vmem:[#allocation28 + $0x3b8] sm:$0xff] }
 0x763   : > { %5470 = vmatpush.msra.mxu2 %v4362_v23  ;;  %5493 = vmatpush.msrb.mxu3 %v4440_v61  ;;  %v4243_v60 = vld [vmem:[#allocation28 + $0x8f8] sm:$0xff]  ;;  %v4716_v23 = vld [vmem:[#allocation28 + $0x17c0] sm:$0xff] }
 0x764   : > { %5501 = vmatpush.msrb.mxu0 %v4608_v62  ;;  %5494 = vmatmul.f32.vlgmr.msrb.gmra.mxu3 %v7796_v9  ;;  %v3991_v61 = vld [vmem:[#allocation28 + $0x118] sm:$0xff]  ;;  %v4069_v62 = vld [vmem:[#allocation28 + $0x388] sm:$0xff] }
 0x765   : > { %5442 = vmatpush.msra.mxu1 %v4314_v63  ;;  %5558 = vmatpush.msra.mxu3 %v4147_v4  ;;  %v4237_v63 = vld [vmem:[#allocation28 + $0x8c8] sm:$0xff]  ;;  %v4710_v4 = vld [vmem:[#allocation28 + $0x1790] sm:$0xff] }
 0x766   : > { %5471 = vmatpush.msra.mxu2 %v4356_v5  ;;  %5502 = vmatpush.msrb.mxu0 %v4602_v8  ;;  %v3985_v5 = vld [vmem:[#allocation28 + $0xe8] sm:$0xff]  ;;  %v4063_v8 = vld [vmem:[#allocation28 + $0x358] sm:$0xff] }
 0x767   : > { %5443 = vmatpush.msra.mxu1 %v4308_v10  ;;  %5559 = vmatpush.msra.mxu3 %v4141_v57  ;;  %v4231_v10 = vld [vmem:[#allocation28 + $0x898] sm:$0xff]  ;;  %v4704_v57 = vld [vmem:[#allocation28 + $0x1760] sm:$0xff] }
 0x768   : > { %5472 = vmatpush.msra.mxu2 %v4350_v11  ;;  %5503 = vmatpush.msrb.mxu0 %v4596_v12  ;;  %v3979_v11 = vld [vmem:[#allocation28 + $0xb8] sm:$0xff]  ;;  %v4057_v12 = vld [vmem:[#allocation28 + $0x328] sm:$0xff] }
 0x769   : > { %5444 = vmatpush.msra.mxu1 %v4302_v35  ;;  %5560 = vmatpush.msra.mxu3 %v4135_v16  ;;  %v4225_v35 = vld [vmem:[#allocation28 + $0x868] sm:$0xff]  ;;  %v4698_v16 = vld [vmem:[#allocation28 + $0x1730] sm:$0xff] }
 0x76a   : > { %5473 = vmatpush.msra.mxu2 %v4344_v6  ;;  %5504 = vmatpush.msrb.mxu0 %v4590_v17  ;;  %v4531_v6 = vld [vmem:[#allocation28 + $0x11f8] sm:$0xff]  ;;  %v3973_v17 = vld [vmem:[#allocation28 + $0x88] sm:$0xff] }
 0x76b   : > { %5474 = vmatmul.f32.vlgmr.msra.gmra.mxu2 %v7793_v43  ;;  %5561 = vmatpush.msra.mxu3 %v4129_v24  ;;  %v4692_v24 = vld [vmem:[#allocation28 + $0x1700] sm:$0xff] }
 0x76c   : > { %5538 = vmatpush.msrb.mxu2 %v4051_v20  ;;  %5445 = vmatpush.msra.mxu1 %v4296_v21  ;;  %v4219_v20 = vld [vmem:[#allocation28 + $0x838] sm:$0xff]  ;;  %v4525_v21 = vld [vmem:[#allocation28 + $0x11c8] sm:$0xff] }
 0x76d   : > { %5505 = vmatpush.msrb.mxu0 %v4584_v22  ;;  %5562 = vmatpush.msra.mxu3 %v4123_v26  ;;  %v3967_v22 = vld [vmem:[#allocation28 + $0x58] sm:$0xff]  ;;  %v4686_v26 = vld [vmem:[#allocation28 + $0x16d0] sm:$0xff] }
 0x76e   : > { %5539 = vmatpush.msrb.mxu2 %v4045_v3  ;;  %5446 = vmatpush.msra.mxu1 %v4290_v0  ;;  %v4213_v3 = vld [vmem:[#allocation28 + $0x808] sm:$0xff]  ;;  %v4519_v0 = vld [vmem:[#allocation28 + $0x1198] sm:$0xff] }
 0x76f   : > { %5506 = vmatpush.msrb.mxu0 %v4578_v27  ;;  %5563 = vmatpush.msra.mxu3 %v4117_v1  ;;  %v3961_v27 = vld [vmem:[#allocation28 + $0x28] sm:$0xff]  ;;  %v4435_v1 = vld [vmem:[#allocation28 + $0xef8] sm:$0xff] }
 0x770   : > { %5540 = vmatpush.msrb.mxu2 %v4039_v14  ;;  %5447 = vmatpush.msra.mxu1 %v4284_v29  ;;  %v4207_v14 = vld [vmem:[#allocation28 + $0x7d8] sm:$0xff]  ;;  %v4513_v29 = vld [vmem:[#allocation28 + $0x1168] sm:$0xff] }
 0x771   : > { %5507 = vmatpush.msrb.mxu0 %v4572_v30  ;;  %5564 = vmatpush.msra.mxu3 %v4111_v33  ;;  %v4201_v30 = vld [vmem:[#allocation28 + $0x7a8] sm:$0xff]  ;;  %v4507_v33 = vld [vmem:[#allocation28 + $0x1138] sm:$0xff] }
 0x772   : > { %5541 = vmatpush.msrb.mxu2 %v4033_v32  ;;  %5448 = vmatpush.msra.mxu1 %v4278_v34  ;;  %v4429_v32 = vld [vmem:[#allocation28 + $0xec8] sm:$0xff]  ;;  %v4674_v34 = vld [vmem:[#allocation28 + $0x1670] sm:$0xff] }
 0x773   : > { %5508 = vmatpush.msrb.mxu0 %v4566_v36  ;;  %5565 = vmatpush.msra.mxu3 %v4105_v18  ;;  %v4195_v36 = vld [vmem:[#allocation28 + $0x778] sm:$0xff]  ;;  %v4501_v18 = vld [vmem:[#allocation28 + $0x1108] sm:$0xff] }
 0x774   : > { %5542 = vmatpush.msrb.mxu2 %v4027_v37  ;;  %5449 = vmatpush.msra.mxu1 %v4272_v31  ;;  %v4423_v37 = vld [vmem:[#allocation28 + $0xe98] sm:$0xff]  ;;  %v4668_v31 = vld [vmem:[#allocation28 + $0x1640] sm:$0xff] }
 0x775   : > { %5509 = vmatpush.msrb.mxu0 %v4560_v38  ;;  %5566 = vmatpush.msra.mxu3 %v4099_v40  ;;  %v4189_v38 = vld [vmem:[#allocation28 + $0x748] sm:$0xff]  ;;  %v4495_v40 = vld [vmem:[#allocation28 + $0x10d8] sm:$0xff] }
 0x776   : > { %5543 = vmatpush.msrb.mxu2 %v4021_v39  ;;  %5450 = vmatpush.msra.mxu1 %v4266_v42  ;;  %v4417_v39 = vld [vmem:[#allocation28 + $0xe68] sm:$0xff]  ;;  %v4183_v42 = vld [vmem:[#allocation28 + $0x718] sm:$0xff] }
 0x777   : > { %5510 = vmatpush.msrb.mxu0 %v4554_v2  ;;  %5567 = vmatpush.msra.mxu3 %v4093_v44  ;;  %v4411_v2 = vld [vmem:[#allocation28 + $0xe38] sm:$0xff]  ;;  %v4656_v44 = vld [vmem:[#allocation28 + $0x15e0] sm:$0xff] }
 0x778   : > { %5544 = vmatpush.msrb.mxu2 %v4015_v28  ;;  %5451 = vmatpush.msra.mxu1 %v4260_v46  ;;  %v4489_v28 = vld [vmem:[#allocation28 + $0x10a8] sm:$0xff] }
 0x779   : > { %5511 = vmatpush.msrb.mxu0 %v4548_v47  ;;  %5568 = vmatpush.msra.mxu3 %v4087_v50  ;;  %v4177_v46 = vld [vmem:[#allocation28 + $0x6e8] sm:$0xff]  ;;  %v4650_v50 = vld [vmem:[#allocation28 + $0x15b0] sm:$0xff] }
 0x77a   : > { %5545 = vmatpush.msrb.mxu2 %v4009_v49  ;;  %5452 = vmatpush.msra.mxu1 %v4254_v52  ;;  %v4405_v47 = vld [vmem:[#allocation28 + $0xe08] sm:$0xff]  ;;  %v4483_v49 = vld [vmem:[#allocation28 + $0x1078] sm:$0xff] }
 0x77b   : > { %5512 = vmatpush.msrb.mxu0 %v4542_v53  ;;  %5569 = vmatpush.msra.mxu3 %v4081_v55  ;;  %v4171_v52 = vld [vmem:[#allocation28 + $0x6b8] sm:$0xff]  ;;  %v4644_v55 = vld [vmem:[#allocation28 + $0x1580] sm:$0xff] }
 0x77c   : > { %5546 = vmatpush.msrb.mxu2 %v4003_v54  ;;  %5453 = vmatpush.msra.mxu1 %v4248_v7  ;;  %v4399_v53 = vld [vmem:[#allocation28 + $0xdd8] sm:$0xff]  ;;  %v4477_v54 = vld [vmem:[#allocation28 + $0x1048] sm:$0xff] }
 0x77d   : > { %5513 = vmatpush.msrb.mxu0 %v4536_v56  ;;  %5454 = vmatmul.f32.vlgmr.msra.gmra.mxu1 %v7784_v41  ;;  %v4165_v7 = vld [vmem:[#allocation28 + $0x688] sm:$0xff] }
 0x77e   : > { %5514 = vmatmul.f32.vlgmr.msrb.gmra.mxu0 %v7802_v25  ;;  %5518 = vmatpush.msrb.mxu1 %v4722_v45  ;;  %v4393_v56 = vld [vmem:[#allocation28 + $0xda8] sm:$0xff]  ;;  %v4471_v45 = vld [vmem:[#allocation28 + $0x1018] sm:$0xff] }
 0x77f   : > { %5547 = vmatpush.msrb.mxu2 %v3997_v58  ;;  %5570 = vmatpush.msra.mxu3 %v4075_v59  ;;  %v4638_v58 = vld [vmem:[#allocation28 + $0x1550] sm:$0xff]  ;;  %v4159_v59 = vld [vmem:[#allocation28 + $0x658] sm:$0xff] }
 0x780   : > { %5578 = vmatpush.msra.mxu0 %v4243_v60  ;;  %5519 = vmatpush.msrb.mxu1 %v4716_v23  ;;  %v4387_v60 = vld [vmem:[#allocation28 + $0xd78] sm:$0xff]  ;;  %v4465_v23 = vld [vmem:[#allocation28 + $0xfe8] sm:$0xff] }
 0x781   : > { %5548 = vmatpush.msrb.mxu2 %v3991_v61  ;;  %5571 = vmatpush.msra.mxu3 %v4069_v62  ;;  %v4632_v61 = vld [vmem:[#allocation28 + $0x1520] sm:$0xff]  ;;  %v4153_v62 = vld [vmem:[#allocation28 + $0x628] sm:$0xff] }
 0x782   : > { %5579 = vmatpush.msra.mxu0 %v4237_v63  ;;  %5520 = vmatpush.msrb.mxu1 %v4710_v4  ;;  %v4339_v63 = vld [vmem:[#allocation28 + $0xbf8] sm:$0xff]  ;;  %v4381_v4 = vld [vmem:[#allocation28 + $0xd48] sm:$0xff] }
 0x783   : > { %5549 = vmatpush.msrb.mxu2 %v3985_v5  ;;  %5572 = vmatpush.msra.mxu3 %v4063_v8  ;;  %v4459_v5 = vld [vmem:[#allocation28 + $0xfb8] sm:$0xff] }
 0x784   : > { %5580 = vmatpush.msra.mxu0 %v4231_v10  ;;  %5521 = vmatpush.msrb.mxu1 %v4704_v57  ;;  %v4627_v8 = vld [vmem:[#allocation28 + $0x14f8] sm:$0xff]  ;;  %v4333_v10 = vld [vmem:[#allocation28 + $0xbc8] sm:$0xff] }
 0x785   : > { %5550 = vmatpush.msrb.mxu2 %v3979_v11  ;;  %5573 = vmatpush.msra.mxu3 %v4057_v12  ;;  %v4375_v57 = vld [vmem:[#allocation28 + $0xd18] sm:$0xff]  ;;  %v4453_v11 = vld [vmem:[#allocation28 + $0xf88] sm:$0xff] }
 0x786   : > { %5581 = vmatpush.msra.mxu0 %v4225_v35  ;;  %5574 = vmatmul.f32.vlgmr.msra.gmra.mxu3 %v7774_v15  ;;  %v4680_v15 = vld [vmem:[#allocation28 + $0x16a0] sm:$0xff]  ;;  %v4621_v12 = vld [vmem:[#allocation28 + $0x14c8] sm:$0xff]  ;;  %v4327_v35 = vld [vmem:[#allocation28 + $0xb98] sm:$0xff] }
 0x787   : > { %5522 = vmatpush.msrb.mxu1 %v4698_v16  ;;  %5638 = vmatpush.msrb.mxu3 %v4531_v6  ;;  %v4369_v16 = vld [vmem:[#allocation28 + $0xce8] sm:$0xff]  ;;  %v4447_v6 = vld [vmem:[#allocation28 + $0xf58] sm:$0xff] }
 0x788   : > { %5551 = vmatpush.msrb.mxu2 %v3973_v17  ;;  %5582 = vmatpush.msra.mxu0 %v4219_v20  ;;  %v4615_v17 = vld [vmem:[#allocation28 + $0x1498] sm:$0xff]  ;;  %v4321_v20 = vld [vmem:[#allocation28 + $0xb68] sm:$0xff] }
 0x789   : > { %5523 = vmatpush.msrb.mxu1 %v4692_v24  ;;  %5639 = vmatpush.msrb.mxu3 %v4525_v21  ;;  %v4363_v24 = vld [vmem:[#allocation28 + $0xcb8] sm:$0xff]  ;;  %v4609_v21 = vld [vmem:[#allocation28 + $0x1468] sm:$0xff] }
 0x78a   : > { %5552 = vmatpush.msrb.mxu2 %v3967_v22  ;;  %5583 = vmatpush.msra.mxu0 %v4213_v3  ;;  %v4315_v22 = vld [vmem:[#allocation28 + $0xb38] sm:$0xff]  ;;  %v4357_v3 = vld [vmem:[#allocation28 + $0xc88] sm:$0xff] }
 0x78b   : > { %5524 = vmatpush.msrb.mxu1 %v4686_v26  ;;  %5640 = vmatpush.msrb.mxu3 %v4519_v0  ;;  %v4603_v26 = vld [vmem:[#allocation28 + $0x1438] sm:$0xff]  ;;  %v4309_v0 = vld [vmem:[#allocation28 + $0xb08] sm:$0xff] }
 0x78c   : > { %5553 = vmatpush.msrb.mxu2 %v3961_v27  ;;  %5584 = vmatpush.msra.mxu0 %v4207_v14  ;;  %v4351_v27 = vld [vmem:[#allocation28 + $0xc58] sm:$0xff]  ;;  %v4597_v14 = vld [vmem:[#allocation28 + $0x1408] sm:$0xff] }
 0x78d   : > { %5554 = vmatmul.f32.vlgmr.msrb.gmra.mxu2 %v7780_v13  ;;  %5641 = vmatpush.msrb.mxu3 %v4513_v29  ;;  %v4662_v13 = vld [vmem:[#allocation28 + $0x1610] sm:$0xff]  ;;  %v4345_v29 = vld [vmem:[#allocation28 + $0xc28] sm:$0xff] }
 0x78e   : > { %5618 = vmatpush.msra.mxu2 %v4435_v1  ;;  %5525 = vmatpush.msrb.mxu1 %v4680_v15  ;;  %v4303_v1 = vld [vmem:[#allocation28 + $0xad8] sm:$0xff] }
 0x78f   : > { %5585 = vmatpush.msra.mxu0 %v4201_v30  ;;  %5642 = vmatpush.msrb.mxu3 %v4507_v33  ;;  %v4591_v15 = vld [vmem:[#allocation28 + $0x13d8] sm:$0xff]  ;;  %v4297_v30 = vld [vmem:[#allocation28 + $0xaa8] sm:$0xff] }
 0x790   : > { %5619 = vmatpush.msra.mxu2 %v4429_v32  ;;  %5526 = vmatpush.msrb.mxu1 %v4674_v34  ;;  %v4585_v32 = vld [vmem:[#allocation28 + $0x13a8] sm:$0xff]  ;;  %v4291_v33 = vld [vmem:[#allocation28 + $0xa78] sm:$0xff] }
 0x791   : > { %5586 = vmatpush.msra.mxu0 %v4195_v36  ;;  %5643 = vmatpush.msrb.mxu3 %v4501_v18  ;;  %v4285_v34 = vld [vmem:[#allocation28 + $0xa48] sm:$0xff]  ;;  %v4567_v18 = vld [vmem:[#allocation28 + $0x1318] sm:$0xff] }
 0x792   : > { %5620 = vmatpush.msra.mxu2 %v4423_v37  ;;  %5527 = vmatpush.msrb.mxu1 %v4668_v31  ;;  %v4573_v36 = vld [vmem:[#allocation28 + $0x1348] sm:$0xff]  ;;  %v4279_v37 = vld [vmem:[#allocation28 + $0xa18] sm:$0xff] }
 0x793   : > { %5587 = vmatpush.msra.mxu0 %v4189_v38  ;;  %5644 = vmatpush.msrb.mxu3 %v4495_v40  ;;  %v4273_v31 = vld [vmem:[#allocation28 + $0x9e8] sm:$0xff]  ;;  %v4555_v40 = vld [vmem:[#allocation28 + $0x12b8] sm:$0xff] }
 0x794   : > { %5621 = vmatpush.msra.mxu2 %v4417_v39  ;;  %5528 = vmatpush.msrb.mxu1 %v4662_v13  ;;  %v4561_v38 = vld [vmem:[#allocation28 + $0x12e8] sm:$0xff]  ;;  %v4267_v39 = vld [vmem:[#allocation28 + $0x9b8] sm:$0xff] }
 0x795   : > { %5588 = vmatpush.msra.mxu0 %v4183_v42  ;;  %5645 = vmatpush.msrb.mxu3 %v4489_v28  ;;  %v4549_v13 = vld [vmem:[#allocation28 + $0x1288] sm:$0xff]  ;;  %v4255_v42 = vld [vmem:[#allocation28 + $0x958] sm:$0xff] }
 0x796   : > { %5622 = vmatpush.msra.mxu2 %v4411_v2  ;;  %5529 = vmatpush.msrb.mxu1 %v4656_v44  ;;  %v4543_v2 = vld [vmem:[#allocation28 + $0x1258] sm:$0xff]  ;;  %v4249_v28 = vld [vmem:[#allocation28 + $0x928] sm:$0xff] }
 0x797   : > { %5589 = vmatpush.msra.mxu0 %v4177_v46  ;;  %5646 = vmatpush.msrb.mxu3 %v4483_v49  ;;  %v4537_v44 = vld [vmem:[#allocation28 + $0x1228] sm:$0xff]  ;;  %v4723_v46 = vld [vmem:[#allocation28 + $0x17f8] sm:$0xff] }
 0x798   : > { %5623 = vmatpush.msra.mxu2 %v4405_v47  ;;  %5530 = vmatpush.msrb.mxu1 %v4650_v50  ;;  %v4717_v47 = vld [vmem:[#allocation28 + $0x17c8] sm:$0xff]  ;;  %v4711_v49 = vld [vmem:[#allocation28 + $0x1798] sm:$0xff] }
 0x799   : > { %5590 = vmatpush.msra.mxu0 %v4171_v52  ;;  %5647 = vmatpush.msrb.mxu3 %v4477_v54  ;;  %v4705_v50 = vld [vmem:[#allocation28 + $0x1768] sm:$0xff]  ;;  %v4699_v52 = vld [vmem:[#allocation28 + $0x1738] sm:$0xff] }
 0x79a   : > { %5624 = vmatpush.msra.mxu2 %v4399_v53  ;;  %5531 = vmatpush.msrb.mxu1 %v4644_v55  ;;  %v4693_v53 = vld [vmem:[#allocation28 + $0x1708] sm:$0xff]  ;;  %v4687_v54 = vld [vmem:[#allocation28 + $0x16d8] sm:$0xff] }
 0x79b   : > { %5591 = vmatpush.msra.mxu0 %v4165_v7  ;;  %5648 = vmatpush.msrb.mxu3 %v4471_v45  ;;  %v4681_v55 = vld [vmem:[#allocation28 + $0x16a8] sm:$0xff]  ;;  %v4675_v7 = vld [vmem:[#allocation28 + $0x1678] sm:$0xff] }
 0x79c   : > { %5625 = vmatpush.msra.mxu2 %v4393_v56  ;;  %5532 = vmatpush.msrb.mxu1 %v4638_v58  ;;  %v4669_v56 = vld [vmem:[#allocation28 + $0x1648] sm:$0xff]  ;;  %v4651_v45 = vld [vmem:[#allocation28 + $0x15b8] sm:$0xff] }
 0x79d   : > { %5592 = vmatpush.msra.mxu0 %v4159_v59  ;;  %5649 = vmatpush.msrb.mxu3 %v4465_v23  ;;  %v4645_v58 = vld [vmem:[#allocation28 + $0x1588] sm:$0xff]  ;;  %v4639_v59 = vld [vmem:[#allocation28 + $0x1558] sm:$0xff]  ;;  %v4915_v23 = vpop.f32.mrf.mxu2 }
 0x79e   : > { %5626 = vmatpush.msra.mxu2 %v4387_v60  ;;  %5533 = vmatpush.msrb.mxu1 %v4632_v61  ;;  %v4633_v60 = vld [vmem:[#allocation28 + $0x1528] sm:$0xff]  ;;  %v7865_v61 = vpop.f32.mrf.mxu3 }
 0x79f   : > { %5593 = vmatpush.msra.mxu0 %v4153_v62  ;;  %5534 = vmatmul.f32.vlgmr.msrb.gmra.mxu1 %v7808_v48  ;;  %v7867_v62 = vpop.f32.mrf.mxu0 }
 0x7a0   : > { %5594 = vmatmul.f32.vlgmr.msra.gmra.mxu0 %v7788_v51  ;;  %5598 = vmatpush.msra.mxu1 %v4339_v63  ;;  %v4441_v51 = vld [vmem:[#allocation28 + $0xf28] sm:$0xff] }
 0x7a1   : > { %5627 = vmatpush.msra.mxu2 %v4381_v4  ;;  %5650 = vmatpush.msrb.mxu3 %v4459_v5 }
 0x7a2   : > { %5658 = vmatpush.msrb.mxu0 %v4627_v8  ;;  %5599 = vmatpush.msra.mxu1 %v4333_v10 }
 0x7a3   : > { %5628 = vmatpush.msra.mxu2 %v4375_v57  ;;  %5651 = vmatpush.msrb.mxu3 %v4453_v11 }
 0x7a4   : > { %5659 = vmatpush.msrb.mxu0 %v4621_v12  ;;  %5600 = vmatpush.msra.mxu1 %v4327_v35 }
 0x7a5   : > { %5629 = vmatpush.msra.mxu2 %v4369_v16  ;;  %5652 = vmatpush.msrb.mxu3 %v4447_v6  ;;  %v7871_v63 = vpop.f32.mrf.mxu2 }
 0x7a6   : > { %5660 = vmatpush.msrb.mxu0 %v4615_v17  ;;  %5601 = vmatpush.msra.mxu1 %v4321_v20 }
 0x7a7   : > { %5630 = vmatpush.msra.mxu2 %v4363_v24  ;;  %5653 = vmatpush.msrb.mxu3 %v4441_v51 }
 0x7a8   : > { %5661 = vmatpush.msrb.mxu0 %v4609_v21  ;;  %5654 = vmatmul.f32.vlgmr.msrb.gmra.mxu3 %v7796_v9  ;;  %v4579_v9 = vld [vmem:[#allocation28 + $0x1378] sm:$0xff] }
 0x7a9   : > { %5602 = vmatpush.msra.mxu1 %v4315_v22  ;;  %5631 = vmatpush.msra.mxu2 %v4357_v3 }
 0x7aa   : > { %5662 = vmatpush.msrb.mxu0 %v4603_v26 }
 0x7ab   : > { %5603 = vmatpush.msra.mxu1 %v4309_v0  ;;  %5632 = vmatpush.msra.mxu2 %v4351_v27 }
 0x7ac   : > { %5663 = vmatpush.msrb.mxu0 %v4597_v14 }
 0x7ad   : > { %5604 = vmatpush.msra.mxu1 %v4303_v1  ;;  %5633 = vmatpush.msra.mxu2 %v4345_v29 }
 0x7ae   : > { %5664 = vmatpush.msrb.mxu0 %v4591_v15  ;;  %5634 = vmatmul.f32.vlgmr.msra.gmra.mxu2 %v7793_v43  ;;  %v4261_v43 = vld [vmem:[#allocation28 + $0x988] sm:$0xff] }
 0x7af   : > { %5605 = vmatpush.msra.mxu1 %v4297_v30 }
 0x7b0   : > { %5665 = vmatpush.msrb.mxu0 %v4585_v32 }
 0x7b1   : > { %5606 = vmatpush.msra.mxu1 %v4291_v33 }
 0x7b2   : > { %5666 = vmatpush.msrb.mxu0 %v4579_v9 }
 0x7b3   : > { %5607 = vmatpush.msra.mxu1 %v4285_v34 }
 0x7b4   : > { %5667 = vmatpush.msrb.mxu0 %v4573_v36 }
 0x7b5   : > { %5608 = vmatpush.msra.mxu1 %v4279_v37 }
 0x7b6   : > { %5668 = vmatpush.msrb.mxu0 %v4567_v18 }
 0x7b7   : > { %5609 = vmatpush.msra.mxu1 %v4273_v31 }
 0x7b8   : > { %5669 = vmatpush.msrb.mxu0 %v4561_v38 }
 0x7b9   : > { %5610 = vmatpush.msra.mxu1 %v4267_v39 }
 0x7ba   : > { %5670 = vmatpush.msrb.mxu0 %v4555_v40 }
 0x7bb   : > { %5611 = vmatpush.msra.mxu1 %v4261_v43 }
 0x7bc   : > { %5671 = vmatpush.msrb.mxu0 %v4549_v13 }
 0x7bd   : > { %5612 = vmatpush.msra.mxu1 %v4255_v42 }
 0x7be   : > { %5672 = vmatpush.msrb.mxu0 %v4543_v2 }
 0x7bf   : > { %5613 = vmatpush.msra.mxu1 %v4249_v28 }
 0x7c0   : > { %5673 = vmatpush.msrb.mxu0 %v4537_v44  ;;  %5614 = vmatmul.f32.vlgmr.msra.gmra.mxu1 %v7784_v41  ;;  %v4663_v41 = vld [vmem:[#allocation28 + $0x1618] sm:$0xff] }
 0x7c1   : > { %5674 = vmatmul.f32.vlgmr.msrb.gmra.mxu0 %v7802_v25  ;;  %5678 = vmatpush.msrb.mxu1 %v4723_v46  ;;  %v4657_v25 = vld [vmem:[#allocation28 + $0x15e8] sm:$0xff] }
 0x7c3   : > { %5679 = vmatpush.msrb.mxu1 %v4717_v47 }
 0x7c5   : > { %5680 = vmatpush.msrb.mxu1 %v4711_v49 }
 0x7c7   : > { %5681 = vmatpush.msrb.mxu1 %v4705_v50 }
 0x7c9   : > { %5682 = vmatpush.msrb.mxu1 %v4699_v52 }
 0x7cb   : > { %5683 = vmatpush.msrb.mxu1 %v4693_v53 }
 0x7cd   : > { %5684 = vmatpush.msrb.mxu1 %v4687_v54 }
 0x7cf   : > { %5685 = vmatpush.msrb.mxu1 %v4681_v55 }
 0x7d1   : > { %5686 = vmatpush.msrb.mxu1 %v4675_v7 }
 0x7d3   : > { %5687 = vmatpush.msrb.mxu1 %v4669_v56 }
 0x7d5   : > { %5688 = vmatpush.msrb.mxu1 %v4663_v41 }
 0x7d7   : > { %5689 = vmatpush.msrb.mxu1 %v4657_v25 }
 0x7d9   : > { %5690 = vmatpush.msrb.mxu1 %v4651_v45 }
 0x7db   : > { %5691 = vmatpush.msrb.mxu1 %v4645_v58 }
 0x7dd   : > { %5692 = vmatpush.msrb.mxu1 %v4639_v59 }
 0x7df   : > { %5693 = vmatpush.msrb.mxu1 %v4633_v60 }
 0x7e0   : > { %5694 = vmatmul.f32.vlgmr.msrb.gmra.mxu1 %v7808_v48  ;;  %v7873_v48 = vpop.f32.mrf.mxu1 }
 0x7e1   : > { %7041 = shalt.err (!%p7038_p10)
}
 0x7e2   : > { %6284 = dma.vmem_to_hbm [thread:$0]  (%p7454_p13), %s5865_s8, 16, %s5867_s13, %s5847_s30  }
 0x7e3   : > { %s8141_s5 = scalar_lea.vmem [#allocation32], %s7485_s9  ;;  %s5879_s16 = sshll.u32 %s5875_s7, 4  ;;  %s5880_s16 = int_to_ptr.hbm [resolvable:$true] %s5879_s16 }
 0x7e4   : > { %s5877_s15 = sshll.u32 %s8141_s5, 4  ;;  %s5851_s23 = scalar_lea.sflag [#allocation33], %s7485_s9  ;;  %s5878_s15 = int_to_ptr.vmem [resolvable:$true] %s5877_s15 }
 0x7e5   : > { %s7056_s24 = sshra.s32 %s5880_s16, 4  ;;  %s7062_s11 = scalar_lea.hbm %s8140_s1, 2  ;;  %s7057_s24 = int_to_ptr.hbm [resolvable:$true] %s7056_s24 }
 0x7e6   : > { %s7058_s0 = scalar_lea.hbm %s7057_s24, 1  ;;  %p7063_p6 = scmp.lt.s32.totalorder %s7057_s24, %s8140_s1 }
 0x7e7   : > { %p7059_p11 = scmp.ne.s32.totalorder %s7057_s24, %s7058_s0  ;;  %p7064_p1 = scmp.lt.s32.totalorder %s7062_s11, %s7058_s0 }
 0x7e9   : > { %p7060_p0 = pnand %p7059_p11, %p7454_p13  ;;  %p7065_p3 = por %p7064_p1, %p7063_p6 }
 0x7eb   : > { %p7061_p2 = pneg %p7060_p0 }
 0x7ed   : > { %p7066_p5 = pnand %p7065_p3, %p7061_p2 }
 0x7ef   : > { %7069 = shalt.err (!%p7066_p5)
}
 0x7f0   : > { %6285 = dma.vmem_to_hbm [thread:$0]  (%p7454_p13), %s5878_s15, 16, %s5880_s16, %s5851_s23   ;;  %v5015_v4 = vpop.f32.mrf.mxu3  ;;  %v5035_v5 = vpop.f32.mrf.mxu0  ;;  %v6473_v3 = vld [vmem:[#allocation29] sm:$0x3f] }
 0x7f1   : > { %v5075_v8 = vpop.f32.mrf.mxu2  ;;  %v5055_v10 = vpop.f32.mrf.mxu1  ;;  %v4727_v26 = vperm.slane %v6473_v3, 1  ;;  %v4730_v1 = vperm.slane %v6473_v3, 4  ;;  %v4728_v29 = vperm.slane %v6473_v3, 2  ;;  %v4729_v32 = vperm.slane %v6473_v3, 3  ;;  %s8158_s9 = smul.u32 6, %s7533_s2  ;;  %s8159_s16 = sld [smem:[#allocation67_spill]] }
 0x7f3   : > { %v4916_v0 = vadd.f32 %v4915_v23, %v4727_v26  ;;  %v5076_v36 = vadd.f32 %v5075_v8, %v4728_v29 }
 0x7f5   : > { %v4936_v33 = vadd.f32 %v7865_v61, %v4916_v0 }
 0x7f7   : > { %v4956_v34 = vadd.f32 %v7867_v62, %v4936_v33  ;;  %s1045_s29 = scalar_lea.vmem %s8159_s16, %s8158_s9 }
 0x7f8   : > { %v5095_v57 = vpop.f32.mrf.mxu3  ;;  %v5115_v11 = vpop.f32.mrf.mxu0 }
 0x7f9   : > { %v5155_v12 = vpop.f32.mrf.mxu2  ;;  %v5135_v35 = vpop.f32.mrf.mxu1  ;;  %v4976_v18 = vadd.f32 %v7873_v48, %v4956_v34  ;;  %v5096_v40 = vadd.f32 %v5095_v57, %v5076_v36  ;;  %v4731_v57 = vperm.slane %v6473_v3, 5 }
 0x7fb   : > { %v4996_v2 = vadd.f32 %v7871_v63, %v4976_v18  ;;  %v5116_v28 = vadd.f32 %v5115_v11, %v5096_v40 }
 0x7fd   : > { %v5136_v47 = vadd.f32 %v5135_v35, %v5116_v28  ;;  %v5016_v50 = vadd.f32 %v5015_v4, %v4996_v2 }
 0x7ff   : > { %v5156_v54 = vadd.f32 %v5155_v12, %v5136_v47  ;;  %v5036_v7 = vadd.f32 %v5035_v5, %v5016_v50  ;;  %v5698_v12 = vsub.f32 0.0, %v7836_v19 }
 0x800   : > { %v5175_v16 = vpop.f32.mrf.mxu3  ;;  %v5195_v6 = vpop.f32.mrf.mxu0 }
 0x801   : > { %v5235_v17 = vpop.f32.mrf.mxu2  ;;  %v5215_v20 = vpop.f32.mrf.mxu1  ;;  %v5056_v25 = vadd.f32 %v5055_v10, %v5036_v7  ;;  %v5176_v45 = vadd.f32 %v5175_v16, %v5156_v54  ;;  %v5704_v16 = vmul.f32 1.442695, %v5698_v12 }
 0x802   : > { %v5236_v37 = vadd.f32 %v5235_v17, %v4729_v32 }
 0x803   : > { %v5699_v61 = vsub.f32 0.0, %v5056_v25  ;;  %v5196_v62 = vadd.f32 %v5195_v6, %v5176_v45 }
 0x805   : > { %v5216_v8 = vadd.f32 %v5215_v20, %v5196_v62  ;;  %v5706_v35 = vmul.f32 1.442695, %v5699_v61 }
 0x807   : > { %v5700_v17 = vsub.f32 0.0, %v5216_v8  ;;  %6448 = vpow2.f32 %v5706_v35 }
 0x808   : > { %v5255_v24 = vpop.f32.mrf.mxu3  ;;  %v5275_v51 = vpop.f32.mrf.mxu0  ;;  %6450 = vpow2.f32 %v5704_v16 }
 0x809   : > { %v5315_v21 = vpop.f32.mrf.mxu2  ;;  %v5295_v22 = vpop.f32.mrf.mxu1  ;;  %v5256_v13 = vadd.f32 %v5255_v24, %v5236_v37  ;;  %v5708_v26 = vmul.f32 1.442695, %v5700_v17 }
 0x80b   : > { %v5276_v44 = vadd.f32 %v5275_v51, %v5256_v13 }
 0x80d   : > { %v5296_v49 = vadd.f32 %v5295_v22, %v5276_v44  ;;  %v6449_v3 = vpop.eup %6448 }
 0x80e   : > { %v6451_v29 = vpop.eup %6450 }
 0x80f   : > { %v5316_v55 = vadd.f32 %v5315_v21, %v5296_v49 }
 0x810   : > { %v5335_v27 = vpop.f32.mrf.mxu3  ;;  %v5355_v14 = vpop.f32.mrf.mxu0 }
 0x811   : > { %v5395_v15 = vpop.f32.mrf.mxu2  ;;  %v5375_v30 = vpop.f32.mrf.mxu1  ;;  %v5336_v58 = vadd.f32 %v5335_v27, %v5316_v55 }
 0x812   : > { %v5396_v9 = vadd.f32 %v5395_v15, %v4730_v1 }
 0x813   : > { %v5356_v63 = vadd.f32 %v5355_v14, %v5336_v58  ;;  %v5717_v14 = vadd.f32 1.0, %v6449_v3 }
 0x815   : > { %v5376_v4 = vadd.f32 %v5375_v30, %v5356_v63  ;;  %v5748_v61 = vand.u32 2147483648, %v5717_v14  ;;  %vm5742_vm5 = vweird.f32 %v5717_v14 }
 0x817   : > { %v5701_v10 = vsub.f32 0.0, %v5376_v4 }
 0x818   : > { %v5415_v31 = vpop.f32.mrf.mxu3  ;;  %v5435_v38 = vpop.f32.mrf.mxu0 }
 0x819   : > { %v5416_v39 = vadd.f32 %v5415_v31, %v5396_v9  ;;  %v5455_v43 = vpop.f32.mrf.mxu1  ;;  %v5475_v52 = vpop.f32.mrf.mxu2  ;;  %v5710_v0 = vmul.f32 1.442695, %v5701_v10  ;;  %v7904_v9 = vadd.f32 1.0, %v6451_v29 }
 0x81b   : > { %v5436_v42 = vadd.f32 %v5435_v38, %v5416_v39  ;;  %vm5727_vm6 = vweird.f32 %v7904_v9  ;;  %v5733_v8 = vand.u32 2147483648, %v7904_v9 }
 0x81d   : > { %v5456_v46 = vadd.f32 %v5455_v43, %v5436_v42 }
 0x81f   : > { %v5476_v53 = vadd.f32 %v5475_v52, %v5456_v46 }
 0x820   : > { %v5495_v56 = vpop.f32.mrf.mxu3  ;;  %v5515_v59 = vpop.f32.mrf.mxu0 }
 0x821   : > { %v5496_v41 = vadd.f32 %v5495_v56, %v5476_v53  ;;  %v5535_v60 = vpop.f32.mrf.mxu1  ;;  %v5555_v11 = vpop.f32.mrf.mxu2 }
 0x822   : > { %v5556_v24 = vadd.f32 %v5555_v11, %v4731_v57 }
 0x823   : > { %v5516_v23 = vadd.f32 %v5515_v59, %v5496_v41 }
 0x825   : > { %v5536_v48 = vadd.f32 %v5535_v60, %v5516_v23  ;;  %v5746_v23 = vand.u32 2147483647, %v5717_v14 }
 0x827   : > { %v5702_v5 = vsub.f32 0.0, %v5536_v48  ;;  %v5731_v48 = vand.u32 2147483647, %v7904_v9  ;;  %vm7949_vm9 = vcmp.eq.f32.partialorder %v5746_v23, 8.507059e+37 }
 0x828   : > { %v5575_v51 = vpop.f32.mrf.mxu3  ;;  %v5595_v22 = vpop.f32.mrf.mxu0 }
 0x829   : > { %v5712_v21 = vmul.f32 1.442695, %v5702_v5  ;;  %v5576_v6 = vadd.f32 %v5575_v51, %v5556_v24  ;;  %v5749_v5 = vor.u32 1.1754944e-38, %v5748_v61  ;;  %vm7974_vm0 = vcmp.eq.f32.partialorder %v5731_v48, 8.507059e+37 }
 0x82b   : > { %v5596_v20 = vadd.f32 %v5595_v22, %v5576_v6  ;;  %6452 = vpow2.f32 %v5712_v21 }
 0x82c   : > { %6454 = vpow2.f32 %v5708_v26 }
 0x82d   : > { %6456 = vpow2.f32 %v5710_v0 }
 0x82e   : > { %6458 = vrcp.f32 %v5717_v14 }
 0x82f   : > { %6460 = vrcp.f32 %v7904_v9 }
 0x830   : > { %v5655_v34 = vpop.f32.mrf.mxu3 }
 0x831   : > { %v5635_v1 = vpop.f32.mrf.mxu2  ;;  %v6453_v30 = vpop.eup %6452 }
 0x832   : > { %v6455_v32 = vpop.eup %6454  ;;  %v7906_v36 = vadd.f32 1.0, %v6453_v30 }
 0x833   : > { %v6457_v33 = vpop.eup %6456  ;;  %v7908_v18 = vadd.f32 1.0, %v6455_v32 }
 0x834   : > { %v7910_v31 = vadd.f32 1.0, %v6457_v33  ;;  %6462 = vrcp.f32 %v7906_v36  ;;  %v6459_v40 = vpop.eup %6458  ;;  %v5793_v21 = vand.u32 2147483648, %v7906_v36  ;;  %vm5787_vm13 = vweird.f32 %v7906_v36 }
 0x835   : > { %6464 = vrcp.f32 %v7908_v18  ;;  %v5738_v42 = vmul.f32 %v6459_v40, %v5717_v14  ;;  %v7916_v28 = vpop.eup %6460  ;;  %vm5743_vm4 = vweird.f32 %v6459_v40  ;;  %v5761_v17 = vand.u32 2147483647, %v7908_v18 }
 0x836   : > { %6466 = vrcp.f32 %v7910_v31  ;;  %v5723_v54 = vmul.f32 %v7916_v28, %v7904_v9  ;;  %vm5728_vm7 = vweird.f32 %v7916_v28  ;;  %vm7941_vm8 = vmor %vm5742_vm5, %vm5743_vm4  ;;  %v5763_v24 = vand.u32 2147483648, %v7908_v18 }
 0x837   : > { %v5739_v50 = vsub.f32 1.0, %v5738_v42  ;;  %v5778_v51 = vand.u32 2147483648, %v7910_v31  ;;  %v5791_v6 = vand.u32 2147483647, %v7906_v36  ;;  %vm5757_vm14 = vweird.f32 %v7908_v18 }
 0x838   : > { %v5724_v45 = vsub.f32 1.0, %v5723_v54  ;;  %vm7982_vm2 = vcmp.eq.f32.partialorder %v5761_v17, 8.507059e+37  ;;  %vm5772_vm3 = vweird.f32 %v7910_v31  ;;  %v5776_v29 = vand.u32 2147483647, %v7910_v31 }
 0x839   : > { %v5740_v7 = vmul.f32 %v6459_v40, %v5739_v50  ;;  %v5764_v32 = vor.u32 1.1754944e-38, %v5763_v24  ;;  %vm5792_vm5 = vcmp.eq.f32.partialorder %v5791_v6, 8.507059e+37  ;;  %v5734_v42 = vor.u32 1.1754944e-38, %v5733_v8 }
 0x83a   : > { %v7918_v44 = vpop.eup %6462  ;;  %v5725_v11 = vmul.f32 %v7916_v28, %v5724_v45  ;;  %v5834_v50 = vlaneseq }
 0x83b   : > { %v7920_v47 = vpop.eup %6464  ;;  %v5783_v52 = vmul.f32 %v7918_v44, %v7906_v36  ;;  %v5741_v60 = vadd.f32 %v6459_v40, %v5740_v7  ;;  %vm5788_vm10 = vweird.f32 %v7918_v44 }
 0x83c   : > { %v7922_v49 = vpop.eup %6466  ;;  %v5753_v53 = vmul.f32 %v7920_v47, %v7908_v18  ;;  %vm5758_vm11 = vweird.f32 %v7920_v47  ;;  %v5726_v0 = vadd.f32 %v7916_v28, %v5725_v11  ;;  %vm7969_vm15 = vmor %vm5787_vm13, %vm5788_vm10  ;;  %v5779_v18 = vor.u32 1.1754944e-38, %v5778_v51 }
 0x83d   : > { %v5615_v27 = vpop.f32.mrf.mxu1  ;;  %v5768_v55 = vmul.f32 %v7922_v49, %v7910_v31  ;;  %v5784_v56 = vsub.f32 1.0, %v5783_v52  ;;  %v5745_v12 = vsel %vm7941_vm8, %v6459_v40, %v5741_v60  ;;  %vm5773_vm12 = vweird.f32 %v7922_v49  ;;  %vm7978_vm1 = vmor %vm5757_vm14, %vm5758_vm11 }
 0x83e   : > { %v5616_v19 = vadd.f32 %v5615_v27, %v5596_v20  ;;  %v5675_v38 = vpop.f32.mrf.mxu0  ;;  %v5754_v25 = vsub.f32 1.0, %v5753_v53  ;;  %v5750_v27 = vsel %vm7949_vm9, %v5749_v5, %v5745_v12  ;;  %vm7996_vm4 = vmor %vm5772_vm3, %vm5773_vm12  ;;  %vm5777_vm10 = vcmp.eq.f32.partialorder %v5776_v29, 8.507059e+37 }
 0x83f   : > { %v5769_v58 = vsub.f32 1.0, %v5768_v55  ;;  %v5785_v62 = vmul.f32 %v7918_v44, %v5784_v56  ;;  %vm8008_vm8 = vmor %vm5727_vm6, %vm5728_vm7  ;;  %vm5823_vm11 = vcmask 1040384   ;;  %vm5827_vm12 = vcmask 1043459  }
 0x840   : > { %v5636_v15 = vadd.f32 %v5635_v1, %v5616_v19  ;;  %v5755_v63 = vmul.f32 %v7920_v47, %v5754_v25  ;;  %vm5825_vm14 = vcmask 1041408  }
 0x841   : > { %v5770_v4 = vmul.f32 %v7922_v49, %v5769_v58  ;;  %v5786_v10 = vadd.f32 %v7918_v44, %v5785_v62 }
 0x842   : > { %v5656_v37 = vadd.f32 %v5655_v34, %v5636_v15  ;;  %v5756_v16 = vadd.f32 %v7920_v47, %v5755_v63  ;;  %v5794_v34 = vor.u32 1.1754944e-38, %v5793_v21 }
 0x843   : > { %v5771_v26 = vadd.f32 %v7922_v49, %v5770_v4  ;;  %v5790_v15 = vsel %vm7969_vm15, %v7918_v44, %v5786_v10  ;;  %vm5829_vm15 = vcmask 1044483  }
 0x844   : > { %v5676_v39 = vadd.f32 %v5675_v38, %v5656_v37  ;;  %v5760_v30 = vsel %vm7978_vm1, %v7920_v47, %v5756_v16  ;;  %vm5831_vm1 = vcmask 1042432  }
 0x845   : > { %v5775_v37 = vsel %vm7996_vm4, %v7922_v49, %v5771_v26 }
 0x846   : > { %v5780_v9 = vsel %vm5777_vm10, %v5779_v18, %v5775_v37 }
 0x85d   : > { %v5695_v43 = vpop.f32.mrf.mxu1 }
 0x85e   : > { %v5696_v13 = vadd.f32 %v5695_v43, %v5676_v39  ;;  %v5795_v39 = vsel %vm5792_vm5, %v5794_v34, %v5790_v15 }
 0x85f   : > { %v5821_v47 = vrot.slane %v5795_v39, 4 }
 0x860   : > { %v5703_v2 = vsub.f32 0.0, %v5696_v13  ;;  %v5730_v13 = vsel %vm8008_vm8, %v7916_v28, %v5726_v0  ;;  %v5820_v28 = vrot.slane %v5780_v9, 5 }
 0x861   : > { %v5735_v55 = vsel %vm7974_vm0, %v5734_v42, %v5730_v13 }
 0x862   : > { %v5714_v46 = vmul.f32 1.442695, %v5703_v2  ;;  %v5765_v2 = vsel %vm7982_vm2, %v5764_v32, %v5760_v30  ;;  %vm5836_vm2 = vcmp.lt.s32.totalorder %v5834_v50, 768 }
 0x863   : > { %v5819_v52 = vrot.slane %v5765_v2, 6 }
 0x864   : > { %6468 = vpow2.f32 %v5714_v46  ;;  %v5818_v46 = vrot.slane %v5750_v27, 7 }
 0x866   : > { %v5824_v56 = vsel %vm5823_vm11, %v5735_v55, %v5818_v46 }
 0x867   : > { %v5826_v25 = vsel %vm5825_vm14, %v5824_v56, %v5819_v52 }
 0x86a   : > { %v6469_v41 = vpop.eup %6468 }
 0x86b   : > { %v7932_v59 = vadd.f32 1.0, %v6469_v41  ;;  %v5828_v41 = vsel %vm5827_vm12, %v5820_v28, %v5821_v47 }
 0x86d   : > { %6470 = vrcp.f32 %v7932_v59  ;;  %v5808_v31 = vand.u32 2147483648, %v7932_v59  ;;  %v5806_v43 = vand.u32 2147483647, %v7932_v59  ;;  %vm5802_vm6 = vweird.f32 %v7932_v59 }
 0x86f   : > { %v5809_v49 = vor.u32 1.1754944e-38, %v5808_v31  ;;  %vm5807_vm13 = vcmp.eq.f32.partialorder %v5806_v43, 8.507059e+37 }
 0x873   : > { %v6471_v22 = vpop.eup %6470 }
 0x874   : > { %v5798_v3 = vmul.f32 %v6471_v22, %v7932_v59  ;;  %vm5803_vm9 = vweird.f32 %v6471_v22 }
 0x875   : > { %vm5804_vm7 = vmor %vm5802_vm6, %vm5803_vm9 }
 0x876   : > { %v5799_v36 = vsub.f32 1.0, %v5798_v3 }
 0x878   : > { %v5800_v40 = vmul.f32 %v6471_v22, %v5799_v36 }
 0x87a   : > { %v5801_v44 = vadd.f32 %v6471_v22, %v5800_v40 }
 0x87c   : > { %v5805_v53 = vsel %vm5804_vm7, %v6471_v22, %v5801_v44 }
 0x87d   : > { %v5810_v54 = vsel %vm5807_vm13, %v5809_v49, %v5805_v53 }
 0x87e   : > { %v5822_v7 = vrot.slane %v5810_v54, 3 }
 0x880   : > { %v5830_v45 = vsel %vm5829_vm15, %v5828_v41, %v5822_v7 }
 0x881   : > { %v5832_v58 = vsel %vm5831_vm1, %v5826_v25, %v5830_v45 }
 0x882   : > { %5838 = vst.msk [vmem:[%s1045_s29] sm:$0x3f] %vm5836_vm2, %v5832_v58 }
 0x883 PF: > { %s8160_s8 = sld [smem:[#allocation46_spill]]  ;;  %p8161_p13 = scmp.ge.s32.totalorder %s7148_s28, 2 }
 0x885   : > { %p6345_p12 = pnand %p8161_p13, %p7459_p4 }
 0x887   : > { %p6346_p8 = pneg %p6345_p12 }
 0x889   : > { %s5898_s7 = sand.u32 1, %s8160_s8  }
 0x88a   : > { %s5899_s2 = scalar_lea.sflag [#allocation4], %s5898_s7 }
 0x88b   : > { %7127 = dma.done.wait (%p6346_p8), %s5899_s2, 16  }
 0x88c   : > { %7129 = vsyncadd (%p6346_p8), %s5899_s2, 4294967280  ;;  %s5908_s12 = scalar_lea.sflag [#allocation33], %s5898_s7 }
 0x88d   : > { %7131 = dma.done.wait (%p6346_p8), %s5908_s12, 16  }
 0x88e   : > { %7133 = vsyncadd (%p6346_p8), %s5908_s12, 4294967280  ;;  %p50_p7 = scmp.ge.s32.totalorder %s7434_s22, 4   ;;  %s8162_s5 = smov %s7140_s26 }
 0x88f   : > { %s8163_s26 = smov %s7144_s27  ;;  %s8164_s27 = smov %s7446_s4 }
 0x890   : > { %s8165_s28 = smov %s7434_s22  ;;  %52 = sbr.rel (!%p50_p7) target bundleno = 38 (0x26), region = 253 }
 0x895   :  { %5913 = vsyncpa [#allocation3], 1 }
 0x896   :  { %5915 = vsyncpa [#allocation3 + $0x1], 1 }
 0x897   :  { %5916 = vsyncpa [#allocation6], 1 }
 0x898   :  { %5917 = vsyncpa [#allocation9], 1 }
 0x899   :  { %5918 = vsyncpa [#allocation12], 1 }
 0x89a   :  { %5919 = vsyncpa [#allocation15], 1 }
 0x89b   :  { %5920 = vsyncpa [#allocation18], 1 }
 0x89c   :  { %5921 = vsyncpa [#allocation21], 1 }
 0x89d   :  { %5922 = vsyncpa [#allocation24], 1 }
 0x89e   :  { %5923 = vsyncpa [#allocation27], 1 }
 0x89f   :  { %5924 = vsyncpa [#allocation30], 1 }
 0x8a0   :  { %5925 = vsyncpa [#allocation4], 1 }
 0x8a1   :  { %5927 = vsyncpa [#allocation4 + $0x1], 1 }
 0x8a2   :  { %5928 = vsyncpa [#allocation33], 1 }
 0x8a3   :  { %5930 = vsyncpa [#allocation33 + $0x1], 1 }

</bundles_post_ra>
